<compile_context>
chip_gen: v7x
topology: tpu7x:2x2x1
jax: 0.10.0
libtpu: 0.0.40
codegen_flags: <defaults>
</compile_context>

<pallas_src>
import functools
import math

import jax
import jax.numpy as jnp
import numpy as np
from jax.experimental import pallas as pl
from jax.experimental.pallas import tpu as pltpu


_LN_EPS = 1e-6  # module uses nn.LayerNorm(nhid, eps=1e-06)


def _gelu_exact(h):
    # PyTorch F.gelu default = exact erf-based gelu (kept for parity).
    return 0.5 * h * (1.0 + jax.lax.erf(h * jnp.float32(1.0 / math.sqrt(2.0))))


def _layernorm(h, gamma, beta):
    mu = jnp.mean(h, axis=-1, keepdims=True)
    d = h - mu                                    # reused for var and output
    var = jnp.mean(d * d, axis=-1, keepdims=True)
    return d * (jax.lax.rsqrt(var + _LN_EPS) * gamma) + beta


def esmlp_kernel(
    x_ref,                      # (TILE_N, nfeat)      bf16 (pre-cast in wrapper)
    wr1_ref, br1_ref,           # (nfeat, nhid) bf16 , (1, nhid) f32
    g0_ref, b0_ref,             # (1, nhid) f32        shared Mlp LayerNorm
    wr_ref, br_ref,             # (L, nhid, nhid) bf16, (L, 1, nhid) f32
    gr_ref, betar_ref,          # (L, 1, nhid) f32
    wc_ref, bc_ref,             # (nhid, C_PAD) bf16 , (1, C_PAD) f32 (pad = -1e30)
    out_ref,                    # (TILE_N, C_PAD)      bf16 softmax probabilities
    *, nlayers_minus_1, re_eps,
):
    x = x_ref[...]              # already bf16 -> straight into the MXU

    # ---- Mlp block, r-branch only (ir-branch never reaches the eval output) ----
    h = jnp.dot(x, wr1_ref[...], preferred_element_type=jnp.float32) + br1_ref[...]
    z0_r = _layernorm(_gelu_exact(h), g0_ref[...], b0_ref[...])

    # ---- (nlayers - 1) hidden layers, static unroll (weights VMEM-resident) ----
    z_r = z0_r
    for l in range(nlayers_minus_1):
        hr = _layernorm(_gelu_exact(z_r), gr_ref[l], betar_ref[l])
        z_r = jnp.dot(hr.astype(jnp.bfloat16), wr_ref[l],
                      preferred_element_type=jnp.float32) + br_ref[l]

    # ---- residual mix ----
    z_r = re_eps * z0_r + (1.0 - re_eps) * z_r

    # ---- classifier + softmax over the (lane-dense, padded) class dim ----
    # Padded columns: zero weights + f32 bias = -1e30  ->  exp underflows to 0.
    cf = jnp.dot(z_r.astype(jnp.bfloat16), wc_ref[...],
                 preferred_element_type=jnp.float32) + bc_ref[...]
    cf = cf - jnp.max(cf, axis=-1, keepdims=True)
    e = jnp.exp(cf)
    # approx=True -> EUP slot; rows sum to 1 only to ~1e-3 relative accuracy.
    inv = pl.reciprocal(jnp.sum(e, axis=-1, keepdims=True), approx=True)
    out_ref[...] = (e * inv).astype(out_ref.dtype)


def _cdiv(a, b):
    return (a + b - 1) // b


def _round_up(a, b):
    return _cdiv(a, b) * b


def _num_tensorcores():
    """2 TensorCores per chip on v7x; 1 on v5e/v6e (safe fallback = 1)."""
    try:
        kind = jax.devices()[0].device_kind.lower()
    except Exception:
        return 1
    return 2 if "v7" in kind else 1


def _choose_tiling(n, num_cores, max_tile=512):
    # Fewest grid steps (a multiple of the TC count, so no core idles on v7x)
    # with the row tile <= max_tile; tile rounded to the bf16 sublane quantum
    # (16) so blocks stay aligned while keeping row padding minimal.
    steps = _round_up(max(num_cores, _cdiv(n, max_tile)), num_cores)
    tile = _round_up(_cdiv(n, steps), 16)
    n_pad = _round_up(n, tile)
    return tile, n_pad, n_pad // tile


def esmlp_forward(x, params, *, re_eps=0.1, max_tile=512):
    """Eval-mode ESMLP forward. x: (N, nfeat) f32. Returns softmax probs (N, nclass) bf16."""
    N, nfeat = x.shape
    nhid = params["wr1"].shape[1]
    nclass = params["wc"].shape[1]
    L = int(params["wr_layers"].shape[0])
    bf16 = jnp.bfloat16

    # --- lane-dense padding of the class dim (avoid masked vst on tiny nclass) ---
    c_pad = _round_up(max(nclass, 1), 128)
    wc_pad = jnp.zeros((nhid, c_pad), jnp.float32).at[:, :nclass].set(params["wc"])
    bc_pad = jnp.full((1, c_pad), -1e30, jnp.float32).at[:, :nclass].set(params["bc"])

    # --- generation-aware row tiling (grid=1 on single-TC chips, 2k on v7x) ---
    num_cores = _num_tensorcores()
    tile, n_pad, grid_steps = _choose_tiling(N, num_cores, max_tile=max_tile)

    # x streamed as bf16 (half the HBM read + half the double-buffered VMEM).
    x_p = x.astype(bf16)
    if n_pad != N:
        x_p = jnp.pad(x_p, ((0, n_pad - N), (0, 0)))
    grid = (grid_steps,)

    if L > 0:
        wr_l = params["wr_layers"].astype(bf16)
        br_l = params["br_layers"]
        gr_l = params["gr_layers"]
        betar_l = params["betar_layers"]
    else:  # dummies (never read since nlayers_minus_1 == 0); avoid zero-sized blocks
        wr_l = jnp.zeros((1, nhid, nhid), bf16)
        br_l = jnp.zeros((1, 1, nhid), jnp.float32)
        gr_l = jnp.ones((1, 1, nhid), jnp.float32)
        betar_l = jnp.zeros((1, 1, nhid), jnp.float32)

    args = (
        x_p,
        params["wr1"].astype(bf16), params["br1"],
        params["g0"], params["b0"],
        wr_l, br_l, gr_l, betar_l,
        wc_pad.astype(bf16), bc_pad,
    )

    def const_spec(a):
        nd = a.ndim
        return pl.BlockSpec(a.shape, lambda i, _nd=nd: (0,) * _nd)

    in_specs = [pl.BlockSpec((tile, nfeat), lambda i: (i, 0))]
    in_specs += [const_spec(a) for a in args[1:]]

    kernel = functools.partial(esmlp_kernel, nlayers_minus_1=L, re_eps=float(re_eps))

    # --- VMEM budget derived from actual block sizes (2x headroom, 8-32 MiB clamp) ---
    weight_bytes = sum(int(np.prod(a.shape)) * a.dtype.itemsize for a in args[1:])
    stream_bytes = 2 * (tile * nfeat * 2 + tile * c_pad * 2)   # double-buffered bf16 x / out
    interm_bytes = 4 * tile * nhid * 4                          # z0_r / z_r / temps (f32 spill)
    vmem_limit = int(min(max(2 * (stream_bytes + 2 * weight_bytes + interm_bytes),
                             8 << 20), 32 << 20))

    # Advisory cost estimate for XLA's scheduler.
    flops = 2 * n_pad * (nfeat * nhid + L * nhid * nhid + nhid * c_pad)
    transcendentals = n_pad * (nhid * (L + 1) + c_pad)
    bytes_accessed = int(n_pad * nfeat * 2 + n_pad * c_pad * 2 + weight_bytes)

    out = pl.pallas_call(
        kernel,
        out_shape=jax.ShapeDtypeStruct((n_pad, c_pad), bf16),
        grid=grid,
        in_specs=in_specs,
        out_specs=pl.BlockSpec((tile, c_pad), lambda i: (i, 0)),
        compiler_params=pltpu.CompilerParams(
            # Row axis is embarrassingly parallel -> megacore sharding on v7x;
            # on single-TC v5e/v6e the grid is already collapsed to 1 step.
            dimension_semantics=("parallel",),
            vmem_limit_bytes=vmem_limit,
        ),
        cost_estimate=pl.CostEstimate(
            flops=flops,
            transcendentals=transcendentals,
            bytes_accessed=bytes_accessed,
        ),
    )(*args)

    # NOTE: real consumers should take the padded bf16 slab directly (this slice
    # is an extra XLA copy of the output); kept here to return (N, nclass).
    return out[:N, :nclass]


# ----------------------- deterministic parameter init -----------------------
def xavier_uniform(key, fan_in, fan_out):
    bound = math.sqrt(6.0 / (fan_in + fan_out))
    return jax.random.uniform(key, (fan_in, fan_out), jnp.float32, -bound, bound)


def init_params(key, nfeat, nhid, nclass, nlayers):
    # Only the r-branch + classifier parameters are needed for the eval output;
    # the module's ir-branch / conv_weights never reach class_logits in eval.
    L = nlayers - 1
    ks = jax.random.split(key, 8)
    params = {
        "wr1": xavier_uniform(ks[0], nfeat, nhid),
        "br1": jax.random.normal(ks[1], (1, nhid), jnp.float32) * 1e-6,
        # shared LayerNorm inside Mlp (default init: gamma=1, beta=0)
        "g0": jnp.ones((1, nhid), jnp.float32),
        "b0": jnp.zeros((1, nhid), jnp.float32),
        "wr_layers": (jnp.stack([xavier_uniform(k, nhid, nhid)
                                 for k in jax.random.split(ks[2], L)]) if L
                      else jnp.zeros((0, nhid, nhid), jnp.float32)),
        "br_layers": jax.random.normal(ks[3], (L, 1, nhid), jnp.float32) * 1e-6,
        "gr_layers": jnp.ones((L, 1, nhid), jnp.float32),
        "betar_layers": jnp.zeros((L, 1, nhid), jnp.float32),
        "wc": xavier_uniform(ks[4], nhid, nclass),
        "bc": jax.random.normal(ks[5], (1, nclass), jnp.float32) * 1e-6,
    }
    return params


# ----------------------------- pure-JAX references -----------------------------
def esmlp_reference(x, p, re_eps=0.1, bf16_matmuls=False):
    def mm(a, w):
        if bf16_matmuls:
            return jnp.dot(a.astype(jnp.bfloat16), w.astype(jnp.bfloat16),
                           preferred_element_type=jnp.float32)
        return jnp.dot(a, w, preferred_element_type=jnp.float32)

    def ln(h, g, b):
        mu = jnp.mean(h, -1, keepdims=True)
        var = jnp.mean((h - mu) ** 2, -1, keepdims=True)
        return (h - mu) * jax.lax.rsqrt(var + _LN_EPS) * g + b

    gelu = lambda h: 0.5 * h * (1.0 + jax.lax.erf(h / jnp.sqrt(2.0)))
    z0_r = ln(gelu(mm(x, p["wr1"]) + p["br1"]), p["g0"], p["b0"])
    z_r = z0_r
    for l in range(p["wr_layers"].shape[0]):
        hr = ln(gelu(z_r), p["gr_layers"][l], p["betar_layers"][l])
        z_r = mm(hr, p["wr_layers"][l]) + p["br_layers"][l]
    z_r = re_eps * z0_r + (1 - re_eps) * z_r
    cf = mm(z_r, p["wc"]) + p["bc"]
    return jax.nn.softmax(cf, axis=-1)


if __name__ == "__main__":
    # Small, module-consistent shapes: 512 graph nodes, nfeat=64, nhid=64,
    # 8 classes, nlayers=3 (=> two hidden Linear+LayerNorm layers).
    N, NFEAT, NHID, NCLASS, NLAYERS = 512, 64, 64, 8, 3

    key = jax.random.PRNGKey(0)
    kx, kp = jax.random.split(key)
    x = jax.random.normal(kx, (N, NFEAT), jnp.float32)
    params = init_params(kp, NFEAT, NHID, NCLASS, NLAYERS)

    probs = jax.block_until_ready(esmlp_forward(x, params, re_eps=0.1))
    assert probs.shape == (N, NCLASS)
    probs_f32 = np.asarray(probs, dtype=np.float32)

    # Check vs. a reference that mirrors the kernel's bf16 matmul operands
    # (extra slack for the bf16 output store + approx softmax reciprocal).
    ref_bf16 = jax.block_until_ready(esmlp_reference(x, params, re_eps=0.1,
                                                     bf16_matmuls=True))
    np.testing.assert_allclose(probs_f32, np.asarray(ref_bf16),
                               atol=2e-2, rtol=2e-2)

    # Looser sanity check vs. the pure-f32 reference (bf16 quantization drift).
    ref_f32 = jax.block_until_ready(esmlp_reference(x, params, re_eps=0.1,
                                                    bf16_matmuls=False))
    np.testing.assert_allclose(probs_f32, np.asarray(ref_f32),
                               atol=5e-2, rtol=0)

    print("KERNEL_OK")
</pallas_src>

<mosaic_0001>
module attributes {stable_mosaic.version = 11 : i64} {
  func.func @esmlp_kernel(%arg0: i32, %arg1: memref<512x64xbf16, #tpu.memory_space<vmem>>, %arg2: memref<64x64xbf16, #tpu.memory_space<vmem>>, %arg3: memref<1x64xf32, #tpu.memory_space<vmem>>, %arg4: memref<1x64xf32, #tpu.memory_space<vmem>>, %arg5: memref<1x64xf32, #tpu.memory_space<vmem>>, %arg6: memref<2x64x64xbf16, #tpu.memory_space<vmem>>, %arg7: memref<2x1x64xf32, #tpu.memory_space<vmem>>, %arg8: memref<2x1x64xf32, #tpu.memory_space<vmem>>, %arg9: memref<2x1x64xf32, #tpu.memory_space<vmem>>, %arg10: memref<64x128xbf16, #tpu.memory_space<vmem>>, %arg11: memref<1x128xf32, #tpu.memory_space<vmem>>, %arg12: memref<512x128xbf16, #tpu.memory_space<vmem>>) attributes {dimension_semantics = [#tpu.dimension_semantics<parallel>], iteration_bounds = array<i64: 1>, scalar_prefetch = 0 : i64, scratch_operands = 0 : i64, tpu.core_type = #tpu.core_type<tc>, window_params = [{transform_indices = @transform_0, window_bounds = array<i64: 512, 64>}, {pipeline_mode = #tpu.pipeline_mode<synchronous>, transform_indices = @transform_1, window_bounds = array<i64: 64, 64>}, {pipeline_mode = #tpu.pipeline_mode<synchronous>, transform_indices = @transform_2, window_bounds = array<i64: 1, 64>}, {pipeline_mode = #tpu.pipeline_mode<synchronous>, transform_indices = @transform_3, window_bounds = array<i64: 1, 64>}, {pipeline_mode = #tpu.pipeline_mode<synchronous>, transform_indices = @transform_4, window_bounds = array<i64: 1, 64>}, {pipeline_mode = #tpu.pipeline_mode<synchronous>, transform_indices = @transform_5, window_bounds = array<i64: 2, 64, 64>}, {pipeline_mode = #tpu.pipeline_mode<synchronous>, transform_indices = @transform_6, window_bounds = array<i64: 2, 1, 64>}, {pipeline_mode = #tpu.pipeline_mode<synchronous>, transform_indices = @transform_7, window_bounds = array<i64: 2, 1, 64>}, {pipeline_mode = #tpu.pipeline_mode<synchronous>, transform_indices = @transform_8, window_bounds = array<i64: 2, 1, 64>}, {pipeline_mode = #tpu.pipeline_mode<synchronous>, transform_indices = @transform_9, window_bounds = array<i64: 64, 128>}, {pipeline_mode = #tpu.pipeline_mode<synchronous>, transform_indices = @transform_10, window_bounds = array<i64: 1, 128>}, {transform_indices = @transform_11, window_bounds = array<i64: 512, 128>}]} {
    %c0 = arith.constant 0 : index
    %c0_0 = arith.constant 0 : index
    %0 = vector.load %arg1[%c0, %c0_0] : memref<512x64xbf16, #tpu.memory_space<vmem>>, vector<512x64xbf16>
    %c0_1 = arith.constant 0 : index
    %c0_2 = arith.constant 0 : index
    %1 = vector.load %arg2[%c0_1, %c0_2] : memref<64x64xbf16, #tpu.memory_space<vmem>>, vector<64x64xbf16>
    %cst = arith.constant dense<0.000000e+00> : vector<512x64xf32>
    %2 = tpu.matmul %0, %1, %cst {dimension_numbers = #tpu.dot_dimension_numbers<[1], [0], [0], [1], [0, 0, 1, 1], [], []>} : vector<512x64xbf16>, vector<64x64xbf16>, vector<512x64xf32> -> vector<512x64xf32>
    %c0_3 = arith.constant 0 : index
    %c0_4 = arith.constant 0 : index
    %3 = vector.load %arg3[%c0_3, %c0_4] : memref<1x64xf32, #tpu.memory_space<vmem>>, vector<1x64xf32>
    %4 = vector.broadcast %3 : vector<1x64xf32> to vector<512x64xf32>
    %5 = arith.addf %2, %4 : vector<512x64xf32>
    %cst_5 = arith.constant 5.000000e-01 : f32
    %6 = vector.broadcast %cst_5 : f32 to vector<512x64xf32>
    %7 = arith.mulf %6, %5 : vector<512x64xf32>
    %cst_6 = arith.constant 0.707106769 : f32
    %8 = vector.broadcast %cst_6 : f32 to vector<512x64xf32>
    %9 = arith.mulf %5, %8 : vector<512x64xf32>
    %10 = math.erf %9 : vector<512x64xf32>
    %cst_7 = arith.constant 1.000000e+00 : f32
    %11 = vector.broadcast %cst_7 : f32 to vector<512x64xf32>
    %12 = arith.addf %11, %10 : vector<512x64xf32>
    %13 = arith.mulf %7, %12 : vector<512x64xf32>
    %c0_8 = arith.constant 0 : index
    %c0_9 = arith.constant 0 : index
    %14 = vector.load %arg4[%c0_8, %c0_9] : memref<1x64xf32, #tpu.memory_space<vmem>>, vector<1x64xf32>
    %c0_10 = arith.constant 0 : index
    %c0_11 = arith.constant 0 : index
    %15 = vector.load %arg5[%c0_10, %c0_11] : memref<1x64xf32, #tpu.memory_space<vmem>>, vector<1x64xf32>
    %cst_12 = arith.constant dense<0.000000e+00> : vector<512xf32>
    %16 = vector.multi_reduction <add>, %13, %cst_12 [1] : vector<512x64xf32> to vector<512xf32>
    %17 = vector.shape_cast %16 : vector<512xf32> to vector<512x1xf32>
    %cst_13 = arith.constant 6.400000e+01 : f32
    %18 = vector.broadcast %cst_13 : f32 to vector<512x1xf32>
    %19 = arith.divf %17, %18 : vector<512x1xf32>
    %20 = vector.broadcast %19 : vector<512x1xf32> to vector<512x64xf32>
    %21 = arith.subf %13, %20 : vector<512x64xf32>
    %22 = arith.mulf %21, %21 : vector<512x64xf32>
    %cst_14 = arith.constant dense<0.000000e+00> : vector<512xf32>
    %23 = vector.multi_reduction <add>, %22, %cst_14 [1] : vector<512x64xf32> to vector<512xf32>
    %24 = vector.shape_cast %23 : vector<512xf32> to vector<512x1xf32>
    %cst_15 = arith.constant 6.400000e+01 : f32
    %25 = vector.broadcast %cst_15 : f32 to vector<512x1xf32>
    %26 = arith.divf %24, %25 : vector<512x1xf32>
    %cst_16 = arith.constant 9.99999997E-7 : f32
    %27 = vector.broadcast %cst_16 : f32 to vector<512x1xf32>
    %28 = arith.addf %26, %27 : vector<512x1xf32>
    %29 = math.rsqrt %28 : vector<512x1xf32>
    %30 = vector.broadcast %29 : vector<512x1xf32> to vector<512x64xf32>
    %31 = vector.broadcast %14 : vector<1x64xf32> to vector<512x64xf32>
    %32 = arith.mulf %30, %31 : vector<512x64xf32>
    %33 = arith.mulf %21, %32 : vector<512x64xf32>
    %34 = vector.broadcast %15 : vector<1x64xf32> to vector<512x64xf32>
    %35 = arith.addf %33, %34 : vector<512x64xf32>
    %cst_17 = arith.constant 5.000000e-01 : f32
    %36 = vector.broadcast %cst_17 : f32 to vector<512x64xf32>
    %37 = arith.mulf %36, %35 : vector<512x64xf32>
    %cst_18 = arith.constant 0.707106769 : f32
    %38 = vector.broadcast %cst_18 : f32 to vector<512x64xf32>
    %39 = arith.mulf %35, %38 : vector<512x64xf32>
    %40 = math.erf %39 : vector<512x64xf32>
    %cst_19 = arith.constant 1.000000e+00 : f32
    %41 = vector.broadcast %cst_19 : f32 to vector<512x64xf32>
    %42 = arith.addf %41, %40 : vector<512x64xf32>
    %43 = arith.mulf %37, %42 : vector<512x64xf32>
    %c0_20 = arith.constant 0 : index
    %c0_21 = arith.constant 0 : index
    %c0_22 = arith.constant 0 : index
    %44 = vector.load %arg8[%c0_20, %c0_21, %c0_22] : memref<2x1x64xf32, #tpu.memory_space<vmem>>, vector<1x1x64xf32>
    %45 = vector.shape_cast %44 : vector<1x1x64xf32> to vector<1x64xf32>
    %c0_23 = arith.constant 0 : index
    %c0_24 = arith.constant 0 : index
    %c0_25 = arith.constant 0 : index
    %46 = vector.load %arg9[%c0_23, %c0_24, %c0_25] : memref<2x1x64xf32, #tpu.memory_space<vmem>>, vector<1x1x64xf32>
    %47 = vector.shape_cast %46 : vector<1x1x64xf32> to vector<1x64xf32>
    %cst_26 = arith.constant dense<0.000000e+00> : vector<512xf32>
    %48 = vector.multi_reduction <add>, %43, %cst_26 [1] : vector<512x64xf32> to vector<512xf32>
    %49 = vector.shape_cast %48 : vector<512xf32> to vector<512x1xf32>
    %cst_27 = arith.constant 6.400000e+01 : f32
    %50 = vector.broadcast %cst_27 : f32 to vector<512x1xf32>
    %51 = arith.divf %49, %50 : vector<512x1xf32>
    %52 = vector.broadcast %51 : vector<512x1xf32> to vector<512x64xf32>
    %53 = arith.subf %43, %52 : vector<512x64xf32>
    %54 = arith.mulf %53, %53 : vector<512x64xf32>
    %cst_28 = arith.constant dense<0.000000e+00> : vector<512xf32>
    %55 = vector.multi_reduction <add>, %54, %cst_28 [1] : vector<512x64xf32> to vector<512xf32>
    %56 = vector.shape_cast %55 : vector<512xf32> to vector<512x1xf32>
    %cst_29 = arith.constant 6.400000e+01 : f32
    %57 = vector.broadcast %cst_29 : f32 to vector<512x1xf32>
    %58 = arith.divf %56, %57 : vector<512x1xf32>
    %cst_30 = arith.constant 9.99999997E-7 : f32
    %59 = vector.broadcast %cst_30 : f32 to vector<512x1xf32>
    %60 = arith.addf %58, %59 : vector<512x1xf32>
    %61 = math.rsqrt %60 : vector<512x1xf32>
    %62 = vector.broadcast %61 : vector<512x1xf32> to vector<512x64xf32>
    %63 = vector.broadcast %45 : vector<1x64xf32> to vector<512x64xf32>
    %64 = arith.mulf %62, %63 : vector<512x64xf32>
    %65 = arith.mulf %53, %64 : vector<512x64xf32>
    %66 = vector.broadcast %47 : vector<1x64xf32> to vector<512x64xf32>
    %67 = arith.addf %65, %66 : vector<512x64xf32>
    %68 = arith.truncf %67 : vector<512x64xf32> to vector<512x64xbf16>
    %c0_31 = arith.constant 0 : index
    %c0_32 = arith.constant 0 : index
    %c0_33 = arith.constant 0 : index
    %69 = vector.load %arg6[%c0_31, %c0_32, %c0_33] : memref<2x64x64xbf16, #tpu.memory_space<vmem>>, vector<1x64x64xbf16>
    %70 = vector.shape_cast %69 : vector<1x64x64xbf16> to vector<64x64xbf16>
    %cst_34 = arith.constant dense<0.000000e+00> : vector<512x64xf32>
    %71 = tpu.matmul %68, %70, %cst_34 {dimension_numbers = #tpu.dot_dimension_numbers<[1], [0], [0], [1], [0, 0, 1, 1], [], []>} : vector<512x64xbf16>, vector<64x64xbf16>, vector<512x64xf32> -> vector<512x64xf32>
    %c0_35 = arith.constant 0 : index
    %c0_36 = arith.constant 0 : index
    %c0_37 = arith.constant 0 : index
    %72 = vector.load %arg7[%c0_35, %c0_36, %c0_37] : memref<2x1x64xf32, #tpu.memory_space<vmem>>, vector<1x1x64xf32>
    %73 = vector.shape_cast %72 : vector<1x1x64xf32> to vector<1x64xf32>
    %74 = vector.broadcast %73 : vector<1x64xf32> to vector<512x64xf32>
    %75 = arith.addf %71, %74 : vector<512x64xf32>
    %cst_38 = arith.constant 5.000000e-01 : f32
    %76 = vector.broadcast %cst_38 : f32 to vector<512x64xf32>
    %77 = arith.mulf %76, %75 : vector<512x64xf32>
    %cst_39 = arith.constant 0.707106769 : f32
    %78 = vector.broadcast %cst_39 : f32 to vector<512x64xf32>
    %79 = arith.mulf %75, %78 : vector<512x64xf32>
    %80 = math.erf %79 : vector<512x64xf32>
    %cst_40 = arith.constant 1.000000e+00 : f32
    %81 = vector.broadcast %cst_40 : f32 to vector<512x64xf32>
    %82 = arith.addf %81, %80 : vector<512x64xf32>
    %83 = arith.mulf %77, %82 : vector<512x64xf32>
    %c1 = arith.constant 1 : index
    %c0_41 = arith.constant 0 : index
    %c0_42 = arith.constant 0 : index
    %84 = vector.load %arg8[%c1, %c0_41, %c0_42] : memref<2x1x64xf32, #tpu.memory_space<vmem>>, vector<1x1x64xf32>
    %85 = vector.shape_cast %84 : vector<1x1x64xf32> to vector<1x64xf32>
    %c1_43 = arith.constant 1 : index
    %c0_44 = arith.constant 0 : index
    %c0_45 = arith.constant 0 : index
    %86 = vector.load %arg9[%c1_43, %c0_44, %c0_45] : memref<2x1x64xf32, #tpu.memory_space<vmem>>, vector<1x1x64xf32>
    %87 = vector.shape_cast %86 : vector<1x1x64xf32> to vector<1x64xf32>
    %cst_46 = arith.constant dense<0.000000e+00> : vector<512xf32>
    %88 = vector.multi_reduction <add>, %83, %cst_46 [1] : vector<512x64xf32> to vector<512xf32>
    %89 = vector.shape_cast %88 : vector<512xf32> to vector<512x1xf32>
    %cst_47 = arith.constant 6.400000e+01 : f32
    %90 = vector.broadcast %cst_47 : f32 to vector<512x1xf32>
    %91 = arith.divf %89, %90 : vector<512x1xf32>
    %92 = vector.broadcast %91 : vector<512x1xf32> to vector<512x64xf32>
    %93 = arith.subf %83, %92 : vector<512x64xf32>
    %94 = arith.mulf %93, %93 : vector<512x64xf32>
    %cst_48 = arith.constant dense<0.000000e+00> : vector<512xf32>
    %95 = vector.multi_reduction <add>, %94, %cst_48 [1] : vector<512x64xf32> to vector<512xf32>
    %96 = vector.shape_cast %95 : vector<512xf32> to vector<512x1xf32>
    %cst_49 = arith.constant 6.400000e+01 : f32
    %97 = vector.broadcast %cst_49 : f32 to vector<512x1xf32>
    %98 = arith.divf %96, %97 : vector<512x1xf32>
    %cst_50 = arith.constant 9.99999997E-7 : f32
    %99 = vector.broadcast %cst_50 : f32 to vector<512x1xf32>
    %100 = arith.addf %98, %99 : vector<512x1xf32>
    %101 = math.rsqrt %100 : vector<512x1xf32>
    %102 = vector.broadcast %101 : vector<512x1xf32> to vector<512x64xf32>
    %103 = vector.broadcast %85 : vector<1x64xf32> to vector<512x64xf32>
    %104 = arith.mulf %102, %103 : vector<512x64xf32>
    %105 = arith.mulf %93, %104 : vector<512x64xf32>
    %106 = vector.broadcast %87 : vector<1x64xf32> to vector<512x64xf32>
    %107 = arith.addf %105, %106 : vector<512x64xf32>
    %108 = arith.truncf %107 : vector<512x64xf32> to vector<512x64xbf16>
    %c1_51 = arith.constant 1 : index
    %c0_52 = arith.constant 0 : index
    %c0_53 = arith.constant 0 : index
    %109 = vector.load %arg6[%c1_51, %c0_52, %c0_53] : memref<2x64x64xbf16, #tpu.memory_space<vmem>>, vector<1x64x64xbf16>
    %110 = vector.shape_cast %109 : vector<1x64x64xbf16> to vector<64x64xbf16>
    %cst_54 = arith.constant dense<0.000000e+00> : vector<512x64xf32>
    %111 = tpu.matmul %108, %110, %cst_54 {dimension_numbers = #tpu.dot_dimension_numbers<[1], [0], [0], [1], [0, 0, 1, 1], [], []>} : vector<512x64xbf16>, vector<64x64xbf16>, vector<512x64xf32> -> vector<512x64xf32>
    %c1_55 = arith.constant 1 : index
    %c0_56 = arith.constant 0 : index
    %c0_57 = arith.constant 0 : index
    %112 = vector.load %arg7[%c1_55, %c0_56, %c0_57] : memref<2x1x64xf32, #tpu.memory_space<vmem>>, vector<1x1x64xf32>
    %113 = vector.shape_cast %112 : vector<1x1x64xf32> to vector<1x64xf32>
    %114 = vector.broadcast %113 : vector<1x64xf32> to vector<512x64xf32>
    %115 = arith.addf %111, %114 : vector<512x64xf32>
    %cst_58 = arith.constant 1.000000e-01 : f32
    %116 = vector.broadcast %cst_58 : f32 to vector<512x64xf32>
    %117 = arith.mulf %116, %35 : vector<512x64xf32>
    %cst_59 = arith.constant 0.899999976 : f32
    %118 = vector.broadcast %cst_59 : f32 to vector<512x64xf32>
    %119 = arith.mulf %118, %115 : vector<512x64xf32>
    %120 = arith.addf %117, %119 : vector<512x64xf32>
    %121 = arith.truncf %120 : vector<512x64xf32> to vector<512x64xbf16>
    %c0_60 = arith.constant 0 : index
    %c0_61 = arith.constant 0 : index
    %122 = vector.load %arg10[%c0_60, %c0_61] : memref<64x128xbf16, #tpu.memory_space<vmem>>, vector<64x128xbf16>
    %cst_62 = arith.constant dense<0.000000e+00> : vector<512x128xf32>
    %123 = tpu.matmul %121, %122, %cst_62 {dimension_numbers = #tpu.dot_dimension_numbers<[1], [0], [0], [1], [0, 0, 1, 1], [], []>} : vector<512x64xbf16>, vector<64x128xbf16>, vector<512x128xf32> -> vector<512x128xf32>
    %c0_63 = arith.constant 0 : index
    %c0_64 = arith.constant 0 : index
    %124 = vector.load %arg11[%c0_63, %c0_64] : memref<1x128xf32, #tpu.memory_space<vmem>>, vector<1x128xf32>
    %125 = vector.broadcast %124 : vector<1x128xf32> to vector<512x128xf32>
    %126 = arith.addf %123, %125 : vector<512x128xf32>
    %cst_65 = arith.constant dense<0xFF800000> : vector<512xf32>
    %127 = vector.multi_reduction <maximumf>, %126, %cst_65 [1] : vector<512x128xf32> to vector<512xf32>
    %128 = vector.shape_cast %127 : vector<512xf32> to vector<512x1xf32>
    %129 = vector.broadcast %128 : vector<512x1xf32> to vector<512x128xf32>
    %130 = arith.subf %126, %129 : vector<512x128xf32>
    %131 = math.exp %130 : vector<512x128xf32>
    %cst_66 = arith.constant dense<0.000000e+00> : vector<512xf32>
    %132 = vector.multi_reduction <add>, %131, %cst_66 [1] : vector<512x128xf32> to vector<512xf32>
    %133 = vector.shape_cast %132 : vector<512xf32> to vector<512x1xf32>
    %134 = tpu.reciprocal %133 {approx = true} : vector<512x1xf32> -> vector<512x1xf32>
    %135 = vector.broadcast %134 : vector<512x1xf32> to vector<512x128xf32>
    %136 = arith.mulf %131, %135 : vector<512x128xf32>
    %137 = arith.truncf %136 : vector<512x128xf32> to vector<512x128xbf16>
    %c0_67 = arith.constant 0 : index
    %c0_68 = arith.constant 0 : index
    %138 = vector.load %arg12[%c0_67, %c0_68] : memref<512x128xbf16, #tpu.memory_space<vmem>>, vector<512x128xbf16>
    tpu.vector_store %arg12[%c0_67, %c0_68], %137 {strides = array<i32>} : memref<512x128xbf16, #tpu.memory_space<vmem>>, vector<512x128xbf16>,
    return
  }
  func.func @transform_0(%arg0: i32) -> (i32, i32) {
    %c0_i32 = arith.constant 0 : i32
    %c0_i32_0 = arith.constant 0 : i32
    return %arg0, %c0_i32 : i32, i32
  }
  func.func @transform_1(%arg0: i32) -> (i32, i32) {
    %c0_i32 = arith.constant 0 : i32
    %c0_i32_0 = arith.constant 0 : i32
    %c0_i32_1 = arith.constant 0 : i32
    return %c0_i32, %c0_i32_0 : i32, i32
  }
  func.func @transform_2(%arg0: i32) -> (i32, i32) {
    %c0_i32 = arith.constant 0 : i32
    %c0_i32_0 = arith.constant 0 : i32
    %c0_i32_1 = arith.constant 0 : i32
    return %c0_i32, %c0_i32_0 : i32, i32
  }
  func.func @transform_3(%arg0: i32) -> (i32, i32) {
    %c0_i32 = arith.constant 0 : i32
    %c0_i32_0 = arith.constant 0 : i32
    %c0_i32_1 = arith.constant 0 : i32
    return %c0_i32, %c0_i32_0 : i32, i32
  }
  func.func @transform_4(%arg0: i32) -> (i32, i32) {
    %c0_i32 = arith.constant 0 : i32
    %c0_i32_0 = arith.constant 0 : i32
    %c0_i32_1 = arith.constant 0 : i32
    return %c0_i32, %c0_i32_0 : i32, i32
  }
  func.func @transform_5(%arg0: i32) -> (i32, i32, i32) {
    %c0_i32 = arith.constant 0 : i32
    %c0_i32_0 = arith.constant 0 : i32
    %c0_i32_1 = arith.constant 0 : i32
    %c0_i32_2 = arith.constant 0 : i32
    return %c0_i32, %c0_i32_0, %c0_i32_1 : i32, i32, i32
  }
  func.func @transform_6(%arg0: i32) -> (i32, i32, i32) {
    %c0_i32 = arith.constant 0 : i32
    %c0_i32_0 = arith.constant 0 : i32
    %c0_i32_1 = arith.constant 0 : i32
    %c0_i32_2 = arith.constant 0 : i32
    return %c0_i32, %c0_i32_0, %c0_i32_1 : i32, i32, i32
  }
  func.func @transform_7(%arg0: i32) -> (i32, i32, i32) {
    %c0_i32 = arith.constant 0 : i32
    %c0_i32_0 = arith.constant 0 : i32
    %c0_i32_1 = arith.constant 0 : i32
    %c0_i32_2 = arith.constant 0 : i32
    return %c0_i32, %c0_i32_0, %c0_i32_1 : i32, i32, i32
  }
  func.func @transform_8(%arg0: i32) -> (i32, i32, i32) {
    %c0_i32 = arith.constant 0 : i32
    %c0_i32_0 = arith.constant 0 : i32
    %c0_i32_1 = arith.constant 0 : i32
    %c0_i32_2 = arith.constant 0 : i32
    return %c0_i32, %c0_i32_0, %c0_i32_1 : i32, i32, i32
  }
  func.func @transform_9(%arg0: i32) -> (i32, i32) {
    %c0_i32 = arith.constant 0 : i32
    %c0_i32_0 = arith.constant 0 : i32
    %c0_i32_1 = arith.constant 0 : i32
    return %c0_i32, %c0_i32_0 : i32, i32
  }
  func.func @transform_10(%arg0: i32) -> (i32, i32) {
    %c0_i32 = arith.constant 0 : i32
    %c0_i32_0 = arith.constant 0 : i32
    %c0_i32_1 = arith.constant 0 : i32
    return %c0_i32, %c0_i32_0 : i32, i32
  }
  func.func @transform_11(%arg0: i32) -> (i32, i32) {
    %c0_i32 = arith.constant 0 : i32
    %c0_i32_0 = arith.constant 0 : i32
    return %arg0, %c0_i32 : i32, i32
  }
}

</mosaic_0001>

<bundles_post_ra>
// kernel: tpu_custom_call.1
= control target key start
LH: loop header
LB: loop body
LE: loop exit
PB: predicated region body
PF: predicated region fallthrough
CT: control target
= control target key end

     0   :  { %vm303_vm0 = vcmask 523264   ;;  %s13748_s0 = inlined_call_operand.vmem [shape: bf16[512,64], index: 0, kind: input, shape index: {}]   ;;  %s13749_s1 = inlined_call_operand.vmem [shape: bf16[64,64], index: 1, kind: input, shape index: {}]   ;;  %s13750_s2 = inlined_call_operand.vmem [shape: f32[1,64], index: 2, kind: input, shape index: {}]   ;;  %s13751_s3 = inlined_call_operand.vmem [shape: f32[1,64], index: 3, kind: input, shape index: {}]   ;;  %s13752_s4 = inlined_call_operand.vmem [shape: f32[1,64], index: 4, kind: input, shape index: {}]   ;;  %s13753_s5 = inlined_call_operand.vmem [shape: bf16[2,64,64], index: 5, kind: input, shape index: {}]   ;;  %s13754_s6 = inlined_call_operand.vmem [shape: f32[2,1,64], index: 6, kind: input, shape index: {}]   ;;  %s13755_s7 = inlined_call_operand.vmem [shape: f32[2,1,64], index: 7, kind: input, shape index: {}]   ;;  %s13756_s8 = inlined_call_operand.vmem [shape: f32[2,1,64], index: 8, kind: input, shape index: {}]   ;;  %s13757_s9 = inlined_call_operand.vmem [shape: bf16[64,128], index: 9, kind: input, shape index: {}]   ;;  %s13758_s10 = inlined_call_operand.vmem [shape: f32[1,128], index: 10, kind: input, shape index: {}]   ;;  %s13759_s11 = inlined_call_operand.hbm [shape: bf16[512,128], index: 11, kind: output, shape index: {}]  }
   0x1   :  { %v7999_v0 = vld [vmem:[%s13749_s1] sm:$0xff]   ;;  %v8000_v1 = vld [vmem:[%s13749_s1 + $0x8] sm:$0xff]   ;;  %v8001_v2 = vld [vmem:[%s13749_s1 + $0x10] sm:$0xff]  }
   0x2   :  { %7708 = vmatprep.subr.bf16.mxu0 %v7999_v0  ;;  %v8003_v3 = vld [vmem:[%s13748_s0] sm:$0xff]   ;;  %v8002_v4 = vld [vmem:[%s13749_s1 + $0x18] sm:$0xff]   ;;  %v8004_v5 = vld [vmem:[%s13748_s0 + $0x8] sm:$0xff]  }
   0x3   :  { %7709 = vmatpush3.bf16.msra.mxu0 %v7999_v0  ;;  %7716 = vmatprep.mubr.msk.bf16.mxu0 %vm303_vm0, %v8003_v3  ;;  %v8005_v6 = vld [vmem:[%s13748_s0 + $0x10] sm:$0xff]   ;;  %v8006_v7 = vld [vmem:[%s13748_s0 + $0x18] sm:$0xff]   ;;  %v8007_v8 = vld [vmem:[%s13748_s0 + $0x20] sm:$0xff]  }
   0x4   :  { %7710 = vmatprep.subr.bf16.mxu0 %v8000_v1  ;;  %v8008_v9 = vld [vmem:[%s13748_s0 + $0x28] sm:$0xff]   ;;  %v8009_v10 = vld [vmem:[%s13748_s0 + $0x30] sm:$0xff]   ;;  %v8010_v11 = vld [vmem:[%s13748_s0 + $0x38] sm:$0xff]  }
   0x5   :  { %v8011_v12 = vld [vmem:[%s13748_s0 + $0x40] sm:$0xff]  }
   0x7   :  { %7711 = vmatpush3.bf16.msra.mxu0 %v8000_v1 }
   0x8   :  { %7712 = vmatprep.subr.bf16.mxu0 %v8001_v2 }
   0xb   :  { %7713 = vmatpush3.bf16.msra.mxu0 %v8001_v2 }
   0xc   :  { %7714 = vmatprep.subr.bf16.mxu0 %v8002_v4 }
   0xf   :  { %7715 = vmatpush3.bf16.msra.mxu0 %v8002_v4 }
  0x12   :  { %7717 = vmatmul.mubr.msk.bf16.vlgmr.msra.gmra.mrb[0].mxu0 %vm303_vm0, %v8004_v5 }
  0x13   :  { %7720 = vmatprep.mubr.msk.bf16.mxu0 %vm303_vm0, %v8005_v6 }
  0x1a   :  { %7721 = vmatmul.mubr.msk.bf16.gmra.mrb[4].mxu0 %vm303_vm0, %v8006_v7 }
  0x1b   :  { %7724 = vmatprep.mubr.msk.bf16.mxu0 %vm303_vm0, %v8007_v8 }
  0x22   :  { %7725 = vmatmul.mubr.msk.bf16.gmra.mrb[8].mxu0 %vm303_vm0, %v8008_v9 }
  0x23   :  { %7728 = vmatprep.mubr.msk.bf16.mxu0 %vm303_vm0, %v8009_v10 }
  0x2a   :  { %7729 = vmatmul.mubr.msk.bf16.gmra.mrb[12].mxu0 %vm303_vm0, %v8010_v11 }
  0x2b   :  { %7732 = vmatprep.mubr.msk.bf16.mxu0 %vm303_vm0, %v8011_v12 }
  0x2c   :  { %16 = vsyncpa [#allocation3], 0  ;;  %v8012_v13 = vld [vmem:[%s13748_s0 + $0x48] sm:$0xff]   ;;  %v8013_v14 = vld [vmem:[%s13748_s0 + $0x50] sm:$0xff]  }
  0x2d   :  { %v8014_v15 = vld [vmem:[%s13748_s0 + $0x58] sm:$0xff]   ;;  %v8015_v16 = vld [vmem:[%s13748_s0 + $0x60] sm:$0xff]   ;;  %v8016_v17 = vld [vmem:[%s13748_s0 + $0x68] sm:$0xff]  }
  0x2e   :  { %v8017_v18 = vld [vmem:[%s13748_s0 + $0x70] sm:$0xff]   ;;  %v8018_v19 = vld [vmem:[%s13748_s0 + $0x78] sm:$0xff]   ;;  %v8019_v20 = vld [vmem:[%s13748_s0 + $0x80] sm:$0xff]  }
  0x2f   :  { %v8020_v21 = vld [vmem:[%s13748_s0 + $0x88] sm:$0xff]   ;;  %v8021_v22 = vld [vmem:[%s13748_s0 + $0x90] sm:$0xff]   ;;  %v8022_v23 = vld [vmem:[%s13748_s0 + $0x98] sm:$0xff]  }
  0x30   :  { %v8023_v24 = vld [vmem:[%s13748_s0 + $0xa0] sm:$0xff]   ;;  %v8024_v25 = vld [vmem:[%s13748_s0 + $0xa8] sm:$0xff]   ;;  %v8025_v26 = vld [vmem:[%s13748_s0 + $0xb0] sm:$0xff]  }
  0x31   :  { %v8026_v27 = vld [vmem:[%s13748_s0 + $0xb8] sm:$0xff]   ;;  %v8027_v28 = vld [vmem:[%s13748_s0 + $0xc0] sm:$0xff]   ;;  %v8028_v29 = vld [vmem:[%s13748_s0 + $0xc8] sm:$0xff]  }
  0x32   :  { %7733 = vmatmul.mubr.msk.bf16.gmra.mrb[16].mxu0 %vm303_vm0, %v8012_v13  ;;  %v8029_v30 = vld [vmem:[%s13748_s0 + $0xd0] sm:$0xff]   ;;  %v8030_v31 = vld [vmem:[%s13748_s0 + $0xd8] sm:$0xff]   ;;  %v8031_v32 = vld [vmem:[%s13748_s0 + $0xe0] sm:$0xff]  }
  0x33   :  { %7736 = vmatprep.mubr.msk.bf16.mxu0 %vm303_vm0, %v8013_v14  ;;  %v8032_v33 = vld [vmem:[%s13748_s0 + $0xe8] sm:$0xff]   ;;  %v8033_v34 = vld [vmem:[%s13748_s0 + $0xf0] sm:$0xff]   ;;  %v8034_v35 = vld [vmem:[%s13748_s0 + $0xf8] sm:$0xff]  }
  0x34   :  { %v9311_v36 = vld [vmem:[%s13750_s2] ss:$0 sm:$0xff] }
  0x3a   :  { %7737 = vmatmul.mubr.msk.bf16.gmra.mrb[20].mxu0 %vm303_vm0, %v8014_v15 }
  0x3b   :  { %7740 = vmatprep.mubr.msk.bf16.mxu0 %vm303_vm0, %v8015_v16 }
  0x42   :  { %7741 = vmatmul.mubr.msk.bf16.gmra.mrb[24].mxu0 %vm303_vm0, %v8016_v17 }
  0x43   :  { %7744 = vmatprep.mubr.msk.bf16.mxu0 %vm303_vm0, %v8017_v18 }
  0x4a   :  { %7745 = vmatmul.mubr.msk.bf16.gmra.mrb[28].mxu0 %vm303_vm0, %v8018_v19 }
  0x4b   :  { %7748 = vmatprep.mubr.msk.bf16.mxu0 %vm303_vm0, %v8019_v20 }
  0x52   :  { %7749 = vmatmul.mubr.msk.bf16.gmra.mrb[32].mxu0 %vm303_vm0, %v8020_v21 }
  0x53   :  { %7752 = vmatprep.mubr.msk.bf16.mxu0 %vm303_vm0, %v8021_v22 }
  0x5a   :  { %7753 = vmatmul.mubr.msk.bf16.gmra.mrb[36].mxu0 %vm303_vm0, %v8022_v23 }
  0x5b   :  { %7756 = vmatprep.mubr.msk.bf16.mxu0 %vm303_vm0, %v8023_v24 }
  0x62   :  { %7757 = vmatmul.mubr.msk.bf16.gmra.mrb[40].mxu0 %vm303_vm0, %v8024_v25 }
  0x63   :  { %7760 = vmatprep.mubr.msk.bf16.mxu0 %vm303_vm0, %v8025_v26 }
  0x6a   :  { %7761 = vmatmul.mubr.msk.bf16.gmra.mrb[44].mxu0 %vm303_vm0, %v8026_v27 }
  0x6b   :  { %7764 = vmatprep.mubr.msk.bf16.mxu0 %vm303_vm0, %v8027_v28 }
  0x72   :  { %7765 = vmatmul.mubr.msk.bf16.gmra.mrb[48].mxu0 %vm303_vm0, %v8028_v29 }
  0x73   :  { %7768 = vmatprep.mubr.msk.bf16.mxu0 %vm303_vm0, %v8029_v30 }
  0x7a   :  { %7769 = vmatmul.mubr.msk.bf16.gmra.mrb[52].mxu0 %vm303_vm0, %v8030_v31 }
  0x7b   :  { %7772 = vmatprep.mubr.msk.bf16.mxu0 %vm303_vm0, %v8031_v32 }
  0x82   :  { %7773 = vmatmul.mubr.msk.bf16.gmra.mrb[56].mxu0 %vm303_vm0, %v8032_v33 }
  0x83   :  { %7776 = vmatprep.mubr.msk.bf16.mxu0 %vm303_vm0, %v8033_v34 }
  0x8a   :  { %7777 = vmatmul.mubr.msk.bf16.gmra.mrb[60].mxu0 %vm303_vm0, %v8034_v35 }
  0xe5   :  { %v7718_v37 = vpop.f32.mrb[0].mxu0 }
  0xe6   :  { %v443_v38 = vadd.f32 %v7718_v37, %v9311_v36  ;;  %v434_v39 = vpop.f32.mrb[1].mxu0 }
  0xe7   :  { %v435_v40 = vadd.f32 %v9311_v36, %v434_v39  ;;  %v7719_v41 = vpop.f32.mrb[2].mxu0 }
  0xe8   :  { %v755_v42 = vmul.f32 0.70710677, %v443_v38  ;;  %v446_v43 = vadd.f32 %v7719_v41, %v9311_v36  ;;  %v437_v44 = vpop.f32.mrb[3].mxu0  ;;  %v691_v63 = vmul.f32 0.5, %v443_v38 }
  0xe9   :  { %v753_v45 = vmul.f32 0.70710677, %v435_v40  ;;  %v438_v46 = vadd.f32 %v9311_v36, %v437_v44  ;;  %v689_v3 = vmul.f32 0.5, %v435_v40 }
  0xea   :  { %8047 = verf.f32 %v755_v42  ;;  %v756_v47 = vmul.f32 0.70710677, %v446_v43  ;;  %v692_v16 = vmul.f32 0.5, %v446_v43 }
  0xeb   :  { %8049 = verf.f32 %v753_v45  ;;  %v754_v48 = vmul.f32 0.70710677, %v438_v46  ;;  %v690_v25 = vmul.f32 0.5, %v438_v46 }
  0xec   :  { %8051 = verf.f32 %v756_v47 }
  0xed   :  { %v7722_v49 = vpop.f32.mrb[4].mxu0  ;;  %8053 = verf.f32 %v754_v48 }
  0xee   :  { %v459_v50 = vadd.f32 %v7722_v49, %v9311_v36  ;;  %v450_v51 = vpop.f32.mrb[5].mxu0 }
  0xef   :  { %v9319_v52 = vadd.f32 %v9311_v36, %v450_v51  ;;  %v7723_v53 = vpop.f32.mrb[6].mxu0 }
  0xf0   :  { %v759_v54 = vmul.f32 0.70710677, %v459_v50  ;;  %v462_v55 = vadd.f32 %v7723_v53, %v9311_v36  ;;  %v453_v56 = vpop.f32.mrb[7].mxu0  ;;  %v695_v28 = vmul.f32 0.5, %v459_v50 }
  0xf1   :  { %v757_v57 = vmul.f32 0.70710677, %v9319_v52  ;;  %v9324_v58 = vadd.f32 %v9311_v36, %v453_v56  ;;  %v693_v48 = vmul.f32 0.5, %v9319_v52 }
  0xf2   :  { %8055 = verf.f32 %v759_v54  ;;  %v760_v59 = vmul.f32 0.70710677, %v462_v55  ;;  %v696_v33 = vmul.f32 0.5, %v462_v55 }
  0xf3   :  { %8057 = verf.f32 %v757_v57  ;;  %v758_v60 = vmul.f32 0.70710677, %v9324_v58  ;;  %v694_v55 = vmul.f32 0.5, %v9324_v58 }
  0xf4   :  { %v8048_v61 = vpop.eup %8047  ;;  %8059 = verf.f32 %v760_v59 }
  0xf5   :  { %v8050_v62 = vpop.eup %8049  ;;  %v7726_v0 = vpop.f32.mrb[8].mxu0  ;;  %v883_v1 = vadd.f32 1.0, %v8048_v61  ;;  %8061 = verf.f32 %v758_v60 }
  0xf6   :  { %v8052_v2 = vpop.eup %8051  ;;  %v9328_v4 = vadd.f32 %v7726_v0, %v9311_v36  ;;  %v466_v5 = vpop.f32.mrb[9].mxu0  ;;  %v881_v6 = vadd.f32 1.0, %v8050_v62 }
  0xf7   :  { %v9331_v7 = vadd.f32 %v9311_v36, %v466_v5  ;;  %v7727_v8 = vpop.f32.mrb[10].mxu0  ;;  %v9333_v9 = vmul.f32 %v883_v1, %v691_v63  ;;  %v884_v10 = vadd.f32 1.0, %v8052_v2  ;;  %v8054_v15 = vpop.eup %8053 }
  0xf8   :  { %v763_v11 = vmul.f32 0.70710677, %v9328_v4  ;;  %v9337_v12 = vadd.f32 %v7727_v8, %v9311_v36  ;;  %v469_v13 = vpop.f32.mrb[11].mxu0  ;;  %v9339_v14 = vmul.f32 %v881_v6, %v689_v3  ;;  %v882_v26 = vadd.f32 1.0, %v8054_v15 }
  0xf9   :  { %v761_v17 = vmul.f32 0.70710677, %v9331_v7  ;;  %v9343_v18 = vadd.f32 %v9311_v36, %v469_v13  ;;  %v1017_v19 = vsel %vm303_vm0, %v9333_v9, 0.0  ;;  %v9351_v23 = vmul.f32 %v884_v10, %v692_v16 }
  0xfa   :  { %8063 = verf.f32 %v763_v11  ;;  %v764_v20 = vmul.f32 0.70710677, %v9337_v12  ;;  %1018 = vadd.xlane.f32.xlu1 %v1017_v19  ;;  %v1011_v21 = vsel %vm303_vm0, %v9339_v14, 0.0  ;;  %v9358_v37 = vmul.f32 %v882_v26, %v690_v25 }
  0xfb   :  { %8065 = verf.f32 %v761_v17  ;;  %v762_v22 = vmul.f32 0.70710677, %v9343_v18  ;;  %1012 = vadd.xlane.f32.xlu0 %v1011_v21  ;;  %v1020_v30 = vsel %vm303_vm0, %v9351_v23, 0.0  ;;  %v699_v62 = vmul.f32 0.5, %v9328_v4 }
  0xfc   :  { %v8056_v24 = vpop.eup %8055  ;;  %8067 = verf.f32 %v764_v20  ;;  %v1014_v44 = vsel %vm303_vm0, %v9358_v37, 0.0  ;;  %v700_v58 = vmul.f32 0.5, %v9337_v12  ;;  %v697_v20 = vmul.f32 0.5, %v9331_v7 }
  0xfd   :  { %v8058_v27 = vpop.eup %8057  ;;  %v7730_v29 = vpop.f32.mrb[12].mxu0  ;;  %v887_v31 = vadd.f32 1.0, %v8056_v24  ;;  %8069 = verf.f32 %v762_v22 }
  0xfe   :  { %v8060_v32 = vpop.eup %8059  ;;  %v9356_v34 = vadd.f32 %v7730_v29, %v9311_v36  ;;  %1021 = vadd.xlane.f32.xlu1 %v1020_v30  ;;  %v482_v35 = vpop.f32.mrb[13].mxu0  ;;  %v885_v46 = vadd.f32 1.0, %v8058_v27  ;;  %v698_v29 = vmul.f32 0.5, %v9343_v18 }
  0xff   :  { %v9361_v38 = vadd.f32 %v9311_v36, %v482_v35  ;;  %v7731_v39 = vpop.f32.mrb[14].mxu0  ;;  %v9363_v40 = vmul.f32 %v887_v31, %v695_v28  ;;  %v888_v41 = vadd.f32 1.0, %v8060_v32  ;;  %v8062_v47 = vpop.eup %8061  ;;  %1015 = vadd.xlane.f32.xlu0 %v1014_v44 }
 0x100   :  { %v767_v42 = vmul.f32 0.70710677, %v9356_v34  ;;  %v9367_v43 = vadd.f32 %v7731_v39, %v9311_v36  ;;  %v485_v45 = vpop.f32.mrb[15].mxu0  ;;  %v9385_v59 = vmul.f32 %v885_v46, %v693_v48  ;;  %v886_v60 = vadd.f32 1.0, %v8062_v47 }
 0x101   :  { %v765_v49 = vmul.f32 0.70710677, %v9361_v38  ;;  %v9374_v50 = vadd.f32 %v9311_v36, %v485_v45  ;;  %v1029_v53 = vsel %vm303_vm0, %v9363_v40, 0.0  ;;  %v9379_v54 = vmul.f32 %v888_v41, %v696_v33 }
 0x102   :  { %8071 = verf.f32 %v767_v42  ;;  %v768_v51 = vmul.f32 0.70710677, %v9367_v43  ;;  %v9392_v5 = vmul.f32 %v886_v60, %v694_v55  ;;  %v1023_v12 = vsel %vm303_vm0, %v9385_v59, 0.0 }
 0x103   :  { %8073 = verf.f32 %v765_v49  ;;  %v766_v56 = vmul.f32 0.70710677, %v9374_v50  ;;  %v1032_v57 = vsel %vm303_vm0, %v9379_v54, 0.0  ;;  %1030 = vadd.xlane.f32.xlu0 %v1029_v53  ;;  %v703_v33 = vmul.f32 0.5, %v9356_v34 }
 0x104   :  { %v8064_v52 = vpop.eup %8063  ;;  %8075 = verf.f32 %v768_v51  ;;  %1033 = vadd.xlane.f32.xlu1 %v1032_v57  ;;  %v1026_v17 = vsel %vm303_vm0, %v9392_v5, 0.0  ;;  %v704_v42 = vmul.f32 0.5, %v9367_v43  ;;  %v701_v57 = vmul.f32 0.5, %v9361_v38 }
 0x105   :  { %v8066_v61 = vpop.eup %8065  ;;  %v7734_v63 = vpop.f32.mrb[16].mxu0  ;;  %v891_v0 = vadd.f32 1.0, %v8064_v52  ;;  %8077 = verf.f32 %v766_v56 }
 0x106   :  { %v8068_v1 = vpop.eup %8067  ;;  %v9390_v2 = vadd.f32 %v7734_v63, %v9311_v36  ;;  %v498_v3 = vpop.f32.mrb[17].mxu0  ;;  %v889_v11 = vadd.f32 1.0, %v8066_v61 }
 0x107   :  { %v9395_v6 = vadd.f32 %v9311_v36, %v498_v3  ;;  %v7735_v8 = vpop.f32.mrb[18].mxu0  ;;  %v9397_v10 = vmul.f32 %v891_v0, %v699_v62  ;;  %v892_v4 = vadd.f32 1.0, %v8068_v1  ;;  %v8070_v19 = vpop.eup %8069  ;;  %1024 = vadd.xlane.f32.xlu0 %v1023_v12  ;;  %v702_v1 = vmul.f32 0.5, %v9374_v50 }
 0x108   :  { %v771_v13 = vmul.f32 0.70710677, %v9390_v2  ;;  %v9401_v15 = vadd.f32 %v7735_v8, %v9311_v36  ;;  %v501_v16 = vpop.f32.mrb[19].mxu0  ;;  %1027 = vadd.xlane.f32.xlu1 %v1026_v17  ;;  %v9418_v28 = vmul.f32 %v889_v11, %v697_v20  ;;  %v890_v31 = vadd.f32 1.0, %v8070_v19 }
 0x109   :  { %v769_v21 = vmul.f32 0.70710677, %v9395_v6  ;;  %v9410_v22 = vadd.f32 %v9311_v36, %v501_v16  ;;  %v1041_v25 = vsel %vm303_vm0, %v9397_v10, 0.0  ;;  %v9415_v26 = vmul.f32 %v892_v4, %v700_v58 }
 0x10a   :  { %8079 = verf.f32 %v771_v13  ;;  %v772_v24 = vmul.f32 0.70710677, %v9401_v15  ;;  %v9428_v45 = vmul.f32 %v890_v31, %v698_v29  ;;  %v1035_v34 = vsel %vm303_vm0, %v9418_v28, 0.0 }
 0x10b   :  { %8081 = verf.f32 %v769_v21  ;;  %v770_v27 = vmul.f32 0.70710677, %v9410_v22  ;;  %v1044_v30 = vsel %vm303_vm0, %v9415_v26, 0.0  ;;  %1042 = vadd.xlane.f32.xlu0 %v1041_v25  ;;  %v707_v13 = vmul.f32 0.5, %v9390_v2 }
 0x10c   :  { %v8072_v7 = vpop.eup %8071  ;;  %8083 = verf.f32 %v772_v24  ;;  %1045 = vadd.xlane.f32.xlu1 %v1044_v30  ;;  %v1038_v56 = vsel %vm303_vm0, %v9428_v45, 0.0  ;;  %v708_v50 = vmul.f32 0.5, %v9401_v15 }
 0x10d   :  { %v8074_v32 = vpop.eup %8073  ;;  %v7738_v35 = vpop.f32.mrb[20].mxu0  ;;  %v895_v39 = vadd.f32 1.0, %v8072_v7  ;;  %8085 = verf.f32 %v770_v27 }
 0x10e   :  { %v8076_v41 = vpop.eup %8075  ;;  %v9426_v44 = vadd.f32 %v7738_v35, %v9311_v36  ;;  %v514_v18 = vpop.f32.mrb[21].mxu0  ;;  %v893_v52 = vadd.f32 1.0, %v8074_v32  ;;  %v705_v35 = vmul.f32 0.5, %v9395_v6 }
 0x10f   :  { %v9431_v46 = vadd.f32 %v9311_v36, %v514_v18  ;;  %v7739_v47 = vpop.f32.mrb[22].mxu0  ;;  %v9435_v48 = vmul.f32 %v895_v39, %v703_v33  ;;  %v896_v49 = vadd.f32 1.0, %v8076_v41  ;;  %v8078_v51 = vpop.eup %8077  ;;  %1036 = vadd.xlane.f32.xlu0 %v1035_v34 }
 0x110   :  { %v775_v43 = vmul.f32 0.70710677, %v9426_v44  ;;  %v9439_v53 = vadd.f32 %v7739_v47, %v9311_v36  ;;  %v517_v55 = vpop.f32.mrb[23].mxu0  ;;  %1039 = vadd.xlane.f32.xlu1 %v1038_v56  ;;  %v9457_v8 = vmul.f32 %v893_v52, %v701_v57  ;;  %v894_v4 = vadd.f32 1.0, %v8078_v51 }
 0x111   :  { %v773_v60 = vmul.f32 0.70710677, %v9431_v46  ;;  %v9446_v61 = vadd.f32 %v9311_v36, %v517_v55  ;;  %v1053_v63 = vsel %vm303_vm0, %v9435_v48, 0.0  ;;  %v9451_v0 = vmul.f32 %v896_v49, %v704_v42 }
 0x112   :  { %8087 = verf.f32 %v775_v43  ;;  %v776_v62 = vmul.f32 0.70710677, %v9439_v53  ;;  %v9464_v21 = vmul.f32 %v894_v4, %v702_v1  ;;  %v1047_v31 = vsel %vm303_vm0, %v9457_v8, 0.0 }
 0x113   :  { %8089 = verf.f32 %v773_v60  ;;  %v774_v38 = vmul.f32 0.70710677, %v9446_v61  ;;  %v1056_v3 = vsel %vm303_vm0, %v9451_v0, 0.0  ;;  %1054 = vadd.xlane.f32.xlu0 %v1053_v63  ;;  %v706_v51 = vmul.f32 0.5, %v9410_v22 }
 0x114   :  { %v8080_v58 = vpop.eup %8079  ;;  %8091 = verf.f32 %v776_v62  ;;  %1057 = vadd.xlane.f32.xlu1 %v1056_v3  ;;  %v1050_v32 = vsel %vm303_vm0, %v9464_v21, 0.0  ;;  %v711_v52 = vmul.f32 0.5, %v9426_v44  ;;  %v712_v63 = vmul.f32 0.5, %v9439_v53 }
 0x115   :  { %v8082_v11 = vpop.eup %8081  ;;  %v7742_v12 = vpop.f32.mrb[24].mxu0  ;;  %v899_v16 = vadd.f32 1.0, %v8080_v58  ;;  %8093 = verf.f32 %v774_v38 }
 0x116   :  { %v8084_v17 = vpop.eup %8083  ;;  %v9462_v19 = vadd.f32 %v7742_v12, %v9311_v36  ;;  %v530_v20 = vpop.f32.mrb[25].mxu0  ;;  %v897_v7 = vadd.f32 1.0, %v8082_v11 }
 0x117   :  { %v9467_v24 = vadd.f32 %v9311_v36, %v530_v20  ;;  %v7743_v25 = vpop.f32.mrb[26].mxu0  ;;  %v9469_v27 = vmul.f32 %v899_v16, %v707_v13  ;;  %v900_v2 = vadd.f32 1.0, %v8084_v17  ;;  %v8086_v29 = vpop.eup %8085  ;;  %1048 = vadd.xlane.f32.xlu0 %v1047_v31  ;;  %v709_v20 = vmul.f32 0.5, %v9431_v46 }
 0x118   :  { %v779_v30 = vmul.f32 0.70710677, %v9462_v19  ;;  %v9473_v15 = vadd.f32 %v7743_v25, %v9311_v36  ;;  %v533_v33 = vpop.f32.mrb[27].mxu0  ;;  %1051 = vadd.xlane.f32.xlu1 %v1050_v32  ;;  %v9490_v49 = vmul.f32 %v897_v7, %v705_v35  ;;  %v898_v55 = vadd.f32 1.0, %v8086_v29 }
 0x119   :  { %v777_v39 = vmul.f32 0.70710677, %v9467_v24  ;;  %v9482_v41 = vadd.f32 %v9311_v36, %v533_v33  ;;  %v1065_v18 = vsel %vm303_vm0, %v9469_v27, 0.0  ;;  %v9487_v47 = vmul.f32 %v900_v2, %v708_v50 }
 0x11a   :  { %8095 = verf.f32 %v779_v30  ;;  %v780_v42 = vmul.f32 0.70710677, %v9473_v15  ;;  %v9500_v38 = vmul.f32 %v898_v55, %v706_v51  ;;  %v1059_v44 = vsel %vm303_vm0, %v9490_v49, 0.0 }
 0x11b   :  { %8097 = verf.f32 %v777_v39  ;;  %v778_v34 = vmul.f32 0.70710677, %v9482_v41  ;;  %v1068_v43 = vsel %vm303_vm0, %v9487_v47, 0.0  ;;  %1066 = vadd.xlane.f32.xlu0 %v1065_v18  ;;  %v710_v31 = vmul.f32 0.5, %v9446_v61 }
 0x11c   :  { %v8088_v6 = vpop.eup %8087  ;;  %8099 = verf.f32 %v780_v42  ;;  %1069 = vadd.xlane.f32.xlu1 %v1068_v43  ;;  %v1062_v16 = vsel %vm303_vm0, %v9500_v38, 0.0  ;;  %v715_v32 = vmul.f32 0.5, %v9462_v19  ;;  %v716_v19 = vmul.f32 0.5, %v9473_v15 }
 0x11d   :  { %v8090_v56 = vpop.eup %8089  ;;  %v7746_v57 = vpop.f32.mrb[28].mxu0  ;;  %v903_v60 = vadd.f32 1.0, %v8088_v6  ;;  %8101 = verf.f32 %v778_v34  ;;  %v713_v34 = vmul.f32 0.5, %v9467_v24 }
 0x11e   :  { %v8092_v62 = vpop.eup %8091  ;;  %v9498_v1 = vadd.f32 %v7746_v57, %v9311_v36  ;;  %v546_v22 = vpop.f32.mrb[29].mxu0  ;;  %v901_v50 = vadd.f32 1.0, %v8090_v56 }
 0x11f   :  { %v9503_v58 = vadd.f32 %v9311_v36, %v546_v22  ;;  %v7747_v3 = vpop.f32.mrb[30].mxu0  ;;  %v9507_v4 = vmul.f32 %v903_v60, %v711_v52  ;;  %v904_v11 = vadd.f32 1.0, %v8092_v62  ;;  %v8094_v13 = vpop.eup %8093  ;;  %1060 = vadd.xlane.f32.xlu0 %v1059_v44 }
 0x120   :  { %v783_v53 = vmul.f32 0.70710677, %v9498_v1  ;;  %v9511_v12 = vadd.f32 %v7747_v3, %v9311_v36  ;;  %v549_v17 = vpop.f32.mrb[31].mxu0  ;;  %1063 = vadd.xlane.f32.xlu1 %v1062_v16  ;;  %v9530_v39 = vmul.f32 %v901_v50, %v709_v20  ;;  %v902_v42 = vadd.f32 1.0, %v8094_v13 }
 0x121   :  { %v781_v25 = vmul.f32 0.70710677, %v9503_v58  ;;  %v9518_v2 = vadd.f32 %v9311_v36, %v549_v17  ;;  %v1077_v29 = vsel %vm303_vm0, %v9507_v4, 0.0  ;;  %v9523_v30 = vmul.f32 %v904_v11, %v712_v63 }
 0x122   :  { %8103 = verf.f32 %v783_v53  ;;  %v784_v7 = vmul.f32 0.70710677, %v9511_v12  ;;  %v9537_v56 = vmul.f32 %v902_v42, %v710_v31  ;;  %v1071_v3 = vsel %vm303_vm0, %v9530_v39, 0.0 }
 0x123   :  { %8105 = verf.f32 %v781_v25  ;;  %v782_v46 = vmul.f32 0.70710677, %v9518_v2  ;;  %v1080_v35 = vsel %vm303_vm0, %v9523_v30, 0.0  ;;  %1078 = vadd.xlane.f32.xlu0 %v1077_v29  ;;  %v714_v13 = vmul.f32 0.5, %v9482_v41 }
 0x124   :  { %v8096_v33 = vpop.eup %8095  ;;  %8107 = verf.f32 %v784_v7  ;;  %1081 = vadd.xlane.f32.xlu1 %v1080_v35  ;;  %v1074_v44 = vsel %vm303_vm0, %v9537_v56, 0.0  ;;  %v719_v25 = vmul.f32 0.5, %v9498_v1  ;;  %v720_v35 = vmul.f32 0.5, %v9511_v12 }
 0x125   :  { %v8098_v18 = vpop.eup %8097  ;;  %v7750_v6 = vpop.f32.mrb[32].mxu0  ;;  %v907_v61 = vadd.f32 1.0, %v8096_v33  ;;  %8109 = verf.f32 %v782_v46  ;;  %v717_v33 = vmul.f32 0.5, %v9503_v58 }
 0x126   :  { %v8100_v51 = vpop.eup %8099  ;;  %v9535_v43 = vadd.f32 %v7750_v6, %v9311_v36  ;;  %v562_v55 = vpop.f32.mrb[33].mxu0  ;;  %v905_v62 = vadd.f32 1.0, %v8098_v18 }
 0x127   :  { %v9540_v52 = vadd.f32 %v9311_v36, %v562_v55  ;;  %v7751_v57 = vpop.f32.mrb[34].mxu0  ;;  %v9542_v60 = vmul.f32 %v907_v61, %v715_v32  ;;  %v908_v24 = vadd.f32 1.0, %v8100_v51  ;;  %v8102_v63 = vpop.eup %8101  ;;  %1072 = vadd.xlane.f32.xlu0 %v1071_v3 }
 0x128   :  { %v787_v22 = vmul.f32 0.70710677, %v9535_v43  ;;  %v574_v15 = vadd.f32 %v7751_v57, %v9311_v36  ;;  %v565_v11 = vpop.f32.mrb[35].mxu0  ;;  %1075 = vadd.xlane.f32.xlu1 %v1074_v44  ;;  %v9561_v41 = vmul.f32 %v905_v62, %v713_v34  ;;  %v906_v32 = vadd.f32 1.0, %v8102_v63 }
 0x129   :  { %v785_v53 = vmul.f32 0.70710677, %v9540_v52  ;;  %v9553_v16 = vadd.f32 %v9311_v36, %v565_v11  ;;  %v1089_v50 = vsel %vm303_vm0, %v9542_v60, 0.0  ;;  %v9557_v20 = vmul.f32 %v908_v24, %v716_v19 }
 0x12a   :  { %8111 = verf.f32 %v787_v22  ;;  %v788_v17 = vmul.f32 0.70710677, %v574_v15  ;;  %v1083_v61 = vsel %vm303_vm0, %v9561_v41, 0.0  ;;  %v9572_v51 = vmul.f32 %v906_v32, %v714_v13 }
 0x12b   :  { %8113 = verf.f32 %v785_v53  ;;  %v786_v7 = vmul.f32 0.70710677, %v9553_v16  ;;  %v1092_v31 = vsel %vm303_vm0, %v9557_v20, 0.0  ;;  %1090 = vadd.xlane.f32.xlu0 %v1089_v50  ;;  %v718_v44 = vmul.f32 0.5, %v9518_v2 }
 0x12c   :  { %v8104_v29 = vpop.eup %8103  ;;  %8115 = verf.f32 %v788_v17  ;;  %1093 = vadd.xlane.f32.xlu1 %v1092_v31  ;;  %v1086_v22 = vsel %vm303_vm0, %v9572_v51, 0.0 }
 0x12d   :  { %v8106_v46 = vpop.eup %8105  ;;  %v7754_v42 = vpop.f32.mrb[36].mxu0  ;;  %v911_v1 = vadd.f32 1.0, %v8104_v29  ;;  %8117 = verf.f32 %v786_v7 }
 0x12e   :  { %v8108_v18 = vpop.eup %8107  ;;  %v9568_v34 = vadd.f32 %v7754_v42, %v9311_v36  ;;  %v578_v6 = vpop.f32.mrb[37].mxu0  ;;  %v909_v57 = vadd.f32 1.0, %v8106_v46  ;;  %v721_v42 = vmul.f32 0.5, %v9540_v52 }
 0x12f   :  { %v9575_v19 = vadd.f32 %v9311_v36, %v578_v6  ;;  %v7755_v58 = vpop.f32.mrb[38].mxu0  ;;  %v9577_v12 = vmul.f32 %v911_v1, %v719_v25  ;;  %v912_v55 = vadd.f32 1.0, %v8108_v18  ;;  %v8110_v24 = vpop.eup %8109  ;;  %1084 = vadd.xlane.f32.xlu0 %v1083_v61  ;;  %v723_v25 = vmul.f32 0.5, %v9535_v43 }
 0x130   :  { %v791_v62 = vmul.f32 0.70710677, %v9568_v34  ;;  %v590_v63 = vadd.f32 %v7755_v58, %v9311_v36  ;;  %v581_v3 = vpop.f32.mrb[39].mxu0  ;;  %1087 = vadd.xlane.f32.xlu1 %v1086_v22  ;;  %v9594_v2 = vmul.f32 %v909_v57, %v717_v33  ;;  %v910_v32 = vadd.f32 1.0, %v8110_v24 }
 0x131   :  { %v789_v11 = vmul.f32 0.70710677, %v9575_v19  ;;  %v9586_v13 = vadd.f32 %v9311_v36, %v581_v3  ;;  %v1101_v17 = vsel %vm303_vm0, %v9577_v12, 0.0  ;;  %v9590_v50 = vmul.f32 %v912_v55, %v720_v35 }
 0x132   :  { %8119 = verf.f32 %v791_v62  ;;  %v792_v53 = vmul.f32 0.70710677, %v590_v63  ;;  %v724_v1 = vmul.f32 0.5, %v574_v15  ;;  %v1095_v61 = vsel %vm303_vm0, %v9594_v2, 0.0 }
 0x133   :  { %8121 = verf.f32 %v789_v11  ;;  %v790_v7 = vmul.f32 0.70710677, %v9586_v13  ;;  %v1104_v31 = vsel %vm303_vm0, %v9590_v50, 0.0  ;;  %1102 = vadd.xlane.f32.xlu0 %v1101_v17  ;;  %v9604_v58 = vmul.f32 %v910_v32, %v718_v44 }
 0x134   :  { %v8112_v29 = vpop.eup %8111  ;;  %8123 = verf.f32 %v792_v53  ;;  %1105 = vadd.xlane.f32.xlu1 %v1104_v31  ;;  %v722_v44 = vmul.f32 0.5, %v9553_v16  ;;  %v727_v32 = vmul.f32 0.5, %v9568_v34 }
 0x135   :  { %v8114_v46 = vpop.eup %8113  ;;  %v7758_v35 = vpop.f32.mrb[40].mxu0  ;;  %v915_v18 = vadd.f32 1.0, %v8112_v29  ;;  %8125 = verf.f32 %v790_v7  ;;  %v1098_v11 = vsel %vm303_vm0, %v9604_v58, 0.0 }
 0x136   :  { %v8116_v43 = vpop.eup %8115  ;;  %v9600_v6 = vadd.f32 %v7758_v35, %v9311_v36  ;;  %v594_v33 = vpop.f32.mrb[41].mxu0  ;;  %v913_v24 = vadd.f32 1.0, %v8114_v46 }
 0x137   :  { %v9607_v55 = vadd.f32 %v9311_v36, %v594_v33  ;;  %v7759_v52 = vpop.f32.mrb[42].mxu0  ;;  %v9609_v15 = vmul.f32 %v915_v18, %v723_v25  ;;  %v916_v57 = vadd.f32 1.0, %v8116_v43  ;;  %v8118_v62 = vpop.eup %8117  ;;  %1096 = vadd.xlane.f32.xlu0 %v1095_v61  ;;  %v725_v61 = vmul.f32 0.5, %v9575_v19 }
 0x138   :  { %v795_v22 = vmul.f32 0.70710677, %v9600_v6  ;;  %v606_v3 = vadd.f32 %v7759_v52, %v9311_v36  ;;  %v597_v53 = vpop.f32.mrb[43].mxu0  ;;  %1099 = vadd.xlane.f32.xlu1 %v1098_v11  ;;  %v9626_v16 = vmul.f32 %v913_v24, %v721_v42  ;;  %v914_v43 = vadd.f32 1.0, %v8118_v62 }
 0x139   :  { %v793_v17 = vmul.f32 0.70710677, %v9607_v55  ;;  %v9618_v25 = vadd.f32 %v9311_v36, %v597_v53  ;;  %v1113_v29 = vsel %vm303_vm0, %v9609_v15, 0.0  ;;  %v9622_v31 = vmul.f32 %v916_v57, %v724_v1 }
 0x13a   :  { %8127 = verf.f32 %v795_v22  ;;  %v796_v7 = vmul.f32 0.70710677, %v606_v3  ;;  %14008 = vst [vmem:[#allocation6_spill] sm:$0xff] %v9626_v16  ;;  %v728_v52 = vmul.f32 0.5, %v590_v63  ;;  %v1107_v24 = vsel %vm303_vm0, %v9626_v16, 0.0 }
 0x13b   :  { %14007 = vst [vmem:[#allocation5_spill] sm:$0xff] %v9622_v31  ;;  %8129 = verf.f32 %v793_v17  ;;  %v794_v46 = vmul.f32 0.70710677, %v9618_v25  ;;  %v1116_v18 = vsel %vm303_vm0, %v9622_v31, 0.0  ;;  %1114 = vadd.xlane.f32.xlu0 %v1113_v29  ;;  %v9636_v11 = vmul.f32 %v914_v43, %v722_v44 }
 0x13c   :  { %v8120_v35 = vpop.eup %8119  ;;  %8131 = verf.f32 %v796_v7  ;;  %1117 = vadd.xlane.f32.xlu1 %v1116_v18  ;;  %v726_v44 = vmul.f32 0.5, %v9586_v13 }
 0x13d   :  { %v8122_v33 = vpop.eup %8121  ;;  %v7762_v1 = vpop.f32.mrb[44].mxu0  ;;  %v919_v57 = vadd.f32 1.0, %v8120_v35  ;;  %8133 = verf.f32 %v794_v46  ;;  %14009 = vst [vmem:[#allocation7_spill] sm:$0xff] %v9636_v11  ;;  %v1110_v35 = vsel %vm303_vm0, %v9636_v11, 0.0  ;;  %v732_v11 = vmul.f32 0.5, %v606_v3 }
 0x13e   :  { %v8124_v34 = vpop.eup %8123  ;;  %v9632_v22 = vadd.f32 %v7762_v1, %v9311_v36  ;;  %v610_v42 = vpop.f32.mrb[45].mxu0  ;;  %v917_v17 = vadd.f32 1.0, %v8122_v33 }
 0x13f   :  { %v9639_v62 = vadd.f32 %v9311_v36, %v610_v42  ;;  %v7763_v19 = vpop.f32.mrb[46].mxu0  ;;  %v9641_v63 = vmul.f32 %v919_v57, %v727_v32  ;;  %v920_v53 = vadd.f32 1.0, %v8124_v34  ;;  %v8126_v7 = vpop.eup %8125  ;;  %1108 = vadd.xlane.f32.xlu0 %v1107_v24  ;;  %v731_v34 = vmul.f32 0.5, %v9600_v6 }
 0x140   :  { %v799_v29 = vmul.f32 0.70710677, %v9632_v22  ;;  %v622_v46 = vadd.f32 %v7763_v19, %v9311_v36  ;;  %v613_v18 = vpop.f32.mrb[47].mxu0  ;;  %1111 = vadd.xlane.f32.xlu1 %v1110_v35  ;;  %v9658_v13 = vmul.f32 %v917_v17, %v725_v61  ;;  %v918_v35 = vadd.f32 1.0, %v8126_v7 }
 0x141   :  { %14010 = vst [vmem:[#allocation8_spill] sm:$0xff] %v9641_v63  ;;  %v797_v43 = vmul.f32 0.70710677, %v9639_v62  ;;  %v9650_v32 = vadd.f32 %v9311_v36, %v613_v18  ;;  %v1125_v1 = vsel %vm303_vm0, %v9641_v63, 0.0  ;;  %v9654_v57 = vmul.f32 %v920_v53, %v728_v52 }
 0x142   :  { %8135 = verf.f32 %v799_v29  ;;  %v800_v33 = vmul.f32 0.70710677, %v622_v46  ;;  %14012 = vst [vmem:[#allocation10_spill] sm:$0xff] %v9658_v13  ;;  %v729_v18 = vmul.f32 0.5, %v9607_v55  ;;  %v1119_v17 = vsel %vm303_vm0, %v9658_v13, 0.0 }
 0x143   :  { %14011 = vst [vmem:[#allocation9_spill] sm:$0xff] %v9654_v57  ;;  %8137 = verf.f32 %v797_v43  ;;  %v798_v42 = vmul.f32 0.70710677, %v9650_v32  ;;  %v1128_v24 = vsel %vm303_vm0, %v9654_v57, 0.0  ;;  %1126 = vadd.xlane.f32.xlu0 %v1125_v1  ;;  %v736_v13 = vmul.f32 0.5, %v622_v46 }
 0x144   :  { %v8128_v19 = vpop.eup %8127  ;;  %8139 = verf.f32 %v800_v33  ;;  %1129 = vadd.xlane.f32.xlu1 %v1128_v24  ;;  %v9668_v33 = vmul.f32 %v918_v35, %v726_v44  ;;  %v730_v44 = vmul.f32 0.5, %v9618_v25 }
 0x145   :  { %v8130_v29 = vpop.eup %8129  ;;  %v7766_v52 = vpop.f32.mrb[48].mxu0  ;;  %v923_v53 = vadd.f32 1.0, %v8128_v19  ;;  %8141 = verf.f32 %v798_v42 }
 0x146   :  { %v8132_v6 = vpop.eup %8131  ;;  %v9664_v43 = vadd.f32 %v7766_v52, %v9311_v36  ;;  %v626_v61 = vpop.f32.mrb[49].mxu0  ;;  %14013 = vst [vmem:[#allocation11_spill] sm:$0xff] %v9668_v33  ;;  %v921_v24 = vadd.f32 1.0, %v8130_v29  ;;  %v1122_v57 = vsel %vm303_vm0, %v9668_v33, 0.0 }
 0x147   :  { %v9671_v7 = vadd.f32 %v9311_v36, %v626_v61  ;;  %v7767_v55 = vpop.f32.mrb[50].mxu0  ;;  %v9673_v3 = vmul.f32 %v923_v53, %v731_v34  ;;  %v924_v1 = vadd.f32 1.0, %v8132_v6  ;;  %v8134_v19 = vpop.eup %8133  ;;  %1120 = vadd.xlane.f32.xlu0 %v1119_v17  ;;  %v735_v61 = vmul.f32 0.5, %v9632_v22 }
 0x148   :  { %v803_v42 = vmul.f32 0.70710677, %v9664_v43  ;;  %v638_v52 = vadd.f32 %v7767_v55, %v9311_v36  ;;  %v629_v63 = vpop.f32.mrb[51].mxu0  ;;  %1123 = vadd.xlane.f32.xlu1 %v1122_v57  ;;  %v9690_v25 = vmul.f32 %v921_v24, %v729_v18  ;;  %v922_v57 = vadd.f32 1.0, %v8134_v19 }
 0x149   :  { %14014 = vst [vmem:[#allocation12_spill] sm:$0xff] %v9673_v3  ;;  %v801_v35 = vmul.f32 0.70710677, %v9671_v7  ;;  %v9682_v34 = vadd.f32 %v9311_v36, %v629_v63  ;;  %v1137_v53 = vsel %vm303_vm0, %v9673_v3, 0.0  ;;  %v9686_v6 = vmul.f32 %v924_v1, %v732_v11 }
 0x14a   :  { %8143 = verf.f32 %v803_v42  ;;  %v804_v29 = vmul.f32 0.70710677, %v638_v52  ;;  %14016 = vst [vmem:[#allocation14_spill] sm:$0xff] %v9690_v25  ;;  %v733_v42 = vmul.f32 0.5, %v9639_v62  ;;  %v1131_v24 = vsel %vm303_vm0, %v9690_v25, 0.0 }
 0x14b   :  { %14015 = vst [vmem:[#allocation13_spill] sm:$0xff] %v9686_v6  ;;  %8145 = verf.f32 %v801_v35  ;;  %v802_v55 = vmul.f32 0.70710677, %v9682_v34  ;;  %v1140_v63 = vsel %vm303_vm0, %v9686_v6, 0.0  ;;  %1138 = vadd.xlane.f32.xlu0 %v1137_v53  ;;  %v738_v16 = vmul.f32 0.5, %v9682_v34 }
 0x14c   :  { %v8136_v33 = vpop.eup %8135  ;;  %8147 = verf.f32 %v804_v29  ;;  %1141 = vadd.xlane.f32.xlu1 %v1140_v63  ;;  %v9700_v29 = vmul.f32 %v922_v57, %v730_v44  ;;  %v734_v44 = vmul.f32 0.5, %v9650_v32 }
 0x14d   :  { %v8138_v17 = vpop.eup %8137  ;;  %v7770_v11 = vpop.f32.mrb[52].mxu0  ;;  %v927_v1 = vadd.f32 1.0, %v8136_v33  ;;  %8149 = verf.f32 %v802_v55 }
 0x14e   :  { %v8140_v22 = vpop.eup %8139  ;;  %v9696_v35 = vadd.f32 %v7770_v11, %v9311_v36  ;;  %v642_v18 = vpop.f32.mrb[53].mxu0  ;;  %14017 = vst [vmem:[#allocation15_spill] sm:$0xff] %v9700_v29  ;;  %v925_v63 = vadd.f32 1.0, %v8138_v17  ;;  %v1134_v6 = vsel %vm303_vm0, %v9700_v29, 0.0  ;;  %v740_v29 = vmul.f32 0.5, %v638_v52 }
 0x14f   :  { %v9703_v19 = vadd.f32 %v9311_v36, %v642_v18  ;;  %v7771_v62 = vpop.f32.mrb[54].mxu0  ;;  %v9705_v46 = vmul.f32 %v927_v1, %v735_v61  ;;  %v928_v53 = vadd.f32 1.0, %v8140_v22  ;;  %v8142_v33 = vpop.eup %8141  ;;  %1132 = vadd.xlane.f32.xlu0 %v1131_v24  ;;  %v739_v18 = vmul.f32 0.5, %v9664_v43 }
 0x150   :  { %v807_v55 = vmul.f32 0.70710677, %v9696_v35  ;;  %v9709_v11 = vadd.f32 %v7771_v62, %v9311_v36  ;;  %v645_v25 = vpop.f32.mrb[55].mxu0  ;;  %1135 = vadd.xlane.f32.xlu1 %v1134_v6  ;;  %v9725_v62 = vmul.f32 %v925_v63, %v733_v42  ;;  %v926_v6 = vadd.f32 1.0, %v8142_v33  ;;  %v9071_v42 = vld [vmem:[%s13750_s2] ss:$0 sm:$0xff] }
 0x151   :  { %14018 = vst [vmem:[#allocation16_spill] sm:$0xff] %v9705_v46  ;;  %v805_v57 = vmul.f32 0.70710677, %v9703_v19  ;;  %v9716_v61 = vadd.f32 %v9311_v36, %v645_v25  ;;  %v1149_v1 = vsel %vm303_vm0, %v9705_v46, 0.0  ;;  %v9721_v22 = vmul.f32 %v928_v53, %v736_v13 }
 0x152   :  { %8151 = verf.f32 %v807_v55  ;;  %v808_v17 = vmul.f32 0.70710677, %v9709_v11  ;;  %14020 = vst [vmem:[#allocation18_spill] sm:$0xff] %v9725_v62  ;;  %v737_v55 = vmul.f32 0.5, %v9671_v7  ;;  %v1143_v33 = vsel %vm303_vm0, %v9725_v62, 0.0 }
 0x153   :  { %14019 = vst [vmem:[#allocation17_spill] sm:$0xff] %v9721_v22  ;;  %8153 = verf.f32 %v805_v57  ;;  %v806_v32 = vmul.f32 0.70710677, %v9716_v61  ;;  %v1152_v36 = vsel %vm303_vm0, %v9721_v22, 0.0  ;;  %1150 = vadd.xlane.f32.xlu0 %v1149_v1 }
 0x154   :  { %v8144_v24 = vpop.eup %8143  ;;  %8155 = verf.f32 %v808_v17  ;;  %1153 = vadd.xlane.f32.xlu1 %v1152_v36  ;;  %v9737_v17 = vmul.f32 %v926_v6, %v734_v44 }
 0x155   :  { %v8146_v25 = vpop.eup %8145  ;;  %v7774_v13 = vpop.f32.mrb[56].mxu0  ;;  %v931_v53 = vadd.f32 1.0, %v8144_v24  ;;  %8157 = verf.f32 %v806_v32 }
 0x156   :  { %v8148_v43 = vpop.eup %8147  ;;  %v9733_v63 = vadd.f32 %v9071_v42, %v7774_v13  ;;  %v658_v57 = vpop.f32.mrb[57].mxu0  ;;  %14021 = vst [vmem:[#allocation19_spill] sm:$0xff] %v9737_v17  ;;  %v929_v36 = vadd.f32 1.0, %v8146_v25  ;;  %v1146_v13 = vsel %vm303_vm0, %v9737_v17, 0.0 }
 0x157   :  { %v9739_v7 = vadd.f32 %v9071_v42, %v658_v57  ;;  %v7775_v52 = vpop.f32.mrb[58].mxu0  ;;  %v9741_v1 = vmul.f32 %v931_v53, %v739_v18  ;;  %v932_v24 = vadd.f32 1.0, %v8148_v43  ;;  %v8150_v32 = vpop.eup %8149  ;;  %1144 = vadd.xlane.f32.xlu0 %v1143_v33  ;;  %v743_v43 = vmul.f32 0.5, %v9696_v35 }
 0x158   :  { %v811_v22 = vmul.f32 0.70710677, %v9733_v63  ;;  %v670_v46 = vadd.f32 %v9071_v42, %v7775_v52  ;;  %v661_v3 = vpop.f32.mrb[59].mxu0  ;;  %1147 = vadd.xlane.f32.xlu1 %v1146_v13  ;;  %v9753_v52 = vmul.f32 %v929_v36, %v737_v55  ;;  %v930_v33 = vadd.f32 1.0, %v8150_v32 }
 0x159   :  { %14022 = vst [vmem:[#allocation20_spill] sm:$0xff] %v9741_v1  ;;  %v809_v44 = vmul.f32 0.70710677, %v9739_v7  ;;  %v662_v6 = vadd.f32 %v9071_v42, %v661_v3  ;;  %v1161_v25 = vsel %vm303_vm0, %v9741_v1, 0.0  ;;  %v9750_v53 = vmul.f32 %v932_v24, %v740_v29 }
 0x15a   :  { %8159 = verf.f32 %v811_v22  ;;  %v812_v18 = vmul.f32 0.70710677, %v670_v46  ;;  %v741_v22 = vmul.f32 0.5, %v9703_v19  ;;  %v744_v35 = vmul.f32 0.5, %v9709_v11 }
 0x15b   :  { %14023 = vst [vmem:[#allocation21_spill] sm:$0xff] %v9750_v53  ;;  %8161 = verf.f32 %v809_v44  ;;  %v810_v57 = vmul.f32 0.70710677, %v662_v6  ;;  %v1164_v34 = vsel %vm303_vm0, %v9750_v53, 0.0  ;;  %1162 = vadd.xlane.f32.xlu0 %v1161_v25  ;;  %v1155_v36 = vsel %vm303_vm0, %v9753_v52, 0.0 }
 0x15c   :  { %v8152_v17 = vpop.eup %8151  ;;  %8163 = verf.f32 %v812_v18  ;;  %1165 = vadd.xlane.f32.xlu1 %v1164_v34  ;;  %v9761_v18 = vmul.f32 %v930_v33, %v738_v16 }
 0x15d   :  { %v8154_v3 = vpop.eup %8153  ;;  %8165 = verf.f32 %v810_v57  ;;  %v7778_v29 = vpop.f32.mrb[60].mxu0  ;;  %v935_v24 = vadd.f32 1.0, %v8152_v17 }
 0x15e   :  { %v8156_v13 = vpop.eup %8155  ;;  %v683_v44 = vadd.f32 %v9071_v42, %v7778_v29  ;;  %v674_v55 = vpop.f32.mrb[61].mxu0  ;;  %v933_v57 = vadd.f32 1.0, %v8154_v3  ;;  %v1158_v17 = vsel %vm303_vm0, %v9761_v18, 0.0  ;;  %v742_v29 = vmul.f32 0.5, %v9716_v61 }
 0x15f   :  { %v675_v53 = vadd.f32 %v9071_v42, %v674_v55  ;;  %v7779_v32 = vpop.f32.mrb[62].mxu0  ;;  %v9763_v1 = vmul.f32 %v935_v24, %v743_v43  ;;  %v936_v19 = vadd.f32 1.0, %v8156_v13  ;;  %v8158_v25 = vpop.eup %8157  ;;  %1156 = vadd.xlane.f32.xlu0 %v1155_v36  ;;  %v747_v3 = vmul.f32 0.5, %v9733_v63 }
 0x160   :  { %v815_v34 = vmul.f32 0.70710677, %v683_v44  ;;  %v686_v62 = vadd.f32 %v9071_v42, %v7779_v32  ;;  %v677_v11 = vpop.f32.mrb[63].mxu0  ;;  %1159 = vadd.xlane.f32.xlu1 %v1158_v17  ;;  %v9773_v55 = vmul.f32 %v933_v57, %v741_v22  ;;  %v934_v36 = vadd.f32 1.0, %v8158_v25 }
 0x161   :  { %v813_v31 = vmul.f32 0.70710677, %v675_v53  ;;  %v678_v16 = vadd.f32 %v9071_v42, %v677_v11  ;;  %v1173_v43 = vsel %vm303_vm0, %v9763_v1, 0.0  ;;  %v9770_v24 = vmul.f32 %v936_v19, %v744_v35 }
 0x162   :  { %8167 = verf.f32 %v815_v34  ;;  %v816_v33 = vmul.f32 0.70710677, %v686_v62  ;;  %v745_v34 = vmul.f32 0.5, %v9739_v7  ;;  %v748_v17 = vmul.f32 0.5, %v670_v46 }
 0x163   :  { %8169 = verf.f32 %v813_v31  ;;  %v814_v13 = vmul.f32 0.70710677, %v678_v16  ;;  %v1176_v61 = vsel %vm303_vm0, %v9770_v24, 0.0  ;;  %1174 = vadd.xlane.f32.xlu0 %v1173_v43  ;;  %v746_v63 = vmul.f32 0.5, %v662_v6 }
 0x164   :  { %v8160_v32 = vpop.eup %8159  ;;  %8171 = verf.f32 %v816_v33  ;;  %1177 = vadd.xlane.f32.xlu1 %v1176_v61  ;;  %v1167_v31 = vsel %vm303_vm0, %v9773_v55, 0.0  ;;  %v9780_v22 = vmul.f32 %v934_v36, %v742_v29 }
 0x165   :  { %v8162_v42 = vpop.eup %8161  ;;  %8173 = verf.f32 %v814_v13  ;;  %v939_v35 = vadd.f32 1.0, %v8160_v32  ;;  %v751_v32 = vmul.f32 0.5, %v683_v44 }
 0x166   :  { %v8164_v19 = vpop.eup %8163  ;;  %v937_v57 = vadd.f32 1.0, %v8162_v42  ;;  %v1170_v7 = vsel %vm303_vm0, %v9780_v22, 0.0  ;;  %v749_v42 = vmul.f32 0.5, %v675_v53 }
 0x167   :  { %v8166_v11 = vpop.eup %8165  ;;  %v9782_v33 = vmul.f32 %v939_v35, %v747_v3  ;;  %v940_v25 = vadd.f32 1.0, %v8164_v19  ;;  %1168 = vadd.xlane.f32.xlu0 %v1167_v31  ;;  %v752_v35 = vmul.f32 0.5, %v686_v62  ;;  %v750_v31 = vmul.f32 0.5, %v678_v16 }
 0x168   :  { %v938_v46 = vadd.f32 1.0, %v8166_v11  ;;  %1171 = vadd.xlane.f32.xlu1 %v1170_v7  ;;  %v9790_v13 = vmul.f32 %v937_v57, %v745_v34 }
 0x169   :  { %v9786_v43 = vmul.f32 %v940_v25, %v748_v17  ;;  %v1185_v6 = vsel %vm303_vm0, %v9782_v33, 0.0 }
 0x16a   :  { %v9792_v29 = vmul.f32 %v938_v46, %v746_v63  ;;  %v1179_v11 = vsel %vm303_vm0, %v9790_v13, 0.0 }
 0x16b   :  { %v1188_v3 = vsel %vm303_vm0, %v9786_v43, 0.0  ;;  %1186 = vadd.xlane.f32.xlu0 %v1185_v6 }
 0x16c   :  { %v8168_v61 = vpop.eup %8167  ;;  %1189 = vadd.xlane.f32.xlu1 %v1188_v3  ;;  %v1182_v34 = vsel %vm303_vm0, %v9792_v29, 0.0 }
 0x16d   :  { %v8170_v36 = vpop.eup %8169  ;;  %v943_v19 = vadd.f32 1.0, %v8168_v61 }
 0x16e   :  { %v8172_v17 = vpop.eup %8171  ;;  %v941_v63 = vadd.f32 1.0, %v8170_v36 }
 0x16f   :  { %v8174_v44 = vpop.eup %8173  ;;  %v9800_v57 = vmul.f32 %v943_v19, %v751_v32  ;;  %v944_v25 = vadd.f32 1.0, %v8172_v17  ;;  %1180 = vadd.xlane.f32.xlu0 %v1179_v11 }
 0x170   :  { %v942_v7 = vadd.f32 1.0, %v8174_v44  ;;  %1183 = vadd.xlane.f32.xlu1 %v1182_v34  ;;  %v9806_v16 = vmul.f32 %v941_v63, %v749_v42 }
 0x171   :  { %v9802_v62 = vmul.f32 %v944_v25, %v752_v35  ;;  %v1197_v53 = vsel %vm303_vm0, %v9800_v57, 0.0 }
 0x172   :  { %v9808_v46 = vmul.f32 %v942_v7, %v750_v31  ;;  %v1191_v32 = vsel %vm303_vm0, %v9806_v16, 0.0 }
 0x173   :  { %v1200_v6 = vsel %vm303_vm0, %v9802_v62, 0.0  ;;  %1198 = vadd.xlane.f32.xlu0 %v1197_v53 }
 0x174   :  { %1201 = vadd.xlane.f32.xlu1 %v1200_v6  ;;  %v1194_v3 = vsel %vm303_vm0, %v9808_v46, 0.0 }
 0x177   :  { %1192 = vadd.xlane.f32.xlu0 %v1191_v32 }
 0x178   :  { %1195 = vadd.xlane.f32.xlu1 %v1194_v3 }
 0x187   :  { %v1019_v61 = vpop.xlane.xlu1 %1018 }
 0x188   :  { %v1206_v36 = vmul.f32 0.015625, %v1019_v61  ;;  %v1013_v35 = vpop.xlane.xlu0 %1012 }
 0x189   :  { %v1204_v42 = vmul.f32 0.015625, %v1013_v35 }
 0x18a   :  { %v9817_v19 = vsub.f32 %v9333_v9, %v1206_v36 }
 0x18b   :  { %v9820_v17 = vsub.f32 %v9339_v14, %v1204_v42  ;;  %v1022_v31 = vpop.xlane.xlu1 %1021 }
 0x18c   :  { %v1207_v11 = vmul.f32 0.015625, %v1022_v31  ;;  %v1334_v34 = vmul.f32 %v9817_v19, %v9817_v19  ;;  %v1016_v44 = vpop.xlane.xlu0 %1015 }
 0x18d   :  { %v1332_v7 = vmul.f32 %v9820_v17, %v9820_v17  ;;  %v1205_v53 = vmul.f32 0.015625, %v1016_v44 }
 0x18e   :  { %v9825_v63 = vsub.f32 %v9351_v23, %v1207_v11  ;;  %v1402_v25 = vsel %vm303_vm0, %v1334_v34, 0.0 }
 0x18f   :  { %1403 = vadd.xlane.f32.xlu0 %v1402_v25  ;;  %v9833_v14 = vsub.f32 %v9358_v37, %v1205_v53  ;;  %v1396_v23 = vsel %vm303_vm0, %v1332_v7, 0.0 }
 0x190   :  { %v1335_v9 = vmul.f32 %v9825_v63, %v9825_v63  ;;  %v1031_v6 = vpop.xlane.xlu0 %1030 }
 0x191   :  { %v1034_v32 = vpop.xlane.xlu1 %1033  ;;  %v1210_v61 = vmul.f32 0.015625, %v1031_v6  ;;  %v1333_v35 = vmul.f32 %v9833_v14, %v9833_v14 }
 0x192   :  { %v1405_v3 = vsel %vm303_vm0, %v1335_v9, 0.0  ;;  %v1211_v36 = vmul.f32 0.015625, %v1034_v32 }
 0x193   :  { %1406 = vadd.xlane.f32.xlu1 %v1405_v3  ;;  %1397 = vadd.xlane.f32.xlu0 %v1396_v23  ;;  %v9840_v42 = vsub.f32 %v9363_v40, %v1210_v61  ;;  %v1399_v34 = vsel %vm303_vm0, %v1333_v35, 0.0 }
 0x194   :  { %v9843_v31 = vsub.f32 %v9379_v54, %v1211_v36  ;;  %v1025_v37 = vpop.xlane.xlu0 %1024 }
 0x195   :  { %v1028_v11 = vpop.xlane.xlu1 %1027  ;;  %v1208_v44 = vmul.f32 0.015625, %v1025_v37  ;;  %v1338_v7 = vmul.f32 %v9840_v42, %v9840_v42 }
 0x196   :  { %v1209_v25 = vmul.f32 0.015625, %v1028_v11  ;;  %v1339_v53 = vmul.f32 %v9843_v31, %v9843_v31 }
 0x197   :  { %1400 = vadd.xlane.f32.xlu1 %v1399_v34  ;;  %v9851_v9 = vsub.f32 %v9385_v59, %v1208_v44  ;;  %v1414_v54 = vsel %vm303_vm0, %v1338_v7, 0.0 }
 0x198   :  { %v9854_v40 = vsub.f32 %v9392_v5, %v1209_v25  ;;  %1415 = vadd.xlane.f32.xlu0 %v1414_v54  ;;  %v1043_v6 = vpop.xlane.xlu0 %1042  ;;  %v1417_v3 = vsel %vm303_vm0, %v1339_v53, 0.0 }
 0x199   :  { %v1046_v32 = vpop.xlane.xlu1 %1045  ;;  %v1214_v23 = vmul.f32 0.015625, %v1043_v6  ;;  %v1336_v36 = vmul.f32 %v9851_v9, %v9851_v9 }
 0x19a   :  { %v1215_v61 = vmul.f32 0.015625, %v1046_v32  ;;  %v1337_v59 = vmul.f32 %v9854_v40, %v9854_v40 }
 0x19b   :  { %1418 = vadd.xlane.f32.xlu1 %v1417_v3  ;;  %v9863_v35 = vsub.f32 %v9397_v10, %v1214_v23  ;;  %v1408_v37 = vsel %vm303_vm0, %v1336_v36, 0.0 }
 0x19c   :  { %v9866_v5 = vsub.f32 %v9415_v26, %v1215_v61  ;;  %1409 = vadd.xlane.f32.xlu0 %v1408_v37  ;;  %v1037_v11 = vpop.xlane.xlu0 %1036  ;;  %v1411_v44 = vsel %vm303_vm0, %v1337_v59, 0.0 }
 0x19d   :  { %v1040_v34 = vpop.xlane.xlu1 %1039  ;;  %v1212_v25 = vmul.f32 0.015625, %v1037_v11  ;;  %v1342_v53 = vmul.f32 %v9863_v35, %v9863_v35 }
 0x19e   :  { %v1213_v7 = vmul.f32 0.015625, %v1040_v34  ;;  %v1343_v10 = vmul.f32 %v9866_v5, %v9866_v5 }
 0x19f   :  { %1412 = vadd.xlane.f32.xlu1 %v1411_v44  ;;  %v9875_v54 = vsub.f32 %v9418_v28, %v1212_v25  ;;  %v1426_v6 = vsel %vm303_vm0, %v1342_v53, 0.0 }
 0x1a0   :  { %v9878_v26 = vsub.f32 %v9428_v45, %v1213_v7  ;;  %1427 = vadd.xlane.f32.xlu0 %v1426_v6  ;;  %v1055_v32 = vpop.xlane.xlu0 %1054  ;;  %v1429_v23 = vsel %vm303_vm0, %v1343_v10, 0.0 }
 0x1a1   :  { %v1058_v3 = vpop.xlane.xlu1 %1057  ;;  %v1218_v61 = vmul.f32 0.015625, %v1055_v32  ;;  %v1340_v59 = vmul.f32 %v9875_v54, %v9875_v54 }
 0x1a2   :  { %v1219_v36 = vmul.f32 0.015625, %v1058_v3  ;;  %v1341_v28 = vmul.f32 %v9878_v26, %v9878_v26 }
 0x1a3   :  { %1430 = vadd.xlane.f32.xlu1 %v1429_v23  ;;  %v9887_v37 = vsub.f32 %v9435_v48, %v1218_v61  ;;  %v1420_v11 = vsel %vm303_vm0, %v1340_v59, 0.0 }
 0x1a4   :  { %v9890_v45 = vsub.f32 %v9451_v0, %v1219_v36  ;;  %1421 = vadd.xlane.f32.xlu0 %v1420_v11  ;;  %v1049_v34 = vpop.xlane.xlu0 %1048  ;;  %v1423_v25 = vsel %vm303_vm0, %v1341_v28, 0.0 }
 0x1a5   :  { %v1052_v44 = vpop.xlane.xlu1 %1051  ;;  %v1216_v7 = vmul.f32 0.015625, %v1049_v34  ;;  %v1346_v10 = vmul.f32 %v9887_v37, %v9887_v37 }
 0x1a6   :  { %v1217_v53 = vmul.f32 0.015625, %v1052_v44  ;;  %v1347_v48 = vmul.f32 %v9890_v45, %v9890_v45 }
 0x1a7   :  { %1424 = vadd.xlane.f32.xlu1 %v1423_v25  ;;  %v9899_v6 = vsub.f32 %v9457_v8, %v1216_v7  ;;  %v1438_v32 = vsel %vm303_vm0, %v1346_v10, 0.0 }
 0x1a8   :  { %v9902_v0 = vsub.f32 %v9464_v21, %v1217_v53  ;;  %1439 = vadd.xlane.f32.xlu0 %v1438_v32  ;;  %v1067_v3 = vpop.xlane.xlu0 %1066  ;;  %v1441_v61 = vsel %vm303_vm0, %v1347_v48, 0.0 }
 0x1a9   :  { %v1070_v23 = vpop.xlane.xlu1 %1069  ;;  %v1222_v36 = vmul.f32 0.015625, %v1067_v3  ;;  %v1344_v28 = vmul.f32 %v9899_v6, %v9899_v6 }
 0x1aa   :  { %v1223_v59 = vmul.f32 0.015625, %v1070_v23  ;;  %v1345_v8 = vmul.f32 %v9902_v0, %v9902_v0 }
 0x1ab   :  { %1442 = vadd.xlane.f32.xlu1 %v1441_v61  ;;  %v9911_v11 = vsub.f32 %v9469_v27, %v1222_v36  ;;  %v1432_v34 = vsel %vm303_vm0, %v1344_v28, 0.0 }
 0x1ac   :  { %v9914_v21 = vsub.f32 %v9487_v47, %v1223_v59  ;;  %1433 = vadd.xlane.f32.xlu0 %v1432_v34  ;;  %v1061_v44 = vpop.xlane.xlu0 %1060  ;;  %v1435_v7 = vsel %vm303_vm0, %v1345_v8, 0.0 }
 0x1ad   :  { %v1064_v25 = vpop.xlane.xlu1 %1063  ;;  %v1220_v53 = vmul.f32 0.015625, %v1061_v44  ;;  %v1350_v48 = vmul.f32 %v9911_v11, %v9911_v11 }
 0x1ae   :  { %v1221_v10 = vmul.f32 0.015625, %v1064_v25  ;;  %v1351_v27 = vmul.f32 %v9914_v21, %v9914_v21 }
 0x1af   :  { %1436 = vadd.xlane.f32.xlu1 %v1435_v7  ;;  %v9923_v32 = vsub.f32 %v9490_v49, %v1220_v53  ;;  %v1450_v3 = vsel %vm303_vm0, %v1350_v48, 0.0 }
 0x1b0   :  { %v9926_v47 = vsub.f32 %v9500_v38, %v1221_v10  ;;  %1451 = vadd.xlane.f32.xlu0 %v1450_v3  ;;  %v1079_v23 = vpop.xlane.xlu0 %1078  ;;  %v1453_v36 = vsel %vm303_vm0, %v1351_v27, 0.0 }
 0x1b1   :  { %v1082_v61 = vpop.xlane.xlu1 %1081  ;;  %v1226_v59 = vmul.f32 0.015625, %v1079_v23  ;;  %v1348_v8 = vmul.f32 %v9923_v32, %v9923_v32 }
 0x1b2   :  { %v1227_v28 = vmul.f32 0.015625, %v1082_v61  ;;  %v1349_v49 = vmul.f32 %v9926_v47, %v9926_v47 }
 0x1b3   :  { %1454 = vadd.xlane.f32.xlu1 %v1453_v36  ;;  %v9935_v34 = vsub.f32 %v9507_v4, %v1226_v59  ;;  %v1444_v44 = vsel %vm303_vm0, %v1348_v8, 0.0 }
 0x1b4   :  { %v9938_v38 = vsub.f32 %v9523_v30, %v1227_v28  ;;  %1445 = vadd.xlane.f32.xlu0 %v1444_v44  ;;  %v1073_v25 = vpop.xlane.xlu0 %1072  ;;  %v1447_v53 = vsel %vm303_vm0, %v1349_v49, 0.0 }
 0x1b5   :  { %v1076_v7 = vpop.xlane.xlu1 %1075  ;;  %v1224_v10 = vmul.f32 0.015625, %v1073_v25  ;;  %v1354_v27 = vmul.f32 %v9935_v34, %v9935_v34 }
 0x1b6   :  { %v1225_v48 = vmul.f32 0.015625, %v1076_v7  ;;  %v1355_v4 = vmul.f32 %v9938_v38, %v9938_v38 }
 0x1b7   :  { %1448 = vadd.xlane.f32.xlu1 %v1447_v53  ;;  %v9947_v3 = vsub.f32 %v9530_v39, %v1224_v10  ;;  %v1462_v23 = vsel %vm303_vm0, %v1354_v27, 0.0 }
 0x1b8   :  { %v9950_v30 = vsub.f32 %v9537_v56, %v1225_v48  ;;  %1463 = vadd.xlane.f32.xlu0 %v1462_v23  ;;  %v1091_v61 = vpop.xlane.xlu0 %1090  ;;  %v1465_v59 = vsel %vm303_vm0, %v1355_v4, 0.0 }
 0x1b9   :  { %v1094_v36 = vpop.xlane.xlu1 %1093  ;;  %v1230_v28 = vmul.f32 0.015625, %v1091_v61  ;;  %v1352_v49 = vmul.f32 %v9947_v3, %v9947_v3 }
 0x1ba   :  { %v1231_v8 = vmul.f32 0.015625, %v1094_v36  ;;  %v1353_v39 = vmul.f32 %v9950_v30, %v9950_v30 }
 0x1bb   :  { %1466 = vadd.xlane.f32.xlu1 %v1465_v59  ;;  %v9959_v44 = vsub.f32 %v9542_v60, %v1230_v28  ;;  %v1456_v25 = vsel %vm303_vm0, %v1352_v49, 0.0 }
 0x1bc   :  { %v9962_v56 = vsub.f32 %v9557_v20, %v1231_v8  ;;  %1457 = vadd.xlane.f32.xlu0 %v1456_v25  ;;  %v1085_v7 = vpop.xlane.xlu0 %1084  ;;  %v1459_v10 = vsel %vm303_vm0, %v1353_v39, 0.0 }
 0x1bd   :  { %v1088_v53 = vpop.xlane.xlu1 %1087  ;;  %v1228_v48 = vmul.f32 0.015625, %v1085_v7  ;;  %v1358_v4 = vmul.f32 %v9959_v44, %v9959_v44 }
 0x1be   :  { %v1229_v27 = vmul.f32 0.015625, %v1088_v53  ;;  %v1359_v60 = vmul.f32 %v9962_v56, %v9962_v56 }
 0x1bf   :  { %1460 = vadd.xlane.f32.xlu1 %v1459_v10  ;;  %v9971_v23 = vsub.f32 %v9561_v41, %v1228_v48  ;;  %v1474_v61 = vsel %vm303_vm0, %v1358_v4, 0.0 }
 0x1c0   :  { %v9974_v20 = vsub.f32 %v9572_v51, %v1229_v27  ;;  %1475 = vadd.xlane.f32.xlu0 %v1474_v61  ;;  %v1103_v36 = vpop.xlane.xlu0 %1102  ;;  %v1477_v28 = vsel %vm303_vm0, %v1359_v60, 0.0 }
 0x1c1   :  { %v1106_v59 = vpop.xlane.xlu1 %1105  ;;  %v1234_v8 = vmul.f32 0.015625, %v1103_v36  ;;  %v1356_v39 = vmul.f32 %v9971_v23, %v9971_v23 }
 0x1c2   :  { %v1235_v49 = vmul.f32 0.015625, %v1106_v59  ;;  %v1357_v41 = vmul.f32 %v9974_v20, %v9974_v20 }
 0x1c3   :  { %1478 = vadd.xlane.f32.xlu1 %v1477_v28  ;;  %v9983_v25 = vsub.f32 %v9577_v12, %v1234_v8  ;;  %v1468_v7 = vsel %vm303_vm0, %v1356_v39, 0.0 }
 0x1c4   :  { %v9986_v51 = vsub.f32 %v9590_v50, %v1235_v49  ;;  %1469 = vadd.xlane.f32.xlu0 %v1468_v7  ;;  %v1097_v53 = vpop.xlane.xlu0 %1096  ;;  %v1471_v48 = vsel %vm303_vm0, %v1357_v41, 0.0 }
 0x1c5   :  { %v1100_v10 = vpop.xlane.xlu1 %1099  ;;  %v1232_v27 = vmul.f32 0.015625, %v1097_v53  ;;  %v1362_v60 = vmul.f32 %v9983_v25, %v9983_v25 }
 0x1c6   :  { %v1233_v4 = vmul.f32 0.015625, %v1100_v10  ;;  %v1363_v12 = vmul.f32 %v9986_v51, %v9986_v51 }
 0x1c7   :  { %1472 = vadd.xlane.f32.xlu1 %v1471_v48  ;;  %v9995_v61 = vsub.f32 %v9594_v2, %v1232_v27  ;;  %v1486_v36 = vsel %vm303_vm0, %v1362_v60, 0.0 }
 0x1c8   :  { %v9998_v50 = vsub.f32 %v9604_v58, %v1233_v4  ;;  %1487 = vadd.xlane.f32.xlu0 %v1486_v36  ;;  %v1115_v59 = vpop.xlane.xlu0 %1114  ;;  %v1489_v8 = vsel %vm303_vm0, %v1363_v12, 0.0  ;;  %v14024_v58 = vld [vmem:[#allocation5_spill] sm:$0xff] }
 0x1c9   :  { %v1118_v28 = vpop.xlane.xlu1 %1117  ;;  %v1238_v49 = vmul.f32 0.015625, %v1115_v59  ;;  %v1360_v41 = vmul.f32 %v9995_v61, %v9995_v61  ;;  %v14025_v59 = vld [vmem:[#allocation6_spill] sm:$0xff] }
 0x1ca   :  { %v1239_v39 = vmul.f32 0.015625, %v1118_v28  ;;  %v1361_v2 = vmul.f32 %v9998_v50, %v9998_v50 }
 0x1cb   :  { %1490 = vadd.xlane.f32.xlu1 %v1489_v8  ;;  %v10007_v7 = vsub.f32 %v9609_v15, %v1238_v49  ;;  %v1480_v10 = vsel %vm303_vm0, %v1360_v41, 0.0  ;;  %v14027_v8 = vld [vmem:[#allocation7_spill] sm:$0xff] }
 0x1cc   :  { %v10010_v53 = vsub.f32 %v14024_v58, %v1239_v39  ;;  %1481 = vadd.xlane.f32.xlu0 %v1480_v10  ;;  %v1109_v48 = vpop.xlane.xlu0 %1108  ;;  %v1483_v4 = vsel %vm303_vm0, %v1361_v2, 0.0 }
 0x1cd   :  { %v1112_v27 = vpop.xlane.xlu1 %1111  ;;  %v1236_v60 = vmul.f32 0.015625, %v1109_v48  ;;  %v1366_v36 = vmul.f32 %v10007_v7, %v10007_v7 }
 0x1ce   :  { %v1237_v12 = vmul.f32 0.015625, %v1112_v27  ;;  %v1367_v15 = vmul.f32 %v10010_v53, %v10010_v53 }
 0x1cf   :  { %1484 = vadd.xlane.f32.xlu1 %v1483_v4  ;;  %v10019_v28 = vsub.f32 %v14025_v59, %v1236_v60  ;;  %v1498_v39 = vsel %vm303_vm0, %v1366_v36, 0.0  ;;  %v14029_v60 = vld [vmem:[#allocation8_spill] sm:$0xff] }
 0x1d0   :  { %v10022_v49 = vsub.f32 %v14027_v8, %v1237_v12  ;;  %1499 = vadd.xlane.f32.xlu0 %v1498_v39  ;;  %v1127_v41 = vpop.xlane.xlu0 %1126  ;;  %v1501_v58 = vsel %vm303_vm0, %v1367_v15, 0.0  ;;  %v14031_v12 = vld [vmem:[#allocation9_spill] sm:$0xff] }
 0x1d1   :  { %14026 = vst [vmem:[#allocation5_spill] sm:$0xff] %v10019_v28  ;;  %v1130_v2 = vpop.xlane.xlu1 %1129  ;;  %v1242_v10 = vmul.f32 0.015625, %v1127_v41  ;;  %v1364_v27 = vmul.f32 %v10019_v28, %v10019_v28 }
 0x1d2   :  { %14028 = vst [vmem:[#allocation6_spill] sm:$0xff] %v10022_v49  ;;  %v1243_v48 = vmul.f32 0.015625, %v1130_v2  ;;  %v1365_v4 = vmul.f32 %v10022_v49, %v10022_v49 }
 0x1d3   :  { %1502 = vadd.xlane.f32.xlu1 %v1501_v58  ;;  %v10031_v59 = vsub.f32 %v14029_v60, %v1242_v10  ;;  %v1492_v36 = vsel %vm303_vm0, %v1364_v27, 0.0  ;;  %v14033_v60 = vld [vmem:[#allocation10_spill] sm:$0xff] }
 0x1d4   :  { %v10034_v8 = vsub.f32 %v14031_v12, %v1243_v48  ;;  %1493 = vadd.xlane.f32.xlu0 %v1492_v36  ;;  %v1121_v39 = vpop.xlane.xlu0 %1120  ;;  %v1495_v41 = vsel %vm303_vm0, %v1365_v4, 0.0  ;;  %v14035_v48 = vld [vmem:[#allocation11_spill] sm:$0xff] }
 0x1d5   :  { %14030 = vst [vmem:[#allocation7_spill] sm:$0xff] %v10031_v59  ;;  %v1124_v15 = vpop.xlane.xlu1 %1123  ;;  %v1240_v2 = vmul.f32 0.015625, %v1121_v39  ;;  %v1370_v28 = vmul.f32 %v10031_v59, %v10031_v59 }
 0x1d6   :  { %14032 = vst [vmem:[#allocation8_spill] sm:$0xff] %v10034_v8  ;;  %v1241_v58 = vmul.f32 0.015625, %v1124_v15  ;;  %v1371_v10 = vmul.f32 %v10034_v8, %v10034_v8 }
 0x1d7   :  { %1496 = vadd.xlane.f32.xlu1 %v1495_v41  ;;  %v10043_v49 = vsub.f32 %v14033_v60, %v1240_v2  ;;  %v1510_v27 = vsel %vm303_vm0, %v1370_v28, 0.0  ;;  %v14037_v60 = vld [vmem:[#allocation12_spill] sm:$0xff] }
 0x1d8   :  { %v10046_v12 = vsub.f32 %v14035_v48, %v1241_v58  ;;  %1511 = vadd.xlane.f32.xlu0 %v1510_v27  ;;  %v1139_v36 = vpop.xlane.xlu0 %1138  ;;  %v1513_v39 = vsel %vm303_vm0, %v1371_v10, 0.0  ;;  %v14039_v58 = vld [vmem:[#allocation13_spill] sm:$0xff] }
 0x1d9   :  { %14034 = vst [vmem:[#allocation9_spill] sm:$0xff] %v10043_v49  ;;  %v1142_v4 = vpop.xlane.xlu1 %1141  ;;  %v1246_v15 = vmul.f32 0.015625, %v1139_v36  ;;  %v1368_v59 = vmul.f32 %v10043_v49, %v10043_v49 }
 0x1da   :  { %14036 = vst [vmem:[#allocation10_spill] sm:$0xff] %v10046_v12  ;;  %v1247_v41 = vmul.f32 0.015625, %v1142_v4  ;;  %v1369_v2 = vmul.f32 %v10046_v12, %v10046_v12 }
 0x1db   :  { %1514 = vadd.xlane.f32.xlu1 %v1513_v39  ;;  %v10055_v8 = vsub.f32 %v14037_v60, %v1246_v15  ;;  %v1504_v28 = vsel %vm303_vm0, %v1368_v59, 0.0  ;;  %v14041_v60 = vld [vmem:[#allocation14_spill] sm:$0xff] }
 0x1dc   :  { %v10058_v48 = vsub.f32 %v14039_v58, %v1247_v41  ;;  %1505 = vadd.xlane.f32.xlu0 %v1504_v28  ;;  %v1133_v27 = vpop.xlane.xlu0 %1132  ;;  %v1507_v36 = vsel %vm303_vm0, %v1369_v2, 0.0  ;;  %v14043_v41 = vld [vmem:[#allocation15_spill] sm:$0xff] }
 0x1dd   :  { %14038 = vst [vmem:[#allocation11_spill] sm:$0xff] %v10055_v8  ;;  %v1136_v10 = vpop.xlane.xlu1 %1135  ;;  %v1244_v4 = vmul.f32 0.015625, %v1133_v27  ;;  %v1374_v49 = vmul.f32 %v10055_v8, %v10055_v8 }
 0x1de   :  { %14040 = vst [vmem:[#allocation12_spill] sm:$0xff] %v10058_v48  ;;  %v1245_v39 = vmul.f32 0.015625, %v1136_v10  ;;  %v1375_v15 = vmul.f32 %v10058_v48, %v10058_v48 }
 0x1df   :  { %1508 = vadd.xlane.f32.xlu1 %v1507_v36  ;;  %v10067_v12 = vsub.f32 %v14041_v60, %v1244_v4  ;;  %v1522_v59 = vsel %vm303_vm0, %v1374_v49, 0.0  ;;  %v14045_v60 = vld [vmem:[#allocation16_spill] sm:$0xff] }
 0x1e0   :  { %v10070_v58 = vsub.f32 %v14043_v41, %v1245_v39  ;;  %1523 = vadd.xlane.f32.xlu0 %v1522_v59  ;;  %v1151_v28 = vpop.xlane.xlu0 %1150  ;;  %v1525_v27 = vsel %vm303_vm0, %v1375_v15, 0.0  ;;  %v14047_v39 = vld [vmem:[#allocation17_spill] sm:$0xff] }
 0x1e1   :  { %14042 = vst [vmem:[#allocation13_spill] sm:$0xff] %v10067_v12  ;;  %v1154_v2 = vpop.xlane.xlu1 %1153  ;;  %v1250_v10 = vmul.f32 0.015625, %v1151_v28  ;;  %v1372_v8 = vmul.f32 %v10067_v12, %v10067_v12 }
 0x1e2   :  { %14044 = vst [vmem:[#allocation14_spill] sm:$0xff] %v10070_v58  ;;  %v1251_v36 = vmul.f32 0.015625, %v1154_v2  ;;  %v1373_v4 = vmul.f32 %v10070_v58, %v10070_v58 }
 0x1e3   :  { %1526 = vadd.xlane.f32.xlu1 %v1525_v27  ;;  %v10079_v48 = vsub.f32 %v14045_v60, %v1250_v10  ;;  %v1516_v49 = vsel %vm303_vm0, %v1372_v8, 0.0  ;;  %v14049_v60 = vld [vmem:[#allocation18_spill] sm:$0xff] }
 0x1e4   :  { %v10082_v41 = vsub.f32 %v14047_v39, %v1251_v36  ;;  %1517 = vadd.xlane.f32.xlu0 %v1516_v49  ;;  %v1145_v59 = vpop.xlane.xlu0 %1144  ;;  %v1519_v28 = vsel %vm303_vm0, %v1373_v4, 0.0  ;;  %v14051_v36 = vld [vmem:[#allocation19_spill] sm:$0xff] }
 0x1e5   :  { %14046 = vst [vmem:[#allocation15_spill] sm:$0xff] %v10079_v48  ;;  %v1148_v15 = vpop.xlane.xlu1 %1147  ;;  %v1248_v2 = vmul.f32 0.015625, %v1145_v59  ;;  %v1378_v12 = vmul.f32 %v10079_v48, %v10079_v48 }
 0x1e6   :  { %14048 = vst [vmem:[#allocation16_spill] sm:$0xff] %v10082_v41  ;;  %v1249_v27 = vmul.f32 0.015625, %v1148_v15  ;;  %v1379_v10 = vmul.f32 %v10082_v41, %v10082_v41 }
 0x1e7   :  { %1520 = vadd.xlane.f32.xlu1 %v1519_v28  ;;  %v10091_v58 = vsub.f32 %v14049_v60, %v1248_v2  ;;  %v1534_v8 = vsel %vm303_vm0, %v1378_v12, 0.0  ;;  %v14052_v60 = vld [vmem:[#allocation20_spill] sm:$0xff] }
 0x1e8   :  { %v10094_v39 = vsub.f32 %v14051_v36, %v1249_v27  ;;  %1535 = vadd.xlane.f32.xlu0 %v1534_v8  ;;  %v1163_v49 = vpop.xlane.xlu0 %1162  ;;  %v1537_v59 = vsel %vm303_vm0, %v1379_v10, 0.0  ;;  %v14053_v27 = vld [vmem:[#allocation21_spill] sm:$0xff] }
 0x1e9   :  { %14050 = vst [vmem:[#allocation17_spill] sm:$0xff] %v10091_v58  ;;  %v1166_v4 = vpop.xlane.xlu1 %1165  ;;  %v1254_v15 = vmul.f32 0.015625, %v1163_v49  ;;  %v1376_v48 = vmul.f32 %v10091_v58, %v10091_v58 }
 0x1ea   :  { %v1255_v28 = vmul.f32 0.015625, %v1166_v4  ;;  %v1377_v2 = vmul.f32 %v10094_v39, %v10094_v39 }
 0x1eb   :  { %1538 = vadd.xlane.f32.xlu1 %v1537_v59  ;;  %v10103_v41 = vsub.f32 %v14052_v60, %v1254_v15  ;;  %v1528_v12 = vsel %vm303_vm0, %v1376_v48, 0.0 }
 0x1ec   :  { %v10106_v36 = vsub.f32 %v14053_v27, %v1255_v28  ;;  %1529 = vadd.xlane.f32.xlu0 %v1528_v12  ;;  %v1157_v8 = vpop.xlane.xlu0 %1156  ;;  %v1531_v49 = vsel %vm303_vm0, %v1377_v2, 0.0 }
 0x1ed   :  { %v1160_v10 = vpop.xlane.xlu1 %1159  ;;  %v1252_v4 = vmul.f32 0.015625, %v1157_v8  ;;  %v1382_v58 = vmul.f32 %v10103_v41, %v10103_v41 }
 0x1ee   :  { %v1253_v59 = vmul.f32 0.015625, %v1160_v10  ;;  %v1383_v15 = vmul.f32 %v10106_v36, %v10106_v36 }
 0x1ef   :  { %1532 = vadd.xlane.f32.xlu1 %v1531_v49  ;;  %v10115_v60 = vsub.f32 %v9753_v52, %v1252_v4  ;;  %v1546_v48 = vsel %vm303_vm0, %v1382_v58, 0.0 }
 0x1f0   :  { %v10118_v28 = vsub.f32 %v9761_v18, %v1253_v59  ;;  %1547 = vadd.xlane.f32.xlu0 %v1546_v48  ;;  %v1175_v27 = vpop.xlane.xlu0 %1174  ;;  %v1549_v12 = vsel %vm303_vm0, %v1383_v15, 0.0 }
 0x1f1   :  { %v1178_v2 = vpop.xlane.xlu1 %1177  ;;  %v1258_v8 = vmul.f32 0.015625, %v1175_v27  ;;  %v1380_v49 = vmul.f32 %v10115_v60, %v10115_v60 }
 0x1f2   :  { %v1259_v10 = vmul.f32 0.015625, %v1178_v2  ;;  %v1381_v52 = vmul.f32 %v10118_v28, %v10118_v28 }
 0x1f3   :  { %1550 = vadd.xlane.f32.xlu1 %v1549_v12  ;;  %v10127_v4 = vsub.f32 %v9763_v1, %v1258_v8  ;;  %v1540_v58 = vsel %vm303_vm0, %v1380_v49, 0.0 }
 0x1f4   :  { %v10130_v18 = vsub.f32 %v9770_v24, %v1259_v10  ;;  %1541 = vadd.xlane.f32.xlu0 %v1540_v58  ;;  %v1169_v59 = vpop.xlane.xlu0 %1168  ;;  %v1543_v48 = vsel %vm303_vm0, %v1381_v52, 0.0 }
 0x1f5   :  { %v1172_v15 = vpop.xlane.xlu1 %1171  ;;  %v1256_v27 = vmul.f32 0.015625, %v1169_v59  ;;  %v1386_v12 = vmul.f32 %v10127_v4, %v10127_v4 }
 0x1f6   :  { %14054 = vst [vmem:[#allocation18_spill] sm:$0xff] %v10130_v18  ;;  %v1257_v2 = vmul.f32 0.015625, %v1172_v15  ;;  %v1387_v1 = vmul.f32 %v10130_v18, %v10130_v18 }
 0x1f7   :  { %1544 = vadd.xlane.f32.xlu1 %v1543_v48  ;;  %v10139_v8 = vsub.f32 %v9773_v55, %v1256_v27  ;;  %v1558_v10 = vsel %vm303_vm0, %v1386_v12, 0.0 }
 0x1f8   :  { %v10142_v24 = vsub.f32 %v9780_v22, %v1257_v2  ;;  %1559 = vadd.xlane.f32.xlu0 %v1558_v10  ;;  %v1187_v49 = vpop.xlane.xlu0 %1186  ;;  %v1561_v58 = vsel %vm303_vm0, %v1387_v1, 0.0 }
 0x1f9   :  { %14055 = vst [vmem:[#allocation19_spill] sm:$0xff] %v10139_v8  ;;  %v1190_v52 = vpop.xlane.xlu1 %1189  ;;  %v1262_v59 = vmul.f32 0.015625, %v1187_v49  ;;  %v1384_v48 = vmul.f32 %v10139_v8, %v10139_v8 }
 0x1fa   :  { %14056 = vst [vmem:[#allocation20_spill] sm:$0xff] %v10142_v24  ;;  %v1263_v15 = vmul.f32 0.015625, %v1190_v52  ;;  %v1385_v55 = vmul.f32 %v10142_v24, %v10142_v24 }
 0x1fb   :  { %1562 = vadd.xlane.f32.xlu1 %v1561_v58  ;;  %v10151_v27 = vsub.f32 %v9782_v33, %v1262_v59  ;;  %v1552_v2 = vsel %vm303_vm0, %v1384_v48, 0.0 }
 0x1fc   :  { %v10154_v22 = vsub.f32 %v9786_v43, %v1263_v15  ;;  %1553 = vadd.xlane.f32.xlu0 %v1552_v2  ;;  %v1181_v12 = vpop.xlane.xlu0 %1180  ;;  %v1555_v10 = vsel %vm303_vm0, %v1385_v55, 0.0 }
 0x1fd   :  { %14057 = vst [vmem:[#allocation21_spill] sm:$0xff] %v10151_v27  ;;  %v1184_v1 = vpop.xlane.xlu1 %1183  ;;  %v1260_v49 = vmul.f32 0.015625, %v1181_v12  ;;  %v1390_v58 = vmul.f32 %v10151_v27, %v10151_v27 }
 0x1fe   :  { %14058 = vst [vmem:[#allocation22_spill] sm:$0xff] %v10154_v22  ;;  %v1261_v52 = vmul.f32 0.015625, %v1184_v1  ;;  %v1391_v33 = vmul.f32 %v10154_v22, %v10154_v22 }
 0x1ff   :  { %1556 = vadd.xlane.f32.xlu1 %v1555_v10  ;;  %v10163_v59 = vsub.f32 %v9790_v13, %v1260_v49  ;;  %v1570_v15 = vsel %vm303_vm0, %v1390_v58, 0.0 }
 0x200   :  { %v10166_v43 = vsub.f32 %v9792_v29, %v1261_v52  ;;  %1571 = vadd.xlane.f32.xlu0 %v1570_v15  ;;  %v1199_v48 = vpop.xlane.xlu0 %1198  ;;  %v1573_v2 = vsel %vm303_vm0, %v1391_v33, 0.0 }
 0x201   :  { %14059 = vst [vmem:[#allocation23_spill] sm:$0xff] %v10163_v59  ;;  %v1202_v55 = vpop.xlane.xlu1 %1201  ;;  %v1266_v12 = vmul.f32 0.015625, %v1199_v48  ;;  %v1388_v10 = vmul.f32 %v10163_v59, %v10163_v59 }
 0x202   :  { %14060 = vst [vmem:[#allocation24_spill] sm:$0xff] %v10166_v43  ;;  %v1267_v1 = vmul.f32 0.015625, %v1202_v55  ;;  %v1389_v13 = vmul.f32 %v10166_v43, %v10166_v43 }
 0x203   :  { %1574 = vadd.xlane.f32.xlu1 %v1573_v2  ;;  %v10175_v49 = vsub.f32 %v9800_v57, %v1266_v12  ;;  %v1564_v52 = vsel %vm303_vm0, %v1388_v10, 0.0 }
 0x204   :  { %v10178_v29 = vsub.f32 %v9802_v62, %v1267_v1  ;;  %1565 = vadd.xlane.f32.xlu0 %v1564_v52  ;;  %v1193_v58 = vpop.xlane.xlu0 %1192  ;;  %v1567_v15 = vsel %vm303_vm0, %v1389_v13, 0.0 }
 0x205   :  { %14061 = vst [vmem:[#allocation25_spill] sm:$0xff] %v10175_v49  ;;  %v1196_v33 = vpop.xlane.xlu1 %1195  ;;  %v1264_v48 = vmul.f32 0.015625, %v1193_v58  ;;  %v1394_v2 = vmul.f32 %v10175_v49, %v10175_v49 }
 0x206   :  { %14062 = vst [vmem:[#allocation26_spill] sm:$0xff] %v10178_v29  ;;  %v1265_v55 = vmul.f32 0.015625, %v1196_v33  ;;  %v1395_v57 = vmul.f32 %v10178_v29, %v10178_v29 }
 0x207   :  { %1568 = vadd.xlane.f32.xlu1 %v1567_v15  ;;  %v10187_v12 = vsub.f32 %v9806_v16, %v1264_v48  ;;  %v1582_v1 = vsel %vm303_vm0, %v1394_v2, 0.0 }
 0x208   :  { %v10190_v62 = vsub.f32 %v9808_v46, %v1265_v55  ;;  %1583 = vadd.xlane.f32.xlu0 %v1582_v1  ;;  %v1585_v10 = vsel %vm303_vm0, %v1395_v57, 0.0 }
 0x209   :  { %14063 = vst [vmem:[#allocation27_spill] sm:$0xff] %v10187_v12  ;;  %v1392_v13 = vmul.f32 %v10187_v12, %v10187_v12 }
 0x20a   :  { %14064 = vst [vmem:[#allocation28_spill] sm:$0xff] %v10190_v62  ;;  %v1393_v52 = vmul.f32 %v10190_v62, %v10190_v62 }
 0x20b   :  { %1586 = vadd.xlane.f32.xlu1 %v1585_v10  ;;  %v1576_v58 = vsel %vm303_vm0, %v1392_v13, 0.0 }
 0x20c   :  { %1577 = vadd.xlane.f32.xlu0 %v1576_v58  ;;  %v1579_v16 = vsel %vm303_vm0, %v1393_v52, 0.0  ;;  %v10203_v52 = vld [vmem:[%s13751_s3] ss:$0 sm:$0xff] }
 0x20f   :  { %1580 = vadd.xlane.f32.xlu1 %v1579_v16 }
 0x21c   :  { %v1404_v46 = vpop.xlane.xlu0 %1403 }
 0x21d   :  { %v1590_v33 = vmul.f32 0.015625, %v1404_v46 }
 0x21f   :  { %v1654_v15 = vadd.f32 1e-06, %v1590_v33 }
 0x220   :  { %v1407_v48 = vpop.xlane.xlu1 %1406  ;;  %v1398_v55 = vpop.xlane.xlu0 %1397 }
 0x221   :  { %8175 = vrsqrt.f32 %v1654_v15  ;;  %v1591_v2 = vmul.f32 0.015625, %v1407_v48  ;;  %v1588_v57 = vmul.f32 0.015625, %v1398_v55 }
 0x223   :  { %v1655_v1 = vadd.f32 1e-06, %v1591_v2  ;;  %v1652_v10 = vadd.f32 1e-06, %v1588_v57  ;;  %v10209_v57 = vld [vmem:[%s13752_s4] ss:$0 sm:$0xff] }
 0x224   :  { %v1401_v29 = vpop.xlane.xlu1 %1400 }
 0x225   :  { %8177 = vrsqrt.f32 %v1655_v1  ;;  %v1589_v49 = vmul.f32 0.015625, %v1401_v29  ;;  %v1416_v13 = vpop.xlane.xlu0 %1415 }
 0x226   :  { %8179 = vrsqrt.f32 %v1652_v10  ;;  %v1594_v58 = vmul.f32 0.015625, %v1416_v13 }
 0x227   :  { %v1653_v62 = vadd.f32 1e-06, %v1589_v49 }
 0x228   :  { %v1419_v12 = vpop.xlane.xlu1 %1418  ;;  %v1658_v46 = vadd.f32 1e-06, %v1594_v58 }
 0x229   :  { %8181 = vrsqrt.f32 %v1653_v62  ;;  %v1595_v16 = vmul.f32 0.015625, %v1419_v12  ;;  %v1410_v48 = vpop.xlane.xlu0 %1409 }
 0x22a   :  { %8183 = vrsqrt.f32 %v1658_v46  ;;  %v1592_v29 = vmul.f32 0.015625, %v1410_v48 }
 0x22b   :  { %v8176_v33 = vpop.eup %8175  ;;  %v1659_v15 = vadd.f32 1e-06, %v1595_v16 }
 0x22c   :  { %v1788_v55 = vmul.f32 %v8176_v33, %v10203_v52  ;;  %v1413_v2 = vpop.xlane.xlu1 %1412  ;;  %v1656_v1 = vadd.f32 1e-06, %v1592_v29 }
 0x22d   :  { %8185 = vrsqrt.f32 %v1659_v15  ;;  %v1593_v49 = vmul.f32 0.015625, %v1413_v2  ;;  %v1428_v13 = vpop.xlane.xlu0 %1427 }
 0x22e   :  { %v1852_v62 = vmul.f32 %v1788_v55, %v9817_v19  ;;  %8187 = vrsqrt.f32 %v1656_v1  ;;  %v1598_v46 = vmul.f32 0.015625, %v1428_v13 }
 0x22f   :  { %v8178_v12 = vpop.eup %8177  ;;  %v1657_v10 = vadd.f32 1e-06, %v1593_v49 }
 0x230   :  { %v8180_v58 = vpop.eup %8179  ;;  %v1789_v16 = vmul.f32 %v8178_v12, %v10203_v52  ;;  %v1431_v33 = vpop.xlane.xlu1 %1430  ;;  %v10214_v15 = vadd.f32 %v10209_v57, %v1852_v62  ;;  %v1662_v1 = vadd.f32 1e-06, %v1598_v46 }
 0x231   :  { %v1786_v48 = vmul.f32 %v8180_v58, %v10203_v52  ;;  %8189 = vrsqrt.f32 %v1657_v10  ;;  %v1599_v2 = vmul.f32 0.015625, %v1431_v33  ;;  %v1422_v49 = vpop.xlane.xlu0 %1421 }
 0x232   :  { %14065 = vst [vmem:[#allocation29_spill] sm:$0xff] %v10214_v15  ;;  %v2050_v29 = vmul.f32 0.70710677, %v10214_v15  ;;  %v1853_v19 = vmul.f32 %v1789_v16, %v9825_v63  ;;  %v1596_v33 = vmul.f32 0.015625, %v1422_v49 }
 0x233   :  { %v8182_v55 = vpop.eup %8181  ;;  %v1850_v43 = vmul.f32 %v1786_v48, %v9820_v17  ;;  %v1663_v62 = vadd.f32 1e-06, %v1599_v2 }
 0x234   :  { %v1787_v12 = vmul.f32 %v8182_v55, %v10203_v52  ;;  %v1425_v13 = vpop.xlane.xlu1 %1424  ;;  %v10222_v59 = vadd.f32 %v10209_v57, %v1853_v19  ;;  %v8184_v10 = vpop.eup %8183  ;;  %8191 = verf.f32 %v2050_v29  ;;  %v1660_v27 = vadd.f32 1e-06, %v1596_v33 }
 0x235   :  { %v10225_v58 = vadd.f32 %v10209_v57, %v1850_v43  ;;  %v1792_v22 = vmul.f32 %v8184_v10, %v10203_v52  ;;  %v1440_v17 = vpop.xlane.xlu0 %1439  ;;  %8193 = vrsqrt.f32 %v1662_v1  ;;  %v1597_v19 = vmul.f32 0.015625, %v1425_v13 }
 0x236   :  { %14066 = vst [vmem:[#allocation30_spill] sm:$0xff] %v10222_v59  ;;  %v2051_v63 = vmul.f32 0.70710677, %v10222_v59  ;;  %v1851_v2 = vmul.f32 %v1787_v12, %v9833_v14  ;;  %8195 = vrsqrt.f32 %v1663_v62  ;;  %v1602_v43 = vmul.f32 0.015625, %v1440_v17 }
 0x237   :  { %14067 = vst [vmem:[#allocation31_spill] sm:$0xff] %v10225_v58  ;;  %v8186_v16 = vpop.eup %8185  ;;  %v2048_v48 = vmul.f32 0.70710677, %v10225_v58  ;;  %v1856_v49 = vmul.f32 %v1792_v22, %v9840_v42  ;;  %v1661_v12 = vadd.f32 1e-06, %v1597_v19 }
 0x238   :  { %v1793_v46 = vmul.f32 %v8186_v16, %v10203_v52  ;;  %v1443_v55 = vpop.xlane.xlu1 %1442  ;;  %v8188_v29 = vpop.eup %8187  ;;  %8197 = verf.f32 %v2051_v63  ;;  %v10234_v24 = vadd.f32 %v10209_v57, %v1851_v2  ;;  %v1666_v62 = vadd.f32 1e-06, %v1602_v43 }
 0x239   :  { %v1790_v16 = vmul.f32 %v8188_v29, %v10203_v52  ;;  %v1434_v1 = vpop.xlane.xlu0 %1433  ;;  %8199 = verf.f32 %v2048_v48  ;;  %v10239_v13 = vadd.f32 %v10209_v57, %v1856_v49  ;;  %v1603_v42 = vmul.f32 0.015625, %v1443_v55 }
 0x23a   :  { %14068 = vst [vmem:[#allocation32_spill] sm:$0xff] %v10234_v24  ;;  %v1857_v10 = vmul.f32 %v1793_v46, %v9843_v31  ;;  %v2049_v33 = vmul.f32 0.70710677, %v10234_v24  ;;  %8201 = vrsqrt.f32 %v1660_v27  ;;  %v1600_v48 = vmul.f32 0.015625, %v1434_v1 }
 0x23b   :  { %v8190_v8 = vpop.eup %8189  ;;  %14069 = vst [vmem:[#allocation33_spill] sm:$0xff] %v10239_v13  ;;  %v2054_v63 = vmul.f32 0.70710677, %v10239_v13  ;;  %v1854_v17 = vmul.f32 %v1790_v16, %v9851_v9  ;;  %v1667_v19 = vadd.f32 1e-06, %v1603_v42  ;;  %v1986_v49 = vmul.f32 0.5, %v10214_v15 }
 0x23c   :  { %v1791_v14 = vmul.f32 %v8190_v8, %v10203_v52  ;;  %v1437_v22 = vpop.xlane.xlu1 %1436  ;;  %v10245_v31 = vadd.f32 %v10209_v57, %v1857_v10  ;;  %8203 = verf.f32 %v2049_v33  ;;  %v1987_v9 = vmul.f32 0.5, %v10222_v59 }
 0x23d   :  { %v1452_v46 = vpop.xlane.xlu0 %1451  ;;  %8205 = vrsqrt.f32 %v1661_v12  ;;  %v1601_v55 = vmul.f32 0.015625, %v1437_v22  ;;  %v1984_v16 = vmul.f32 0.5, %v10225_v58  ;;  %v1985_v59 = vmul.f32 0.5, %v10234_v24 }
 0x23e   :  { %14070 = vst [vmem:[#allocation34_spill] sm:$0xff] %v10245_v31  ;;  %v1855_v2 = vmul.f32 %v1791_v14, %v9854_v40  ;;  %v8192_v8 = vpop.eup %8191  ;;  %8207 = vrsqrt.f32 %v1666_v62  ;;  %v1606_v27 = vmul.f32 0.015625, %v1452_v46  ;;  %v2055_v10 = vmul.f32 0.70710677, %v10245_v31 }
 0x23f   :  { %v2178_v29 = vadd.f32 1.0, %v8192_v8  ;;  %v8194_v18 = vpop.eup %8193  ;;  %8209 = verf.f32 %v2054_v63  ;;  %v10254_v40 = vadd.f32 %v10209_v57, %v1854_v17  ;;  %v1664_v14 = vadd.f32 1e-06, %v1600_v48 }
 0x240   :  { %v1455_v43 = vpop.xlane.xlu1 %1454  ;;  %v8196_v1 = vpop.eup %8195  ;;  %8211 = verf.f32 %v2055_v10  ;;  %v10259_v22 = vadd.f32 %v10209_v57, %v1855_v2  ;;  %v1665_v33 = vadd.f32 1e-06, %v1601_v55  ;;  %v1796_v17 = vmul.f32 %v8194_v18, %v10203_v52 }
 0x241   :  { %14071 = vst [vmem:[#allocation35_spill] sm:$0xff] %v10254_v40  ;;  %v1446_v12 = vpop.xlane.xlu0 %1445  ;;  %v10256_v42 = vmul.f32 %v2178_v29, %v1986_v49  ;;  %8213 = vrsqrt.f32 %v1667_v19  ;;  %v1607_v46 = vmul.f32 0.015625, %v1455_v43  ;;  %v1670_v58 = vadd.f32 1e-06, %v1606_v27 }
 0x242   :  { %14073 = vst [vmem:[#allocation37_spill] sm:$0xff] %v10259_v22  ;;  %v8198_v62 = vpop.eup %8197  ;;  %v1604_v29 = vmul.f32 0.015625, %v1446_v12  ;;  %v1990_v2 = vmul.f32 0.5, %v10239_v13  ;;  %v2052_v19 = vmul.f32 0.70710677, %v10254_v40  ;;  %v1797_v55 = vmul.f32 %v8196_v1, %v10203_v52 }
 0x243   :  { %14072 = vst [vmem:[#allocation36_spill] sm:$0xff] %v10256_v42  ;;  %v8200_v63 = vpop.eup %8199  ;;  %v2312_v48 = vsel %vm303_vm0, %v10256_v42, 0.0  ;;  %v2179_v49 = vadd.f32 1.0, %v8198_v62  ;;  %8215 = vrsqrt.f32 %v1664_v14  ;;  %v2053_v18 = vmul.f32 0.70710677, %v10259_v22 }
 0x244   :  { %v1449_v8 = vpop.xlane.xlu1 %1448  ;;  %2313 = vadd.xlane.f32.xlu0 %v2312_v48  ;;  %v2176_v10 = vadd.f32 1.0, %v8200_v63  ;;  %v8202_v27 = vpop.eup %8201  ;;  %8217 = vrsqrt.f32 %v1665_v33  ;;  %v1671_v15 = vadd.f32 1e-06, %v1607_v46  ;;  %v1860_v1 = vmul.f32 %v1796_v17, %v9863_v35 }
 0x245   :  { %v1464_v43 = vpop.xlane.xlu0 %1463  ;;  %v10268_v24 = vmul.f32 %v2179_v49, %v1987_v9  ;;  %v1605_v42 = vmul.f32 0.015625, %v1449_v8  ;;  %8219 = vrsqrt.f32 %v1670_v58  ;;  %v1668_v9 = vadd.f32 1e-06, %v1604_v29 }
 0x246   :  { %v10271_v12 = vmul.f32 %v2176_v10, %v1984_v16  ;;  %v8204_v63 = vpop.eup %8203  ;;  %v1610_v48 = vmul.f32 0.015625, %v1464_v43  ;;  %8221 = verf.f32 %v2052_v19  ;;  %v1991_v58 = vmul.f32 0.5, %v10245_v31 }
 0x247   :  { %14074 = vst [vmem:[#allocation38_spill] sm:$0xff] %v10268_v24  ;;  %v2315_v13 = vsel %vm303_vm0, %v10268_v24, 0.0  ;;  %v8206_v14 = vpop.eup %8205  ;;  %v2177_v33 = vadd.f32 1.0, %v8204_v63  ;;  %8223 = verf.f32 %v2053_v18  ;;  %v10280_v10 = vadd.f32 %v10209_v57, %v1860_v1 }
 0x248   :  { %v1467_v62 = vpop.xlane.xlu1 %1466  ;;  %14075 = vst [vmem:[#allocation39_spill] sm:$0xff] %v10271_v12  ;;  %2316 = vadd.xlane.f32.xlu1 %v2315_v13  ;;  %v2306_v49 = vsel %vm303_vm0, %v10271_v12, 0.0  ;;  %v8208_v46 = vpop.eup %8207  ;;  %v1794_v35 = vmul.f32 %v8202_v27, %v10203_v52  ;;  %v1669_v17 = vadd.f32 1e-06, %v1605_v42  ;;  %8225 = vrsqrt.f32 %v1671_v15 }
 0x249   :  { %v1611_v8 = vmul.f32 0.015625, %v1467_v62  ;;  %2307 = vadd.xlane.f32.xlu0 %v2306_v49  ;;  %v1458_v16 = vpop.xlane.xlu0 %1457  ;;  %14076 = vst [vmem:[#allocation40_spill] sm:$0xff] %v10280_v10  ;;  %v8210_v43 = vpop.eup %8209  ;;  %v10283_v29 = vmul.f32 %v2177_v33, %v1985_v59  ;;  %v1674_v19 = vadd.f32 1e-06, %v1610_v48  ;;  %8227 = vrsqrt.f32 %v1668_v9 }
 0x24a   :  { %v1608_v13 = vmul.f32 0.015625, %v1458_v16  ;;  %v8212_v63 = vpop.eup %8211  ;;  %v2182_v49 = vadd.f32 1.0, %v8210_v43  ;;  %v2058_v31 = vmul.f32 0.70710677, %v10280_v10  ;;  %v1795_v27 = vmul.f32 %v8206_v14, %v10203_v52 }
 0x24b   :  { %v8214_v24 = vpop.eup %8213  ;;  %v2309_v18 = vsel %vm303_vm0, %v10283_v29, 0.0  ;;  %v2183_v1 = vadd.f32 1.0, %v8212_v63  ;;  %v1675_v42 = vadd.f32 1e-06, %v1611_v8  ;;  %v1861_v15 = vmul.f32 %v1797_v55, %v9866_v5 }
 0x24c   :  { %v1461_v12 = vpop.xlane.xlu1 %1460  ;;  %2310 = vadd.xlane.f32.xlu1 %v2309_v18  ;;  %v10289_v59 = vmul.f32 %v2182_v49, %v1990_v2  ;;  %8229 = vrsqrt.f32 %v1669_v17  ;;  %v1988_v16 = vmul.f32 0.5, %v10254_v40  ;;  %v1989_v55 = vmul.f32 0.5, %v10259_v22 }
 0x24d   :  { %v1609_v62 = vmul.f32 0.015625, %v1461_v12  ;;  %v1476_v33 = vpop.xlane.xlu0 %1475  ;;  %v1672_v12 = vadd.f32 1e-06, %v1608_v13  ;;  %v10292_v48 = vmul.f32 %v2183_v1, %v1991_v58  ;;  %v8216_v43 = vpop.eup %8215  ;;  %8231 = vrsqrt.f32 %v1674_v19 }
 0x24e   :  { %v2324_v14 = vsel %vm303_vm0, %v10289_v59, 0.0  ;;  %v10298_v8 = vadd.f32 %v10209_v57, %v1861_v15  ;;  %v8218_v2 = vpop.eup %8217  ;;  %8233 = verf.f32 %v2058_v31  ;;  %v1858_v58 = vmul.f32 %v1794_v35, %v9875_v54 }
 0x24f   :  { %14077 = vst [vmem:[#allocation41_spill] sm:$0xff] %v10292_v48  ;;  %v1673_v63 = vadd.f32 1e-06, %v1609_v62  ;;  %2325 = vadd.xlane.f32.xlu0 %v2324_v14  ;;  %v2327_v5 = vsel %vm303_vm0, %v10292_v48, 0.0  ;;  %v8220_v17 = vpop.eup %8219  ;;  %v1800_v13 = vmul.f32 %v8208_v46, %v10203_v52  ;;  %8235 = vrsqrt.f32 %v1675_v42 }
 0x250   :  { %v1479_v9 = vpop.xlane.xlu1 %1478  ;;  %14078 = vst [vmem:[#allocation42_spill] sm:$0xff] %v10298_v8  ;;  %v1614_v19 = vmul.f32 0.015625, %v1476_v33  ;;  %2328 = vadd.xlane.f32.xlu1 %v2327_v5  ;;  %v2059_v49 = vmul.f32 0.70710677, %v10298_v8  ;;  %v8222_v18 = vpop.eup %8221  ;;  %v1801_v1 = vmul.f32 %v8214_v24, %v10203_v52  ;;  %8237 = vrsqrt.f32 %v1672_v12 }
 0x251   :  { %v1470_v62 = vpop.xlane.xlu0 %1469  ;;  %v1615_v15 = vmul.f32 0.015625, %v1479_v9  ;;  %v10308_v22 = vadd.f32 %v10209_v57, %v1858_v58  ;;  %v8224_v31 = vpop.eup %8223  ;;  %8239 = vrsqrt.f32 %v1673_v63  ;;  %v2180_v54 = vadd.f32 1.0, %v8222_v18 }
 0x252   :  { %v1612_v35 = vmul.f32 0.015625, %v1470_v62  ;;  %v1859_v46 = vmul.f32 %v1795_v27, %v9878_v26  ;;  %v1798_v42 = vmul.f32 %v8216_v43, %v10203_v52  ;;  %v10313_v33 = vmul.f32 %v8218_v2, %v10203_v52  ;;  %v8226_v24 = vpop.eup %8225 }
 0x253   :  { %14079 = vst [vmem:[#allocation43_spill] sm:$0xff] %v10308_v22  ;;  %v2181_v5 = vadd.f32 1.0, %v8224_v31  ;;  %8241 = verf.f32 %v2059_v49  ;;  %v1678_v12 = vadd.f32 1e-06, %v1614_v19  ;;  %v10315_v9 = vmul.f32 %v2180_v54, %v1988_v16  ;;  %v8228_v63 = vpop.eup %8227 }
 0x254   :  { %v1473_v14 = vpop.xlane.xlu1 %1472  ;;  %v2056_v48 = vmul.f32 0.70710677, %v10308_v22  ;;  %v10319_v62 = vmul.f32 %v8220_v17, %v10203_v52  ;;  %v1679_v26 = vadd.f32 1e-06, %v1615_v15  ;;  %v1994_v43 = vmul.f32 0.5, %v10280_v10 }
 0x255   :  { %14080 = vst [vmem:[#allocation44_spill] sm:$0xff] %v10315_v9  ;;  %v1613_v40 = vmul.f32 0.015625, %v1473_v14  ;;  %v1488_v58 = vpop.xlane.xlu0 %1487  ;;  %v10321_v27 = vmul.f32 %v2181_v5, %v1989_v55  ;;  %v2318_v49 = vsel %vm303_vm0, %v10315_v9, 0.0  ;;  %v1676_v19 = vadd.f32 1e-06, %v1612_v35 }
 0x256   :  { %v1618_v16 = vmul.f32 0.015625, %v1488_v58  ;;  %v10327_v18 = vadd.f32 %v10209_v57, %v1859_v46  ;;  %v8230_v14 = vpop.eup %8229  ;;  %v10330_v31 = vmul.f32 %v8226_v24, %v10203_v52  ;;  %2319 = vadd.xlane.f32.xlu0 %v2318_v49  ;;  %8243 = verf.f32 %v2056_v48 }
 0x257   :  { %14081 = vst [vmem:[#allocation45_spill] sm:$0xff] %v10321_v27  ;;  %v2321_v55 = vsel %vm303_vm0, %v10321_v27, 0.0  ;;  %v1864_v17 = vmul.f32 %v1800_v13, %v9887_v37  ;;  %v8232_v15 = vpop.eup %8231  ;;  %v10336_v54 = vmul.f32 %v8228_v63, %v10203_v52  ;;  %8245 = vrsqrt.f32 %v1678_v12 }
 0x258   :  { %v1491_v2 = vpop.xlane.xlu1 %1490  ;;  %14082 = vst [vmem:[#allocation46_spill] sm:$0xff] %v10327_v18  ;;  %2322 = vadd.xlane.f32.xlu1 %v2321_v55  ;;  %v1677_v35 = vadd.f32 1e-06, %v1613_v40  ;;  %v2057_v5 = vmul.f32 0.70710677, %v10327_v18  ;;  %v8234_v58 = vpop.eup %8233  ;;  %8247 = vrsqrt.f32 %v1679_v26  ;;  %v1995_v24 = vmul.f32 0.5, %v10298_v8 }
 0x259   :  { %v1482_v46 = vpop.xlane.xlu0 %1481  ;;  %v1619_v49 = vmul.f32 0.015625, %v1491_v2  ;;  %v10341_v48 = vadd.f32 %v10209_v57, %v1864_v17  ;;  %v8236_v37 = vpop.eup %8235  ;;  %8249 = vrsqrt.f32 %v1676_v19  ;;  %v2186_v13 = vadd.f32 1.0, %v8234_v58 }
 0x25a   :  { %v1682_v63 = vadd.f32 1e-06, %v1618_v16  ;;  %v1865_v12 = vmul.f32 %v1801_v1, %v9890_v45  ;;  %v8238_v55 = vpop.eup %8237  ;;  %v10345_v40 = vmul.f32 %v8230_v14, %v10203_v52  ;;  %v1616_v27 = vmul.f32 0.015625, %v1482_v46 }
 0x25b   :  { %14083 = vst [vmem:[#allocation47_spill] sm:$0xff] %v10341_v48  ;;  %8251 = verf.f32 %v2057_v5  ;;  %v2062_v26 = vmul.f32 0.70710677, %v10341_v48  ;;  %v8240_v8 = vpop.eup %8239  ;;  %v10348_v2 = vmul.f32 %v2186_v13, %v1994_v43  ;;  %v1992_v17 = vmul.f32 0.5, %v10308_v22 }
 0x25c   :  { %v1485_v10 = vpop.xlane.xlu1 %1484  ;;  %8253 = vrsqrt.f32 %v1677_v35  ;;  %v10352_v19 = vadd.f32 %v10209_v57, %v1865_v12  ;;  %v10355_v45 = vmul.f32 %v8232_v15, %v10203_v52  ;;  %v10358_v1 = vmul.f32 %v8236_v37, %v10203_v52 }
 0x25d   :  { %v1500_v9 = vpop.xlane.xlu0 %1499  ;;  %v8242_v16 = vpop.eup %8241  ;;  %v1683_v14 = vadd.f32 1e-06, %v1619_v49  ;;  %v1862_v5 = vmul.f32 %v1798_v42, %v9899_v6  ;;  %v2336_v43 = vsel %vm303_vm0, %v10348_v2, 0.0  ;;  %8255 = vrsqrt.f32 %v1682_v63 }
 0x25e   :  { %14084 = vst [vmem:[#allocation48_spill] sm:$0xff] %v10352_v19  ;;  %v2187_v35 = vadd.f32 1.0, %v8242_v16  ;;  %v1617_v58 = vmul.f32 0.015625, %v1485_v10  ;;  %v10364_v13 = vmul.f32 %v8238_v55, %v10203_v52  ;;  %2337 = vadd.xlane.f32.xlu0 %v2336_v43  ;;  %v1680_v12 = vadd.f32 1e-06, %v1616_v27 }
 0x25f   :  { %8257 = verf.f32 %v2062_v26  ;;  %v2063_v15 = vmul.f32 0.70710677, %v10352_v19  ;;  %v1622_v49 = vmul.f32 0.015625, %v1500_v9  ;;  %v10370_v22 = vadd.f32 %v10209_v57, %v1862_v5 }
 0x260   :  { %v1503_v46 = vpop.xlane.xlu1 %1502  ;;  %v10367_v37 = vmul.f32 %v2187_v35, %v1995_v24  ;;  %v1863_v42 = vmul.f32 %v10313_v33, %v9902_v0  ;;  %v8244_v63 = vpop.eup %8243  ;;  %v10375_v10 = vmul.f32 %v8240_v8, %v10203_v52  ;;  %8259 = vrsqrt.f32 %v1683_v14 }
 0x261   :  { %14086 = vst [vmem:[#allocation50_spill] sm:$0xff] %v10370_v22  ;;  %v1494_v6 = vpop.xlane.xlu0 %1493  ;;  %v1993_v27 = vmul.f32 0.5, %v10327_v18  ;;  %v1623_v55 = vmul.f32 0.015625, %v1503_v46  ;;  %v8246_v26 = vpop.eup %8245  ;;  %v2184_v9 = vadd.f32 1.0, %v8244_v63  ;;  %v1681_v16 = vadd.f32 1e-06, %v1617_v58 }
 0x262   :  { %14085 = vst [vmem:[#allocation49_spill] sm:$0xff] %v10367_v37  ;;  %v2339_v24 = vsel %vm303_vm0, %v10367_v37, 0.0  ;;  %8261 = verf.f32 %v2063_v15  ;;  %v8248_v43 = vpop.eup %8247  ;;  %v1998_v0 = vmul.f32 0.5, %v10341_v48  ;;  %v2060_v8 = vmul.f32 0.70710677, %v10370_v22 }
 0x263   :  { %2340 = vadd.xlane.f32.xlu1 %v2339_v24  ;;  %8263 = vrsqrt.f32 %v1680_v12  ;;  %v10383_v33 = vadd.f32 %v10209_v57, %v1863_v42  ;;  %v8250_v14 = vpop.eup %8249  ;;  %v10385_v46 = vmul.f32 %v2184_v9, %v1992_v17  ;;  %v1686_v35 = vadd.f32 1e-06, %v1622_v49 }
 0x264   :  { %v1497_v5 = vpop.xlane.xlu1 %1496  ;;  %v1620_v18 = vmul.f32 0.015625, %v1494_v6  ;;  %v1868_v58 = vmul.f32 %v10319_v62, %v9911_v11  ;;  %v10390_v24 = vmul.f32 %v8246_v26, %v10203_v52  ;;  %v1687_v12 = vadd.f32 1e-06, %v1623_v55 }
 0x265   :  { %14087 = vst [vmem:[#allocation51_spill] sm:$0xff] %v10383_v33  ;;  %v1512_v15 = vpop.xlane.xlu0 %1511  ;;  %v8252_v63 = vpop.eup %8251  ;;  %8265 = verf.f32 %v2060_v8  ;;  %v2061_v48 = vmul.f32 0.70710677, %v10383_v33  ;;  %v2330_v42 = vsel %vm303_vm0, %v10385_v46, 0.0  ;;  %v1621_v49 = vmul.f32 0.015625, %v1497_v5 }
 0x266   :  { %v8254_v37 = vpop.eup %8253  ;;  %v2185_v17 = vadd.f32 1.0, %v8252_v63  ;;  %8267 = vrsqrt.f32 %v1681_v16  ;;  %v10396_v6 = vmul.f32 %v8248_v43, %v10203_v52  ;;  %2331 = vadd.xlane.f32.xlu0 %v2330_v42  ;;  %v10399_v11 = vadd.f32 %v10209_v57, %v1868_v58 }
 0x267   :  { %8269 = verf.f32 %v2061_v48  ;;  %v1869_v62 = vmul.f32 %v10330_v31, %v9914_v21  ;;  %v8256_v55 = vpop.eup %8255  ;;  %v1999_v9 = vmul.f32 0.5, %v10352_v19  ;;  %v1684_v8 = vadd.f32 1e-06, %v1620_v18 }
 0x268   :  { %14088 = vst [vmem:[#allocation52_spill] sm:$0xff] %v10399_v11  ;;  %v10403_v26 = vmul.f32 %v2185_v17, %v1993_v27  ;;  %8271 = vrsqrt.f32 %v1686_v35  ;;  %v1515_v16 = vpop.xlane.xlu1 %1514  ;;  %v10407_v43 = vmul.f32 %v8250_v14, %v10203_v52  ;;  %v10410_v48 = vmul.f32 %v8254_v37, %v10203_v52 }
 0x269   :  { %v1506_v5 = vpop.xlane.xlu0 %1505  ;;  %v8258_v63 = vpop.eup %8257  ;;  %8273 = vrsqrt.f32 %v1687_v12  ;;  %v2066_v58 = vmul.f32 0.70710677, %v10399_v11  ;;  %v1685_v27 = vadd.f32 1e-06, %v1621_v49  ;;  %v10416_v35 = vadd.f32 %v10209_v57, %v1869_v62 }
 0x26a   :  { %14089 = vst [vmem:[#allocation53_spill] sm:$0xff] %v10403_v26  ;;  %v2333_v21 = vsel %vm303_vm0, %v10403_v26, 0.0  ;;  %v2190_v31 = vadd.f32 1.0, %v8258_v63  ;;  %v8260_v18 = vpop.eup %8259  ;;  %v1996_v42 = vmul.f32 0.5, %v10370_v22  ;;  %v1866_v37 = vmul.f32 %v10336_v54, %v9923_v32 }
 0x26b   :  { %14090 = vst [vmem:[#allocation54_spill] sm:$0xff] %v10416_v35  ;;  %2334 = vadd.xlane.f32.xlu1 %v2333_v21  ;;  %8275 = verf.f32 %v2066_v58  ;;  %v1867_v14 = vmul.f32 %v10345_v40, %v9926_v47  ;;  %v10424_v17 = vmul.f32 %v8256_v55, %v10203_v52  ;;  %v1626_v49 = vmul.f32 0.015625, %v1512_v15 }
 0x26c   :  { %v8262_v12 = vpop.eup %8261  ;;  %v10426_v63 = vmul.f32 %v2190_v31, %v1998_v0  ;;  %8277 = vrsqrt.f32 %v1684_v8  ;;  %v2067_v21 = vmul.f32 0.70710677, %v10416_v35  ;;  %v1627_v22 = vmul.f32 0.015625, %v1515_v16  ;;  %v1509_v40 = vpop.xlane.xlu1 %1508 }
 0x26d   :  { %v8264_v62 = vpop.eup %8263  ;;  %v2191_v19 = vadd.f32 1.0, %v8262_v12  ;;  %v10430_v58 = vadd.f32 %v10209_v57, %v1866_v37  ;;  %v10433_v32 = vmul.f32 %v8260_v18, %v10203_v52  ;;  %8279 = vrsqrt.f32 %v1685_v27  ;;  %v1524_v0 = vpop.xlane.xlu0 %1523 }
 0x26e   :  { %14091 = vst [vmem:[#allocation55_spill] sm:$0xff] %v10426_v63  ;;  %v2348_v47 = vsel %vm303_vm0, %v10426_v63, 0.0  ;;  %v10438_v54 = vadd.f32 %v10209_v57, %v1867_v14  ;;  %8281 = verf.f32 %v2067_v21  ;;  %v1624_v16 = vmul.f32 0.015625, %v1506_v5 }
 0x26f   :  { %14092 = vst [vmem:[#allocation56_spill] sm:$0xff] %v10430_v58  ;;  %v8266_v15 = vpop.eup %8265  ;;  %2349 = vadd.xlane.f32.xlu0 %v2348_v47  ;;  %v10440_v55 = vmul.f32 %v2191_v19, %v1999_v9  ;;  %v2064_v8 = vmul.f32 0.70710677, %v10430_v58  ;;  %v1997_v37 = vmul.f32 0.5, %v10383_v33  ;;  %v1690_v12 = vadd.f32 1e-06, %v1626_v49 }
 0x270   :  { %14093 = vst [vmem:[#allocation57_spill] sm:$0xff] %v10438_v54  ;;  %v8268_v31 = vpop.eup %8267  ;;  %v2188_v18 = vadd.f32 1.0, %v8266_v15  ;;  %v2065_v27 = vmul.f32 0.70710677, %v10438_v54  ;;  %v10446_v14 = vmul.f32 %v8264_v62, %v10203_v52  ;;  %v1691_v19 = vadd.f32 1e-06, %v1627_v22 }
 0x271   :  { %v8270_v63 = vpop.eup %8269  ;;  %v2351_v47 = vsel %vm303_vm0, %v10440_v55, 0.0  ;;  %8283 = verf.f32 %v2064_v8  ;;  %v1872_v49 = vmul.f32 %v10355_v45, %v9935_v34  ;;  %v10455_v33 = vmul.f32 %v8268_v31, %v10203_v52  ;;  %v1527_v34 = vpop.xlane.xlu1 %1526 }
 0x272   :  { %v8272_v9 = vpop.eup %8271  ;;  %2352 = vadd.xlane.f32.xlu1 %v2351_v47  ;;  %v10450_v21 = vmul.f32 %v2188_v18, %v1996_v42  ;;  %v2189_v5 = vadd.f32 1.0, %v8270_v63  ;;  %8285 = verf.f32 %v2065_v27  ;;  %v2002_v62 = vmul.f32 0.5, %v10399_v11  ;;  %v1518_v45 = vpop.xlane.xlu0 %1517 }
 0x273   :  { %v8274_v15 = vpop.eup %8273  ;;  %v1688_v26 = vadd.f32 1e-06, %v1624_v16  ;;  %v1873_v22 = vmul.f32 %v10358_v1, %v9938_v38  ;;  %8287 = vrsqrt.f32 %v1690_v12  ;;  %v10465_v63 = vadd.f32 %v10209_v57, %v1872_v49 }
 0x274   :  { %v2342_v8 = vsel %vm303_vm0, %v10450_v21, 0.0  ;;  %v10462_v42 = vmul.f32 %v2189_v5, %v1997_v37  ;;  %v10468_v31 = vmul.f32 %v8272_v9, %v10203_v52  ;;  %8289 = vrsqrt.f32 %v1691_v19 }
 0x275   :  { %14094 = vst [vmem:[#allocation58_spill] sm:$0xff] %v10465_v63  ;;  %v8276_v18 = vpop.eup %8275  ;;  %2343 = vadd.xlane.f32.xlu0 %v2342_v8  ;;  %v10471_v16 = vadd.f32 %v10209_v57, %v1873_v22  ;;  %v1870_v38 = vmul.f32 %v10364_v13, %v9947_v3  ;;  %v1625_v27 = vmul.f32 0.015625, %v1509_v40  ;;  %v2070_v47 = vmul.f32 0.70710677, %v10465_v63 }
 0x276   :  { %v8278_v1 = vpop.eup %8277  ;;  %v2345_v37 = vsel %vm303_vm0, %v10462_v42, 0.0  ;;  %v2194_v12 = vadd.f32 1.0, %v8276_v18  ;;  %v2003_v9 = vmul.f32 0.5, %v10416_v35  ;;  %8291 = vrsqrt.f32 %v1688_v26  ;;  %v1536_v35 = vpop.xlane.xlu0 %1535 }
 0x277   :  { %14095 = vst [vmem:[#allocation59_spill] sm:$0xff] %v10471_v16  ;;  %2346 = vadd.xlane.f32.xlu1 %v2345_v37  ;;  %v1630_v5 = vmul.f32 0.015625, %v1524_v0  ;;  %v2071_v19 = vmul.f32 0.70710677, %v10471_v16  ;;  %v8280_v49 = vpop.eup %8279  ;;  %v10481_v22 = vmul.f32 %v8274_v15, %v10203_v52  ;;  %v2000_v13 = vmul.f32 0.5, %v10430_v58 }
 0x278   :  { %v10483_v3 = vmul.f32 %v2194_v12, %v2002_v62  ;;  %8293 = verf.f32 %v2070_v47  ;;  %v8282_v8 = vpop.eup %8281  ;;  %v2001_v40 = vmul.f32 0.5, %v10438_v54  ;;  %v10488_v18 = vadd.f32 %v10209_v57, %v1870_v38  ;;  %v1521_v12 = vpop.xlane.xlu1 %1520 }
 0x279   :  { %8295 = verf.f32 %v2071_v19  ;;  %v1871_v26 = vmul.f32 %v10375_v10, %v9950_v30  ;;  %v2195_v15 = vadd.f32 1.0, %v8282_v8  ;;  %v1689_v37 = vadd.f32 1e-06, %v1625_v27 }
 0x27a   :  { %14096 = vst [vmem:[#allocation60_spill] sm:$0xff] %v10483_v3  ;;  %14097 = vst [vmem:[#allocation61_spill] sm:$0xff] %v10488_v18  ;;  %v2360_v0 = vsel %vm303_vm0, %v10483_v3, 0.0  ;;  %v1631_v62 = vmul.f32 0.015625, %v1527_v34  ;;  %v10495_v47 = vmul.f32 %v8278_v1, %v10203_v52  ;;  %v10498_v19 = vmul.f32 %v8280_v49, %v10203_v52 }
 0x27b   :  { %v8284_v58 = vpop.eup %8283  ;;  %2361 = vadd.xlane.f32.xlu0 %v2360_v0  ;;  %v1694_v38 = vadd.f32 1e-06, %v1630_v5  ;;  %v2068_v54 = vmul.f32 0.70710677, %v10488_v18  ;;  %v10501_v10 = vmul.f32 %v2195_v15, %v2003_v9  ;;  %v1628_v8 = vmul.f32 0.015625, %v1518_v45 }
 0x27c   :  { %v8286_v30 = vpop.eup %8285  ;;  %v2192_v11 = vadd.f32 1.0, %v8284_v58  ;;  %v10504_v34 = vadd.f32 %v10209_v57, %v1871_v26  ;;  %v1629_v3 = vmul.f32 0.015625, %v1521_v12  ;;  %v1876_v1 = vmul.f32 %v10390_v24, %v9959_v44 }
 0x27d   :  { %v2193_v27 = vadd.f32 1.0, %v8286_v30  ;;  %8297 = verf.f32 %v2068_v54  ;;  %v8288_v49 = vpop.eup %8287  ;;  %v2363_v5 = vsel %vm303_vm0, %v10501_v10, 0.0  ;;  %v1695_v9 = vadd.f32 1e-06, %v1631_v62 }
 0x27e   :  { %14098 = vst [vmem:[#allocation62_spill] sm:$0xff] %v10504_v34  ;;  %v10510_v0 = vmul.f32 %v2192_v11, %v2000_v13  ;;  %8299 = vrsqrt.f32 %v1689_v37  ;;  %v8290_v15 = vpop.eup %8289  ;;  %2364 = vadd.xlane.f32.xlu1 %v2363_v5  ;;  %v2069_v45 = vmul.f32 0.70710677, %v10504_v34  ;;  %v10516_v54 = vadd.f32 %v10209_v57, %v1876_v1  ;;  %v1539_v13 = vpop.xlane.xlu1 %1538 }
 0x27f   :  { %v10512_v58 = vmul.f32 %v2193_v27, %v2001_v40  ;;  %8301 = vrsqrt.f32 %v1694_v38  ;;  %v1692_v24 = vadd.f32 1e-06, %v1628_v8  ;;  %v1634_v26 = vmul.f32 0.015625, %v1536_v35  ;;  %v1530_v37 = vpop.xlane.xlu0 %1529 }
 0x280   :  { %14099 = vst [vmem:[#allocation63_spill] sm:$0xff] %v10516_v54  ;;  %v2354_v44 = vsel %vm303_vm0, %v10510_v0, 0.0  ;;  %v1877_v11 = vmul.f32 %v10396_v6, %v9962_v56  ;;  %v8292_v62 = vpop.eup %8291  ;;  %8303 = verf.f32 %v2069_v45  ;;  %v1693_v12 = vadd.f32 1e-06, %v1629_v3 }
 0x281   :  { %2355 = vadd.xlane.f32.xlu0 %v2354_v44  ;;  %v2357_v40 = vsel %vm303_vm0, %v10512_v58, 0.0  ;;  %v2074_v38 = vmul.f32 0.70710677, %v10516_v54  ;;  %v10526_v27 = vmul.f32 %v8288_v49, %v10203_v52  ;;  %v2006_v35 = vmul.f32 0.5, %v10465_v63 }
 0x282   :  { %v8294_v30 = vpop.eup %8293  ;;  %8305 = vrsqrt.f32 %v1695_v9  ;;  %v10530_v56 = vadd.f32 %v10209_v57, %v1877_v11  ;;  %2358 = vadd.xlane.f32.xlu1 %v2357_v40  ;;  %v2007_v1 = vmul.f32 0.5, %v10471_v16  ;;  %v1874_v3 = vmul.f32 %v10407_v43, %v9971_v23  ;;  %v1533_v23 = vpop.xlane.xlu1 %1532 }
 0x283   :  { %v8296_v6 = vpop.eup %8295  ;;  %v2198_v8 = vadd.f32 1.0, %v8294_v30  ;;  %8307 = verf.f32 %v2074_v38  ;;  %v1698_v45 = vadd.f32 1e-06, %v1634_v26  ;;  %v1635_v9 = vmul.f32 0.015625, %v1539_v13  ;;  %v1548_v43 = vpop.xlane.xlu0 %1547 }
 0x284   :  { %14100 = vst [vmem:[#allocation64_spill] sm:$0xff] %v10530_v56  ;;  %v2199_v5 = vadd.f32 1.0, %v8296_v6  ;;  %8309 = vrsqrt.f32 %v1692_v24  ;;  %v2075_v49 = vmul.f32 0.70710677, %v10530_v56  ;;  %v10539_v11 = vadd.f32 %v10209_v57, %v1874_v3 }
 0x285   :  { %v10536_v44 = vmul.f32 %v2198_v8, %v2006_v35  ;;  %8311 = vrsqrt.f32 %v1693_v12  ;;  %v1632_v30 = vmul.f32 0.015625, %v1530_v37  ;;  %v1875_v38 = vmul.f32 %v10410_v48, %v9974_v20 }
 0x286   :  { %14101 = vst [vmem:[#allocation65_spill] sm:$0xff] %v10539_v11  ;;  %v10541_v40 = vmul.f32 %v2199_v5, %v2007_v1  ;;  %8313 = verf.f32 %v2075_v49  ;;  %v10546_v26 = vmul.f32 %v8290_v15, %v10203_v52  ;;  %v2004_v13 = vmul.f32 0.5, %v10488_v18 }
 0x287   :  { %v8298_v24 = vpop.eup %8297  ;;  %v2372_v12 = vsel %vm303_vm0, %v10536_v44, 0.0  ;;  %v2072_v35 = vmul.f32 0.70710677, %v10539_v11  ;;  %8315 = vrsqrt.f32 %v1698_v45  ;;  %v10555_v20 = vadd.f32 %v10209_v57, %v1875_v38 }
 0x288   :  { %v8300_v6 = vpop.eup %8299  ;;  %2373 = vadd.xlane.f32.xlu0 %v2372_v12  ;;  %v2375_v37 = vsel %vm303_vm0, %v10541_v40, 0.0  ;;  %v2196_v8 = vadd.f32 1.0, %v8298_v24  ;;  %v10558_v15 = vmul.f32 %v8292_v62, %v10203_v52  ;;  %v1699_v1 = vadd.f32 1e-06, %v1635_v9 }
 0x289   :  { %14102 = vst [vmem:[#allocation66_spill] sm:$0xff] %v10555_v20  ;;  %v8302_v48 = vpop.eup %8301  ;;  %2376 = vadd.xlane.f32.xlu1 %v2375_v37  ;;  %8317 = verf.f32 %v2072_v35  ;;  %v1880_v3 = vmul.f32 %v10424_v17, %v9983_v25  ;;  %v2005_v49 = vmul.f32 0.5, %v10504_v34  ;;  %v1696_v12 = vadd.f32 1e-06, %v1632_v30  ;;  %v1551_v35 = vpop.xlane.xlu1 %1550 }
 0x28a   :  { %v10562_v5 = vmul.f32 %v2196_v8, %v2004_v13  ;;  %v2073_v45 = vmul.f32 0.70710677, %v10555_v20  ;;  %v8304_v24 = vpop.eup %8303  ;;  %v10567_v38 = vmul.f32 %v8300_v6, %v10203_v52  ;;  %v2010_v62 = vmul.f32 0.5, %v10516_v54  ;;  %v1542_v8 = vpop.xlane.xlu0 %1541  ;;  %v10580_v52 = vld [vmem:[%s13751_s3] ss:$0 sm:$0xff] }
 0x28b   :  { %v10571_v37 = vadd.f32 %v10209_v57, %v1880_v3  ;;  %v1881_v9 = vmul.f32 %v10433_v32, %v9986_v51  ;;  %v2197_v13 = vadd.f32 1.0, %v8304_v24  ;;  %v1633_v30 = vmul.f32 0.015625, %v1533_v23 }
 0x28c   :  { %v8306_v25 = vpop.eup %8305  ;;  %v2366_v17 = vsel %vm303_vm0, %v10562_v5, 0.0  ;;  %8319 = verf.f32 %v2073_v45  ;;  %v10583_v6 = vmul.f32 %v10580_v52, %v8302_v48  ;;  %v2011_v51 = vmul.f32 0.5, %v10530_v56 }
 0x28d   :  { %14103 = vst [vmem:[#allocation67_spill] sm:$0xff] %v10571_v37  ;;  %v8308_v34 = vpop.eup %8307  ;;  %2367 = vadd.xlane.f32.xlu0 %v2366_v17  ;;  %8321 = vrsqrt.f32 %v1699_v1  ;;  %v2078_v32 = vmul.f32 0.70710677, %v10571_v37  ;;  %v10587_v45 = vmul.f32 %v2197_v13, %v2005_v49  ;;  %v10590_v24 = vadd.f32 %v10209_v57, %v1881_v9 }
 0x28e   :  { %v8310_v3 = vpop.eup %8309  ;;  %v2202_v23 = vadd.f32 1.0, %v8308_v34  ;;  %8323 = vrsqrt.f32 %v1696_v12  ;;  %v10593_v18 = vmul.f32 %v10580_v52, %v8306_v25  ;;  %v1878_v48 = vmul.f32 %v10446_v14, %v9995_v61  ;;  %v10608_v61 = vld [vmem:[%s13752_s4] ss:$0 sm:$0xff] }
 0x28f   :  { %14104 = vst [vmem:[#allocation68_spill] sm:$0xff] %v10590_v24  ;;  %v8312_v54 = vpop.eup %8311  ;;  %8325 = verf.f32 %v2078_v32  ;;  %v1879_v1 = vmul.f32 %v10455_v33, %v9998_v50  ;;  %v2369_v49 = vsel %vm303_vm0, %v10587_v45, 0.0  ;;  %v1697_v12 = vadd.f32 1e-06, %v1633_v30  ;;  %v1545_v32 = vpop.xlane.xlu1 %1544 }
 0x290   :  { %v8314_v17 = vpop.eup %8313  ;;  %v10601_v34 = vmul.f32 %v2202_v23, %v2010_v62  ;;  %v1638_v57 = vmul.f32 0.015625, %v1548_v43  ;;  %2370 = vadd.xlane.f32.xlu1 %v2369_v49  ;;  %v2008_v25 = vmul.f32 0.5, %v10539_v11  ;;  %v2079_v13 = vmul.f32 0.70710677, %v10590_v24  ;;  %v1560_v23 = vpop.xlane.xlu0 %1559 }
 0x291   :  { %v2203_v9 = vadd.f32 1.0, %v8314_v17  ;;  %v10611_v50 = vadd.f32 %v10608_v61, %v1878_v48  ;;  %v8316_v33 = vpop.eup %8315  ;;  %v10614_v14 = vmul.f32 %v10580_v52, %v8310_v3  ;;  %v1639_v62 = vmul.f32 0.015625, %v1551_v35 }
 0x292   :  { %v2384_v43 = vsel %vm303_vm0, %v10601_v34, 0.0  ;;  %v10619_v30 = vadd.f32 %v10608_v61, %v1879_v1  ;;  %v10622_v49 = vmul.f32 %v10580_v52, %v8312_v54  ;;  %v2009_v11 = vmul.f32 0.5, %v10555_v20 }
 0x293   :  { %14105 = vst [vmem:[#allocation69_spill] sm:$0xff] %v10611_v50  ;;  %v8318_v17 = vpop.eup %8317  ;;  %2385 = vadd.xlane.f32.xlu0 %v2384_v43  ;;  %v10624_v48 = vmul.f32 %v2203_v9, %v2011_v51  ;;  %8327 = verf.f32 %v2079_v13  ;;  %v1702_v56 = vadd.f32 1e-06, %v1638_v57  ;;  %v2076_v35 = vmul.f32 0.70710677, %v10611_v50 }
 0x294   :  { %14106 = vst [vmem:[#allocation70_spill] sm:$0xff] %v10619_v30  ;;  %v2200_v3 = vadd.f32 1.0, %v8318_v17  ;;  %8329 = vrsqrt.f32 %v1697_v12  ;;  %v1636_v16 = vmul.f32 0.015625, %v1542_v8  ;;  %v2077_v63 = vmul.f32 0.70710677, %v10619_v30 }
 0x295   :  { %v2387_v1 = vsel %vm303_vm0, %v10624_v48, 0.0  ;;  %v1884_v54 = vmul.f32 %v10468_v31, %v10007_v7  ;;  %v10634_v51 = vmul.f32 %v10580_v52, %v8316_v33  ;;  %v1703_v12 = vadd.f32 1e-06, %v1639_v62  ;;  %v1563_v33 = vpop.xlane.xlu1 %1562  ;;  %v1554_v62 = vpop.xlane.xlu0 %1553 }
 0x296   :  { %v8320_v43 = vpop.eup %8319  ;;  %2388 = vadd.xlane.f32.xlu1 %v2387_v1  ;;  %v10636_v9 = vmul.f32 %v2200_v3, %v2008_v25  ;;  %8331 = verf.f32 %v2076_v35  ;;  %v1637_v17 = vmul.f32 0.015625, %v1545_v32  ;;  %v2014_v31 = vmul.f32 0.5, %v10571_v37 }
 0x297   :  { %v8322_v57 = vpop.eup %8321  ;;  %v2201_v13 = vadd.f32 1.0, %v8320_v43  ;;  %8333 = verf.f32 %v2077_v63  ;;  %v10639_v8 = vadd.f32 %v10608_v61, %v1884_v54  ;;  %v1885_v25 = vmul.f32 %v10481_v22, %v10010_v53 }
 0x298   :  { %v8324_v20 = vpop.eup %8323  ;;  %v2378_v7 = vsel %vm303_vm0, %v10636_v9, 0.0  ;;  %8335 = vrsqrt.f32 %v1702_v56  ;;  %v2015_v63 = vmul.f32 0.5, %v10590_v24  ;;  %v1700_v32 = vadd.f32 1e-06, %v1636_v16  ;;  %v14110_v56 = vld [vmem:[#allocation5_spill] sm:$0xff] }
 0x299   :  { %14107 = vst [vmem:[#allocation71_spill] sm:$0xff] %v10639_v8  ;;  %v8326_v3 = vpop.eup %8325  ;;  %2379 = vadd.xlane.f32.xlu0 %v2378_v7  ;;  %v10646_v35 = vmul.f32 %v2201_v13, %v2009_v11  ;;  %v2082_v1 = vmul.f32 0.70710677, %v10639_v8  ;;  %8337 = vrsqrt.f32 %v1703_v12  ;;  %v1642_v43 = vmul.f32 0.015625, %v1560_v23 }
 0x29a   :  { %v2206_v54 = vadd.f32 1.0, %v8326_v3  ;;  %v10651_v37 = vadd.f32 %v10608_v61, %v1885_v25  ;;  %v1701_v22 = vadd.f32 1e-06, %v1637_v17  ;;  %v1882_v11 = vmul.f32 %v10495_v47, %v14110_v56  ;;  %v14113_v3 = vld [vmem:[#allocation6_spill] sm:$0xff] }
 0x29b   :  { %14108 = vst [vmem:[#allocation72_spill] sm:$0xff] %v10646_v35  ;;  %v2381_v53 = vsel %vm303_vm0, %v10646_v35, 0.0  ;;  %8339 = verf.f32 %v2082_v1  ;;  %v10658_v13 = vmul.f32 %v10580_v52, %v8322_v57  ;;  %v1643_v23 = vmul.f32 0.015625, %v1563_v33  ;;  %v1572_v33 = vpop.xlane.xlu0 %1571 }
 0x29c   :  { %14109 = vst [vmem:[#allocation73_spill] sm:$0xff] %v10651_v37  ;;  %2382 = vadd.xlane.f32.xlu1 %v2381_v53  ;;  %v10660_v16 = vmul.f32 %v2206_v54, %v2014_v31  ;;  %v2083_v12 = vmul.f32 0.70710677, %v10651_v37  ;;  %v10664_v25 = vmul.f32 %v10580_v52, %v8324_v20  ;;  %8341 = vrsqrt.f32 %v1700_v32  ;;  %v1557_v53 = vpop.xlane.xlu1 %1556 }
 0x29d   :  { %v8328_v7 = vpop.eup %8327  ;;  %v10667_v17 = vadd.f32 %v10608_v61, %v1882_v11  ;;  %v1883_v47 = vmul.f32 %v10498_v19, %v14113_v3  ;;  %v1706_v54 = vadd.f32 1e-06, %v1642_v43  ;;  %v2012_v20 = vmul.f32 0.5, %v10611_v50  ;;  %v14117_v50 = vld [vmem:[#allocation8_spill] sm:$0xff] }
 0x29e   :  { %14111 = vst [vmem:[#allocation5_spill] sm:$0xff] %v10660_v16  ;;  %v8330_v1 = vpop.eup %8329  ;;  %v2396_v57 = vsel %vm303_vm0, %v10660_v16, 0.0  ;;  %v2207_v31 = vadd.f32 1.0, %v8328_v7  ;;  %8343 = verf.f32 %v2083_v12  ;;  %v1640_v56 = vmul.f32 0.015625, %v1554_v62  ;;  %v14116_v16 = vld [vmem:[#allocation7_spill] sm:$0xff] }
 0x29f   :  { %14112 = vst [vmem:[#allocation74_spill] sm:$0xff] %v10667_v17  ;;  %2397 = vadd.xlane.f32.xlu0 %v2396_v57  ;;  %8345 = vrsqrt.f32 %v1701_v22  ;;  %v2080_v32 = vmul.f32 0.70710677, %v10667_v17  ;;  %v1707_v19 = vadd.f32 1e-06, %v1643_v23  ;;  %v10678_v3 = vadd.f32 %v10608_v61, %v1883_v47 }
 0x2a0   :  { %v8332_v11 = vpop.eup %8331  ;;  %v10675_v24 = vmul.f32 %v2207_v31, %v2015_v63  ;;  %v1888_v43 = vmul.f32 %v10526_v27, %v14116_v16  ;;  %v2013_v57 = vmul.f32 0.5, %v10619_v30  ;;  %v1889_v22 = vmul.f32 %v10546_v26, %v14117_v50 }
 0x2a1   :  { %14115 = vst [vmem:[#allocation75_spill] sm:$0xff] %v10678_v3  ;;  %v8334_v12 = vpop.eup %8333  ;;  %v2204_v7 = vadd.f32 1.0, %v8332_v11  ;;  %8347 = verf.f32 %v2080_v32  ;;  %v1641_v23 = vmul.f32 0.015625, %v1557_v53  ;;  %v1704_v31 = vadd.f32 1e-06, %v1640_v56 }
 0x2a2   :  { %14114 = vst [vmem:[#allocation6_spill] sm:$0xff] %v10675_v24  ;;  %v8336_v35 = vpop.eup %8335  ;;  %v2399_v62 = vsel %vm303_vm0, %v10675_v24, 0.0  ;;  %v2205_v63 = vadd.f32 1.0, %v8334_v12  ;;  %8349 = vrsqrt.f32 %v1706_v54  ;;  %v2081_v27 = vmul.f32 0.70710677, %v10678_v3  ;;  %v1575_v12 = vpop.xlane.xlu1 %1574 }
 0x2a3   :  { %2400 = vadd.xlane.f32.xlu1 %v2399_v62  ;;  %v10687_v47 = vmul.f32 %v2204_v7, %v2012_v20  ;;  %v10691_v16 = vadd.f32 %v10608_v61, %v1888_v43  ;;  %v8338_v32 = vpop.eup %8337  ;;  %8351 = vrsqrt.f32 %v1707_v19  ;;  %v1646_v26 = vmul.f32 0.015625, %v1572_v33  ;;  %v1566_v54 = vpop.xlane.xlu0 %1565 }
 0x2a4   :  { %v10693_v11 = vmul.f32 %v2205_v63, %v2013_v57  ;;  %v10696_v50 = vadd.f32 %v10608_v61, %v1889_v22  ;;  %v10699_v20 = vmul.f32 %v10580_v52, %v8330_v1  ;;  %v2018_v43 = vmul.f32 0.5, %v10639_v8  ;;  %v14122_v63 = vld [vmem:[#allocation9_spill] sm:$0xff] }
 0x2a5   :  { %14118 = vst [vmem:[#allocation7_spill] sm:$0xff] %v10687_v47  ;;  %14119 = vst [vmem:[#allocation8_spill] sm:$0xff] %v10691_v16  ;;  %v8340_v53 = vpop.eup %8339  ;;  %v2390_v56 = vsel %vm303_vm0, %v10687_v47, 0.0  ;;  %8353 = verf.f32 %v2081_v27  ;;  %v1705_v7 = vadd.f32 1e-06, %v1641_v23  ;;  %v1647_v62 = vmul.f32 0.015625, %v1575_v12 }
 0x2a6   :  { %14120 = vst [vmem:[#allocation76_spill] sm:$0xff] %v10693_v11  ;;  %14121 = vst [vmem:[#allocation77_spill] sm:$0xff] %v10696_v50  ;;  %2391 = vadd.xlane.f32.xlu0 %v2390_v56  ;;  %v2393_v19 = vsel %vm303_vm0, %v10693_v11, 0.0  ;;  %v2210_v33 = vadd.f32 1.0, %v8340_v53  ;;  %v2086_v57 = vmul.f32 0.70710677, %v10691_v16  ;;  %v8342_v22 = vpop.eup %8341  ;;  %8355 = vrsqrt.f32 %v1704_v31 }
 0x2a7   :  { %2394 = vadd.xlane.f32.xlu1 %v2393_v19  ;;  %v2087_v1 = vmul.f32 0.70710677, %v10696_v50  ;;  %v1886_v30 = vmul.f32 %v10558_v15, %v14122_v63  ;;  %v2019_v27 = vmul.f32 0.5, %v10651_v37  ;;  %v1710_v56 = vadd.f32 1e-06, %v1646_v26  ;;  %v14125_v12 = vld [vmem:[#allocation10_spill] sm:$0xff] }
 0x2a8   :  { %v8344_v24 = vpop.eup %8343  ;;  %v10710_v8 = vmul.f32 %v2210_v33, %v2018_v43  ;;  %8357 = verf.f32 %v2086_v57  ;;  %v1644_v31 = vmul.f32 0.015625, %v1566_v54  ;;  %v10717_v19 = vmul.f32 %v10580_v52, %v8336_v35  ;;  %v1569_v33 = vpop.xlane.xlu1 %1568  ;;  %v14128_v37 = vld [vmem:[#allocation11_spill] sm:$0xff] }
 0x2a9   :  { %v8346_v53 = vpop.eup %8345  ;;  %v2211_v23 = vadd.f32 1.0, %v8344_v24  ;;  %8359 = verf.f32 %v2087_v1  ;;  %v10714_v11 = vadd.f32 %v10608_v61, %v1886_v30  ;;  %v1887_v43 = vmul.f32 %v10567_v38, %v14125_v12  ;;  %v10723_v57 = vpop.xlane.xlu0 %1583 }
 0x2aa   :  { %14123 = vst [vmem:[#allocation9_spill] sm:$0xff] %v10710_v8  ;;  %v2408_v15 = vsel %vm303_vm0, %v10710_v8, 0.0  ;;  %8361 = vrsqrt.f32 %v1705_v7  ;;  %v10726_v24 = vmul.f32 %v10580_v52, %v8338_v32  ;;  %v1711_v54 = vadd.f32 1e-06, %v1647_v62 }
 0x2ab   :  { %14124 = vst [vmem:[#allocation78_spill] sm:$0xff] %v10714_v11  ;;  %v8348_v26 = vpop.eup %8347  ;;  %2409 = vadd.xlane.f32.xlu0 %v2408_v15  ;;  %v10728_v30 = vmul.f32 %v2211_v23, %v2019_v27  ;;  %v2084_v35 = vmul.f32 0.70710677, %v10714_v11  ;;  %v2016_v63 = vmul.f32 0.5, %v10667_v17  ;;  %8363 = vrsqrt.f32 %v1710_v56 }
 0x2ac   :  { %v8350_v1 = vpop.eup %8349  ;;  %v2208_v7 = vadd.f32 1.0, %v8348_v26  ;;  %v10733_v38 = vadd.f32 %v10608_v61, %v1887_v43  ;;  %v1708_v32 = vadd.f32 1e-06, %v1644_v31  ;;  %v1892_v27 = vmul.f32 %v10583_v6, %v14128_v37  ;;  %v14131_v31 = vld [vmem:[#allocation12_spill] sm:$0xff] }
 0x2ad   :  { %14126 = vst [vmem:[#allocation10_spill] sm:$0xff] %v10728_v30  ;;  %v2411_v12 = vsel %vm303_vm0, %v10728_v30, 0.0  ;;  %8365 = verf.f32 %v2084_v35  ;;  %v8352_v23 = vpop.eup %8351  ;;  %v10740_v62 = vmul.f32 %v10580_v52, %v8342_v22  ;;  %v1645_v26 = vmul.f32 0.015625, %v1569_v33  ;;  %v1578_v33 = vpop.xlane.xlu0 %1577 }
 0x2ae   :  { %14127 = vst [vmem:[#allocation79_spill] sm:$0xff] %v10733_v38  ;;  %2412 = vadd.xlane.f32.xlu1 %v2411_v12  ;;  %v10742_v15 = vmul.f32 %v2208_v7, %v2016_v63  ;;  %v2085_v56 = vmul.f32 0.70710677, %v10733_v38  ;;  %v2017_v17 = vmul.f32 0.5, %v10678_v3  ;;  %8367 = vrsqrt.f32 %v1711_v54  ;;  %v10756_v7 = vpop.xlane.xlu1 %1586 }
 0x2af   :  { %v8354_v43 = vpop.eup %8353  ;;  %v10747_v35 = vadd.f32 %v10608_v61, %v1892_v27  ;;  %v1893_v37 = vmul.f32 %v10593_v18, %v14131_v31  ;;  %v10752_v6 = vmul.f32 %v10580_v52, %v8346_v53  ;;  %v10759_v54 = vmul.f32 %v10580_v52, %v8350_v1 }
 0x2b0   :  { %14129 = vst [vmem:[#allocation11_spill] sm:$0xff] %v10742_v15  ;;  %v2402_v22 = vsel %vm303_vm0, %v10742_v15, 0.0  ;;  %v2209_v63 = vadd.f32 1.0, %v8354_v43  ;;  %8369 = verf.f32 %v2085_v56  ;;  %v8356_v12 = vpop.eup %8355  ;;  %v2022_v27 = vmul.f32 0.5, %v10691_v16  ;;  %v14133_v56 = vld [vmem:[#allocation13_spill] sm:$0xff] }
 0x2b1   :  { %14130 = vst [vmem:[#allocation80_spill] sm:$0xff] %v10747_v35  ;;  %2403 = vadd.xlane.f32.xlu0 %v2402_v22  ;;  %8371 = vrsqrt.f32 %v1708_v32  ;;  %v2090_v18 = vmul.f32 0.70710677, %v10747_v35  ;;  %v1709_v3 = vadd.f32 1e-06, %v1645_v26  ;;  %v10766_v43 = vadd.f32 %v10608_v61, %v1893_v37  ;;  %v14134_v22 = vld [vmem:[#allocation14_spill] sm:$0xff] }
 0x2b2   :  { %v8358_v53 = vpop.eup %8357  ;;  %v10763_v31 = vmul.f32 %v2209_v63, %v2017_v17  ;;  %v1890_v30 = vmul.f32 %v10614_v14, %v14133_v56  ;;  %v1648_v1 = vmul.f32 0.015625, %v1578_v33  ;;  %v1891_v16 = vmul.f32 %v10622_v49, %v14134_v22  ;;  %v1581_v22 = vpop.xlane.xlu1 %1580 }
 0x2b3   :  { %14132 = vst [vmem:[#allocation12_spill] sm:$0xff] %v10766_v43  ;;  %v8360_v15 = vpop.eup %8359  ;;  %v2214_v8 = vadd.f32 1.0, %v8358_v53  ;;  %8373 = verf.f32 %v2090_v18  ;;  %v10773_v47 = vmul.f32 %v10580_v52, %v8352_v23  ;;  %v2023_v26 = vmul.f32 0.5, %v10696_v50 }
 0x2b4   :  { %v8362_v32 = vpop.eup %8361  ;;  %v2405_v17 = vsel %vm303_vm0, %v10763_v31, 0.0  ;;  %v2215_v37 = vadd.f32 1.0, %v8360_v15  ;;  %v2020_v14 = vmul.f32 0.5, %v10714_v11  ;;  %v2091_v33 = vmul.f32 0.70710677, %v10766_v43 }
 0x2b5   :  { %2406 = vadd.xlane.f32.xlu1 %v2405_v17  ;;  %v10778_v63 = vmul.f32 %v2214_v8, %v2022_v27  ;;  %v10783_v18 = vadd.f32 %v10608_v61, %v1890_v30  ;;  %v8364_v49 = vpop.eup %8363  ;;  %8375 = vrsqrt.f32 %v1709_v3  ;;  %v1712_v23 = vadd.f32 1e-06, %v1648_v1 }
 0x2b6   :  { %v10785_v53 = vmul.f32 %v2215_v37, %v2023_v26  ;;  %v10788_v56 = vadd.f32 %v10608_v61, %v1891_v16  ;;  %v10791_v8 = vmul.f32 %v10580_v52, %v8356_v12  ;;  %v10794_v27 = vmul.f32 %v10580_v52, %v8362_v32  ;;  %v14139_v37 = vld [vmem:[#allocation15_spill] sm:$0xff] }
 0x2b7   :  { %14135 = vst [vmem:[#allocation13_spill] sm:$0xff] %v10778_v63  ;;  %14136 = vst [vmem:[#allocation14_spill] sm:$0xff] %v10783_v18  ;;  %v8366_v15 = vpop.eup %8365  ;;  %v2420_v30 = vsel %vm303_vm0, %v10778_v63, 0.0  ;;  %8377 = verf.f32 %v2091_v33  ;;  %v2021_v16 = vmul.f32 0.5, %v10733_v38  ;;  %v2088_v17 = vmul.f32 0.70710677, %v10783_v18 }
 0x2b8   :  { %14137 = vst [vmem:[#allocation81_spill] sm:$0xff] %v10785_v53  ;;  %14138 = vst [vmem:[#allocation82_spill] sm:$0xff] %v10788_v56  ;;  %2421 = vadd.xlane.f32.xlu0 %v2420_v30  ;;  %v2423_v3 = vsel %vm303_vm0, %v10785_v53, 0.0  ;;  %v2212_v1 = vadd.f32 1.0, %v8366_v15  ;;  %v8368_v26 = vpop.eup %8367  ;;  %8379 = vrsqrt.f32 %v1712_v23  ;;  %v2089_v12 = vmul.f32 0.70710677, %v10788_v56 }
 0x2b9   :  { %2424 = vadd.xlane.f32.xlu1 %v2423_v3  ;;  %v1649_v32 = vmul.f32 0.015625, %v1581_v22  ;;  %v1896_v11 = vmul.f32 %v10634_v51, %v14139_v37  ;;  %v10806_v33 = vmul.f32 %v10580_v52, %v8364_v49  ;;  %8381 = verf.f32 %v2088_v17  ;;  %v14140_v15 = vld [vmem:[#allocation16_spill] sm:$0xff] }
 0x2ba   :  { %v8370_v50 = vpop.eup %8369  ;;  %v10808_v30 = vmul.f32 %v2212_v1, %v2020_v14  ;;  %v1897_v38 = vmul.f32 %v10658_v13, %v14140_v15  ;;  %v2026_v23 = vmul.f32 0.5, %v10747_v35  ;;  %8383 = verf.f32 %v2089_v12  ;;  %v14143_v14 = vld [vmem:[#allocation17_spill] sm:$0xff] }
 0x2bb   :  { %v8372_v53 = vpop.eup %8371  ;;  %v2213_v63 = vadd.f32 1.0, %v8370_v50  ;;  %v10814_v22 = vadd.f32 %v10608_v61, %v1896_v11  ;;  %v1894_v3 = vmul.f32 %v10664_v25, %v14143_v14  ;;  %v1895_v13 = vmul.f32 %v10699_v20, %v10094_v39 }
 0x2bc   :  { %v2414_v51 = vsel %vm303_vm0, %v10808_v30, 0.0  ;;  %v10819_v49 = vadd.f32 %v10608_v61, %v1897_v38  ;;  %v2027_v17 = vmul.f32 0.5, %v10766_v43  ;;  %v1713_v11 = vadd.f32 1e-06, %v1649_v32 }
 0x2bd   :  { %14141 = vst [vmem:[#allocation15_spill] sm:$0xff] %v10814_v22  ;;  %v8374_v1 = vpop.eup %8373  ;;  %2415 = vadd.xlane.f32.xlu0 %v2414_v51  ;;  %v10825_v50 = vmul.f32 %v2213_v63, %v2021_v16  ;;  %v2094_v12 = vmul.f32 0.70710677, %v10814_v22  ;;  %v10830_v37 = vmul.f32 %v10580_v52, %v8368_v26  ;;  %v10834_v25 = vadd.f32 %v10608_v61, %v1894_v3 }
 0x2be   :  { %14142 = vst [vmem:[#allocation16_spill] sm:$0xff] %v10819_v49  ;;  %v2218_v38 = vadd.f32 1.0, %v8374_v1  ;;  %v2095_v15 = vmul.f32 0.70710677, %v10819_v49  ;;  %v10837_v39 = vmul.f32 %v10580_v52, %v8372_v53  ;;  %v10842_v63 = vadd.f32 %v10608_v61, %v1895_v13 }
 0x2bf   :  { %14144 = vst [vmem:[#allocation17_spill] sm:$0xff] %v10834_v25  ;;  %v2417_v20 = vsel %vm303_vm0, %v10825_v50, 0.0  ;;  %8385 = verf.f32 %v2094_v12  ;;  %v8376_v16 = vpop.eup %8375  ;;  %v2024_v32 = vmul.f32 0.5, %v10783_v18  ;;  %v2025_v51 = vmul.f32 0.5, %v10788_v56 }
 0x2c0   :  { %14145 = vst [vmem:[#allocation83_spill] sm:$0xff] %v10842_v63  ;;  %2418 = vadd.xlane.f32.xlu1 %v2417_v20  ;;  %v10844_v26 = vmul.f32 %v2218_v38, %v2026_v23  ;;  %8387 = verf.f32 %v2095_v15  ;;  %v2092_v53 = vmul.f32 0.70710677, %v10834_v25  ;;  %v2093_v3 = vmul.f32 0.70710677, %v10842_v63 }
 0x2c1   :  { %v8378_v14 = vpop.eup %8377  ;;  %8389 = vrsqrt.f32 %v1713_v11  ;;  %v1900_v1 = vmul.f32 %v10717_v19, %v10103_v41  ;;  %v1901_v23 = vmul.f32 %v10726_v24, %v10106_v36  ;;  %v1898_v38 = vmul.f32 %v10740_v62, %v10115_v60 }
 0x2c2   :  { %v2432_v13 = vsel %vm303_vm0, %v10844_v26, 0.0  ;;  %v2219_v12 = vadd.f32 1.0, %v8378_v14  ;;  %v8380_v15 = vpop.eup %8379  ;;  %v10859_v11 = vmul.f32 %v10580_v52, %v8376_v16  ;;  %8391 = verf.f32 %v2092_v53 }
 0x2c3   :  { %2433 = vadd.xlane.f32.xlu0 %v2432_v13  ;;  %v10862_v20 = vadd.f32 %v10608_v61, %v1900_v1  ;;  %v1899_v41 = vmul.f32 %v10752_v6, %v10118_v28  ;;  %v8382_v19 = vpop.eup %8381  ;;  %8393 = verf.f32 %v2093_v3  ;;  %v10869_v36 = vadd.f32 %v10608_v61, %v1901_v23 }
 0x2c4   :  { %v10866_v14 = vmul.f32 %v2219_v12, %v2027_v17  ;;  %v10872_v60 = vadd.f32 %v10608_v61, %v1898_v38  ;;  %v8384_v24 = vpop.eup %8383  ;;  %v2216_v62 = vadd.f32 1.0, %v8382_v19  ;;  %v2030_v16 = vmul.f32 0.5, %v10814_v22 }
 0x2c5   :  { %14146 = vst [vmem:[#allocation84_spill] sm:$0xff] %v10862_v20  ;;  %14147 = vst [vmem:[#allocation85_spill] sm:$0xff] %v10869_v36  ;;  %v2098_v53 = vmul.f32 0.70710677, %v10862_v20  ;;  %v10877_v1 = vadd.f32 %v10608_v61, %v1899_v41  ;;  %v2217_v6 = vadd.f32 1.0, %v8384_v24  ;;  %v2031_v17 = vmul.f32 0.5, %v10819_v49 }
 0x2c6   :  { %14148 = vst [vmem:[#allocation86_spill] sm:$0xff] %v10872_v60  ;;  %v2435_v28 = vsel %vm303_vm0, %v10866_v14, 0.0  ;;  %v2099_v3 = vmul.f32 0.70710677, %v10869_v36  ;;  %v10883_v13 = vmul.f32 %v2216_v62, %v2024_v32  ;;  %v2028_v12 = vmul.f32 0.5, %v10834_v25 }
 0x2c7   :  { %14149 = vst [vmem:[#allocation87_spill] sm:$0xff] %v10877_v1  ;;  %2436 = vadd.xlane.f32.xlu1 %v2435_v28  ;;  %8395 = verf.f32 %v2098_v53  ;;  %v2096_v23 = vmul.f32 0.70710677, %v10872_v60  ;;  %v10888_v38 = vmul.f32 %v10580_v52, %v8380_v15  ;;  %v10890_v41 = vmul.f32 %v2217_v6, %v2025_v51  ;;  %v14150_v28 = vld [vmem:[#allocation18_spill] sm:$0xff] }
 0x2c8   :  { %v2029_v19 = vmul.f32 0.5, %v10842_v63  ;;  %8397 = verf.f32 %v2099_v3  ;;  %v2426_v49 = vsel %vm303_vm0, %v10883_v13, 0.0  ;;  %v2097_v32 = vmul.f32 0.70710677, %v10877_v1  ;;  %v14151_v3 = vld [vmem:[#allocation19_spill] sm:$0xff] }
 0x2c9   :  { %v8386_v24 = vpop.eup %8385  ;;  %8399 = verf.f32 %v2096_v23  ;;  %v1904_v62 = vmul.f32 %v10759_v54, %v10127_v4  ;;  %2427 = vadd.xlane.f32.xlu0 %v2426_v49  ;;  %v2429_v15 = vsel %vm303_vm0, %v10890_v41, 0.0  ;;  %v1905_v6 = vmul.f32 %v10773_v47, %v14150_v28  ;;  %v14153_v4 = vld [vmem:[#allocation20_spill] sm:$0xff] }
 0x2ca   :  { %v8388_v53 = vpop.eup %8387  ;;  %v2222_v51 = vadd.f32 1.0, %v8386_v24  ;;  %v1902_v63 = vmul.f32 %v10791_v8, %v14151_v3  ;;  %8401 = verf.f32 %v2097_v32  ;;  %v1903_v54 = vmul.f32 %v10794_v27, %v14153_v4 }
 0x2cb   :  { %v8390_v25 = vpop.eup %8389  ;;  %2430 = vadd.xlane.f32.xlu1 %v2429_v15  ;;  %v2223_v23 = vadd.f32 1.0, %v8388_v53  ;;  %v10905_v22 = vadd.f32 %v10608_v61, %v1904_v62  ;;  %v2034_v24 = vmul.f32 0.5, %v10862_v20  ;;  %v10913_v56 = vadd.f32 %v10608_v61, %v1905_v6  ;;  %v14157_v53 = vld [vmem:[#allocation21_spill] sm:$0xff] }
 0x2cc   :  { %v10909_v49 = vmul.f32 %v2222_v51, %v2030_v16  ;;  %v10916_v47 = vadd.f32 %v10608_v61, %v1902_v63  ;;  %v8392_v8 = vpop.eup %8391  ;;  %v10922_v62 = vadd.f32 %v10608_v61, %v1903_v54  ;;  %v1908_v27 = vmul.f32 %v10806_v33, %v14157_v53 }
 0x2cd   :  { %14152 = vst [vmem:[#allocation18_spill] sm:$0xff] %v10905_v22  ;;  %14154 = vst [vmem:[#allocation19_spill] sm:$0xff] %v10913_v56  ;;  %v10918_v15 = vmul.f32 %v2223_v23, %v2031_v17  ;;  %v2102_v32 = vmul.f32 0.70710677, %v10905_v22  ;;  %v8394_v16 = vpop.eup %8393  ;;  %v2220_v28 = vadd.f32 1.0, %v8392_v8  ;;  %v2035_v6 = vmul.f32 0.5, %v10869_v36 }
 0x2ce   :  { %14155 = vst [vmem:[#allocation20_spill] sm:$0xff] %v10916_v47  ;;  %14156 = vst [vmem:[#allocation88_spill] sm:$0xff] %v10922_v62  ;;  %v2444_v51 = vsel %vm303_vm0, %v10909_v49, 0.0  ;;  %v2103_v63 = vmul.f32 0.70710677, %v10913_v56  ;;  %v2221_v3 = vadd.f32 1.0, %v8394_v16  ;;  %v1847_v4 = vmul.f32 %v10580_v52, %v8390_v25 }
 0x2cf   :  { %2445 = vadd.xlane.f32.xlu0 %v2444_v51  ;;  %v2447_v17 = vsel %vm303_vm0, %v10918_v15, 0.0  ;;  %v2032_v23 = vmul.f32 0.5, %v10872_v60  ;;  %8403 = verf.f32 %v2102_v32  ;;  %v10934_v33 = vmul.f32 %v2220_v28, %v2028_v12  ;;  %v14159_v16 = vld [vmem:[#allocation22_spill] sm:$0xff]  ;;  %v14160_v12 = vld [vmem:[#allocation23_spill] sm:$0xff] }
 0x2d0   :  { %2448 = vadd.xlane.f32.xlu1 %v2447_v17  ;;  %8405 = verf.f32 %v2103_v63  ;;  %v2100_v54 = vmul.f32 0.70710677, %v10916_v47  ;;  %v10937_v53 = vmul.f32 %v2221_v3, %v2029_v19  ;;  %v2101_v51 = vmul.f32 0.70710677, %v10922_v62 }
 0x2d1   :  { %v8396_v8 = vpop.eup %8395  ;;  %v10941_v36 = vadd.f32 %v10608_v61, %v1908_v27  ;;  %v1909_v60 = vmul.f32 %v10830_v37, %v14159_v16  ;;  %v2438_v52 = vsel %vm303_vm0, %v10934_v33, 0.0  ;;  %v1906_v28 = vmul.f32 %v10837_v39, %v14160_v12  ;;  %v14163_v12 = vld [vmem:[#allocation24_spill] sm:$0xff] }
 0x2d2   :  { %v8398_v32 = vpop.eup %8397  ;;  %v2226_v25 = vadd.f32 1.0, %v8396_v8  ;;  %8407 = verf.f32 %v2100_v54  ;;  %v2441_v19 = vsel %vm303_vm0, %v10937_v53, 0.0  ;;  %v2033_v27 = vmul.f32 0.5, %v10877_v1  ;;  %v14164_v1 = vld [vmem:[#allocation27_spill] sm:$0xff] }
 0x2d3   :  { %14158 = vst [vmem:[#allocation21_spill] sm:$0xff] %v10941_v36  ;;  %v8400_v63 = vpop.eup %8399  ;;  %2439 = vadd.xlane.f32.xlu0 %v2438_v52  ;;  %v2227_v17 = vadd.f32 1.0, %v8398_v32  ;;  %8409 = verf.f32 %v2101_v51  ;;  %v2106_v16 = vmul.f32 0.70710677, %v10941_v36  ;;  %v10956_v54 = vadd.f32 %v10608_v61, %v1909_v60 }
 0x2d4   :  { %2442 = vadd.xlane.f32.xlu1 %v2441_v19  ;;  %v10952_v37 = vmul.f32 %v2226_v25, %v2034_v24  ;;  %v2224_v3 = vadd.f32 1.0, %v8400_v63  ;;  %v8402_v8 = vpop.eup %8401  ;;  %v10961_v52 = vadd.f32 %v10608_v61, %v1906_v28  ;;  %v1907_v32 = vmul.f32 %v10859_v11, %v14163_v12  ;;  %v2314_v28 = vpop.xlane.xlu0 %2313 }
 0x2d5   :  { %14161 = vst [vmem:[#allocation22_spill] sm:$0xff] %v10956_v54  ;;  %v10958_v39 = vmul.f32 %v2227_v17, %v2035_v6  ;;  %v1910_v51 = vmul.f32 %v10888_v38, %v14164_v1  ;;  %v2225_v63 = vadd.f32 1.0, %v8402_v8  ;;  %8411 = verf.f32 %v2106_v16 }
 0x2d6   :  { %14162 = vst [vmem:[#allocation23_spill] sm:$0xff] %v10961_v52  ;;  %v2456_v24 = vsel %vm303_vm0, %v10952_v37, 0.0  ;;  %v10969_v25 = vmul.f32 %v2224_v3, %v2032_v23  ;;  %v2107_v6 = vmul.f32 0.70710677, %v10956_v54  ;;  %v2104_v1 = vmul.f32 0.70710677, %v10961_v52 }
 0x2d7   :  { %2457 = vadd.xlane.f32.xlu0 %v2456_v24  ;;  %v2459_v60 = vsel %vm303_vm0, %v10958_v39, 0.0  ;;  %v10976_v19 = vmul.f32 %v2225_v63, %v2033_v27  ;;  %v10980_v38 = vadd.f32 %v10608_v61, %v1907_v32  ;;  %v10983_v17 = vadd.f32 %v10608_v61, %v1910_v51  ;;  %v14167_v3 = vld [vmem:[#allocation28_spill] sm:$0xff]  ;;  %v2317_v63 = vpop.xlane.xlu1 %2316 }
 0x2d8   :  { %2460 = vadd.xlane.f32.xlu1 %v2459_v60  ;;  %v2450_v11 = vsel %vm303_vm0, %v10969_v25, 0.0  ;;  %8413 = verf.f32 %v2107_v6  ;;  %v1911_v16 = vmul.f32 %v1847_v4, %v14167_v3  ;;  %v2038_v24 = vmul.f32 0.5, %v10905_v22 }
 0x2d9   :  { %14165 = vst [vmem:[#allocation24_spill] sm:$0xff] %v10980_v38  ;;  %v8404_v23 = vpop.eup %8403  ;;  %14166 = vst [vmem:[#allocation27_spill] sm:$0xff] %v10983_v17  ;;  %v2453_v12 = vsel %vm303_vm0, %v10976_v19, 0.0  ;;  %8415 = verf.f32 %v2104_v1  ;;  %v2039_v32 = vmul.f32 0.5, %v10913_v56  ;;  %v2105_v6 = vmul.f32 0.70710677, %v10980_v38 }
 0x2da   :  { %v8406_v8 = vpop.eup %8405  ;;  %v2230_v27 = vadd.f32 1.0, %v8404_v23  ;;  %v2108_v51 = vmul.f32 0.70710677, %v10983_v17  ;;  %v10995_v3 = vadd.f32 %v10608_v61, %v1911_v16  ;;  %v2036_v1 = vmul.f32 0.5, %v10916_v47  ;;  %v2308_v23 = vpop.xlane.xlu0 %2307 }
 0x2db   :  { %2451 = vadd.xlane.f32.xlu0 %v2450_v11  ;;  %v2231_v60 = vadd.f32 1.0, %v8406_v8  ;;  %8417 = verf.f32 %v2105_v6  ;;  %v2037_v56 = vmul.f32 0.5, %v10922_v62  ;;  %v2501_v47 = vmul.f32 0.015625, %v2317_v63 }
 0x2dc   :  { %v8408_v20 = vpop.eup %8407  ;;  %2454 = vadd.xlane.f32.xlu1 %v2453_v12  ;;  %v10992_v4 = vmul.f32 %v2230_v27, %v2038_v24  ;;  %14168 = vst [vmem:[#allocation28_spill] sm:$0xff] %v10995_v3  ;;  %8419 = verf.f32 %v2108_v51  ;;  %v2109_v12 = vmul.f32 0.70710677, %v10995_v3  ;;  %v2311_v27 = vpop.xlane.xlu1 %2310 }
 0x2dd   :  { %v8410_v18 = vpop.eup %8409  ;;  %v10997_v22 = vmul.f32 %v2231_v60, %v2039_v32  ;;  %v2228_v11 = vadd.f32 1.0, %v8408_v20  ;;  %v2042_v60 = vmul.f32 0.5, %v10941_v36 }
 0x2de   :  { %v2468_v8 = vsel %vm303_vm0, %v10992_v4, 0.0  ;;  %v2229_v43 = vadd.f32 1.0, %v8410_v18  ;;  %8421 = verf.f32 %v2109_v12 }
 0x2df   :  { %2469 = vadd.xlane.f32.xlu0 %v2468_v8  ;;  %v2471_v61 = vsel %vm303_vm0, %v10997_v22, 0.0  ;;  %v11005_v16 = vmul.f32 %v2228_v11, %v2036_v1  ;;  %v8412_v24 = vpop.eup %8411  ;;  %v2500_v11 = vmul.f32 0.015625, %v2314_v28  ;;  %v2326_v8 = vpop.xlane.xlu0 %2325  ;;  %v14171_v28 = vld [vmem:[#allocation36_spill] sm:$0xff] }
 0x2e0   :  { %2472 = vadd.xlane.f32.xlu1 %v2471_v61  ;;  %v11008_v20 = vmul.f32 %v2229_v43, %v2037_v56  ;;  %v2234_v18 = vadd.f32 1.0, %v8412_v24  ;;  %v2043_v43 = vmul.f32 0.5, %v10956_v54  ;;  %v2040_v24 = vmul.f32 0.5, %v10961_v52  ;;  %v2329_v35 = vpop.xlane.xlu1 %2328 }
 0x2e1   :  { %v2462_v32 = vsel %vm303_vm0, %v11005_v16, 0.0  ;;  %v2041_v54 = vmul.f32 0.5, %v10980_v38  ;;  %v2498_v52 = vmul.f32 0.015625, %v2308_v23 }
 0x2e2   :  { %v2465_v6 = vsel %vm303_vm0, %v11008_v20, 0.0  ;;  %v8414_v51 = vpop.eup %8413  ;;  %v11015_v1 = vmul.f32 %v2234_v18, %v2042_v60  ;;  %v11026_v18 = vsub.f32 %v14171_v28, %v2500_v11  ;;  %v2499_v28 = vmul.f32 0.015625, %v2311_v27 }
 0x2e3   :  { %2463 = vadd.xlane.f32.xlu0 %v2462_v32  ;;  %v8416_v61 = vpop.eup %8415  ;;  %v2235_v56 = vadd.f32 1.0, %v8414_v51 }
 0x2e4   :  { %14169 = vst [vmem:[#allocation89_spill] sm:$0xff] %v11015_v1  ;;  %2466 = vadd.xlane.f32.xlu1 %v2465_v6  ;;  %v2480_v62 = vsel %vm303_vm0, %v11015_v1, 0.0  ;;  %v2232_v12 = vadd.f32 1.0, %v8416_v61  ;;  %v1650_v61 = vmul.f32 0.015625, %v10723_v57  ;;  %v2045_v57 = vmul.f32 0.5, %v10995_v3 }
 0x2e5   :  { %v11021_v36 = vmul.f32 %v2235_v56, %v2043_v43  ;;  %v8418_v32 = vpop.eup %8417  ;;  %v2320_v56 = vpop.xlane.xlu0 %2319  ;;  %v2628_v23 = vmul.f32 %v11026_v18, %v11026_v18  ;;  %v2505_v3 = vmul.f32 0.015625, %v2329_v35 }
 0x2e6   :  { %v11023_v60 = vmul.f32 %v2232_v12, %v2040_v24  ;;  %v8420_v6 = vpop.eup %8419  ;;  %v2233_v1 = vadd.f32 1.0, %v8418_v32  ;;  %v14172_v24 = vld [vmem:[#allocation38_spill] sm:$0xff] }
 0x2e7   :  { %14170 = vst [vmem:[#allocation90_spill] sm:$0xff] %v11021_v36  ;;  %2481 = vadd.xlane.f32.xlu0 %v2480_v62  ;;  %v2483_v51 = vsel %vm303_vm0, %v11021_v36, 0.0  ;;  %v2044_v62 = vmul.f32 0.5, %v10983_v17  ;;  %v2236_v43 = vadd.f32 1.0, %v8420_v6  ;;  %v11038_v12 = vsub.f32 %v14172_v24, %v2501_v47  ;;  %v14173_v17 = vld [vmem:[#allocation39_spill] sm:$0xff]  ;;  %v2323_v47 = vpop.xlane.xlu1 %2322 }
 0x2e8   :  { %2484 = vadd.xlane.f32.xlu1 %v2483_v51  ;;  %v2474_v63 = vsel %vm303_vm0, %v11023_v60, 0.0  ;;  %v11035_v11 = vmul.f32 %v2233_v1, %v2041_v54  ;;  %v8422_v36 = vpop.eup %8421  ;;  %v11048_v54 = vsub.f32 %v14173_v17, %v2498_v52  ;;  %v2504_v1 = vmul.f32 0.015625, %v2326_v8 }
 0x2e9   :  { %v11040_v32 = vmul.f32 %v2236_v43, %v2044_v62  ;;  %v2237_v6 = vadd.f32 1.0, %v8422_v36  ;;  %v1714_v24 = vadd.f32 1e-06, %v1650_v61  ;;  %v11055_v62 = vsub.f32 %v10283_v29, %v2499_v28 }
 0x2ea   :  { %v2477_v51 = vsel %vm303_vm0, %v11035_v11, 0.0  ;;  %v2629_v43 = vmul.f32 %v11038_v12, %v11038_v12  ;;  %v1651_v36 = vmul.f32 0.015625, %v10756_v7  ;;  %v2696_v52 = vsel %vm303_vm0, %v2628_v23, 0.0 }
 0x2eb   :  { %2475 = vadd.xlane.f32.xlu0 %v2474_v63  ;;  %v2486_v27 = vsel %vm303_vm0, %v11040_v32, 0.0  ;;  %v11052_v63 = vmul.f32 %v2237_v6, %v2045_v57  ;;  %v2338_v17 = vpop.xlane.xlu0 %2337  ;;  %v11064_v61 = vsub.f32 %v10289_v59, %v2504_v1  ;;  %v2626_v29 = vmul.f32 %v11048_v54, %v11048_v54  ;;  %v14174_v57 = vld [vmem:[#allocation41_spill] sm:$0xff]  ;;  %v14175_v1 = vld [vmem:[#allocation44_spill] sm:$0xff] }
 0x2ec   :  { %2478 = vadd.xlane.f32.xlu1 %v2477_v51  ;;  %v2502_v28 = vmul.f32 0.015625, %v2320_v56  ;;  %8423 = vrsqrt.f32 %v1714_v24  ;;  %v2699_v35 = vsel %vm303_vm0, %v2629_v43, 0.0  ;;  %v11070_v7 = vsub.f32 %v14174_v57, %v2505_v3 }
 0x2ed   :  { %v2489_v8 = vsel %vm303_vm0, %v11052_v63, 0.0  ;;  %v2627_v23 = vmul.f32 %v11055_v62, %v11055_v62  ;;  %v2503_v51 = vmul.f32 0.015625, %v2323_v47  ;;  %v2690_v59 = vsel %vm303_vm0, %v2626_v29, 0.0 }
 0x2ee   :  { %v11076_v38 = vsub.f32 %v14175_v1, %v2502_v28  ;;  %v2632_v56 = vmul.f32 %v11064_v61, %v11064_v61  ;;  %v2508_v24 = vmul.f32 0.015625, %v2338_v17  ;;  %v2633_v47 = vmul.f32 %v11070_v7, %v11070_v7 }
 0x2ef   :  { %2487 = vadd.xlane.f32.xlu0 %v2486_v27  ;;  %v1715_v27 = vadd.f32 1e-06, %v1651_v36  ;;  %v2693_v3 = vsel %vm303_vm0, %v2627_v23, 0.0 }
 0x2f0   :  { %2490 = vadd.xlane.f32.xlu1 %v2489_v8  ;;  %v2341_v6 = vpop.xlane.xlu1 %2340  ;;  %v14176_v8 = vld [vmem:[#allocation45_spill] sm:$0xff]  ;;  %v11088_v29 = vsub.f32 %v10348_v2, %v2508_v24  ;;  %v2630_v17 = vmul.f32 %v11076_v38, %v11076_v38  ;;  %v2711_v23 = vsel %vm303_vm0, %v2633_v47, 0.0 }
 0x2f1   :  { %v11082_v57 = vsub.f32 %v14176_v8, %v2503_v51  ;;  %v2509_v36 = vmul.f32 0.015625, %v2341_v6  ;;  %8425 = vrsqrt.f32 %v1715_v27  ;;  %v14178_v51 = vld [vmem:[#allocation49_spill] sm:$0xff] }
 0x2f2   :  { %14177 = vst [vmem:[#allocation36_spill] sm:$0xff] %v11088_v29  ;;  %v2702_v2 = vsel %vm303_vm0, %v2630_v17, 0.0  ;;  %v2636_v24 = vmul.f32 %v11088_v29, %v11088_v29  ;;  %v14181_v47 = vld [vmem:[#allocation53_spill] sm:$0xff] }
 0x2f3   :  { %2697 = vadd.xlane.f32.xlu0 %v2696_v52  ;;  %v2332_v43 = vpop.xlane.xlu0 %2331  ;;  %v2708_v52 = vsel %vm303_vm0, %v2632_v56, 0.0  ;;  %v11094_v1 = vsub.f32 %v14178_v51, %v2509_v36  ;;  %v2631_v6 = vmul.f32 %v11082_v57, %v11082_v57  ;;  %v14182_v51 = vld [vmem:[#allocation55_spill] sm:$0xff] }
 0x2f4   :  { %2700 = vadd.xlane.f32.xlu1 %v2699_v35  ;;  %v2506_v28 = vmul.f32 0.015625, %v2332_v43 }
 0x2f5   :  { %14179 = vst [vmem:[#allocation38_spill] sm:$0xff] %v11094_v1  ;;  %v2705_v8 = vsel %vm303_vm0, %v2631_v6, 0.0 }
 0x2f6   :  { %v11100_v56 = vsub.f32 %v10385_v46, %v2506_v28  ;;  %v2720_v28 = vsel %vm303_vm0, %v2636_v24, 0.0 }
 0x2f7   :  { %2691 = vadd.xlane.f32.xlu0 %v2690_v59  ;;  %v8424_v59 = vpop.eup %8423 }
 0x2f8   :  { %v2335_v35 = vpop.xlane.xlu1 %2334  ;;  %2694 = vadd.xlane.f32.xlu1 %v2693_v3  ;;  %14180 = vst [vmem:[#allocation39_spill] sm:$0xff] %v11100_v56  ;;  %v2634_v6 = vmul.f32 %v11100_v56, %v11100_v56  ;;  %v14184_v56 = vld [vmem:[#allocation25_spill] sm:$0xff] }
 0x2f9   :  { %v2507_v27 = vmul.f32 0.015625, %v2335_v35  ;;  %v2637_v35 = vmul.f32 %v11094_v1, %v11094_v1 }
 0x2fb   :  { %2709 = vadd.xlane.f32.xlu0 %v2708_v52  ;;  %v11106_v36 = vsub.f32 %v14181_v47, %v2507_v27  ;;  %v9074_v52 = vld [vmem:[%s13751_s3] ss:$0 sm:$0xff]  ;;  %v8426_v27 = vpop.eup %8425  ;;  %v2723_v47 = vsel %vm303_vm0, %v2637_v35, 0.0 }
 0x2fc   :  { %v2350_v43 = vpop.xlane.xlu0 %2349  ;;  %2712 = vadd.xlane.f32.xlu1 %v2711_v23  ;;  %v1848_v46 = vmul.f32 %v9074_v52, %v8424_v59  ;;  %v1849_v24 = vmul.f32 %v9074_v52, %v8426_v27  ;;  %v14186_v27 = vld [vmem:[#allocation26_spill] sm:$0xff] }
 0x2fd   :  { %v2512_v3 = vmul.f32 0.015625, %v2350_v43  ;;  %v2635_v59 = vmul.f32 %v11106_v36, %v11106_v36 }
 0x2ff   :  { %2703 = vadd.xlane.f32.xlu0 %v2702_v2  ;;  %v2353_v17 = vpop.xlane.xlu1 %2352  ;;  %v11115_v23 = vsub.f32 %v14182_v51, %v2512_v3  ;;  %v2714_v3 = vsel %vm303_vm0, %v2634_v6, 0.0 }
 0x300   :  { %v2513_v43 = vmul.f32 0.015625, %v2353_v17  ;;  %2706 = vadd.xlane.f32.xlu1 %v2705_v8  ;;  %v1912_v8 = vmul.f32 %v1848_v46, %v14184_v56 }
 0x301   :  { %14183 = vst [vmem:[#allocation41_spill] sm:$0xff] %v11115_v23  ;;  %v2640_v51 = vmul.f32 %v11115_v23, %v11115_v23 }
 0x302   :  { %v11121_v29 = vsub.f32 %v10440_v55, %v2513_v43  ;;  %v2344_v1 = vpop.xlane.xlu0 %2343  ;;  %v2717_v43 = vsel %vm303_vm0, %v2635_v59, 0.0 }
 0x303   :  { %2721 = vadd.xlane.f32.xlu0 %v2720_v28  ;;  %v2510_v2 = vmul.f32 0.015625, %v2344_v1  ;;  %v2732_v52 = vsel %vm303_vm0, %v2640_v51, 0.0 }
 0x304   :  { %v2347_v17 = vpop.xlane.xlu1 %2346  ;;  %2724 = vadd.xlane.f32.xlu1 %v2723_v47  ;;  %v2641_v28 = vmul.f32 %v11121_v29, %v11121_v29  ;;  %v1913_v47 = vmul.f32 %v1849_v24, %v14186_v27 }
 0x305   :  { %v11130_v35 = vsub.f32 %v10450_v21, %v2510_v2  ;;  %v2511_v55 = vmul.f32 0.015625, %v2347_v17  ;;  %v9075_v21 = vld [vmem:[%s13752_s4] ss:$0 sm:$0xff] }
 0x306   :  { %v11144_v46 = vadd.f32 %v9075_v21, %v1912_v8  ;;  %v2735_v2 = vsel %vm303_vm0, %v2641_v28, 0.0  ;;  %v11155_v8 = vadd.f32 %v9075_v21, %v1913_v47 }
 0x307   :  { %2715 = vadd.xlane.f32.xlu0 %v2714_v3  ;;  %v11136_v1 = vsub.f32 %v10462_v42, %v2511_v55  ;;  %v2638_v56 = vmul.f32 %v11130_v35, %v11130_v35  ;;  %v14187_v3 = vld [vmem:[#allocation60_spill] sm:$0xff] }
 0x308   :  { %v2362_v6 = vpop.xlane.xlu0 %2361  ;;  %14185 = vst [vmem:[#allocation44_spill] sm:$0xff] %v11144_v46  ;;  %2718 = vadd.xlane.f32.xlu1 %v2717_v43  ;;  %v2110_v23 = vmul.f32 0.70710677, %v11144_v46  ;;  %14188 = vst [vmem:[#allocation45_spill] sm:$0xff] %v11155_v8  ;;  %v2111_v21 = vmul.f32 0.70710677, %v11155_v8 }
 0x309   :  { %v2516_v59 = vmul.f32 0.015625, %v2362_v6  ;;  %v2639_v42 = vmul.f32 %v11136_v1, %v11136_v1  ;;  %v2726_v55 = vsel %vm303_vm0, %v2638_v56, 0.0 }
 0x30a   :  { %8427 = verf.f32 %v2110_v23  ;;  %v8035_v23 = vld [vmem:[%s13753_s5] sm:$0xff]  }
 0x30b   :  { %2733 = vadd.xlane.f32.xlu0 %v2732_v52  ;;  %v11151_v17 = vsub.f32 %v14187_v3, %v2516_v59  ;;  %v2365_v51 = vpop.xlane.xlu1 %2364  ;;  %v2729_v6 = vsel %vm303_vm0, %v2639_v42, 0.0  ;;  %8429 = verf.f32 %v2111_v21  ;;  %7780 = vmatprep.subr.bf16.mxu1 %v8035_v23 }
 0x30c   :  { %2736 = vadd.xlane.f32.xlu1 %v2735_v2  ;;  %v2517_v24 = vmul.f32 0.015625, %v2365_v51  ;;  %7781 = vmatpush3.bf16.msra.mxu1 %v8035_v23 }
 0x30d   :  { %v2644_v43 = vmul.f32 %v11151_v17, %v11151_v17 }
 0x30e   :  { %v2356_v28 = vpop.xlane.xlu0 %2355  ;;  %v11161_v52 = vsub.f32 %v10501_v10, %v2517_v24 }
 0x30f   :  { %2727 = vadd.xlane.f32.xlu0 %v2726_v55  ;;  %v2514_v27 = vmul.f32 0.015625, %v2356_v28  ;;  %v2359_v59 = vpop.xlane.xlu1 %2358  ;;  %v2744_v56 = vsel %vm303_vm0, %v2644_v43, 0.0 }
 0x310   :  { %2730 = vadd.xlane.f32.xlu1 %v2729_v6  ;;  %v2515_v2 = vmul.f32 0.015625, %v2359_v59  ;;  %v2645_v3 = vmul.f32 %v11161_v52, %v11161_v52 }
 0x311   :  { %v11166_v47 = vsub.f32 %v10510_v0, %v2514_v27  ;;  %v8036_v27 = vld [vmem:[%s13753_s5 + $0x8] sm:$0xff]  }
 0x312   :  { %v11171_v42 = vsub.f32 %v10512_v58, %v2515_v2  ;;  %v2747_v10 = vsel %vm303_vm0, %v2645_v3, 0.0  ;;  %7782 = vmatprep.subr.bf16.mxu1 %v8036_v27 }
 0x313   :  { %2745 = vadd.xlane.f32.xlu0 %v2744_v56  ;;  %v2642_v51 = vmul.f32 %v11166_v47, %v11166_v47  ;;  %7783 = vmatpush3.bf16.msra.mxu1 %v8036_v27 }
 0x314   :  { %2748 = vadd.xlane.f32.xlu1 %v2747_v10  ;;  %v2643_v24 = vmul.f32 %v11171_v42, %v11171_v42  ;;  %v8428_v21 = vpop.eup %8427 }
 0x315   :  { %v2374_v0 = vpop.xlane.xlu0 %2373  ;;  %v2738_v55 = vsel %vm303_vm0, %v2642_v51, 0.0 }
 0x316   :  { %v2520_v58 = vmul.f32 0.015625, %v2374_v0  ;;  %v2377_v43 = vpop.xlane.xlu1 %2376  ;;  %v2741_v6 = vsel %vm303_vm0, %v2643_v24, 0.0  ;;  %v8430_v24 = vpop.eup %8429 }
 0x317   :  { %v2521_v28 = vmul.f32 0.015625, %v2377_v43  ;;  %2739 = vadd.xlane.f32.xlu0 %v2738_v55  ;;  %v2238_v55 = vadd.f32 1.0, %v8428_v21 }
 0x318   :  { %v11187_v59 = vsub.f32 %v10536_v44, %v2520_v58  ;;  %2742 = vadd.xlane.f32.xlu1 %v2741_v6  ;;  %v8037_v44 = vld [vmem:[%s13753_s5 + $0x10] sm:$0xff]   ;;  %v2046_v6 = vmul.f32 0.5, %v11144_v46  ;;  %v14193_v46 = vld [vmem:[#allocation5_spill] sm:$0xff] }
 0x319   :  { %v11190_v56 = vsub.f32 %v10541_v40, %v2521_v28  ;;  %7784 = vmatprep.subr.bf16.mxu1 %v8037_v44 }
 0x31a   :  { %v2368_v2 = vpop.xlane.xlu0 %2367  ;;  %v2648_v3 = vmul.f32 %v11187_v59, %v11187_v59  ;;  %7785 = vmatpush3.bf16.msra.mxu1 %v8037_v44 }
 0x31b   :  { %v2518_v10 = vmul.f32 0.015625, %v2368_v2  ;;  %v2649_v51 = vmul.f32 %v11190_v56, %v11190_v56 }
 0x31c   :  { %v2756_v23 = vsel %vm303_vm0, %v2648_v3, 0.0  ;;  %v11214_v3 = vmul.f32 %v2238_v55, %v2046_v6 }
 0x31d   :  { %v11201_v40 = vsub.f32 %v10562_v5, %v2518_v10  ;;  %2757 = vadd.xlane.f32.xlu0 %v2756_v23  ;;  %v2759_v0 = vsel %vm303_vm0, %v2649_v51, 0.0  ;;  %v2371_v58 = vpop.xlane.xlu1 %2370  ;;  %v8038_v5 = vld [vmem:[%s13753_s5 + $0x18] sm:$0xff]   ;;  %v2239_v10 = vadd.f32 1.0, %v8430_v24  ;;  %v2047_v23 = vmul.f32 0.5, %v11155_v8 }
 0x31e   :  { %2760 = vadd.xlane.f32.xlu1 %v2759_v0  ;;  %v2519_v43 = vmul.f32 0.015625, %v2371_v58  ;;  %7786 = vmatprep.subr.bf16.mxu1 %v8038_v5 }
 0x31f   :  { %v2646_v28 = vmul.f32 %v11201_v40, %v11201_v40  ;;  %7787 = vmatpush3.bf16.msra.mxu1 %v8038_v5 }
 0x320   :  { %v2386_v27 = vpop.xlane.xlu0 %2385  ;;  %v11211_v2 = vsub.f32 %v10587_v45, %v2519_v43  ;;  %v2492_v45 = vsel %vm303_vm0, %v11214_v3, 0.0  ;;  %v11222_v43 = vmul.f32 %v2239_v10, %v2047_v23 }
 0x321   :  { %v2750_v21 = vsel %vm303_vm0, %v2646_v28, 0.0  ;;  %v2524_v0 = vmul.f32 0.015625, %v2386_v27 }
 0x322   :  { %2751 = vadd.xlane.f32.xlu0 %v2750_v21  ;;  %v2647_v44 = vmul.f32 %v11211_v2, %v11211_v2  ;;  %v2495_v27 = vsel %vm303_vm0, %v11222_v43, 0.0 }
 0x323   :  { %v2389_v51 = vpop.xlane.xlu1 %2388  ;;  %v11225_v6 = vsub.f32 %v10601_v34, %v2524_v0 }
 0x324   :  { %v2753_v58 = vsel %vm303_vm0, %v2647_v44, 0.0  ;;  %v2525_v28 = vmul.f32 0.015625, %v2389_v51 }
 0x325   :  { %2754 = vadd.xlane.f32.xlu1 %v2753_v58  ;;  %14189 = vst [vmem:[#allocation49_spill] sm:$0xff] %v11225_v6  ;;  %v14191_v58 = vld [vmem:[#allocation72_spill] sm:$0xff] }
 0x326   :  { %v2380_v55 = vpop.xlane.xlu0 %2379  ;;  %2493 = vadd.xlane.f32.xlu0 %v2492_v45  ;;  %v11235_v23 = vsub.f32 %v10624_v48, %v2525_v28 }
 0x327   :  { %v2522_v24 = vmul.f32 0.015625, %v2380_v55 }
 0x328   :  { %14190 = vst [vmem:[#allocation53_spill] sm:$0xff] %v11235_v23  ;;  %v2653_v48 = vmul.f32 %v11235_v23, %v11235_v23  ;;  %v14197_v23 = vld [vmem:[#allocation6_spill] sm:$0xff] }
 0x329   :  { %v11228_v5 = vsub.f32 %v10636_v9, %v2522_v24  ;;  %v2383_v21 = vpop.xlane.xlu1 %2382  ;;  %2496 = vadd.xlane.f32.xlu1 %v2495_v27  ;;  %v2652_v9 = vmul.f32 %v11225_v6, %v11225_v6 }
 0x32a   :  { %v2523_v44 = vmul.f32 0.015625, %v2383_v21 }
 0x32b   :  { %v2650_v10 = vmul.f32 %v11228_v5, %v11228_v5  ;;  %v2768_v28 = vsel %vm303_vm0, %v2652_v9, 0.0  ;;  %v14199_v9 = vld [vmem:[#allocation76_spill] sm:$0xff] }
 0x32c   :  { %v11238_v51 = vsub.f32 %v14191_v58, %v2523_v44  ;;  %v2398_v34 = vpop.xlane.xlu0 %2397 }
 0x32d   :  { %v2762_v0 = vsel %vm303_vm0, %v2650_v10, 0.0  ;;  %v2528_v21 = vmul.f32 0.015625, %v2398_v34 }
 0x32e   :  { %14192 = vst [vmem:[#allocation55_spill] sm:$0xff] %v11238_v51  ;;  %2763 = vadd.xlane.f32.xlu0 %v2762_v0  ;;  %v2651_v45 = vmul.f32 %v11238_v51, %v11238_v51  ;;  %v2771_v0 = vsel %vm303_vm0, %v2653_v48, 0.0 }
 0x32f   :  { %v11251_v6 = vsub.f32 %v14193_v46, %v2528_v21 }
 0x330   :  { %v2401_v55 = vpop.xlane.xlu1 %2400  ;;  %v2765_v24 = vsel %vm303_vm0, %v2651_v45, 0.0  ;;  %v14195_v45 = vld [vmem:[#allocation7_spill] sm:$0xff] }
 0x331   :  { %2766 = vadd.xlane.f32.xlu1 %v2765_v24  ;;  %v2529_v27 = vmul.f32 0.015625, %v2401_v55  ;;  %14194 = vst [vmem:[#allocation25_spill] sm:$0xff] %v11251_v6  ;;  %v2656_v46 = vmul.f32 %v11251_v6, %v11251_v6  ;;  %v14203_v6 = vld [vmem:[#allocation11_spill] sm:$0xff] }
 0x332   :  { %2769 = vadd.xlane.f32.xlu0 %v2768_v28 }
 0x333   :  { %v2392_v44 = vpop.xlane.xlu0 %2391  ;;  %v11257_v24 = vsub.f32 %v14197_v23, %v2529_v27 }
 0x334   :  { %v2526_v10 = vmul.f32 0.015625, %v2392_v44  ;;  %v2395_v58 = vpop.xlane.xlu1 %2394 }
 0x335   :  { %v2527_v8 = vmul.f32 0.015625, %v2395_v58  ;;  %2772 = vadd.xlane.f32.xlu1 %v2771_v0  ;;  %14198 = vst [vmem:[#allocation60_spill] sm:$0xff] %v11257_v24  ;;  %v2657_v23 = vmul.f32 %v11257_v24, %v11257_v24  ;;  %v2780_v58 = vsel %vm303_vm0, %v2656_v46, 0.0 }
 0x336   :  { %v11254_v51 = vsub.f32 %v14195_v45, %v2526_v10 }
 0x337   :  { %v11260_v34 = vsub.f32 %v14199_v9, %v2527_v8  ;;  %v2783_v45 = vsel %vm303_vm0, %v2657_v23, 0.0  ;;  %v14201_v9 = vld [vmem:[#allocation9_spill] sm:$0xff] }
 0x338   :  { %14196 = vst [vmem:[#allocation26_spill] sm:$0xff] %v11254_v51  ;;  %v2410_v55 = vpop.xlane.xlu0 %2409  ;;  %v2654_v28 = vmul.f32 %v11254_v51, %v11254_v51 }
 0x339   :  { %14200 = vst [vmem:[#allocation72_spill] sm:$0xff] %v11260_v34  ;;  %v2655_v48 = vmul.f32 %v11260_v34, %v11260_v34  ;;  %v2532_v27 = vmul.f32 0.015625, %v2410_v55 }
 0x33a   :  { %v2774_v44 = vsel %vm303_vm0, %v2654_v28, 0.0 }
 0x33b   :  { %2775 = vadd.xlane.f32.xlu0 %v2774_v44  ;;  %v2777_v21 = vsel %vm303_vm0, %v2655_v48, 0.0  ;;  %v2413_v8 = vpop.xlane.xlu1 %2412  ;;  %v11275_v28 = vsub.f32 %v14201_v9, %v2532_v27 }
 0x33c   :  { %2778 = vadd.xlane.f32.xlu1 %v2777_v21  ;;  %v2533_v44 = vmul.f32 0.015625, %v2413_v8  ;;  %v14204_v21 = vld [vmem:[#allocation10_spill] sm:$0xff] }
 0x33d   :  { %14202 = vst [vmem:[#allocation5_spill] sm:$0xff] %v11275_v28  ;;  %v2660_v8 = vmul.f32 %v11275_v28, %v11275_v28 }
 0x33e   :  { %v2404_v10 = vpop.xlane.xlu0 %2403  ;;  %v11283_v51 = vsub.f32 %v14204_v21, %v2533_v44  ;;  %v14206_v44 = vld [vmem:[#allocation13_spill] sm:$0xff] }
 0x33f   :  { %v2530_v0 = vmul.f32 0.015625, %v2404_v10  ;;  %2781 = vadd.xlane.f32.xlu0 %v2780_v58 }
 0x340   :  { %2784 = vadd.xlane.f32.xlu1 %v2783_v45  ;;  %14205 = vst [vmem:[#allocation7_spill] sm:$0xff] %v11283_v51 }
 0x341   :  { %v11278_v48 = vsub.f32 %v14203_v6, %v2530_v0  ;;  %v2792_v0 = vsel %vm303_vm0, %v2660_v8, 0.0 }
 0x342   :  { %v2407_v34 = vpop.xlane.xlu1 %2406 }
 0x343   :  { %v2531_v24 = vmul.f32 0.015625, %v2407_v34  ;;  %v2658_v55 = vmul.f32 %v11278_v48, %v11278_v48 }
 0x345   :  { %v11286_v46 = vsub.f32 %v10763_v31, %v2531_v24  ;;  %v2422_v23 = vpop.xlane.xlu0 %2421  ;;  %v2786_v10 = vsel %vm303_vm0, %v2658_v55, 0.0  ;;  %v2661_v31 = vmul.f32 %v11283_v51, %v11283_v51  ;;  %v14207_v51 = vld [vmem:[#allocation81_spill] sm:$0xff] }
 0x346   :  { %2787 = vadd.xlane.f32.xlu0 %v2786_v10  ;;  %v2425_v6 = vpop.xlane.xlu1 %2424  ;;  %v2536_v27 = vmul.f32 0.015625, %v2422_v23 }
 0x347   :  { %v2659_v34 = vmul.f32 %v11286_v46, %v11286_v46  ;;  %v2537_v9 = vmul.f32 0.015625, %v2425_v6  ;;  %v2795_v23 = vsel %vm303_vm0, %v2661_v31, 0.0 }
 0x348   :  { %v11298_v55 = vsub.f32 %v14206_v44, %v2536_v27 }
 0x349   :  { %v2789_v58 = vsel %vm303_vm0, %v2659_v34, 0.0  ;;  %v11307_v28 = vsub.f32 %v14207_v51, %v2537_v9 }
 0x34a   :  { %v2416_v24 = vpop.xlane.xlu0 %2415  ;;  %2790 = vadd.xlane.f32.xlu1 %v2789_v58  ;;  %2793 = vadd.xlane.f32.xlu0 %v2792_v0 }
 0x34b   :  { %v2534_v45 = vmul.f32 0.015625, %v2416_v24  ;;  %v2665_v51 = vmul.f32 %v11307_v28, %v11307_v28 }
 0x34d   :  { %v11301_v21 = vsub.f32 %v10808_v30, %v2534_v45  ;;  %v2419_v10 = vpop.xlane.xlu1 %2418  ;;  %v2664_v30 = vmul.f32 %v11298_v55, %v11298_v55 }
 0x34e   :  { %v2535_v34 = vmul.f32 0.015625, %v2419_v10  ;;  %2796 = vadd.xlane.f32.xlu1 %v2795_v23 }
 0x34f   :  { %v2662_v8 = vmul.f32 %v11301_v21, %v11301_v21 }
 0x350   :  { %v11310_v58 = vsub.f32 %v10825_v50, %v2535_v34  ;;  %v2434_v6 = vpop.xlane.xlu0 %2433  ;;  %v2804_v50 = vsel %vm303_vm0, %v2664_v30, 0.0  ;;  %v2807_v34 = vsel %vm303_vm0, %v2665_v51, 0.0 }
 0x351   :  { %v2798_v27 = vsel %vm303_vm0, %v2662_v8, 0.0  ;;  %v2540_v45 = vmul.f32 0.015625, %v2434_v6 }
 0x352   :  { %2799 = vadd.xlane.f32.xlu0 %v2798_v27  ;;  %v2663_v0 = vmul.f32 %v11310_v58, %v11310_v58 }
 0x353   :  { %v11323_v27 = vsub.f32 %v10844_v26, %v2540_v45 }
 0x354   :  { %v2437_v31 = vpop.xlane.xlu1 %2436  ;;  %v2801_v24 = vsel %vm303_vm0, %v2663_v0, 0.0 }
 0x355   :  { %2802 = vadd.xlane.f32.xlu1 %v2801_v24  ;;  %v2541_v9 = vmul.f32 0.015625, %v2437_v31  ;;  %14208 = vst [vmem:[#allocation6_spill] sm:$0xff] %v11323_v27 }
 0x356   :  { %2805 = vadd.xlane.f32.xlu0 %v2804_v50  ;;  %v2428_v44 = vpop.xlane.xlu0 %2427 }
 0x357   :  { %v2538_v10 = vmul.f32 0.015625, %v2428_v44  ;;  %v11329_v24 = vsub.f32 %v10866_v14, %v2541_v9 }
 0x358   :  { %v2431_v23 = vpop.xlane.xlu1 %2430 }
 0x359   :  { %v2539_v8 = vmul.f32 0.015625, %v2431_v23  ;;  %2808 = vadd.xlane.f32.xlu1 %v2807_v34  ;;  %v11326_v0 = vsub.f32 %v10883_v13, %v2538_v10  ;;  %v2668_v13 = vmul.f32 %v11323_v27, %v11323_v27 }
 0x35b   :  { %v11332_v6 = vsub.f32 %v10890_v41, %v2539_v8  ;;  %v2666_v31 = vmul.f32 %v11326_v0, %v11326_v0  ;;  %v2669_v41 = vmul.f32 %v11329_v24, %v11329_v24  ;;  %v2816_v8 = vsel %vm303_vm0, %v2668_v13, 0.0 }
 0x35c   :  { %v2446_v30 = vpop.xlane.xlu0 %2445 }
 0x35d   :  { %v2449_v50 = vpop.xlane.xlu1 %2448  ;;  %v2667_v51 = vmul.f32 %v11332_v6, %v11332_v6  ;;  %v2810_v26 = vsel %vm303_vm0, %v2666_v31, 0.0  ;;  %v2544_v45 = vmul.f32 0.015625, %v2446_v30  ;;  %v2819_v30 = vsel %vm303_vm0, %v2669_v41, 0.0 }
 0x35e   :  { %2811 = vadd.xlane.f32.xlu0 %v2810_v26  ;;  %v2545_v9 = vmul.f32 0.015625, %v2449_v50 }
 0x35f   :  { %v2813_v14 = vsel %vm303_vm0, %v2667_v51, 0.0  ;;  %v11346_v31 = vsub.f32 %v10909_v49, %v2544_v45 }
 0x360   :  { %v2440_v44 = vpop.xlane.xlu0 %2439  ;;  %2814 = vadd.xlane.f32.xlu1 %v2813_v14  ;;  %v11353_v51 = vsub.f32 %v10918_v15, %v2545_v9 }
 0x361   :  { %v2542_v10 = vmul.f32 0.015625, %v2440_v44  ;;  %v2443_v23 = vpop.xlane.xlu1 %2442  ;;  %v2672_v41 = vmul.f32 %v11346_v31, %v11346_v31 }
 0x362   :  { %v2543_v34 = vmul.f32 0.015625, %v2443_v23  ;;  %2817 = vadd.xlane.f32.xlu0 %v2816_v8  ;;  %v2673_v44 = vmul.f32 %v11353_v51, %v11353_v51 }
 0x363   :  { %v11349_v27 = vsub.f32 %v10934_v33, %v2542_v10 }
 0x364   :  { %v11356_v50 = vsub.f32 %v10937_v53, %v2543_v34  ;;  %v2458_v26 = vpop.xlane.xlu0 %2457  ;;  %2820 = vadd.xlane.f32.xlu1 %v2819_v30 }
 0x365   :  { %v2461_v14 = vpop.xlane.xlu1 %2460  ;;  %v2670_v13 = vmul.f32 %v11349_v27, %v11349_v27  ;;  %v2548_v33 = vmul.f32 0.015625, %v2458_v26  ;;  %v2828_v26 = vsel %vm303_vm0, %v2672_v41, 0.0 }
 0x366   :  { %v2671_v49 = vmul.f32 %v11356_v50, %v11356_v50  ;;  %v2549_v15 = vmul.f32 0.015625, %v2461_v14 }
 0x367   :  { %v2822_v45 = vsel %vm303_vm0, %v2670_v13, 0.0  ;;  %v11369_v8 = vsub.f32 %v10952_v37, %v2548_v33 }
 0x368   :  { %2823 = vadd.xlane.f32.xlu0 %v2822_v45  ;;  %v2452_v9 = vpop.xlane.xlu0 %2451  ;;  %v2825_v53 = vsel %vm303_vm0, %v2671_v49, 0.0  ;;  %v11376_v14 = vsub.f32 %v10958_v39, %v2549_v15  ;;  %v2831_v45 = vsel %vm303_vm0, %v2673_v44, 0.0 }
 0x369   :  { %v2546_v10 = vmul.f32 0.015625, %v2452_v9  ;;  %2826 = vadd.xlane.f32.xlu1 %v2825_v53  ;;  %v2455_v23 = vpop.xlane.xlu1 %2454  ;;  %v2676_v39 = vmul.f32 %v11369_v8, %v11369_v8 }
 0x36a   :  { %v2547_v34 = vmul.f32 0.015625, %v2455_v23  ;;  %v2677_v44 = vmul.f32 %v11376_v14, %v11376_v14 }
 0x36b   :  { %v11372_v30 = vsub.f32 %v10969_v25, %v2546_v10 }
 0x36c   :  { %v11379_v13 = vsub.f32 %v10976_v19, %v2547_v34  ;;  %2829 = vadd.xlane.f32.xlu0 %v2828_v26  ;;  %v2470_v49 = vpop.xlane.xlu0 %2469 }
 0x36d   :  { %2832 = vadd.xlane.f32.xlu1 %v2831_v45  ;;  %v2473_v9 = vpop.xlane.xlu1 %2472  ;;  %v2674_v37 = vmul.f32 %v11372_v30, %v11372_v30  ;;  %v2552_v33 = vmul.f32 0.015625, %v2470_v49  ;;  %v2840_v45 = vsel %vm303_vm0, %v2676_v39, 0.0 }
 0x36e   :  { %v2675_v25 = vmul.f32 %v11379_v13, %v11379_v13  ;;  %v2553_v19 = vmul.f32 0.015625, %v2473_v9 }
 0x36f   :  { %v2834_v41 = vsel %vm303_vm0, %v2674_v37, 0.0  ;;  %v11393_v26 = vsub.f32 %v10992_v4, %v2552_v33 }
 0x370   :  { %2835 = vadd.xlane.f32.xlu0 %v2834_v41  ;;  %v2464_v15 = vpop.xlane.xlu0 %2463  ;;  %v2837_v53 = vsel %vm303_vm0, %v2675_v25, 0.0  ;;  %v11400_v9 = vsub.f32 %v10997_v22, %v2553_v19  ;;  %v2843_v41 = vsel %vm303_vm0, %v2677_v44, 0.0 }
 0x371   :  { %v2550_v10 = vmul.f32 0.015625, %v2464_v15  ;;  %2838 = vadd.xlane.f32.xlu1 %v2837_v53  ;;  %v2467_v23 = vpop.xlane.xlu1 %2466  ;;  %14209 = vst [vmem:[#allocation76_spill] sm:$0xff] %v11393_v26  ;;  %v2680_v22 = vmul.f32 %v11393_v26, %v11393_v26 }
 0x372   :  { %v2551_v34 = vmul.f32 0.015625, %v2467_v23  ;;  %v2681_v44 = vmul.f32 %v11400_v9, %v11400_v9  ;;  %v14210_v23 = vld [vmem:[#allocation89_spill] sm:$0xff] }
 0x373   :  { %v11396_v49 = vsub.f32 %v11005_v16, %v2550_v10 }
 0x374   :  { %v11403_v37 = vsub.f32 %v11008_v20, %v2551_v34  ;;  %2841 = vadd.xlane.f32.xlu0 %v2840_v45  ;;  %v2482_v25 = vpop.xlane.xlu0 %2481 }
 0x375   :  { %2844 = vadd.xlane.f32.xlu1 %v2843_v41  ;;  %v2678_v4 = vmul.f32 %v11396_v49, %v11396_v49  ;;  %v2556_v33 = vmul.f32 0.015625, %v2482_v25  ;;  %v2485_v15 = vpop.xlane.xlu1 %2484 }
 0x376   :  { %v2679_v16 = vmul.f32 %v11403_v37, %v11403_v37  ;;  %v2557_v20 = vmul.f32 0.015625, %v2485_v15  ;;  %v14213_v15 = vld [vmem:[#allocation90_spill] sm:$0xff] }
 0x377   :  { %v2846_v39 = vsel %vm303_vm0, %v2678_v4, 0.0  ;;  %v11417_v34 = vsub.f32 %v14210_v23, %v2556_v33  ;;  %v2852_v4 = vsel %vm303_vm0, %v2680_v22, 0.0 }
 0x378   :  { %2847 = vadd.xlane.f32.xlu0 %v2846_v39  ;;  %v2476_v19 = vpop.xlane.xlu0 %2475  ;;  %v2849_v53 = vsel %vm303_vm0, %v2679_v16, 0.0  ;;  %v11424_v39 = vsub.f32 %v14213_v15, %v2557_v20  ;;  %v2855_v16 = vsel %vm303_vm0, %v2681_v44, 0.0 }
 0x379   :  { %v2554_v10 = vmul.f32 0.015625, %v2476_v19  ;;  %2850 = vadd.xlane.f32.xlu1 %v2849_v53  ;;  %14211 = vst [vmem:[#allocation9_spill] sm:$0xff] %v11417_v34  ;;  %v2479_v45 = vpop.xlane.xlu1 %2478 }
 0x37a   :  { %v2555_v41 = vmul.f32 0.015625, %v2479_v45  ;;  %14214 = vst [vmem:[#allocation10_spill] sm:$0xff] %v11424_v39 }
 0x37b   :  { %v11420_v25 = vsub.f32 %v11023_v60, %v2554_v10  ;;  %v2684_v10 = vmul.f32 %v11417_v34, %v11417_v34 }
 0x37c   :  { %2853 = vadd.xlane.f32.xlu0 %v2852_v4  ;;  %v2488_v26 = vpop.xlane.xlu0 %2487  ;;  %v11428_v19 = vsub.f32 %v11035_v11, %v2555_v41  ;;  %v2685_v11 = vmul.f32 %v11424_v39, %v11424_v39 }
 0x37d   :  { %14212 = vst [vmem:[#allocation11_spill] sm:$0xff] %v11420_v25  ;;  %2856 = vadd.xlane.f32.xlu1 %v2855_v16  ;;  %v2682_v33 = vmul.f32 %v11420_v25, %v11420_v25  ;;  %v2558_v53 = vmul.f32 0.015625, %v2488_v26  ;;  %v2491_v60 = vpop.xlane.xlu1 %2490  ;;  %v2864_v16 = vsel %vm303_vm0, %v2684_v10, 0.0 }
 0x37e   :  { %14215 = vst [vmem:[#allocation13_spill] sm:$0xff] %v11428_v19  ;;  %v2683_v44 = vmul.f32 %v11428_v19, %v11428_v19  ;;  %v2559_v23 = vmul.f32 0.015625, %v2491_v60 }
 0x37f   :  { %v2858_v22 = vsel %vm303_vm0, %v2682_v33, 0.0  ;;  %v11436_v20 = vsub.f32 %v11040_v32, %v2558_v53 }
 0x380   :  { %2859 = vadd.xlane.f32.xlu0 %v2858_v22  ;;  %v2698_v45 = vpop.xlane.xlu0 %2697  ;;  %v2861_v26 = vsel %vm303_vm0, %v2683_v44, 0.0  ;;  %v11444_v41 = vsub.f32 %v11052_v63, %v2559_v23  ;;  %v2867_v44 = vsel %vm303_vm0, %v2685_v11, 0.0 }
 0x381   :  { %14216 = vst [vmem:[#allocation81_spill] sm:$0xff] %v11436_v20  ;;  %v2686_v4 = vmul.f32 %v11436_v20, %v11436_v20  ;;  %v2884_v15 = vmul.f32 0.015625, %v2698_v45  ;;  %2862 = vadd.xlane.f32.xlu1 %v2861_v26  ;;  %v2701_v32 = vpop.xlane.xlu1 %2700 }
 0x382   :  { %14217 = vst [vmem:[#allocation89_spill] sm:$0xff] %v11444_v41  ;;  %v2687_v33 = vmul.f32 %v11444_v41, %v11444_v41  ;;  %v2885_v60 = vmul.f32 0.015625, %v2701_v32 }
 0x383   :  { %v2948_v53 = vadd.f32 1e-06, %v2884_v15  ;;  %v2870_v63 = vsel %vm303_vm0, %v2686_v4, 0.0 }
 0x384   :  { %2865 = vadd.xlane.f32.xlu0 %v2864_v16  ;;  %v2692_v22 = vpop.xlane.xlu0 %2691  ;;  %v2949_v23 = vadd.f32 1e-06, %v2885_v60  ;;  %v2873_v26 = vsel %vm303_vm0, %v2687_v33, 0.0 }
 0x385   :  { %v2882_v39 = vmul.f32 0.015625, %v2692_v22  ;;  %2868 = vadd.xlane.f32.xlu1 %v2867_v44  ;;  %8431 = vrsqrt.f32 %v2948_v53  ;;  %v2695_v45 = vpop.xlane.xlu1 %2694 }
 0x386   :  { %8433 = vrsqrt.f32 %v2949_v23  ;;  %v2883_v20 = vmul.f32 0.015625, %v2695_v45 }
 0x387   :  { %v2946_v10 = vadd.f32 1e-06, %v2882_v39 }
 0x388   :  { %2871 = vadd.xlane.f32.xlu0 %v2870_v63  ;;  %v2710_v41 = vpop.xlane.xlu0 %2709  ;;  %v2947_v15 = vadd.f32 1e-06, %v2883_v20  ;;  %v11457_v20 = vld [vmem:[%s13755_s7] ss:$0 sm:$0xff] }
 0x389   :  { %8435 = vrsqrt.f32 %v2946_v10  ;;  %v2888_v32 = vmul.f32 0.015625, %v2710_v41  ;;  %2874 = vadd.xlane.f32.xlu1 %v2873_v26  ;;  %v2713_v16 = vpop.xlane.xlu1 %2712 }
 0x38a   :  { %8437 = vrsqrt.f32 %v2947_v15  ;;  %v2889_v4 = vmul.f32 0.015625, %v2713_v16 }
 0x38b   :  { %v2952_v11 = vadd.f32 1e-06, %v2888_v32 }
 0x38c   :  { %v2704_v60 = vpop.xlane.xlu0 %2703  ;;  %v2953_v22 = vadd.f32 1e-06, %v2889_v4 }
 0x38d   :  { %8439 = vrsqrt.f32 %v2952_v11  ;;  %v2886_v53 = vmul.f32 0.015625, %v2704_v60  ;;  %v2707_v44 = vpop.xlane.xlu1 %2706 }
 0x38e   :  { %8441 = vrsqrt.f32 %v2953_v22  ;;  %v2887_v23 = vmul.f32 0.015625, %v2707_v44 }
 0x38f   :  { %v2950_v33 = vadd.f32 1e-06, %v2886_v53  ;;  %v8432_v39 = vpop.eup %8431 }
 0x390   :  { %v2722_v45 = vpop.xlane.xlu0 %2721  ;;  %v8434_v41 = vpop.eup %8433  ;;  %v2951_v63 = vadd.f32 1e-06, %v2887_v23  ;;  %v3082_v4 = vmul.f32 %v8432_v39, %v11457_v20 }
 0x391   :  { %8443 = vrsqrt.f32 %v2950_v33  ;;  %v2892_v26 = vmul.f32 0.015625, %v2722_v45  ;;  %v2725_v10 = vpop.xlane.xlu1 %2724  ;;  %v3083_v15 = vmul.f32 %v8434_v41, %v11457_v20 }
 0x392   :  { %8445 = vrsqrt.f32 %v2951_v63  ;;  %v2893_v11 = vmul.f32 0.015625, %v2725_v10  ;;  %v3146_v39 = vmul.f32 %v3082_v4, %v11026_v18 }
 0x393   :  { %v8436_v32 = vpop.eup %8435  ;;  %v2956_v16 = vadd.f32 1e-06, %v2892_v26  ;;  %v3147_v19 = vmul.f32 %v3083_v15, %v11038_v12 }
 0x394   :  { %v2716_v60 = vpop.xlane.xlu0 %2715  ;;  %v3080_v22 = vmul.f32 %v8436_v32, %v11457_v20  ;;  %v8438_v53 = vpop.eup %8437  ;;  %v2957_v44 = vadd.f32 1e-06, %v2893_v11  ;;  %v11469_v32 = vld [vmem:[%s13756_s8] ss:$0 sm:$0xff] }
 0x395   :  { %v2890_v34 = vmul.f32 0.015625, %v2716_v60  ;;  %8447 = vrsqrt.f32 %v2956_v16  ;;  %v2719_v33 = vpop.xlane.xlu1 %2718  ;;  %v3081_v23 = vmul.f32 %v8438_v53, %v11457_v20 }
 0x396   :  { %v3144_v45 = vmul.f32 %v3080_v22, %v11048_v54  ;;  %8449 = vrsqrt.f32 %v2957_v44  ;;  %v2891_v26 = vmul.f32 0.015625, %v2719_v33  ;;  %v3217_v54 = vadd.f32 %v11469_v32, %v3147_v19 }
 0x397   :  { %v8440_v41 = vpop.eup %8439  ;;  %v2954_v63 = vadd.f32 1e-06, %v2890_v34  ;;  %v3145_v12 = vmul.f32 %v3081_v23, %v11055_v62  ;;  %v3216_v62 = vadd.f32 %v11469_v32, %v3146_v39 }
 0x398   :  { %v2734_v10 = vpop.xlane.xlu0 %2733  ;;  %v8442_v15 = vpop.eup %8441  ;;  %v2955_v16 = vadd.f32 1e-06, %v2891_v26  ;;  %v3214_v34 = vadd.f32 %v11469_v32, %v3144_v45  ;;  %v3086_v18 = vmul.f32 %v8440_v41, %v11457_v20 }
 0x399   :  { %8451 = vrsqrt.f32 %v2954_v63  ;;  %v2896_v11 = vmul.f32 0.015625, %v2734_v10  ;;  %v2737_v60 = vpop.xlane.xlu1 %2736  ;;  %v3215_v22 = vadd.f32 %v11469_v32, %v3145_v12  ;;  %v3087_v4 = vmul.f32 %v8442_v15, %v11457_v20 }
 0x39a   :  { %8453 = vrsqrt.f32 %v2955_v16  ;;  %v2897_v33 = vmul.f32 0.015625, %v2737_v60  ;;  %v3279_v45 = vpack.c.bf16 %v3217_v54, %v3216_v62  ;;  %v3150_v39 = vmul.f32 %v3086_v18, %v11064_v61 }
 0x39b   :  { %v8444_v53 = vpop.eup %8443  ;;  %v2960_v44 = vadd.f32 1e-06, %v2896_v11  ;;  %v3278_v63 = vpack.c.bf16 %v3215_v22, %v3214_v34  ;;  %v3151_v12 = vmul.f32 %v3087_v4, %v11070_v7 }
 0x39c   :  { %v2728_v23 = vpop.xlane.xlu0 %2727  ;;  %v3084_v26 = vmul.f32 %v8444_v53, %v11457_v20  ;;  %v8446_v19 = vpop.eup %8445  ;;  %v2961_v10 = vadd.f32 1e-06, %v2897_v33 }
 0x39d   :  { %v2894_v25 = vmul.f32 0.015625, %v2728_v23  ;;  %8455 = vrsqrt.f32 %v2960_v44  ;;  %v2731_v41 = vpop.xlane.xlu1 %2730  ;;  %7788 = vmatprep.mubr.msk.bf16.mxu1 %vm303_vm0, %v3278_v63  ;;  %v3085_v15 = vmul.f32 %v8446_v19, %v11457_v20  ;;  %v3221_v44 = vadd.f32 %v11469_v32, %v3151_v12 }
 0x39e   :  { %v3148_v16 = vmul.f32 %v3084_v26, %v11076_v38  ;;  %8457 = vrsqrt.f32 %v2961_v10  ;;  %v2895_v60 = vmul.f32 0.015625, %v2731_v41  ;;  %7789 = vmatmul.mubr.msk.bf16.vlgmr.msra.gmra.mrb[0].mxu1 %vm303_vm0, %v3279_v45 }
 0x39f   :  { %v2958_v11 = vadd.f32 1e-06, %v2894_v25  ;;  %v8448_v34 = vpop.eup %8447  ;;  %v3149_v54 = vmul.f32 %v3085_v15, %v11082_v57  ;;  %v3220_v25 = vadd.f32 %v11469_v32, %v3150_v39 }
 0x3a0   :  { %v2746_v22 = vpop.xlane.xlu0 %2745  ;;  %v8450_v7 = vpop.eup %8449  ;;  %v2959_v4 = vadd.f32 1e-06, %v2895_v60  ;;  %v3218_v38 = vadd.f32 %v11469_v32, %v3148_v16  ;;  %v3090_v57 = vmul.f32 %v8448_v34, %v11457_v20  ;;  %v14218_v16 = vld [vmem:[#allocation38_spill] sm:$0xff] }
 0x3a1   :  { %8459 = vrsqrt.f32 %v2958_v11  ;;  %v2900_v53 = vmul.f32 0.015625, %v2746_v22  ;;  %v2749_v33 = vpop.xlane.xlu1 %2748  ;;  %v3219_v61 = vadd.f32 %v11469_v32, %v3149_v54  ;;  %v3091_v18 = vmul.f32 %v8450_v7, %v11457_v20  ;;  %v14219_v22 = vld [vmem:[#allocation39_spill] sm:$0xff] }
 0x3a2   :  { %8461 = vrsqrt.f32 %v2959_v4  ;;  %v2901_v63 = vmul.f32 0.015625, %v2749_v33  ;;  %v3281_v15 = vpack.c.bf16 %v3221_v44, %v3220_v25  ;;  %v14220_v4 = vld [vmem:[#allocation36_spill] sm:$0xff] }
 0x3a3   :  { %v8452_v62 = vpop.eup %8451  ;;  %v2964_v23 = vadd.f32 1e-06, %v2900_v53  ;;  %v3280_v19 = vpack.c.bf16 %v3219_v61, %v3218_v38  ;;  %v3155_v11 = vmul.f32 %v3091_v18, %v14218_v16  ;;  %v3154_v53 = vmul.f32 %v3090_v57, %v14220_v4 }
 0x3a4   :  { %v2740_v26 = vpop.xlane.xlu0 %2739  ;;  %v3088_v10 = vmul.f32 %v8452_v62, %v11457_v20  ;;  %v8454_v45 = vpop.eup %8453  ;;  %v2965_v12 = vadd.f32 1e-06, %v2901_v63 }
 0x3a5   :  { %v2898_v41 = vmul.f32 0.015625, %v2740_v26  ;;  %8463 = vrsqrt.f32 %v2964_v23  ;;  %v2743_v39 = vpop.xlane.xlu1 %2742  ;;  %7792 = vmatprep.mubr.msk.bf16.mxu1 %vm303_vm0, %v3280_v19  ;;  %v3089_v60 = vmul.f32 %v8454_v45, %v11457_v20  ;;  %v3225_v25 = vadd.f32 %v11469_v32, %v3155_v11 }
 0x3a6   :  { %v3152_v54 = vmul.f32 %v3088_v10, %v14219_v22  ;;  %8465 = vrsqrt.f32 %v2965_v12  ;;  %v2899_v7 = vmul.f32 0.015625, %v2743_v39  ;;  %7793 = vmatmul.mubr.msk.bf16.gmra.mrb[4].mxu1 %vm303_vm0, %v3281_v15  ;;  %v3224_v57 = vadd.f32 %v11469_v32, %v3154_v53 }
 0x3a7   :  { %v2962_v34 = vadd.f32 1e-06, %v2898_v41  ;;  %v8456_v33 = vpop.eup %8455  ;;  %v3153_v44 = vmul.f32 %v3089_v60, %v11106_v36 }
 0x3a8   :  { %v8458_v38 = vpop.eup %8457  ;;  %v2963_v61 = vadd.f32 1e-06, %v2899_v7  ;;  %v3222_v62 = vadd.f32 %v11469_v32, %v3152_v54  ;;  %v3094_v36 = vmul.f32 %v8456_v33, %v11457_v20  ;;  %v3283_v16 = vpack.c.bf16 %v3225_v25, %v3224_v57  ;;  %v14221_v7 = vld [vmem:[#allocation41_spill] sm:$0xff] }
 0x3a9   :  { %8467 = vrsqrt.f32 %v2962_v34  ;;  %v3223_v23 = vadd.f32 %v11469_v32, %v3153_v44  ;;  %v3095_v63 = vmul.f32 %v8458_v38, %v11457_v20 }
 0x3aa   :  { %v2758_v18 = vpop.xlane.xlu0 %2757  ;;  %8469 = vrsqrt.f32 %v2963_v61  ;;  %v3158_v4 = vmul.f32 %v3094_v36, %v14221_v7 }
 0x3ab   :  { %v8460_v26 = vpop.eup %8459  ;;  %v2904_v19 = vmul.f32 0.015625, %v2758_v18  ;;  %v2761_v10 = vpop.xlane.xlu1 %2760  ;;  %v3282_v12 = vpack.c.bf16 %v3223_v23, %v3222_v62  ;;  %v3159_v11 = vmul.f32 %v3095_v63, %v11121_v29 }
 0x3ac   :  { %v2905_v45 = vmul.f32 0.015625, %v2761_v10  ;;  %v3092_v41 = vmul.f32 %v8460_v26, %v11457_v20  ;;  %v8462_v15 = vpop.eup %8461  ;;  %v3228_v26 = vadd.f32 %v11469_v32, %v3158_v4 }
 0x3ad   :  { %7796 = vmatprep.mubr.msk.bf16.mxu1 %vm303_vm0, %v3282_v12  ;;  %v3093_v60 = vmul.f32 %v8462_v15, %v11457_v20  ;;  %v2968_v54 = vadd.f32 1e-06, %v2904_v19  ;;  %v3229_v29 = vadd.f32 %v11469_v32, %v3159_v11 }
 0x3ae   :  { %v2969_v39 = vadd.f32 1e-06, %v2905_v45  ;;  %v3156_v22 = vmul.f32 %v3092_v41, %v11130_v35  ;;  %7797 = vmatmul.mubr.msk.bf16.gmra.mrb[8].mxu1 %vm303_vm0, %v3283_v16 }
 0x3af   :  { %v2752_v34 = vpop.xlane.xlu0 %2751  ;;  %v8464_v53 = vpop.eup %8463  ;;  %v3157_v44 = vmul.f32 %v3093_v60, %v11136_v1  ;;  %v3285_v45 = vpack.c.bf16 %v3229_v29, %v3228_v26 }
 0x3b0   :  { %v2902_v33 = vmul.f32 0.015625, %v2752_v34  ;;  %v8466_v38 = vpop.eup %8465  ;;  %8471 = vrsqrt.f32 %v2969_v39  ;;  %v3226_v25 = vadd.f32 %v11469_v32, %v3156_v22  ;;  %v3098_v19 = vmul.f32 %v8464_v53, %v11457_v20 }
 0x3b1   :  { %v3227_v18 = vadd.f32 %v11469_v32, %v3157_v44  ;;  %v3099_v35 = vmul.f32 %v8466_v38, %v11457_v20  ;;  %8473 = vrsqrt.f32 %v2968_v54 }
 0x3b2   :  { %v2966_v61 = vadd.f32 1e-06, %v2902_v33  ;;  %v2755_v23 = vpop.xlane.xlu1 %2754  ;;  %v3162_v22 = vmul.f32 %v3098_v19, %v11151_v17 }
 0x3b3   :  { %v8468_v62 = vpop.eup %8467  ;;  %v2494_v63 = vpop.xlane.xlu0 %2493  ;;  %v2903_v1 = vmul.f32 0.015625, %v2755_v23  ;;  %v3284_v57 = vpack.c.bf16 %v3227_v18, %v3226_v25  ;;  %v3163_v41 = vmul.f32 %v3099_v35, %v11161_v52 }
 0x3b4   :  { %8475 = vrsqrt.f32 %v2966_v61  ;;  %v2560_v10 = vmul.f32 0.015625, %v2494_v63  ;;  %v8470_v36 = vpop.eup %8469  ;;  %v3096_v12 = vmul.f32 %v8468_v62, %v11457_v20  ;;  %v3232_v44 = vadd.f32 %v11469_v32, %v3162_v22 }
 0x3b5   :  { %v2967_v15 = vadd.f32 1e-06, %v2903_v1  ;;  %7800 = vmatprep.mubr.msk.bf16.mxu1 %vm303_vm0, %v3284_v57  ;;  %v3097_v11 = vmul.f32 %v8470_v36, %v11457_v20 }
 0x3b6   :  { %v11523_v16 = vsub.f32 %v11214_v3, %v2560_v10  ;;  %v2497_v39 = vpop.xlane.xlu1 %2496  ;;  %7801 = vmatmul.mubr.msk.bf16.gmra.mrb[12].mxu1 %vm303_vm0, %v3285_v45  ;;  %v3160_v60 = vmul.f32 %v3096_v12, %v11166_v47  ;;  %v3233_v3 = vadd.f32 %v11469_v32, %v3163_v41 }
 0x3b7   :  { %8477 = vrsqrt.f32 %v2967_v15  ;;  %v2561_v54 = vmul.f32 0.015625, %v2497_v39  ;;  %v3161_v34 = vmul.f32 %v3097_v11, %v11171_v42 }
 0x3b8   :  { %v2688_v52 = vmul.f32 %v11523_v16, %v11523_v16  ;;  %v3230_v53 = vadd.f32 %v11469_v32, %v3160_v60  ;;  %v3287_v25 = vpack.c.bf16 %v3233_v3, %v3232_v44 }
 0x3b9   :  { %v11535_v7 = vsub.f32 %v11222_v43, %v2561_v54  ;;  %v3231_v47 = vadd.f32 %v11469_v32, %v3161_v34 }
 0x3ba   :  { %v2876_v4 = vsel %vm303_vm0, %v2688_v52, 0.0  ;;  %v8472_v33 = vpop.eup %8471 }
 0x3bb   :  { %v2764_v17 = vpop.xlane.xlu0 %2763  ;;  %2877 = vadd.xlane.f32.xlu0 %v2876_v4  ;;  %v2689_v42 = vmul.f32 %v11535_v7, %v11535_v7  ;;  %v3286_v29 = vpack.c.bf16 %v3231_v47, %v3230_v53  ;;  %v8474_v61 = vpop.eup %8473  ;;  %v3103_v23 = vmul.f32 %v8472_v33, %v11457_v20 }
 0x3bc   :  { %v2906_v38 = vmul.f32 0.015625, %v2764_v17  ;;  %v3102_v10 = vmul.f32 %v8474_v61, %v11457_v20 }
 0x3bd   :  { %v2879_v62 = vsel %vm303_vm0, %v2689_v42, 0.0  ;;  %7804 = vmatprep.mubr.msk.bf16.mxu1 %vm303_vm0, %v3286_v29  ;;  %v3167_v41 = vmul.f32 %v3103_v23, %v11190_v56 }
 0x3be   :  { %v8476_v43 = vpop.eup %8475  ;;  %v2970_v18 = vadd.f32 1e-06, %v2906_v38  ;;  %v2767_v35 = vpop.xlane.xlu1 %2766  ;;  %2880 = vadd.xlane.f32.xlu1 %v2879_v62  ;;  %7805 = vmatmul.mubr.msk.bf16.gmra.mrb[16].mxu1 %vm303_vm0, %v3287_v25  ;;  %v3166_v60 = vmul.f32 %v3102_v10, %v11187_v59 }
 0x3bf   :  { %v2907_v63 = vmul.f32 0.015625, %v2767_v35  ;;  %v2770_v26 = vpop.xlane.xlu0 %2769  ;;  %v3100_v19 = vmul.f32 %v8476_v43, %v11457_v20  ;;  %v3237_v52 = vadd.f32 %v11469_v32, %v3167_v41 }
 0x3c0   :  { %8479 = vrsqrt.f32 %v2970_v18  ;;  %v2908_v1 = vmul.f32 0.015625, %v2770_v26  ;;  %v3236_v4 = vadd.f32 %v11469_v32, %v3166_v60 }
 0x3c1   :  { %v2971_v57 = vadd.f32 1e-06, %v2907_v63  ;;  %v8478_v36 = vpop.eup %8477  ;;  %v3164_v39 = vmul.f32 %v3100_v19, %v11201_v40  ;;  %v14222_v19 = vld [vmem:[#allocation55_spill] sm:$0xff] }
 0x3c2   :  { %v2972_v45 = vadd.f32 1e-06, %v2908_v1  ;;  %v2773_v12 = vpop.xlane.xlu1 %2772  ;;  %v3101_v11 = vmul.f32 %v8478_v36, %v11457_v20  ;;  %v3289_v44 = vpack.c.bf16 %v3237_v52, %v3236_v4 }
 0x3c3   :  { %8481 = vrsqrt.f32 %v2971_v57  ;;  %v2909_v15 = vmul.f32 0.015625, %v2773_v12  ;;  %v3234_v34 = vadd.f32 %v11469_v32, %v3164_v39  ;;  %v14224_v39 = vld [vmem:[#allocation53_spill] sm:$0xff] }
 0x3c4   :  { %8483 = vrsqrt.f32 %v2972_v45  ;;  %v3165_v54 = vmul.f32 %v3101_v11, %v11211_v2  ;;  %v14223_v45 = vld [vmem:[#allocation49_spill] sm:$0xff] }
 0x3c5   :  { %v2973_v22 = vadd.f32 1e-06, %v2909_v15 }
 0x3c6   :  { %v3235_v3 = vadd.f32 %v11469_v32, %v3165_v54 }
 0x3c7   :  { %8485 = vrsqrt.f32 %v2973_v22 }
 0x3c8   :  { %v2776_v56 = vpop.xlane.xlu0 %2775  ;;  %v3288_v33 = vpack.c.bf16 %v3235_v3, %v3234_v34 }
 0x3c9   :  { %v2910_v53 = vmul.f32 0.015625, %v2776_v56  ;;  %v2779_v47 = vpop.xlane.xlu1 %2778 }
 0x3ca   :  { %v8480_v40 = vpop.eup %8479  ;;  %v2911_v17 = vmul.f32 0.015625, %v2779_v47  ;;  %7808 = vmatprep.mubr.msk.bf16.mxu1 %vm303_vm0, %v3288_v33 }
 0x3cb   :  { %v2974_v59 = vadd.f32 1e-06, %v2910_v53  ;;  %v3104_v2 = vmul.f32 %v8480_v40, %v11457_v20  ;;  %7809 = vmatmul.mubr.msk.bf16.gmra.mrb[20].mxu1 %vm303_vm0, %v3289_v44 }
 0x3cc   :  { %v2975_v38 = vadd.f32 1e-06, %v2911_v17  ;;  %v2782_v42 = vpop.xlane.xlu0 %2781 }
 0x3cd   :  { %v8482_v29 = vpop.eup %8481  ;;  %8487 = vrsqrt.f32 %v2974_v59  ;;  %v2912_v61 = vmul.f32 0.015625, %v2782_v42  ;;  %v2785_v25 = vpop.xlane.xlu1 %2784  ;;  %v3168_v43 = vmul.f32 %v3104_v2, %v11228_v5  ;;  %v14225_v42 = vld [vmem:[#allocation26_spill] sm:$0xff] }
 0x3ce   :  { %v8484_v18 = vpop.eup %8483  ;;  %8489 = vrsqrt.f32 %v2975_v38  ;;  %v2913_v35 = vmul.f32 0.015625, %v2785_v25  ;;  %v3105_v62 = vmul.f32 %v8482_v29, %v11457_v20 }
 0x3cf   :  { %v2976_v23 = vadd.f32 1e-06, %v2912_v61  ;;  %v3106_v63 = vmul.f32 %v8484_v18, %v11457_v20  ;;  %v3238_v57 = vadd.f32 %v11469_v32, %v3168_v43  ;;  %v14226_v61 = vld [vmem:[#allocation72_spill] sm:$0xff] }
 0x3d0   :  { %v2977_v26 = vadd.f32 1e-06, %v2913_v35  ;;  %v3169_v1 = vmul.f32 %v3105_v62, %v14222_v19  ;;  %v14227_v19 = vld [vmem:[#allocation25_spill] sm:$0xff] }
 0x3d1   :  { %v8486_v10 = vpop.eup %8485  ;;  %8491 = vrsqrt.f32 %v2976_v23  ;;  %v3170_v12 = vmul.f32 %v3106_v63, %v14223_v45 }
 0x3d2   :  { %8493 = vrsqrt.f32 %v2977_v26  ;;  %v3239_v36 = vadd.f32 %v11469_v32, %v3169_v1  ;;  %v3107_v5 = vmul.f32 %v8486_v10, %v11457_v20 }
 0x3d3   :  { %v2788_v41 = vpop.xlane.xlu0 %2787  ;;  %v3240_v54 = vadd.f32 %v11469_v32, %v3170_v12 }
 0x3d4   :  { %v2914_v15 = vmul.f32 0.015625, %v2788_v41  ;;  %v3290_v11 = vpack.c.bf16 %v3239_v36, %v3238_v57  ;;  %v3171_v60 = vmul.f32 %v3107_v5, %v14224_v39  ;;  %v14228_v36 = vld [vmem:[#allocation60_spill] sm:$0xff] }
 0x3d6   :  { %v2978_v22 = vadd.f32 1e-06, %v2914_v15  ;;  %7812 = vmatprep.mubr.msk.bf16.mxu1 %vm303_vm0, %v3290_v11  ;;  %v3241_v52 = vadd.f32 %v11469_v32, %v3171_v60 }
 0x3d7   :  { %v8488_v34 = vpop.eup %8487  ;;  %v2791_v3 = vpop.xlane.xlu1 %2790 }
 0x3d8   :  { %v2794_v56 = vpop.xlane.xlu0 %2793  ;;  %v8490_v4 = vpop.eup %8489  ;;  %8495 = vrsqrt.f32 %v2978_v22  ;;  %v2915_v53 = vmul.f32 0.015625, %v2791_v3  ;;  %v3291_v33 = vpack.c.bf16 %v3241_v52, %v3240_v54  ;;  %v3108_v40 = vmul.f32 %v8488_v34, %v11457_v20 }
 0x3d9   :  { %v2916_v47 = vmul.f32 0.015625, %v2794_v56  ;;  %v3109_v17 = vmul.f32 %v8490_v4, %v11457_v20 }
 0x3da   :  { %v2979_v44 = vadd.f32 1e-06, %v2915_v53  ;;  %7813 = vmatmul.mubr.msk.bf16.gmra.mrb[24].mxu1 %vm303_vm0, %v3291_v33  ;;  %v3172_v29 = vmul.f32 %v3108_v40, %v14225_v42 }
 0x3db   :  { %v2980_v59 = vadd.f32 1e-06, %v2916_v47  ;;  %v8492_v2 = vpop.eup %8491  ;;  %v2797_v38 = vpop.xlane.xlu1 %2796  ;;  %v3173_v25 = vmul.f32 %v3109_v17, %v14226_v61 }
 0x3dc   :  { %v8494_v43 = vpop.eup %8493  ;;  %8497 = vrsqrt.f32 %v2979_v44  ;;  %v2917_v18 = vmul.f32 0.015625, %v2797_v38  ;;  %v3110_v35 = vmul.f32 %v8492_v2, %v11457_v20  ;;  %v3242_v62 = vadd.f32 %v11469_v32, %v3172_v29 }
 0x3dd   :  { %8499 = vrsqrt.f32 %v2980_v59  ;;  %v3243_v23 = vadd.f32 %v11469_v32, %v3173_v25  ;;  %v3111_v63 = vmul.f32 %v8494_v43, %v11457_v20 }
 0x3de   :  { %v2981_v26 = vadd.f32 1e-06, %v2917_v18  ;;  %v3174_v1 = vmul.f32 %v3110_v35, %v14227_v19 }
 0x3df   :  { %v2800_v10 = vpop.xlane.xlu0 %2799  ;;  %v3292_v57 = vpack.c.bf16 %v3243_v23, %v3242_v62  ;;  %v3175_v5 = vmul.f32 %v3111_v63, %v14228_v36  ;;  %v14230_v23 = vld [vmem:[#allocation7_spill] sm:$0xff] }
 0x3e0   :  { %8501 = vrsqrt.f32 %v2981_v26  ;;  %v2918_v45 = vmul.f32 0.015625, %v2800_v10  ;;  %v3244_v12 = vadd.f32 %v11469_v32, %v3174_v1 }
 0x3e1   :  { %7816 = vmatprep.mubr.msk.bf16.mxu1 %vm303_vm0, %v3292_v57  ;;  %v3245_v41 = vadd.f32 %v11469_v32, %v3175_v5 }
 0x3e2   :  { %v8496_v15 = vpop.eup %8495  ;;  %v2982_v11 = vadd.f32 1e-06, %v2918_v45  ;;  %v2803_v39 = vpop.xlane.xlu1 %2802 }
 0x3e3   :  { %v2919_v60 = vmul.f32 0.015625, %v2803_v39  ;;  %v2806_v22 = vpop.xlane.xlu0 %2805  ;;  %v3293_v54 = vpack.c.bf16 %v3245_v41, %v3244_v12  ;;  %v3112_v52 = vmul.f32 %v8496_v15, %v11457_v20 }
 0x3e4   :  { %8503 = vrsqrt.f32 %v2982_v11  ;;  %v2920_v34 = vmul.f32 0.015625, %v2806_v22 }
 0x3e5   :  { %v2983_v3 = vadd.f32 1e-06, %v2919_v60  ;;  %7817 = vmatmul.mubr.msk.bf16.gmra.mrb[28].mxu1 %vm303_vm0, %v3293_v54  ;;  %v3176_v47 = vmul.f32 %v3112_v52, %v11278_v48  ;;  %v14229_v48 = vld [vmem:[#allocation5_spill] sm:$0xff] }
 0x3e6   :  { %v8498_v56 = vpop.eup %8497  ;;  %v2984_v4 = vadd.f32 1e-06, %v2920_v34  ;;  %v2809_v53 = vpop.xlane.xlu1 %2808 }
 0x3e7   :  { %v8500_v33 = vpop.eup %8499  ;;  %8505 = vrsqrt.f32 %v2983_v3  ;;  %v2921_v40 = vmul.f32 0.015625, %v2809_v53  ;;  %v3113_v17 = vmul.f32 %v8498_v56, %v11457_v20  ;;  %v3246_v42 = vadd.f32 %v11469_v32, %v3176_v47 }
 0x3e8   :  { %8507 = vrsqrt.f32 %v2984_v4  ;;  %v3114_v44 = vmul.f32 %v8500_v33, %v11457_v20 }
 0x3e9   :  { %v2985_v59 = vadd.f32 1e-06, %v2921_v40  ;;  %v3177_v2 = vmul.f32 %v3113_v17, %v11286_v46 }
 0x3ea   :  { %v8502_v38 = vpop.eup %8501  ;;  %v3178_v25 = vmul.f32 %v3114_v44, %v14229_v48 }
 0x3eb   :  { %8509 = vrsqrt.f32 %v2985_v59  ;;  %v3247_v29 = vadd.f32 %v11469_v32, %v3177_v2  ;;  %v3115_v61 = vmul.f32 %v8502_v38, %v11457_v20  ;;  %v2812_v43 = vpop.xlane.xlu0 %2811 }
 0x3ec   :  { %v2922_v18 = vmul.f32 0.015625, %v2812_v43  ;;  %v3248_v46 = vadd.f32 %v11469_v32, %v3178_v25 }
 0x3ed   :  { %v2815_v35 = vpop.xlane.xlu1 %2814  ;;  %v3294_v62 = vpack.c.bf16 %v3247_v29, %v3246_v42  ;;  %v3179_v63 = vmul.f32 %v3115_v61, %v14230_v23 }
 0x3ee   :  { %v8504_v26 = vpop.eup %8503  ;;  %v2923_v19 = vmul.f32 0.015625, %v2815_v35  ;;  %v2986_v1 = vadd.f32 1e-06, %v2922_v18 }
 0x3ef   :  { %7820 = vmatprep.mubr.msk.bf16.mxu1 %vm303_vm0, %v3294_v62  ;;  %v3249_v10 = vadd.f32 %v11469_v32, %v3179_v63  ;;  %v3116_v57 = vmul.f32 %v8504_v26, %v11457_v20  ;;  %v2818_v5 = vpop.xlane.xlu0 %2817 }
 0x3f0   :  { %v2987_v36 = vadd.f32 1e-06, %v2923_v19  ;;  %8511 = vrsqrt.f32 %v2986_v1  ;;  %v2924_v12 = vmul.f32 0.015625, %v2818_v5 }
 0x3f1   :  { %v8506_v45 = vpop.eup %8505  ;;  %v2821_v41 = vpop.xlane.xlu1 %2820  ;;  %v3295_v15 = vpack.c.bf16 %v3249_v10, %v3248_v46  ;;  %v3180_v11 = vmul.f32 %v3116_v57, %v11301_v21 }
 0x3f2   :  { %v8508_v39 = vpop.eup %8507  ;;  %8513 = vrsqrt.f32 %v2987_v36  ;;  %v2925_v60 = vmul.f32 0.015625, %v2821_v41  ;;  %v3117_v22 = vmul.f32 %v8506_v45, %v11457_v20  ;;  %v2988_v54 = vadd.f32 1e-06, %v2924_v12 }
 0x3f3   :  { %7821 = vmatmul.mubr.msk.bf16.gmra.mrb[32].mxu1 %vm303_vm0, %v3295_v15  ;;  %v3118_v52 = vmul.f32 %v8508_v39, %v11457_v20  ;;  %v3250_v53 = vadd.f32 %v11469_v32, %v3180_v11 }
 0x3f4   :  { %v2989_v34 = vadd.f32 1e-06, %v2925_v60  ;;  %v3181_v3 = vmul.f32 %v3117_v22, %v11310_v58  ;;  %8515 = vrsqrt.f32 %v2988_v54  ;;  %v14231_v54 = vld [vmem:[#allocation6_spill] sm:$0xff] }
 0x3f5   :  { %v8510_v56 = vpop.eup %8509  ;;  %v2824_v4 = vpop.xlane.xlu0 %2823  ;;  %v3182_v21 = vmul.f32 %v3118_v52, %v11298_v55 }
 0x3f6   :  { %8517 = vrsqrt.f32 %v2989_v34  ;;  %v2926_v47 = vmul.f32 0.015625, %v2824_v4  ;;  %v2827_v33 = vpop.xlane.xlu1 %2826  ;;  %v3251_v40 = vadd.f32 %v11469_v32, %v3181_v3  ;;  %v3119_v17 = vmul.f32 %v8510_v56, %v11457_v20 }
 0x3f7   :  { %v2927_v44 = vmul.f32 0.015625, %v2827_v33  ;;  %v3252_v55 = vadd.f32 %v11469_v32, %v3182_v21 }
 0x3f8   :  { %v2990_v59 = vadd.f32 1e-06, %v2926_v47  ;;  %v3296_v2 = vpack.c.bf16 %v3251_v40, %v3250_v53  ;;  %v3183_v38 = vmul.f32 %v3119_v17, %v11307_v28 }
 0x3f9   :  { %v2991_v58 = vadd.f32 1e-06, %v2927_v44  ;;  %v2830_v42 = vpop.xlane.xlu0 %2829 }
 0x3fa   :  { %8519 = vrsqrt.f32 %v2990_v59  ;;  %v2928_v29 = vmul.f32 0.015625, %v2830_v42  ;;  %v2833_v61 = vpop.xlane.xlu1 %2832  ;;  %7824 = vmatprep.mubr.msk.bf16.mxu1 %vm303_vm0, %v3296_v2  ;;  %v3253_v48 = vadd.f32 %v11469_v32, %v3183_v38  ;;  %v8512_v25 = vpop.eup %8511 }
 0x3fb   :  { %8521 = vrsqrt.f32 %v2991_v58  ;;  %v2929_v43 = vmul.f32 0.015625, %v2833_v61  ;;  %v3120_v23 = vmul.f32 %v8512_v25, %v11457_v20 }
 0x3fc   :  { %v8514_v18 = vpop.eup %8513  ;;  %v2992_v35 = vadd.f32 1e-06, %v2928_v29  ;;  %v3297_v62 = vpack.c.bf16 %v3253_v48, %v3252_v55 }
 0x3fd   :  { %v2993_v28 = vadd.f32 1e-06, %v2929_v43  ;;  %v2836_v63 = vpop.xlane.xlu0 %2835  ;;  %v3121_v26 = vmul.f32 %v8514_v18, %v11457_v20  ;;  %v3184_v46 = vmul.f32 %v3120_v23, %v11326_v0 }
 0x3fe   :  { %8523 = vrsqrt.f32 %v2992_v35  ;;  %v2930_v19 = vmul.f32 0.015625, %v2836_v63  ;;  %v2839_v1 = vpop.xlane.xlu1 %2838  ;;  %7825 = vmatmul.mubr.msk.bf16.gmra.mrb[36].mxu1 %vm303_vm0, %v3297_v62  ;;  %v8516_v10 = vpop.eup %8515 }
 0x3ff   :  { %8525 = vrsqrt.f32 %v2993_v28  ;;  %v2931_v57 = vmul.f32 0.015625, %v2839_v1  ;;  %v3185_v36 = vmul.f32 %v3121_v26, %v11332_v6  ;;  %v3122_v12 = vmul.f32 %v8516_v10, %v11457_v20 }
 0x400   :  { %v8518_v5 = vpop.eup %8517  ;;  %v2994_v45 = vadd.f32 1e-06, %v2930_v19  ;;  %v3254_v11 = vadd.f32 %v11469_v32, %v3184_v46 }
 0x401   :  { %v2995_v41 = vadd.f32 1e-06, %v2931_v57  ;;  %v2842_v15 = vpop.xlane.xlu0 %2841  ;;  %v3255_v39 = vadd.f32 %v11469_v32, %v3185_v36  ;;  %v3123_v60 = vmul.f32 %v8518_v5, %v11457_v20  ;;  %v3186_v52 = vmul.f32 %v3122_v12, %v14231_v54 }
 0x402   :  { %8527 = vrsqrt.f32 %v2994_v45  ;;  %v2932_v22 = vmul.f32 0.015625, %v2842_v15  ;;  %v2845_v0 = vpop.xlane.xlu1 %2844 }
 0x403   :  { %8529 = vrsqrt.f32 %v2995_v41  ;;  %v2933_v34 = vmul.f32 0.015625, %v2845_v0  ;;  %v3298_v6 = vpack.c.bf16 %v3255_v39, %v3254_v11  ;;  %v3187_v3 = vmul.f32 %v3123_v60, %v11329_v24 }
 0x404   :  { %v8520_v56 = vpop.eup %8519  ;;  %v2996_v4 = vadd.f32 1e-06, %v2932_v22  ;;  %v3256_v33 = vadd.f32 %v11469_v32, %v3186_v52 }
 0x405   :  { %v8522_v53 = vpop.eup %8521  ;;  %v2997_v21 = vadd.f32 1e-06, %v2933_v34  ;;  %v2848_v47 = vpop.xlane.xlu0 %2847  ;;  %7828 = vmatprep.mubr.msk.bf16.mxu1 %vm303_vm0, %v3298_v6  ;;  %v3257_v40 = vadd.f32 %v11469_v32, %v3187_v3  ;;  %v3124_v17 = vmul.f32 %v8520_v56, %v11457_v20 }
 0x406   :  { %8531 = vrsqrt.f32 %v2996_v4  ;;  %v2934_v44 = vmul.f32 0.015625, %v2848_v47  ;;  %v2851_v59 = vpop.xlane.xlu1 %2850  ;;  %v3125_v2 = vmul.f32 %v8522_v53, %v11457_v20 }
 0x407   :  { %8533 = vrsqrt.f32 %v2997_v21  ;;  %v2935_v24 = vmul.f32 0.015625, %v2851_v59  ;;  %v3299_v38 = vpack.c.bf16 %v3257_v40, %v3256_v33  ;;  %v3188_v58 = vmul.f32 %v3124_v17, %v11349_v27 }
 0x408   :  { %v8524_v42 = vpop.eup %8523  ;;  %v2998_v29 = vadd.f32 1e-06, %v2934_v44  ;;  %v3189_v61 = vmul.f32 %v3125_v2, %v11356_v50 }
 0x409   :  { %v8526_v55 = vpop.eup %8525  ;;  %v2999_v48 = vadd.f32 1e-06, %v2935_v24  ;;  %v2854_v25 = vpop.xlane.xlu0 %2853  ;;  %7829 = vmatmul.mubr.msk.bf16.gmra.mrb[40].mxu1 %vm303_vm0, %v3299_v38  ;;  %v3258_v43 = vadd.f32 %v11469_v32, %v3188_v58  ;;  %v3126_v18 = vmul.f32 %v8524_v42, %v11457_v20 }
 0x40a   :  { %8535 = vrsqrt.f32 %v2998_v29  ;;  %v2936_v35 = vmul.f32 0.015625, %v2854_v25  ;;  %v2857_v62 = vpop.xlane.xlu1 %2856  ;;  %v3259_v23 = vadd.f32 %v11469_v32, %v3189_v61  ;;  %v3127_v27 = vmul.f32 %v8526_v55, %v11457_v20 }
 0x40b   :  { %8537 = vrsqrt.f32 %v2999_v48  ;;  %v2937_v28 = vmul.f32 0.015625, %v2857_v62  ;;  %v3190_v50 = vmul.f32 %v3126_v18, %v11346_v31 }
 0x40c   :  { %v8528_v63 = vpop.eup %8527  ;;  %v3000_v26 = vadd.f32 1e-06, %v2936_v35  ;;  %v3300_v19 = vpack.c.bf16 %v3259_v23, %v3258_v43  ;;  %v3191_v1 = vmul.f32 %v3127_v27, %v11353_v51 }
 0x40d   :  { %v8530_v46 = vpop.eup %8529  ;;  %v3001_v10 = vadd.f32 1e-06, %v2937_v28  ;;  %v2860_v57 = vpop.xlane.xlu0 %2859  ;;  %v3260_v36 = vadd.f32 %v11469_v32, %v3190_v50  ;;  %v3128_v5 = vmul.f32 %v8528_v63, %v11457_v20 }
 0x40e   :  { %8539 = vrsqrt.f32 %v3000_v26  ;;  %v2938_v45 = vmul.f32 0.015625, %v2860_v57  ;;  %7832 = vmatprep.mubr.msk.bf16.mxu1 %vm303_vm0, %v3300_v19  ;;  %v3261_v12 = vadd.f32 %v11469_v32, %v3191_v1  ;;  %v3129_v31 = vmul.f32 %v8530_v46, %v11457_v20  ;;  %v2863_v41 = vpop.xlane.xlu1 %2862 }
 0x40f   :  { %8541 = vrsqrt.f32 %v3001_v10  ;;  %v3192_v15 = vmul.f32 %v3128_v5, %v11372_v30  ;;  %v2939_v39 = vmul.f32 0.015625, %v2863_v41  ;;  %v9076_v10 = vld [vmem:[%s13755_s7] ss:$0 sm:$0xff] }
 0x410   :  { %v8532_v51 = vpop.eup %8531  ;;  %v3002_v11 = vadd.f32 1e-06, %v2938_v45  ;;  %v3301_v60 = vpack.c.bf16 %v3261_v12, %v3260_v36  ;;  %v3193_v22 = vmul.f32 %v3129_v31, %v11379_v13  ;;  %v14233_v36 = vld [vmem:[#allocation11_spill] sm:$0xff]  ;;  %v14234_v31 = vld [vmem:[#allocation13_spill] sm:$0xff] }
 0x411   :  { %v8534_v0 = vpop.eup %8533  ;;  %v2866_v54 = vpop.xlane.xlu0 %2865  ;;  %v3262_v52 = vadd.f32 %v11469_v32, %v3192_v15  ;;  %v3130_v34 = vmul.f32 %v8532_v51, %v11457_v20  ;;  %v3003_v6 = vadd.f32 1e-06, %v2939_v39  ;;  %v14235_v39 = vld [vmem:[#allocation9_spill] sm:$0xff] }
 0x412   :  { %8543 = vrsqrt.f32 %v3002_v11  ;;  %v2940_v3 = vmul.f32 0.015625, %v2866_v54  ;;  %7833 = vmatmul.mubr.msk.bf16.gmra.mrb[44].mxu1 %vm303_vm0, %v3301_v60  ;;  %v3263_v56 = vadd.f32 %v11469_v32, %v3193_v22  ;;  %v2869_v30 = vpop.xlane.xlu1 %2868  ;;  %v3131_v4 = vmul.f32 %v8534_v0, %v11457_v20  ;;  %v14236_v54 = vld [vmem:[#allocation10_spill] sm:$0xff] }
 0x413   :  { %v3194_v53 = vmul.f32 %v3130_v34, %v11369_v8  ;;  %8545 = vrsqrt.f32 %v3003_v6  ;;  %v2941_v47 = vmul.f32 0.015625, %v2869_v30 }
 0x414   :  { %v8536_v21 = vpop.eup %8535  ;;  %v3004_v13 = vadd.f32 1e-06, %v2940_v3  ;;  %v3302_v33 = vpack.c.bf16 %v3263_v56, %v3262_v52  ;;  %v3195_v44 = vmul.f32 %v3131_v4, %v11376_v14  ;;  %v14237_v4 = vld [vmem:[#allocation81_spill] sm:$0xff] }
 0x415   :  { %v8538_v40 = vpop.eup %8537  ;;  %v2872_v17 = vpop.xlane.xlu0 %2871  ;;  %v3132_v59 = vmul.f32 %v8536_v21, %v11457_v20  ;;  %v3005_v2 = vadd.f32 1e-06, %v2941_v47  ;;  %v3264_v8 = vadd.f32 %v11469_v32, %v3194_v53 }
 0x416   :  { %8547 = vrsqrt.f32 %v3004_v13  ;;  %v2942_v24 = vmul.f32 0.015625, %v2872_v17  ;;  %7836 = vmatprep.mubr.msk.bf16.mxu1 %vm303_vm0, %v3302_v33  ;;  %v3133_v38 = vmul.f32 %v8538_v40, %v11457_v20  ;;  %v2875_v58 = vpop.xlane.xlu1 %2874  ;;  %v3265_v42 = vadd.f32 %v11469_v32, %v3195_v44  ;;  %v14238_v13 = vld [vmem:[#allocation89_spill] sm:$0xff] }
 0x417   :  { %v3196_v29 = vmul.f32 %v3132_v59, %v11396_v49  ;;  %8549 = vrsqrt.f32 %v3005_v2  ;;  %v2943_v14 = vmul.f32 0.015625, %v2875_v58  ;;  %v14232_v49 = vld [vmem:[#allocation76_spill] sm:$0xff] }
 0x418   :  { %v8540_v61 = vpop.eup %8539  ;;  %v3006_v55 = vadd.f32 1e-06, %v2942_v24  ;;  %v3197_v48 = vmul.f32 %v3133_v38, %v11403_v37  ;;  %v3303_v43 = vpack.c.bf16 %v3265_v42, %v3264_v8 }
 0x419   :  { %v8542_v25 = vpop.eup %8541  ;;  %v3266_v18 = vadd.f32 %v11469_v32, %v3196_v29  ;;  %v3134_v35 = vmul.f32 %v8540_v61, %v11457_v20  ;;  %v3007_v62 = vadd.f32 1e-06, %v2943_v14 }
 0x41a   :  { %8551 = vrsqrt.f32 %v3006_v55  ;;  %v3267_v23 = vadd.f32 %v11469_v32, %v3197_v48  ;;  %v3135_v27 = vmul.f32 %v8542_v25, %v11457_v20  ;;  %7837 = vmatmul.mubr.msk.bf16.gmra.mrb[48].mxu1 %vm303_vm0, %v3303_v43 }
 0x41b   :  { %v3198_v28 = vmul.f32 %v3134_v35, %v14232_v49  ;;  %8553 = vrsqrt.f32 %v3007_v62 }
 0x41c   :  { %v8544_v50 = vpop.eup %8543  ;;  %v3304_v63 = vpack.c.bf16 %v3267_v23, %v3266_v18  ;;  %v3199_v37 = vmul.f32 %v3135_v27, %v11400_v9  ;;  %v11700_v18 = vld [vmem:[%s13754_s6] ss:$0 sm:$0xff] }
 0x41d   :  { %v3136_v26 = vmul.f32 %v8544_v50, %v11457_v20  ;;  %v8546_v19 = vpop.eup %8545  ;;  %v3268_v1 = vadd.f32 %v11469_v32, %v3198_v28 }
 0x41e   :  { %7840 = vmatprep.mubr.msk.bf16.mxu1 %vm303_vm0, %v3304_v63  ;;  %v3269_v46 = vadd.f32 %v11469_v32, %v3199_v37  ;;  %v3137_v57 = vmul.f32 %v9076_v10, %v8546_v19 }
 0x41f   :  { %v3200_v5 = vmul.f32 %v3136_v26, %v14233_v36 }
 0x420   :  { %v8548_v45 = vpop.eup %8547  ;;  %v3305_v12 = vpack.c.bf16 %v3269_v46, %v3268_v1  ;;  %v3201_v9 = vmul.f32 %v3137_v57, %v14234_v31 }
 0x421   :  { %v3138_v41 = vmul.f32 %v9076_v10, %v8548_v45  ;;  %v8550_v20 = vpop.eup %8549  ;;  %v3270_v15 = vadd.f32 %v11469_v32, %v3200_v5 }
 0x422   :  { %7841 = vmatmul.mubr.msk.bf16.gmra.mrb[52].mxu1 %vm303_vm0, %v3305_v12  ;;  %v3271_v51 = vadd.f32 %v11469_v32, %v3201_v9  ;;  %v3139_v11 = vmul.f32 %v9076_v10, %v8550_v20 }
 0x423   :  { %v3202_v60 = vmul.f32 %v3138_v41, %v14235_v39 }
 0x424   :  { %v8552_v22 = vpop.eup %8551  ;;  %v3306_v0 = vpack.c.bf16 %v3271_v51, %v3270_v15  ;;  %v3203_v52 = vmul.f32 %v3139_v11, %v14236_v54 }
 0x425   :  { %v3140_v34 = vmul.f32 %v9076_v10, %v8552_v22  ;;  %v8554_v6 = vpop.eup %8553  ;;  %v3272_v3 = vadd.f32 %v11469_v32, %v3202_v60 }
 0x426   :  { %7844 = vmatprep.mubr.msk.bf16.mxu1 %vm303_vm0, %v3306_v0  ;;  %v3273_v56 = vadd.f32 %v11469_v32, %v3203_v52  ;;  %v3141_v30 = vmul.f32 %v9076_v10, %v8554_v6 }
 0x427   :  { %v3204_v53 = vmul.f32 %v3140_v34, %v14237_v4 }
 0x428   :  { %v3307_v21 = vpack.c.bf16 %v3273_v56, %v3272_v3  ;;  %v3205_v47 = vmul.f32 %v3141_v30, %v14238_v13 }
 0x429   :  { %v3274_v33 = vadd.f32 %v11469_v32, %v3204_v53 }
 0x42a   :  { %7845 = vmatmul.mubr.msk.bf16.gmra.mrb[56].mxu1 %vm303_vm0, %v3307_v21  ;;  %v3275_v40 = vadd.f32 %v11469_v32, %v3205_v47  ;;  %v9077_v32 = vld [vmem:[%s13756_s8] ss:$0 sm:$0xff] }
 0x42c   :  { %v3308_v17 = vpack.c.bf16 %v3275_v40, %v3274_v33 }
 0x42e   :  { %7848 = vmatprep.mubr.msk.bf16.mxu1 %vm303_vm0, %v3308_v17 }
 0x448   :  { %v2878_v44 = vpop.xlane.xlu0 %2877 }
 0x449   :  { %v2944_v59 = vmul.f32 0.015625, %v2878_v44 }
 0x44b   :  { %v3008_v2 = vadd.f32 1e-06, %v2944_v59  ;;  %v2881_v24 = vpop.xlane.xlu1 %2880 }
 0x44c   :  { %v2945_v38 = vmul.f32 0.015625, %v2881_v24 }
 0x44d   :  { %8555 = vrsqrt.f32 %v3008_v2 }
 0x44e   :  { %v3009_v58 = vadd.f32 1e-06, %v2945_v38 }
 0x450   :  { %8557 = vrsqrt.f32 %v3009_v58 }
 0x457   :  { %v8556_v8 = vpop.eup %8555 }
 0x458   :  { %v3142_v42 = vmul.f32 %v9076_v10, %v8556_v8 }
 0x45a   :  { %v8558_v29 = vpop.eup %8557  ;;  %v3206_v55 = vmul.f32 %v3142_v42, %v11523_v16 }
 0x45b   :  { %v3143_v61 = vmul.f32 %v9076_v10, %v8558_v29 }
 0x45c   :  { %v3276_v48 = vadd.f32 %v9077_v32, %v3206_v55 }
 0x45d   :  { %v3207_v14 = vmul.f32 %v3143_v61, %v11535_v7 }
 0x45f   :  { %v3277_v25 = vadd.f32 %v9077_v32, %v3207_v14 }
 0x461   :  { %v3309_v43 = vpack.c.bf16 %v3277_v25, %v3276_v48 }
 0x463   :  { %7849 = vmatmul.mubr.msk.bf16.gmra.mrb[60].mxu1 %vm303_vm0, %v3309_v43 }
 0x471   :  { %v7790_v35 = vpop.f32.mrb[0].mxu1 }
 0x472   :  { %v3488_v62 = vadd.f32 %v7790_v35, %v11700_v18  ;;  %v3479_v16 = vpop.f32.mrb[1].mxu1 }
 0x473   :  { %v3480_v7 = vadd.f32 %v11700_v18, %v3479_v16  ;;  %v7791_v23 = vpop.f32.mrb[2].mxu1 }
 0x474   :  { %v3800_v27 = vmul.f32 0.70710677, %v3488_v62  ;;  %v3491_v49 = vadd.f32 %v7791_v23, %v11700_v18  ;;  %v3482_v28 = vpop.f32.mrb[3].mxu1  ;;  %v3736_v51 = vmul.f32 0.5, %v3488_v62 }
 0x475   :  { %v3798_v50 = vmul.f32 0.70710677, %v3480_v7  ;;  %v3483_v63 = vadd.f32 %v11700_v18, %v3482_v28  ;;  %v3734_v22 = vmul.f32 0.5, %v3480_v7 }
 0x476   :  { %8559 = verf.f32 %v3800_v27  ;;  %v3801_v37 = vmul.f32 0.70710677, %v3491_v49  ;;  %v3737_v30 = vmul.f32 0.5, %v3491_v49 }
 0x477   :  { %8561 = verf.f32 %v3798_v50  ;;  %v3799_v26 = vmul.f32 0.70710677, %v3483_v63  ;;  %v3735_v38 = vmul.f32 0.5, %v3483_v63 }
 0x478   :  { %8563 = verf.f32 %v3801_v37 }
 0x479   :  { %v7794_v19 = vpop.f32.mrb[4].mxu1  ;;  %8565 = verf.f32 %v3799_v26 }
 0x47a   :  { %v3504_v1 = vadd.f32 %v7794_v19, %v11700_v18  ;;  %v3495_v46 = vpop.f32.mrb[5].mxu1 }
 0x47b   :  { %v11708_v10 = vadd.f32 %v11700_v18, %v3495_v46  ;;  %v7795_v57 = vpop.f32.mrb[6].mxu1 }
 0x47c   :  { %v3804_v36 = vmul.f32 0.70710677, %v3504_v1  ;;  %v3507_v5 = vadd.f32 %v7795_v57, %v11700_v18  ;;  %v3498_v45 = vpop.f32.mrb[7].mxu1  ;;  %v3740_v29 = vmul.f32 0.5, %v3504_v1 }
 0x47d   :  { %v3802_v12 = vmul.f32 0.70710677, %v11708_v10  ;;  %v11713_v31 = vadd.f32 %v11700_v18, %v3498_v45  ;;  %v3738_v26 = vmul.f32 0.5, %v11708_v10 }
 0x47e   :  { %8567 = verf.f32 %v3804_v36  ;;  %v3805_v9 = vmul.f32 0.70710677, %v3507_v5  ;;  %v3741_v27 = vmul.f32 0.5, %v3507_v5 }
 0x47f   :  { %8569 = verf.f32 %v3802_v12  ;;  %v3803_v41 = vmul.f32 0.70710677, %v11713_v31  ;;  %v3739_v12 = vmul.f32 0.5, %v11713_v31 }
 0x480   :  { %v8560_v20 = vpop.eup %8559  ;;  %8571 = verf.f32 %v3805_v9 }
 0x481   :  { %v8562_v15 = vpop.eup %8561  ;;  %v7798_v11 = vpop.f32.mrb[8].mxu1  ;;  %v3928_v39 = vadd.f32 1.0, %v8560_v20  ;;  %8573 = verf.f32 %v3803_v41 }
 0x482   :  { %v8564_v60 = vpop.eup %8563  ;;  %v11717_v0 = vadd.f32 %v7798_v11, %v11700_v18  ;;  %v3511_v54 = vpop.f32.mrb[9].mxu1  ;;  %v3926_v52 = vadd.f32 1.0, %v8562_v15 }
 0x483   :  { %v11720_v34 = vadd.f32 %v11700_v18, %v3511_v54  ;;  %v7799_v6 = vpop.f32.mrb[10].mxu1  ;;  %v11722_v3 = vmul.f32 %v3928_v39, %v3736_v51  ;;  %v3929_v56 = vadd.f32 1.0, %v8564_v60  ;;  %v8566_v13 = vpop.eup %8565 }
 0x484   :  { %v3808_v4 = vmul.f32 0.70710677, %v11717_v0  ;;  %v11726_v53 = vadd.f32 %v7799_v6, %v11700_v18  ;;  %v3514_v21 = vpop.f32.mrb[11].mxu1  ;;  %v11734_v17 = vmul.f32 %v3926_v52, %v3734_v22  ;;  %v3927_v8 = vadd.f32 1.0, %v8566_v13 }
 0x485   :  { %v3806_v47 = vmul.f32 0.70710677, %v11720_v34  ;;  %v11730_v33 = vadd.f32 %v11700_v18, %v3514_v21  ;;  %v4064_v40 = vsel %vm303_vm0, %v11722_v3, 0.0  ;;  %v11737_v59 = vmul.f32 %v3929_v56, %v3737_v30 }
 0x486   :  { %8575 = verf.f32 %v3808_v4  ;;  %v3809_v44 = vmul.f32 0.70710677, %v11726_v53  ;;  %4065 = vadd.xlane.f32.xlu0 %v4064_v40  ;;  %v4058_v55 = vsel %vm303_vm0, %v11734_v17, 0.0  ;;  %v11747_v43 = vmul.f32 %v3927_v8, %v3735_v38 }
 0x487   :  { %8577 = verf.f32 %v3806_v47  ;;  %v3807_v2 = vmul.f32 0.70710677, %v11730_v33  ;;  %v4067_v58 = vsel %vm303_vm0, %v11737_v59, 0.0  ;;  %v3744_v15 = vmul.f32 0.5, %v11717_v0 }
 0x488   :  { %v8568_v24 = vpop.eup %8567  ;;  %8579 = verf.f32 %v3809_v44  ;;  %4068 = vadd.xlane.f32.xlu1 %v4067_v58  ;;  %v4061_v50 = vsel %vm303_vm0, %v11747_v43, 0.0  ;;  %v3745_v21 = vmul.f32 0.5, %v11726_v53 }
 0x489   :  { %v8570_v42 = vpop.eup %8569  ;;  %v7802_v61 = vpop.f32.mrb[12].mxu1  ;;  %v3932_v14 = vadd.f32 1.0, %v8568_v24  ;;  %8581 = verf.f32 %v3807_v2  ;;  %v3742_v2 = vmul.f32 0.5, %v11720_v34 }
 0x48a   :  { %v8572_v32 = vpop.eup %8571  ;;  %v11745_v48 = vadd.f32 %v7802_v61, %v11700_v18  ;;  %v3527_v25 = vpop.f32.mrb[13].mxu1  ;;  %4059 = vadd.xlane.f32.xlu0 %v4058_v55  ;;  %v3930_v23 = vadd.f32 1.0, %v8570_v42  ;;  %v3743_v61 = vmul.f32 0.5, %v11730_v33 }
 0x48b   :  { %v11750_v35 = vadd.f32 %v11700_v18, %v3527_v25  ;;  %v7803_v62 = vpop.f32.mrb[14].mxu1  ;;  %v11752_v16 = vmul.f32 %v3932_v14, %v3740_v29  ;;  %v3933_v7 = vadd.f32 1.0, %v8572_v32  ;;  %v8574_v37 = vpop.eup %8573 }
 0x48c   :  { %v3812_v49 = vmul.f32 0.70710677, %v11745_v48  ;;  %v11756_v28 = vadd.f32 %v7803_v62, %v11700_v18  ;;  %v3530_v63 = vpop.f32.mrb[15].mxu1  ;;  %4062 = vadd.xlane.f32.xlu1 %v4061_v50  ;;  %v11771_v45 = vmul.f32 %v3930_v23, %v3738_v26  ;;  %v3931_v41 = vadd.f32 1.0, %v8574_v37 }
 0x48d   :  { %v3810_v19 = vmul.f32 0.70710677, %v11750_v35  ;;  %v11763_v1 = vadd.f32 %v11700_v18, %v3530_v63  ;;  %v4076_v46 = vsel %vm303_vm0, %v11752_v16, 0.0  ;;  %v11768_v36 = vmul.f32 %v3933_v7, %v3741_v27 }
 0x48e   :  { %8583 = verf.f32 %v3812_v49  ;;  %v3813_v57 = vmul.f32 0.70710677, %v11756_v28  ;;  %4077 = vadd.xlane.f32.xlu0 %v4076_v46  ;;  %v4070_v11 = vsel %vm303_vm0, %v11771_v45, 0.0  ;;  %v11780_v31 = vmul.f32 %v3931_v41, %v3739_v12 }
 0x48f   :  { %8585 = verf.f32 %v3810_v19  ;;  %v3811_v5 = vmul.f32 0.70710677, %v11763_v1  ;;  %v4079_v9 = vsel %vm303_vm0, %v11768_v36, 0.0  ;;  %v3748_v25 = vmul.f32 0.5, %v11745_v48 }
 0x490   :  { %v8576_v10 = vpop.eup %8575  ;;  %8587 = verf.f32 %v3813_v57  ;;  %4080 = vadd.xlane.f32.xlu1 %v4079_v9  ;;  %v4073_v40 = vsel %vm303_vm0, %v11780_v31, 0.0  ;;  %v3746_v50 = vmul.f32 0.5, %v11750_v35  ;;  %v3749_v63 = vmul.f32 0.5, %v11756_v28 }
 0x491   :  { %v8578_v20 = vpop.eup %8577  ;;  %8589 = verf.f32 %v3811_v5  ;;  %v7806_v51 = vpop.f32.mrb[16].mxu1  ;;  %v3936_v39 = vadd.f32 1.0, %v8576_v10  ;;  %v3747_v10 = vmul.f32 0.5, %v11763_v1 }
 0x492   :  { %v8580_v60 = vpop.eup %8579  ;;  %v3552_v22 = vadd.f32 %v7806_v51, %v11700_v18  ;;  %v3543_v54 = vpop.f32.mrb[17].mxu1  ;;  %4071 = vadd.xlane.f32.xlu0 %v4070_v11  ;;  %v3934_v30 = vadd.f32 1.0, %v8578_v20 }
 0x493   :  { %v11783_v52 = vadd.f32 %v11700_v18, %v3543_v54  ;;  %v7807_v6 = vpop.f32.mrb[18].mxu1  ;;  %v11785_v56 = vmul.f32 %v3936_v39, %v3744_v15  ;;  %v3937_v0 = vadd.f32 1.0, %v8580_v60  ;;  %v8582_v4 = vpop.eup %8581 }
 0x494   :  { %v3816_v13 = vmul.f32 0.70710677, %v3552_v22  ;;  %v11789_v47 = vadd.f32 %v7807_v6, %v11700_v18  ;;  %v3546_v44 = vpop.f32.mrb[19].mxu1  ;;  %4074 = vadd.xlane.f32.xlu1 %v4073_v40  ;;  %v11804_v29 = vmul.f32 %v3934_v30, %v3742_v2  ;;  %v3935_v14 = vadd.f32 1.0, %v8582_v4 }
 0x495   :  { %v3814_v24 = vmul.f32 0.70710677, %v11783_v52  ;;  %v11796_v38 = vadd.f32 %v11700_v18, %v3546_v44  ;;  %v4088_v58 = vsel %vm303_vm0, %v11785_v56, 0.0  ;;  %v11801_v8 = vmul.f32 %v3937_v0, %v3745_v21 }
 0x496   :  { %8591 = verf.f32 %v3816_v13  ;;  %v3817_v53 = vmul.f32 0.70710677, %v11789_v47  ;;  %4089 = vadd.xlane.f32.xlu0 %v4088_v58  ;;  %v4082_v62 = vsel %vm303_vm0, %v11804_v29, 0.0  ;;  %v11812_v27 = vmul.f32 %v3935_v14, %v3743_v61 }
 0x497   :  { %8593 = verf.f32 %v3814_v24  ;;  %v3815_v42 = vmul.f32 0.70710677, %v11796_v38  ;;  %v4091_v55 = vsel %vm303_vm0, %v11801_v8, 0.0  ;;  %v3752_v20 = vmul.f32 0.5, %v3552_v22 }
 0x498   :  { %v8584_v34 = vpop.eup %8583  ;;  %8595 = verf.f32 %v3817_v53  ;;  %4092 = vadd.xlane.f32.xlu1 %v4091_v55  ;;  %v4085_v48 = vsel %vm303_vm0, %v11812_v27, 0.0  ;;  %v3750_v4 = vmul.f32 0.5, %v11783_v52  ;;  %v3753_v44 = vmul.f32 0.5, %v11789_v47 }
 0x499   :  { %v8586_v32 = vpop.eup %8585  ;;  %8597 = verf.f32 %v3815_v42  ;;  %v3940_v7 = vadd.f32 1.0, %v8584_v34  ;;  %v3751_v47 = vmul.f32 0.5, %v11796_v38 }
 0x49a   :  { %v8588_v23 = vpop.eup %8587  ;;  %4083 = vadd.xlane.f32.xlu0 %v4082_v62  ;;  %v3938_v49 = vadd.f32 1.0, %v8586_v32 }
 0x49b   :  { %v8590_v33 = vpop.eup %8589  ;;  %v11816_v37 = vmul.f32 %v3940_v7, %v3748_v25  ;;  %v3941_v26 = vadd.f32 1.0, %v8588_v23 }
 0x49c   :  { %v3939_v19 = vadd.f32 1.0, %v8590_v33  ;;  %4086 = vadd.xlane.f32.xlu1 %v4085_v48  ;;  %v11824_v5 = vmul.f32 %v3938_v49, %v3746_v50 }
 0x49d   :  { %v4100_v46 = vsel %vm303_vm0, %v11816_v37, 0.0  ;;  %v11822_v57 = vmul.f32 %v3941_v26, %v3749_v63 }
 0x49e   :  { %v7810_v35 = vpop.f32.mrb[20].mxu1  ;;  %4101 = vadd.xlane.f32.xlu0 %v4100_v46  ;;  %v11831_v11 = vmul.f32 %v3939_v19, %v3747_v10  ;;  %v4094_v6 = vsel %vm303_vm0, %v11824_v5, 0.0 }
 0x49f   :  { %v3568_v28 = vadd.f32 %v7810_v35, %v11700_v18  ;;  %v3559_v12 = vpop.f32.mrb[21].mxu1  ;;  %v4103_v9 = vsel %vm303_vm0, %v11822_v57, 0.0 }
 0x4a0   :  { %v8592_v41 = vpop.eup %8591  ;;  %v3560_v15 = vadd.f32 %v11700_v18, %v3559_v12  ;;  %v7811_v51 = vpop.f32.mrb[22].mxu1  ;;  %4104 = vadd.xlane.f32.xlu1 %v4103_v9  ;;  %v4097_v53 = vsel %vm303_vm0, %v11831_v11, 0.0 }
 0x4a1   :  { %v8594_v39 = vpop.eup %8593  ;;  %v3820_v60 = vmul.f32 0.70710677, %v3568_v28  ;;  %v3571_v54 = vadd.f32 %v7811_v51, %v11700_v18  ;;  %v3562_v1 = vpop.f32.mrb[23].mxu1  ;;  %v3944_v0 = vadd.f32 1.0, %v8592_v41  ;;  %v3756_v50 = vmul.f32 0.5, %v3568_v28 }
 0x4a2   :  { %v8596_v30 = vpop.eup %8595  ;;  %v3818_v21 = vmul.f32 0.70710677, %v3560_v15  ;;  %v3563_v22 = vadd.f32 %v11700_v18, %v3562_v1  ;;  %4095 = vadd.xlane.f32.xlu0 %v4094_v6  ;;  %v3942_v13 = vadd.f32 1.0, %v8594_v39  ;;  %v3754_v41 = vmul.f32 0.5, %v3560_v15 }
 0x4a3   :  { %v8598_v40 = vpop.eup %8597  ;;  %8599 = verf.f32 %v3820_v60  ;;  %v3821_v2 = vmul.f32 0.70710677, %v3571_v54  ;;  %v11839_v24 = vmul.f32 %v3944_v0, %v3752_v20  ;;  %v3945_v42 = vadd.f32 1.0, %v8596_v30 }
 0x4a4   :  { %8601 = verf.f32 %v3818_v21  ;;  %v3819_v58 = vmul.f32 0.70710677, %v3563_v22  ;;  %4098 = vadd.xlane.f32.xlu1 %v4097_v53  ;;  %v11845_v34 = vmul.f32 %v3942_v13, %v3750_v4  ;;  %v3943_v61 = vadd.f32 1.0, %v8598_v40 }
 0x4a5   :  { %8603 = verf.f32 %v3821_v2  ;;  %v4112_v52 = vsel %vm303_vm0, %v11839_v24, 0.0  ;;  %v11848_v55 = vmul.f32 %v3945_v42, %v3753_v44  ;;  %v3757_v60 = vmul.f32 0.5, %v3571_v54 }
 0x4a6   :  { %8605 = verf.f32 %v3819_v58  ;;  %4113 = vadd.xlane.f32.xlu0 %v4112_v52  ;;  %v11852_v32 = vmul.f32 %v3943_v61, %v3751_v47  ;;  %v4106_v25 = vsel %vm303_vm0, %v11845_v34, 0.0  ;;  %v3755_v6 = vmul.f32 0.5, %v3563_v22 }
 0x4a7   :  { %v4115_v14 = vsel %vm303_vm0, %v11848_v55, 0.0 }
 0x4a8   :  { %4116 = vadd.xlane.f32.xlu1 %v4115_v14  ;;  %v4109_v7 = vsel %vm303_vm0, %v11852_v32, 0.0 }
 0x4aa   :  { %4107 = vadd.xlane.f32.xlu0 %v4106_v25 }
 0x4ac   :  { %4110 = vadd.xlane.f32.xlu1 %v4109_v7 }
 0x4ad   :  { %v7814_v62 = vpop.f32.mrb[24].mxu1  ;;  %v8600_v23 = vpop.eup %8599 }
 0x4ae   :  { %v3584_v38 = vadd.f32 %v7814_v62, %v11700_v18  ;;  %v3575_v49 = vpop.f32.mrb[25].mxu1  ;;  %v8602_v33 = vpop.eup %8601  ;;  %v3948_v48 = vadd.f32 1.0, %v8600_v23 }
 0x4af   :  { %v3576_v63 = vadd.f32 %v11700_v18, %v3575_v49  ;;  %v7815_v26 = vpop.f32.mrb[26].mxu1  ;;  %v8604_v19 = vpop.eup %8603  ;;  %v3946_v12 = vadd.f32 1.0, %v8602_v33 }
 0x4b0   :  { %v3824_v46 = vmul.f32 0.70710677, %v3584_v38  ;;  %v3587_v10 = vadd.f32 %v7815_v26, %v11700_v18  ;;  %v3578_v35 = vpop.f32.mrb[27].mxu1  ;;  %v8606_v9 = vpop.eup %8605  ;;  %v11862_v39 = vmul.f32 %v3948_v48, %v3756_v50  ;;  %v3949_v1 = vadd.f32 1.0, %v8604_v19 }
 0x4b1   :  { %v3822_v20 = vmul.f32 0.70710677, %v3576_v63  ;;  %v3579_v51 = vadd.f32 %v11700_v18, %v3578_v35  ;;  %v11868_v15 = vmul.f32 %v3946_v12, %v3754_v41  ;;  %v3947_v21 = vadd.f32 1.0, %v8606_v9 }
 0x4b2   :  { %8607 = verf.f32 %v3824_v46  ;;  %v3825_v28 = vmul.f32 0.70710677, %v3587_v10  ;;  %v4124_v30 = vsel %vm303_vm0, %v11862_v39, 0.0  ;;  %v11866_v4 = vmul.f32 %v3949_v1, %v3757_v60 }
 0x4b3   :  { %8609 = verf.f32 %v3822_v20  ;;  %v3823_v0 = vmul.f32 0.70710677, %v3579_v51  ;;  %4125 = vadd.xlane.f32.xlu0 %v4124_v30  ;;  %v11872_v13 = vmul.f32 %v3947_v21, %v3755_v6  ;;  %v4118_v22 = vsel %vm303_vm0, %v11868_v15, 0.0 }
 0x4b4   :  { %8611 = verf.f32 %v3825_v28  ;;  %v4127_v54 = vsel %vm303_vm0, %v11866_v4, 0.0  ;;  %v3760_v23 = vmul.f32 0.5, %v3584_v38  ;;  %v3758_v26 = vmul.f32 0.5, %v3576_v63 }
 0x4b5   :  { %8613 = verf.f32 %v3823_v0  ;;  %4128 = vadd.xlane.f32.xlu1 %v4127_v54  ;;  %v4121_v42 = vsel %vm303_vm0, %v11872_v13, 0.0  ;;  %v3761_v35 = vmul.f32 0.5, %v3587_v10  ;;  %v3759_v20 = vmul.f32 0.5, %v3579_v51 }
 0x4b7   :  { %4119 = vadd.xlane.f32.xlu0 %v4118_v22 }
 0x4b8   :  { %v7818_v40 = vpop.f32.mrb[28].mxu1 }
 0x4b9   :  { %v3600_v44 = vadd.f32 %v7818_v40, %v11700_v18  ;;  %v3591_v2 = vpop.f32.mrb[29].mxu1  ;;  %4122 = vadd.xlane.f32.xlu1 %v4121_v42 }
 0x4ba   :  { %v3592_v58 = vadd.f32 %v11700_v18, %v3591_v2  ;;  %v7819_v53 = vpop.f32.mrb[30].mxu1 }
 0x4bb   :  { %v3828_v52 = vmul.f32 0.70710677, %v3600_v44  ;;  %v3603_v61 = vadd.f32 %v7819_v53, %v11700_v18  ;;  %v3594_v47 = vpop.f32.mrb[31].mxu1  ;;  %v3764_v22 = vmul.f32 0.5, %v3600_v44 }
 0x4bc   :  { %v8608_v14 = vpop.eup %8607  ;;  %v3826_v25 = vmul.f32 0.70710677, %v3592_v58  ;;  %v3595_v62 = vadd.f32 %v11700_v18, %v3594_v47 }
 0x4bd   :  { %v8610_v7 = vpop.eup %8609  ;;  %8615 = verf.f32 %v3828_v52  ;;  %v3829_v49 = vmul.f32 0.70710677, %v3603_v61  ;;  %v3952_v33 = vadd.f32 1.0, %v8608_v14 }
 0x4be   :  { %v8612_v50 = vpop.eup %8611  ;;  %8617 = verf.f32 %v3826_v25  ;;  %v3827_v48 = vmul.f32 0.70710677, %v3595_v62  ;;  %v3950_v19 = vadd.f32 1.0, %v8610_v7 }
 0x4bf   :  { %v8614_v46 = vpop.eup %8613  ;;  %8619 = verf.f32 %v3829_v49  ;;  %v11882_v12 = vmul.f32 %v3952_v33, %v3760_v23  ;;  %v3953_v9 = vadd.f32 1.0, %v8612_v50  ;;  %v3762_v23 = vmul.f32 0.5, %v3592_v58 }
 0x4c0   :  { %8621 = verf.f32 %v3827_v48  ;;  %v3951_v41 = vadd.f32 1.0, %v8614_v46  ;;  %v11888_v28 = vmul.f32 %v3950_v19, %v3758_v26  ;;  %v3765_v26 = vmul.f32 0.5, %v3603_v61 }
 0x4c1   :  { %14239 = vst [vmem:[#allocation90_spill] sm:$0xff] %v11882_v12  ;;  %v4136_v38 = vsel %vm303_vm0, %v11882_v12, 0.0  ;;  %v11886_v60 = vmul.f32 %v3953_v9, %v3761_v35  ;;  %v3763_v19 = vmul.f32 0.5, %v3595_v62 }
 0x4c2   :  { %4137 = vadd.xlane.f32.xlu0 %v4136_v38  ;;  %v11892_v1 = vmul.f32 %v3951_v41, %v3759_v20  ;;  %v4130_v10 = vsel %vm303_vm0, %v11888_v28, 0.0 }
 0x4c3   :  { %14240 = vst [vmem:[#allocation38_spill] sm:$0xff] %v11886_v60  ;;  %v4139_v63 = vsel %vm303_vm0, %v11886_v60, 0.0 }
 0x4c4   :  { %14241 = vst [vmem:[#allocation39_spill] sm:$0xff] %v11892_v1  ;;  %4140 = vadd.xlane.f32.xlu1 %v4139_v63  ;;  %v4133_v21 = vsel %vm303_vm0, %v11892_v1, 0.0 }
 0x4c6   :  { %v7822_v6 = vpop.f32.mrb[32].mxu1  ;;  %4131 = vadd.xlane.f32.xlu0 %v4130_v10 }
 0x4c7   :  { %v8616_v51 = vpop.eup %8615  ;;  %v3616_v0 = vadd.f32 %v7822_v6, %v11700_v18  ;;  %v3607_v30 = vpop.f32.mrb[33].mxu1 }
 0x4c8   :  { %v8618_v54 = vpop.eup %8617  ;;  %v3608_v40 = vadd.f32 %v11700_v18, %v3607_v30  ;;  %v7823_v2 = vpop.f32.mrb[34].mxu1  ;;  %4134 = vadd.xlane.f32.xlu1 %v4133_v21  ;;  %v3956_v53 = vadd.f32 1.0, %v8616_v51 }
 0x4c9   :  { %v8620_v42 = vpop.eup %8619  ;;  %v3832_v52 = vmul.f32 0.70710677, %v3616_v0  ;;  %v3619_v47 = vadd.f32 %v7823_v2, %v11700_v18  ;;  %v3610_v14 = vpop.f32.mrb[35].mxu1  ;;  %v3954_v25 = vadd.f32 1.0, %v8618_v54 }
 0x4ca   :  { %v8622_v7 = vpop.eup %8621  ;;  %v3830_v49 = vmul.f32 0.70710677, %v3608_v40  ;;  %v3611_v33 = vadd.f32 %v11700_v18, %v3610_v14  ;;  %v11902_v50 = vmul.f32 %v3956_v53, %v3764_v22  ;;  %v3957_v48 = vadd.f32 1.0, %v8620_v42 }
 0x4cb   :  { %8623 = verf.f32 %v3832_v52  ;;  %v3833_v44 = vmul.f32 0.70710677, %v3619_v47  ;;  %v11908_v58 = vmul.f32 %v3954_v25, %v3762_v23  ;;  %v3955_v41 = vadd.f32 1.0, %v8622_v7 }
 0x4cc   :  { %14242 = vst [vmem:[#allocation36_spill] sm:$0xff] %v11902_v50  ;;  %8625 = verf.f32 %v3830_v49  ;;  %v3831_v46 = vmul.f32 0.70710677, %v3611_v33  ;;  %v4148_v35 = vsel %vm303_vm0, %v11902_v50, 0.0  ;;  %v11906_v9 = vmul.f32 %v3957_v48, %v3765_v26 }
 0x4cd   :  { %8627 = verf.f32 %v3833_v44  ;;  %4149 = vadd.xlane.f32.xlu0 %v4148_v35  ;;  %14244 = vst [vmem:[#allocation55_spill] sm:$0xff] %v11908_v58  ;;  %v11912_v20 = vmul.f32 %v3955_v41, %v3763_v19  ;;  %v4142_v62 = vsel %vm303_vm0, %v11908_v58, 0.0  ;;  %v3768_v14 = vmul.f32 0.5, %v3616_v0 }
 0x4ce   :  { %14243 = vst [vmem:[#allocation41_spill] sm:$0xff] %v11906_v9  ;;  %8629 = verf.f32 %v3831_v46  ;;  %v4151_v61 = vsel %vm303_vm0, %v11906_v9, 0.0  ;;  %v3766_v49 = vmul.f32 0.5, %v3608_v40  ;;  %v3769_v19 = vmul.f32 0.5, %v3619_v47 }
 0x4cf   :  { %14245 = vst [vmem:[#allocation49_spill] sm:$0xff] %v11912_v20  ;;  %4152 = vadd.xlane.f32.xlu1 %v4151_v61  ;;  %v4145_v30 = vsel %vm303_vm0, %v11912_v20, 0.0  ;;  %v3767_v61 = vmul.f32 0.5, %v3611_v33 }
 0x4d1   :  { %v7826_v38 = vpop.f32.mrb[36].mxu1  ;;  %4143 = vadd.xlane.f32.xlu0 %v4142_v62 }
 0x4d2   :  { %v3632_v63 = vadd.f32 %v7826_v38, %v11700_v18  ;;  %v3623_v10 = vpop.f32.mrb[37].mxu1 }
 0x4d3   :  { %v3624_v6 = vadd.f32 %v11700_v18, %v3623_v10  ;;  %v7827_v51 = vpop.f32.mrb[38].mxu1  ;;  %4146 = vadd.xlane.f32.xlu1 %v4145_v30 }
 0x4d4   :  { %v3836_v21 = vmul.f32 0.70710677, %v3632_v63  ;;  %v3635_v54 = vadd.f32 %v7827_v51, %v11700_v18  ;;  %v3626_v22 = vpop.f32.mrb[39].mxu1 }
 0x4d5   :  { %v8624_v2 = vpop.eup %8623  ;;  %v3834_v53 = vmul.f32 0.70710677, %v3624_v6  ;;  %v3627_v42 = vadd.f32 %v11700_v18, %v3626_v22 }
 0x4d6   :  { %v8626_v52 = vpop.eup %8625  ;;  %8631 = verf.f32 %v3836_v21  ;;  %v3837_v25 = vmul.f32 0.70710677, %v3635_v54  ;;  %v3960_v7 = vadd.f32 1.0, %v8624_v2 }
 0x4d7   :  { %v8628_v23 = vpop.eup %8627  ;;  %8633 = verf.f32 %v3834_v53  ;;  %v3835_v26 = vmul.f32 0.70710677, %v3627_v42  ;;  %v3958_v44 = vadd.f32 1.0, %v8626_v52 }
 0x4d8   :  { %v8630_v48 = vpop.eup %8629  ;;  %8635 = verf.f32 %v3837_v25  ;;  %v11922_v46 = vmul.f32 %v3960_v7, %v3768_v14  ;;  %v3961_v35 = vadd.f32 1.0, %v8628_v23 }
 0x4d9   :  { %8637 = verf.f32 %v3835_v26  ;;  %v3959_v41 = vadd.f32 1.0, %v8630_v48  ;;  %v11928_v38 = vmul.f32 %v3958_v44, %v3766_v49  ;;  %v3772_v26 = vmul.f32 0.5, %v3632_v63 }
 0x4da   :  { %14246 = vst [vmem:[#allocation53_spill] sm:$0xff] %v11922_v46  ;;  %v4160_v0 = vsel %vm303_vm0, %v11922_v46, 0.0  ;;  %v11926_v62 = vmul.f32 %v3961_v35, %v3769_v19  ;;  %v3770_v35 = vmul.f32 0.5, %v3624_v6 }
 0x4db   :  { %14248 = vst [vmem:[#allocation72_spill] sm:$0xff] %v11928_v38  ;;  %4161 = vadd.xlane.f32.xlu0 %v4160_v0  ;;  %v11932_v47 = vmul.f32 %v3959_v41, %v3767_v61  ;;  %v4154_v22 = vsel %vm303_vm0, %v11928_v38, 0.0 }
 0x4dc   :  { %14247 = vst [vmem:[#allocation26_spill] sm:$0xff] %v11926_v62  ;;  %v7830_v40 = vpop.f32.mrb[40].mxu1  ;;  %v4163_v10 = vsel %vm303_vm0, %v11926_v62, 0.0 }
 0x4dd   :  { %14249 = vst [vmem:[#allocation25_spill] sm:$0xff] %v11932_v47  ;;  %v3648_v51 = vadd.f32 %v7830_v40, %v11700_v18  ;;  %v3639_v30 = vpop.f32.mrb[41].mxu1  ;;  %4164 = vadd.xlane.f32.xlu1 %v4163_v10  ;;  %v4157_v23 = vsel %vm303_vm0, %v11932_v47, 0.0  ;;  %v3773_v40 = vmul.f32 0.5, %v3635_v54 }
 0x4de   :  { %v11936_v33 = vadd.f32 %v11700_v18, %v3639_v30  ;;  %v7831_v21 = vpop.f32.mrb[42].mxu1 }
 0x4df   :  { %v3840_v2 = vmul.f32 0.70710677, %v3648_v51  ;;  %v3651_v53 = vadd.f32 %v7831_v21, %v11700_v18  ;;  %v3642_v52 = vpop.f32.mrb[43].mxu1  ;;  %4155 = vadd.xlane.f32.xlu0 %v4154_v22  ;;  %v3771_v22 = vmul.f32 0.5, %v3627_v42 }
 0x4e0   :  { %v8632_v14 = vpop.eup %8631  ;;  %v3838_v25 = vmul.f32 0.70710677, %v11936_v33  ;;  %v11943_v7 = vadd.f32 %v11700_v18, %v3642_v52 }
 0x4e1   :  { %v8634_v49 = vpop.eup %8633  ;;  %8639 = verf.f32 %v3840_v2  ;;  %v3841_v44 = vmul.f32 0.70710677, %v3651_v53  ;;  %4158 = vadd.xlane.f32.xlu1 %v4157_v23  ;;  %v3964_v48 = vadd.f32 1.0, %v8632_v14 }
 0x4e2   :  { %v8636_v19 = vpop.eup %8635  ;;  %8641 = verf.f32 %v3838_v25  ;;  %v3839_v41 = vmul.f32 0.70710677, %v11943_v7  ;;  %v3962_v61 = vadd.f32 1.0, %v8634_v49 }
 0x4e3   :  { %v8638_v0 = vpop.eup %8637  ;;  %8643 = verf.f32 %v3841_v44  ;;  %v11948_v10 = vmul.f32 %v3964_v48, %v3772_v26  ;;  %v3965_v30 = vadd.f32 1.0, %v8636_v19 }
 0x4e4   :  { %8645 = verf.f32 %v3839_v41  ;;  %v3963_v21 = vadd.f32 1.0, %v8638_v0  ;;  %v11954_v6 = vmul.f32 %v3962_v61, %v3770_v35 }
 0x4e5   :  { %14250 = vst [vmem:[#allocation60_spill] sm:$0xff] %v11948_v10  ;;  %v7834_v63 = vpop.f32.mrb[44].mxu1  ;;  %v4172_v2 = vsel %vm303_vm0, %v11948_v10, 0.0  ;;  %v11952_v52 = vmul.f32 %v3965_v30, %v3773_v40 }
 0x4e6   :  { %14252 = vst [vmem:[#allocation7_spill] sm:$0xff] %v11954_v6  ;;  %v3664_v14 = vadd.f32 %v7834_v63, %v11700_v18  ;;  %v3655_v25 = vpop.f32.mrb[45].mxu1  ;;  %4173 = vadd.xlane.f32.xlu0 %v4172_v2  ;;  %v11960_v26 = vmul.f32 %v3963_v21, %v3771_v22  ;;  %v4166_v41 = vsel %vm303_vm0, %v11954_v6, 0.0  ;;  %v3776_v22 = vmul.f32 0.5, %v3648_v51 }
 0x4e7   :  { %14251 = vst [vmem:[#allocation5_spill] sm:$0xff] %v11952_v52  ;;  %v3656_v54 = vadd.f32 %v11700_v18, %v3655_v25  ;;  %v7835_v23 = vpop.f32.mrb[46].mxu1  ;;  %v4175_v49 = vsel %vm303_vm0, %v11952_v52, 0.0 }
 0x4e8   :  { %14253 = vst [vmem:[#allocation6_spill] sm:$0xff] %v11960_v26  ;;  %v3844_v42 = vmul.f32 0.70710677, %v3664_v14  ;;  %v11963_v44 = vadd.f32 %v7835_v23, %v11700_v18  ;;  %v3658_v48 = vpop.f32.mrb[47].mxu1  ;;  %4176 = vadd.xlane.f32.xlu1 %v4175_v49  ;;  %v4169_v30 = vsel %vm303_vm0, %v11960_v26, 0.0  ;;  %v3774_v49 = vmul.f32 0.5, %v11936_v33 }
 0x4e9   :  { %v3842_v19 = vmul.f32 0.70710677, %v3656_v54  ;;  %v11966_v35 = vadd.f32 %v11700_v18, %v3658_v48 }
 0x4ea   :  { %8647 = verf.f32 %v3844_v42  ;;  %v3845_v61 = vmul.f32 0.70710677, %v11963_v44  ;;  %4167 = vadd.xlane.f32.xlu0 %v4166_v41  ;;  %v3777_v42 = vmul.f32 0.5, %v3651_v53  ;;  %v3775_v53 = vmul.f32 0.5, %v11943_v7 }
 0x4eb   :  { %v8640_v0 = vpop.eup %8639  ;;  %8649 = verf.f32 %v3842_v19  ;;  %v3843_v40 = vmul.f32 0.70710677, %v11966_v35 }
 0x4ec   :  { %v8642_v21 = vpop.eup %8641  ;;  %8651 = verf.f32 %v3845_v61  ;;  %4170 = vadd.xlane.f32.xlu1 %v4169_v30  ;;  %v3968_v63 = vadd.f32 1.0, %v8640_v0 }
 0x4ed   :  { %v8644_v2 = vpop.eup %8643  ;;  %8653 = verf.f32 %v3843_v40  ;;  %v3966_v25 = vadd.f32 1.0, %v8642_v21  ;;  %v7838_v48 = vpop.f32.mrb[48].mxu1 }
 0x4ee   :  { %v8646_v23 = vpop.eup %8645  ;;  %v11975_v41 = vmul.f32 %v3968_v63, %v3776_v22  ;;  %v3969_v19 = vadd.f32 1.0, %v8644_v2  ;;  %v11978_v52 = vadd.f32 %v7838_v48, %v11700_v18  ;;  %v3671_v10 = vpop.f32.mrb[49].mxu1 }
 0x4ef   :  { %v3967_v26 = vadd.f32 1.0, %v8646_v23  ;;  %v11981_v51 = vadd.f32 %v11700_v18, %v3671_v10  ;;  %v7839_v61 = vpop.f32.mrb[50].mxu1  ;;  %v11987_v33 = vmul.f32 %v3966_v25, %v3774_v49 }
 0x4f0   :  { %14254 = vst [vmem:[#allocation76_spill] sm:$0xff] %v11975_v41  ;;  %v4184_v0 = vsel %vm303_vm0, %v11975_v41, 0.0  ;;  %v11985_v40 = vmul.f32 %v3969_v19, %v3777_v42  ;;  %v3848_v30 = vmul.f32 0.70710677, %v11978_v52  ;;  %v11992_v21 = vadd.f32 %v7839_v61, %v11700_v18  ;;  %v3674_v22 = vpop.f32.mrb[51].mxu1 }
 0x4f1   :  { %14256 = vst [vmem:[#allocation13_spill] sm:$0xff] %v11987_v33  ;;  %4185 = vadd.xlane.f32.xlu0 %v4184_v0  ;;  %v3846_v10 = vmul.f32 0.70710677, %v11981_v51  ;;  %v11996_v63 = vadd.f32 %v11700_v18, %v3674_v22  ;;  %v12001_v7 = vmul.f32 %v3967_v26, %v3775_v53  ;;  %v4178_v42 = vsel %vm303_vm0, %v11987_v33, 0.0 }
 0x4f2   :  { %14255 = vst [vmem:[#allocation11_spill] sm:$0xff] %v11985_v40  ;;  %v4187_v2 = vsel %vm303_vm0, %v11985_v40, 0.0  ;;  %8655 = verf.f32 %v3848_v30  ;;  %v3849_v25 = vmul.f32 0.70710677, %v11992_v21  ;;  %v3780_v19 = vmul.f32 0.5, %v3664_v14 }
 0x4f3   :  { %4188 = vadd.xlane.f32.xlu1 %v4187_v2  ;;  %14257 = vst [vmem:[#allocation9_spill] sm:$0xff] %v12001_v7  ;;  %8657 = verf.f32 %v3846_v10  ;;  %v3847_v49 = vmul.f32 0.70710677, %v11996_v63  ;;  %v3778_v22 = vmul.f32 0.5, %v3656_v54  ;;  %v4181_v2 = vsel %vm303_vm0, %v12001_v7, 0.0 }
 0x4f4   :  { %v8648_v23 = vpop.eup %8647  ;;  %8659 = verf.f32 %v3849_v25  ;;  %v3781_v14 = vmul.f32 0.5, %v11963_v44 }
 0x4f5   :  { %v8650_v48 = vpop.eup %8649  ;;  %4179 = vadd.xlane.f32.xlu0 %v4178_v42  ;;  %v3972_v61 = vadd.f32 1.0, %v8648_v23  ;;  %v7842_v30 = vpop.f32.mrb[52].mxu1  ;;  %8661 = verf.f32 %v3847_v49  ;;  %v3779_v49 = vmul.f32 0.5, %v11966_v35  ;;  %v3784_v35 = vmul.f32 0.5, %v11978_v52 }
 0x4f6   :  { %v8652_v0 = vpop.eup %8651  ;;  %v3970_v26 = vadd.f32 1.0, %v8650_v48  ;;  %v12009_v10 = vadd.f32 %v7842_v30, %v11700_v18  ;;  %v3687_v40 = vpop.f32.mrb[53].mxu1 }
 0x4f7   :  { %v8654_v53 = vpop.eup %8653  ;;  %4182 = vadd.xlane.f32.xlu1 %v4181_v2  ;;  %v12011_v41 = vmul.f32 %v3972_v61, %v3780_v19  ;;  %v3973_v33 = vadd.f32 1.0, %v8652_v0  ;;  %v12015_v25 = vadd.f32 %v11700_v18, %v3687_v40  ;;  %v7843_v54 = vpop.f32.mrb[54].mxu1 }
 0x4f8   :  { %v12017_v23 = vmul.f32 %v3970_v26, %v3778_v22  ;;  %v3852_v42 = vmul.f32 0.70710677, %v12009_v10  ;;  %v12021_v48 = vadd.f32 %v7843_v54, %v11700_v18  ;;  %v3690_v30 = vpop.f32.mrb[55].mxu1  ;;  %v3971_v61 = vadd.f32 1.0, %v8654_v53 }
 0x4f9   :  { %14258 = vst [vmem:[#allocation10_spill] sm:$0xff] %v12011_v41  ;;  %v4196_v19 = vsel %vm303_vm0, %v12011_v41, 0.0  ;;  %v3850_v0 = vmul.f32 0.70710677, %v12015_v25  ;;  %v12027_v44 = vadd.f32 %v11700_v18, %v3690_v30  ;;  %v12029_v40 = vmul.f32 %v3973_v33, %v3781_v14 }
 0x4fa   :  { %14259 = vst [vmem:[#allocation81_spill] sm:$0xff] %v12017_v23  ;;  %4197 = vadd.xlane.f32.xlu0 %v4196_v19  ;;  %8663 = verf.f32 %v3852_v42  ;;  %v3853_v22 = vmul.f32 0.70710677, %v12021_v48  ;;  %v4190_v18 = vsel %vm303_vm0, %v12017_v23, 0.0  ;;  %v12038_v54 = vmul.f32 %v3971_v61, %v3779_v49 }
 0x4fb   :  { %14260 = vst [vmem:[#allocation89_spill] sm:$0xff] %v12029_v40  ;;  %8665 = verf.f32 %v3850_v0  ;;  %v3851_v2 = vmul.f32 0.70710677, %v12027_v44  ;;  %v4199_v26 = vsel %vm303_vm0, %v12029_v40, 0.0  ;;  %v3782_v19 = vmul.f32 0.5, %v11981_v51 }
 0x4fc   :  { %v8656_v53 = vpop.eup %8655  ;;  %8667 = verf.f32 %v3853_v22  ;;  %4200 = vadd.xlane.f32.xlu1 %v4199_v26  ;;  %14261 = vst [vmem:[#allocation91_spill] sm:$0xff] %v12038_v54  ;;  %v12045_v0 = vld [vmem:[%s13754_s6] ss:$0 sm:$0xff]  ;;  %v4193_v52 = vsel %vm303_vm0, %v12038_v54, 0.0  ;;  %v3785_v51 = vmul.f32 0.5, %v11992_v21 }
 0x4fd   :  { %v8658_v33 = vpop.eup %8657  ;;  %8669 = verf.f32 %v3851_v2  ;;  %v7846_v14 = vpop.f32.mrb[56].mxu1  ;;  %v3976_v42 = vadd.f32 1.0, %v8656_v53 }
 0x4fe   :  { %4191 = vadd.xlane.f32.xlu0 %v4190_v18  ;;  %v8660_v30 = vpop.eup %8659  ;;  %v3712_v22 = vadd.f32 %v12045_v0, %v7846_v14  ;;  %v3703_v26 = vpop.f32.mrb[57].mxu1  ;;  %v3974_v61 = vadd.f32 1.0, %v8658_v33 }
 0x4ff   :  { %v3704_v49 = vadd.f32 %v12045_v0, %v3703_v26  ;;  %v7847_v40 = vpop.f32.mrb[58].mxu1  ;;  %v12051_v2 = vmul.f32 %v3976_v42, %v3784_v35  ;;  %v3977_v53 = vadd.f32 1.0, %v8660_v30  ;;  %v8662_v7 = vpop.eup %8661 }
 0x500   :  { %v3856_v18 = vmul.f32 0.70710677, %v3712_v22  ;;  %v3715_v41 = vadd.f32 %v12045_v0, %v7847_v40  ;;  %4194 = vadd.xlane.f32.xlu1 %v4193_v52  ;;  %v3706_v23 = vpop.f32.mrb[59].mxu1  ;;  %v12058_v6 = vmul.f32 %v3974_v61, %v3782_v19  ;;  %v3783_v40 = vmul.f32 0.5, %v11996_v63 }
 0x501   :  { %14262 = vst [vmem:[#allocation92_spill] sm:$0xff] %v12051_v2  ;;  %v3854_v14 = vmul.f32 0.70710677, %v3704_v49  ;;  %v3707_v33 = vadd.f32 %v12045_v0, %v3706_v23  ;;  %v4208_v26 = vsel %vm303_vm0, %v12051_v2, 0.0  ;;  %v12060_v42 = vmul.f32 %v3977_v53, %v3785_v51 }
 0x502   :  { %14263 = vst [vmem:[#allocation93_spill] sm:$0xff] %v12058_v6  ;;  %8671 = verf.f32 %v3856_v18  ;;  %v3857_v35 = vmul.f32 0.70710677, %v3715_v41  ;;  %4209 = vadd.xlane.f32.xlu0 %v4208_v26  ;;  %v3975_v23 = vadd.f32 1.0, %v8662_v7  ;;  %v3788_v2 = vmul.f32 0.5, %v12009_v10 }
 0x503   :  { %14264 = vst [vmem:[#allocation94_spill] sm:$0xff] %v12060_v42  ;;  %8673 = verf.f32 %v3854_v14  ;;  %v3855_v21 = vmul.f32 0.70710677, %v3707_v33  ;;  %v4211_v52 = vsel %vm303_vm0, %v12060_v42, 0.0  ;;  %v4202_v19 = vsel %vm303_vm0, %v12058_v6, 0.0 }
 0x504   :  { %v8664_v30 = vpop.eup %8663  ;;  %8675 = verf.f32 %v3857_v35  ;;  %4212 = vadd.xlane.f32.xlu1 %v4211_v52  ;;  %v12068_v51 = vmul.f32 %v3975_v23, %v3783_v40  ;;  %v3786_v14 = vmul.f32 0.5, %v12015_v25  ;;  %v3789_v26 = vmul.f32 0.5, %v12021_v48 }
 0x505   :  { %v8666_v54 = vpop.eup %8665  ;;  %8677 = verf.f32 %v3855_v21  ;;  %v3980_v61 = vadd.f32 1.0, %v8664_v30 }
 0x506   :  { %v8668_v53 = vpop.eup %8667  ;;  %4203 = vadd.xlane.f32.xlu0 %v4202_v19  ;;  %14265 = vst [vmem:[#allocation95_spill] sm:$0xff] %v12068_v51  ;;  %v3978_v18 = vadd.f32 1.0, %v8666_v54  ;;  %v4205_v10 = vsel %vm303_vm0, %v12068_v51, 0.0  ;;  %v3787_v54 = vmul.f32 0.5, %v12027_v44  ;;  %v3792_v19 = vmul.f32 0.5, %v3712_v22 }
 0x507   :  { %v8670_v63 = vpop.eup %8669  ;;  %v12072_v7 = vmul.f32 %v3980_v61, %v3788_v2  ;;  %v3981_v35 = vadd.f32 1.0, %v8668_v53  ;;  %v3793_v44 = vmul.f32 0.5, %v3715_v41 }
 0x508   :  { %v3979_v21 = vadd.f32 1.0, %v8670_v63  ;;  %4206 = vadd.xlane.f32.xlu1 %v4205_v10  ;;  %v12080_v40 = vmul.f32 %v3978_v18, %v3786_v14 }
 0x509   :  { %14266 = vst [vmem:[#allocation96_spill] sm:$0xff] %v12072_v7  ;;  %v4220_v30 = vsel %vm303_vm0, %v12072_v7, 0.0  ;;  %v12078_v52 = vmul.f32 %v3981_v35, %v3789_v26  ;;  %v3790_v26 = vmul.f32 0.5, %v3704_v49 }
 0x50a   :  { %14268 = vst [vmem:[#allocation98_spill] sm:$0xff] %v12080_v40  ;;  %4221 = vadd.xlane.f32.xlu0 %v4220_v30  ;;  %v12085_v2 = vmul.f32 %v3979_v21, %v3787_v54  ;;  %v4214_v61 = vsel %vm303_vm0, %v12080_v40, 0.0 }
 0x50b   :  { %14267 = vst [vmem:[#allocation97_spill] sm:$0xff] %v12078_v52  ;;  %v4223_v25 = vsel %vm303_vm0, %v12078_v52, 0.0 }
 0x50c   :  { %v8672_v48 = vpop.eup %8671  ;;  %14269 = vst [vmem:[#allocation99_spill] sm:$0xff] %v12085_v2  ;;  %4224 = vadd.xlane.f32.xlu1 %v4223_v25  ;;  %v4217_v21 = vsel %vm303_vm0, %v12085_v2, 0.0 }
 0x50d   :  { %v8674_v23 = vpop.eup %8673  ;;  %v3984_v53 = vadd.f32 1.0, %v8672_v48  ;;  %v3791_v48 = vmul.f32 0.5, %v3707_v33 }
 0x50e   :  { %v8676_v63 = vpop.eup %8675  ;;  %4215 = vadd.xlane.f32.xlu0 %v4214_v61  ;;  %v3982_v18 = vadd.f32 1.0, %v8674_v23 }
 0x50f   :  { %v8678_v14 = vpop.eup %8677  ;;  %v12089_v35 = vmul.f32 %v3984_v53, %v3792_v19  ;;  %v3985_v10 = vadd.f32 1.0, %v8676_v63 }
 0x510   :  { %v3983_v30 = vadd.f32 1.0, %v8678_v14  ;;  %4218 = vadd.xlane.f32.xlu1 %v4217_v21  ;;  %v12097_v25 = vmul.f32 %v3982_v18, %v3790_v26 }
 0x511   :  { %14270 = vst [vmem:[#allocation100_spill] sm:$0xff] %v12089_v35  ;;  %v4232_v22 = vsel %vm303_vm0, %v12089_v35, 0.0  ;;  %v12095_v54 = vmul.f32 %v3985_v10, %v3793_v44 }
 0x512   :  { %14272 = vst [vmem:[#allocation102_spill] sm:$0xff] %v12097_v25  ;;  %4233 = vadd.xlane.f32.xlu0 %v4232_v22  ;;  %v12101_v23 = vmul.f32 %v3983_v30, %v3791_v48  ;;  %v4226_v19 = vsel %vm303_vm0, %v12097_v25, 0.0 }
 0x513   :  { %14271 = vst [vmem:[#allocation101_spill] sm:$0xff] %v12095_v54  ;;  %v4235_v41 = vsel %vm303_vm0, %v12095_v54, 0.0  ;;  %v4066_v49 = vpop.xlane.xlu0 %4065 }
 0x514   :  { %14273 = vst [vmem:[#allocation103_spill] sm:$0xff] %v12101_v23  ;;  %4236 = vadd.xlane.f32.xlu1 %v4235_v41  ;;  %v4229_v63 = vsel %vm303_vm0, %v12101_v23, 0.0  ;;  %v4252_v46 = vmul.f32 0.015625, %v4066_v49 }
 0x515   :  { %v4069_v61 = vpop.xlane.xlu1 %4068 }
 0x516   :  { %4227 = vadd.xlane.f32.xlu0 %v4226_v19  ;;  %v4253_v47 = vmul.f32 0.015625, %v4069_v61  ;;  %v12143_v9 = vsub.f32 %v11722_v3, %v4252_v46 }
 0x517   :  { %v4060_v53 = vpop.xlane.xlu0 %4059 }
 0x518   :  { %4230 = vadd.xlane.f32.xlu1 %v4229_v63  ;;  %v12148_v49 = vsub.f32 %v11737_v59, %v4253_v47 }
 0x519   :  { %v4063_v18 = vpop.xlane.xlu1 %4062 }
 0x51a   :  { %v4251_v60 = vmul.f32 0.015625, %v4063_v18 }
 0x51b   :  { %v4078_v33 = vpop.xlane.xlu0 %4077 }
 0x51c   :  { %v4256_v46 = vmul.f32 0.015625, %v4078_v33  ;;  %v12164_v59 = vsub.f32 %v11747_v43, %v4251_v60 }
 0x51d   :  { %v4081_v14 = vpop.xlane.xlu1 %4080 }
 0x51f   :  { %v4072_v26 = vpop.xlane.xlu0 %4071 }
 0x520   :  { %v4254_v18 = vmul.f32 0.015625, %v4072_v26 }
 0x521   :  { %v4075_v44 = vpop.xlane.xlu1 %4074 }
 0x522   :  { %v4255_v33 = vmul.f32 0.015625, %v4075_v44  ;;  %v12189_v26 = vsub.f32 %v11771_v45, %v4254_v18 }
 0x523   :  { %v12107_v10 = vpop.xlane.xlu0 %4089 }
 0x524   :  { %v12196_v44 = vsub.f32 %v11780_v31, %v4255_v33 }
 0x525   :  { %v12109_v21 = vpop.xlane.xlu1 %4092 }
 0x527   :  { %v12111_v30 = vpop.xlane.xlu0 %4083 }
 0x529   :  { %v12113_v22 = vpop.xlane.xlu1 %4086 }
 0x52b   :  { %v12115_v48 = vpop.xlane.xlu0 %4101 }
 0x52c   :  { %v4264_v33 = vmul.f32 0.015625, %v12115_v48 }
 0x52d   :  { %v12117_v41 = vpop.xlane.xlu1 %4104 }
 0x52f   :  { %v12119_v19 = vpop.xlane.xlu0 %4095 }
 0x531   :  { %v12121_v63 = vpop.xlane.xlu1 %4098 }
 0x533   :  { %v12128_v52 = vpop.xlane.xlu0 %4113 }
 0x535   :  { %v12131_v42 = vpop.xlane.xlu1 %4116 }
 0x536   :  { %v12123_v54 = vpop.f32.mrb[60].mxu1 }
 0x537   :  { %v3719_v35 = vpop.f32.mrb[61].mxu1  ;;  %v12133_v6 = vpop.xlane.xlu0 %4107 }
 0x538   :  { %v3720_v23 = vadd.f32 %v12045_v0, %v3719_v35  ;;  %v12126_v25 = vpop.f32.mrb[62].mxu1  ;;  %v8039_v35 = vld [vmem:[%s13753_s5 + $0x20] sm:$0xff]  }
 0x539   :  { %v3722_v7 = vpop.f32.mrb[63].mxu1  ;;  %v12135_v62 = vpop.xlane.xlu1 %4110  ;;  %7852 = vmatprep.subr.bf16.mxu0 %v8039_v35 }
 0x53a   :  { %v3858_v2 = vmul.f32 0.70710677, %v3720_v23  ;;  %v3723_v40 = vadd.f32 %v12045_v0, %v3722_v7  ;;  %7853 = vmatpush3.bf16.msra.mxu0 %v8039_v35  ;;  %v4380_v35 = vmul.f32 %v12143_v9, %v12143_v9 }
 0x53c   :  { %8679 = verf.f32 %v3858_v2  ;;  %v3859_v51 = vmul.f32 0.70710677, %v3723_v40  ;;  %v4250_v2 = vmul.f32 0.015625, %v4060_v53  ;;  %v3795_v12 = vmul.f32 0.5, %v3723_v40 }
 0x53d   :  { %v12173_v40 = vsub.f32 %v11752_v16, %v4256_v46  ;;  %v4379_v16 = vmul.f32 %v12164_v59, %v12164_v59  ;;  %v4261_v46 = vmul.f32 0.015625, %v12109_v21  ;;  %v4382_v21 = vmul.f32 %v12189_v26, %v12189_v26 }
 0x53e   :  { %8681 = verf.f32 %v3859_v51  ;;  %v3794_v51 = vmul.f32 0.5, %v3720_v23  ;;  %v12155_v3 = vsub.f32 %v11734_v17, %v4250_v2  ;;  %v4381_v17 = vmul.f32 %v12148_v49, %v12148_v49 }
 0x53f   :  { %v12214_v18 = vsub.f32 %v11801_v8, %v4261_v46  ;;  %v4262_v46 = vmul.f32 0.015625, %v12119_v19  ;;  %v12256_v19 = vadd.f32 %v12045_v0, %v12123_v54 }
 0x540   :  { %v12140_v38 = vpop.xlane.xlu0 %4125  ;;  %v4378_v43 = vmul.f32 %v12155_v3, %v12155_v3  ;;  %v4451_v2 = vsel %vm303_vm0, %v4381_v17, 0.0 }
 0x541   :  { %v4389_v48 = vmul.f32 %v12214_v18, %v12214_v18 }
 0x542   :  { %v12145_v50 = vpop.xlane.xlu1 %4128 }
 0x544   :  { %v12157_v23 = vpop.xlane.xlu0 %4119 }
 0x546   :  { %v8680_v7 = vpop.eup %8679 }
 0x547   :  { %v3986_v20 = vadd.f32 1.0, %v8680_v7 }
 0x548   :  { %v8682_v58 = vpop.eup %8681 }
 0x549   :  { %v12150_v61 = vmul.f32 %v3986_v20, %v3794_v51  ;;  %v3987_v1 = vadd.f32 1.0, %v8682_v58  ;;  %v4257_v20 = vmul.f32 0.015625, %v4081_v14  ;;  %v12166_v58 = vpop.xlane.xlu1 %4122  ;;  %v4260_v51 = vmul.f32 0.015625, %v12107_v10 }
 0x54b   :  { %v4238_v53 = vsel %vm303_vm0, %v12150_v61, 0.0  ;;  %v12161_v7 = vmul.f32 %v3987_v1, %v3795_v12  ;;  %v4448_v1 = vsel %vm303_vm0, %v4380_v35, 0.0  ;;  %v12181_v60 = vsub.f32 %v11768_v36, %v4257_v20 }
 0x54c   :  { %4239 = vadd.xlane.f32.xlu0 %v4238_v53  ;;  %v4442_v35 = vsel %vm303_vm0, %v4378_v43, 0.0  ;;  %v4384_v36 = vmul.f32 %v12173_v40, %v12173_v40  ;;  %v4445_v20 = vsel %vm303_vm0, %v4379_v16, 0.0  ;;  %v12205_v10 = vsub.f32 %v11785_v56, %v4260_v51 }
 0x54d   :  { %v4241_v47 = vsel %vm303_vm0, %v12161_v7, 0.0  ;;  %v4385_v45 = vmul.f32 %v12181_v60, %v12181_v60  ;;  %v4383_v56 = vmul.f32 %v12196_v44, %v12196_v44  ;;  %v4454_v16 = vsel %vm303_vm0, %v4382_v21, 0.0 }
 0x54e   :  { %4242 = vadd.xlane.f32.xlu1 %v4241_v47  ;;  %v4258_v47 = vmul.f32 0.015625, %v12111_v30  ;;  %v4460_v31 = vsel %vm303_vm0, %v4384_v36, 0.0  ;;  %v4388_v8 = vmul.f32 %v12205_v10, %v12205_v10  ;;  %v4265_v51 = vmul.f32 0.015625, %v12117_v41 }
 0x54f   :  { %v12175_v12 = vpop.xlane.xlu0 %4137  ;;  %v4463_v43 = vsel %vm303_vm0, %v4385_v45, 0.0  ;;  %v12239_v36 = vsub.f32 %v11816_v37, %v4264_v33  ;;  %v4263_v45 = vmul.f32 0.015625, %v12121_v63  ;;  %v12259_v21 = vsub.f32 %v11824_v5, %v4262_v46 }
 0x550   :  { %4449 = vadd.xlane.f32.xlu0 %v4448_v1  ;;  %v4259_v1 = vmul.f32 0.015625, %v12113_v22  ;;  %v12221_v30 = vsub.f32 %v11804_v29, %v4258_v47  ;;  %v4457_v29 = vsel %vm303_vm0, %v4383_v56, 0.0  ;;  %v12246_v41 = vsub.f32 %v11822_v57, %v4265_v51 }
 0x551   :  { %v12183_v14 = vpop.xlane.xlu1 %4140  ;;  %v4268_v57 = vmul.f32 0.015625, %v12128_v52  ;;  %v12269_v56 = vadd.f32 %v12045_v0, %v12126_v25  ;;  %v12272_v54 = vsub.f32 %v11831_v11, %v4263_v45  ;;  %v4269_v5 = vmul.f32 0.015625, %v12131_v42 }
 0x552   :  { %4452 = vadd.xlane.f32.xlu1 %v4451_v2  ;;  %v12230_v22 = vsub.f32 %v11812_v27, %v4259_v1  ;;  %v4386_v27 = vmul.f32 %v12221_v30, %v12221_v30  ;;  %v4393_v52 = vmul.f32 %v12246_v41, %v12246_v41  ;;  %v4266_v0 = vmul.f32 0.015625, %v12133_v6 }
 0x553   :  { %v12199_v53 = vpop.xlane.xlu0 %4131  ;;  %v4390_v42 = vmul.f32 %v12259_v21, %v12259_v21  ;;  %v3861_v51 = vmul.f32 0.70710677, %v12269_v56  ;;  %v4391_v6 = vmul.f32 %v12272_v54, %v12272_v54 }
 0x554   :  { %4443 = vadd.xlane.f32.xlu0 %v4442_v35  ;;  %v4387_v37 = vmul.f32 %v12230_v22, %v12230_v22  ;;  %v4466_v63 = vsel %vm303_vm0, %v4386_v27, 0.0  ;;  %v4272_v27 = vmul.f32 0.015625, %v12140_v38 }
 0x555   :  { %v12208_v17 = vpop.xlane.xlu1 %4134  ;;  %v4478_v45 = vsel %vm303_vm0, %v4390_v42, 0.0 }
 0x556   :  { %4446 = vadd.xlane.f32.xlu1 %v4445_v20  ;;  %v4472_v20 = vsel %vm303_vm0, %v4388_v8, 0.0  ;;  %v4469_v33 = vsel %vm303_vm0, %v4387_v37, 0.0  ;;  %v12280_v8 = vsub.f32 %v11839_v24, %v4268_v57  ;;  %v4487_v24 = vsel %vm303_vm0, %v4393_v52, 0.0 }
 0x557   :  { %v4273_v37 = vmul.f32 0.015625, %v12145_v50  ;;  %v4481_v57 = vsel %vm303_vm0, %v4391_v6, 0.0  ;;  %v4274_v6 = vmul.f32 0.015625, %v12199_v53 }
 0x558   :  { %4461 = vadd.xlane.f32.xlu0 %v4460_v31  ;;  %v4475_v31 = vsel %vm303_vm0, %v4389_v48, 0.0  ;;  %v4267_v48 = vmul.f32 0.015625, %v12135_v62 }
 0x559   :  { %v12324_v50 = vsub.f32 %v11866_v4, %v4273_v37  ;;  %v8040_v4 = vld [vmem:[%s13753_s5 + $0x28] sm:$0xff]  }
 0x55a   :  { %4464 = vadd.xlane.f32.xlu1 %v4463_v43  ;;  %v12224_v2 = vpop.xlane.xlu0 %4149  ;;  %v4392_v43 = vmul.f32 %v12239_v36, %v12239_v36  ;;  %7854 = vmatprep.subr.bf16.mxu0 %v8040_v4 }
 0x55b   :  { %7855 = vmatpush3.bf16.msra.mxu0 %v8040_v4 }
 0x55c   :  { %4455 = vadd.xlane.f32.xlu0 %v4454_v16  ;;  %v12233_v35 = vpop.xlane.xlu1 %4152  ;;  %v3860_v16 = vmul.f32 0.70710677, %v12256_v19  ;;  %v4484_v11 = vsel %vm303_vm0, %v4392_v43, 0.0  ;;  %v4270_v43 = vmul.f32 0.015625, %v12157_v23 }
 0x55e   :  { %4458 = vadd.xlane.f32.xlu1 %v4457_v29  ;;  %v12249_v47 = vpop.xlane.xlu0 %4143  ;;  %v12290_v29 = vsub.f32 %v11848_v55, %v4269_v5  ;;  %8683 = verf.f32 %v3860_v16  ;;  %v4396_v55 = vmul.f32 %v12280_v8, %v12280_v8  ;;  %v12333_v23 = vsub.f32 %v11868_v15, %v4270_v43 }
 0x55f   :  { %8685 = verf.f32 %v3861_v51  ;;  %v4401_v15 = vmul.f32 %v12324_v50, %v12324_v50 }
 0x560   :  { %4473 = vadd.xlane.f32.xlu0 %v4472_v20  ;;  %v12262_v1 = vpop.xlane.xlu1 %4146  ;;  %v12299_v20 = vsub.f32 %v11845_v34, %v4266_v0  ;;  %v4397_v34 = vmul.f32 %v12290_v29, %v12290_v29  ;;  %v4496_v5 = vsel %vm303_vm0, %v4396_v55, 0.0 }
 0x561   :  { %v4511_v43 = vsel %vm303_vm0, %v4401_v15, 0.0 }
 0x562   :  { %4476 = vadd.xlane.f32.xlu1 %v4475_v31  ;;  %v12308_v31 = vsub.f32 %v11852_v32, %v4267_v48  ;;  %v4394_v32 = vmul.f32 %v12299_v20, %v12299_v20  ;;  %v4499_v52 = vsel %vm303_vm0, %v4397_v34, 0.0  ;;  %v4275_v34 = vmul.f32 0.015625, %v12208_v17 }
 0x564   :  { %4467 = vadd.xlane.f32.xlu0 %v4466_v63  ;;  %v12317_v63 = vsub.f32 %v11862_v39, %v4272_v27  ;;  %v4395_v16 = vmul.f32 %v12308_v31, %v12308_v31  ;;  %v4490_v0 = vsel %vm303_vm0, %v4394_v32, 0.0  ;;  %v3797_v32 = vmul.f32 0.5, %v12269_v56 }
 0x565   :  { %v4277_v56 = vmul.f32 0.015625, %v12183_v14 }
 0x566   :  { %4470 = vadd.xlane.f32.xlu1 %v4469_v33  ;;  %v4271_v33 = vmul.f32 0.015625, %v12166_v58  ;;  %v4493_v48 = vsel %vm303_vm0, %v4395_v16, 0.0 }
 0x568   :  { %v12283_v25 = vpop.xlane.xlu0 %4161  ;;  %4485 = vadd.xlane.f32.xlu0 %v4484_v11  ;;  %v4400_v11 = vmul.f32 %v12317_v63, %v12317_v63  ;;  %v8684_v58 = vpop.eup %8683  ;;  %v12344_v51 = vsub.f32 %v11872_v13, %v4271_v33  ;;  %v3796_v13 = vmul.f32 0.5, %v12256_v19  ;;  %v4276_v19 = vmul.f32 0.015625, %v12175_v12 }
 0x569   :  { %v3988_v55 = vadd.f32 1.0, %v8684_v58 }
 0x56a   :  { %v12293_v46 = vpop.xlane.xlu1 %4164  ;;  %4488 = vadd.xlane.f32.xlu1 %v4487_v24  ;;  %v8686_v24 = vpop.eup %8685  ;;  %v4508_v27 = vsel %vm303_vm0, %v4400_v11, 0.0  ;;  %v4399_v53 = vmul.f32 %v12344_v51, %v12344_v51  ;;  %v14274_v11 = vld [vmem:[#allocation39_spill] sm:$0xff] }
 0x56b   :  { %v12371_v17 = vmul.f32 %v3988_v55, %v3796_v13  ;;  %v12378_v4 = vsub.f32 %v14274_v11, %v4275_v34  ;;  %v4279_v13 = vmul.f32 0.015625, %v12262_v1  ;;  %v4280_v34 = vmul.f32 0.015625, %v12224_v2 }
 0x56c   :  { %v12305_v62 = vpop.xlane.xlu0 %4155  ;;  %4479 = vadd.xlane.f32.xlu0 %v4478_v45  ;;  %v4398_v45 = vmul.f32 %v12333_v23, %v12333_v23  ;;  %v4505_v12 = vsel %vm303_vm0, %v4399_v53, 0.0  ;;  %v4281_v1 = vmul.f32 0.015625, %v12233_v35 }
 0x56e   :  { %v12314_v38 = vpop.xlane.xlu1 %4158  ;;  %4482 = vadd.xlane.f32.xlu1 %v4481_v57  ;;  %v8041_v57 = vld [vmem:[%s13753_s5 + $0x30] sm:$0xff]   ;;  %v4502_v16 = vsel %vm303_vm0, %v4398_v45, 0.0  ;;  %v14276_v45 = vld [vmem:[#allocation38_spill] sm:$0xff] }
 0x56f   :  { %7856 = vmatprep.subr.bf16.mxu0 %v8041_v57  ;;  %v12396_v55 = vsub.f32 %v14276_v45, %v4277_v56 }
 0x570   :  { %4497 = vadd.xlane.f32.xlu0 %v4496_v5  ;;  %v3989_v5 = vadd.f32 1.0, %v8686_v24  ;;  %7857 = vmatpush3.bf16.msra.mxu0 %v8041_v57  ;;  %v4278_v24 = vmul.f32 0.015625, %v12249_v47  ;;  %v4403_v47 = vmul.f32 %v12378_v4, %v12378_v4 }
 0x571   :  { %v4405_v2 = vmul.f32 %v12396_v55, %v12396_v55 }
 0x572   :  { %4500 = vadd.xlane.f32.xlu1 %v4499_v52  ;;  %v12368_v52 = vsub.f32 %v11888_v28, %v4274_v6  ;;  %v12381_v58 = vmul.f32 %v3989_v5, %v3797_v32  ;;  %v4244_v6 = vsel %vm303_vm0, %v12371_v17, 0.0  ;;  %v4517_v56 = vsel %vm303_vm0, %v4403_v47, 0.0 }
 0x573   :  { %v12330_v39 = vpop.xlane.xlu0 %4173 }
 0x574   :  { %4491 = vadd.xlane.f32.xlu0 %v4490_v0  ;;  %v8042_v0 = vld [vmem:[%s13753_s5 + $0x38] sm:$0xff]   ;;  %v4402_v14 = vmul.f32 %v12368_v52, %v12368_v52  ;;  %v4247_v57 = vsel %vm303_vm0, %v12381_v58, 0.0 }
 0x575   :  { %v12341_v42 = vpop.xlane.xlu1 %4176  ;;  %7858 = vmatprep.subr.bf16.mxu0 %v8042_v0 }
 0x576   :  { %4494 = vadd.xlane.f32.xlu1 %v4493_v48  ;;  %v14275_v48 = vld [vmem:[#allocation90_spill] sm:$0xff]  ;;  %7859 = vmatpush3.bf16.msra.mxu0 %v8042_v0  ;;  %v4514_v5 = vsel %vm303_vm0, %v4402_v14, 0.0  ;;  %v14280_v14 = vld [vmem:[#allocation41_spill] sm:$0xff] }
 0x577   :  { %v12354_v37 = vpop.xlane.xlu0 %4167  ;;  %v12386_v15 = vsub.f32 %v14275_v48, %v4276_v19  ;;  %v12425_v45 = vsub.f32 %v14280_v14, %v4281_v1 }
 0x578   :  { %4509 = vadd.xlane.f32.xlu0 %v4508_v27 }
 0x579   :  { %v12364_v33 = vpop.xlane.xlu1 %4170  ;;  %v4404_v32 = vmul.f32 %v12386_v15, %v12386_v15 }
 0x57a   :  { %4512 = vadd.xlane.f32.xlu1 %v4511_v43  ;;  %v14277_v43 = vld [vmem:[#allocation55_spill] sm:$0xff] }
 0x57b   :  { %v12405_v53 = vsub.f32 %v14277_v43, %v4278_v24  ;;  %v4282_v24 = vmul.f32 0.015625, %v12305_v62  ;;  %v4284_v62 = vmul.f32 0.015625, %v12283_v25  ;;  %v14281_v43 = vld [vmem:[#allocation72_spill] sm:$0xff]  ;;  %v4409_v25 = vmul.f32 %v12425_v45, %v12425_v45 }
 0x57c   :  { %4503 = vadd.xlane.f32.xlu0 %v4502_v16  ;;  %v14278_v16 = vld [vmem:[#allocation49_spill] sm:$0xff] }
 0x57d   :  { %v12412_v0 = vsub.f32 %v14278_v16, %v4279_v13  ;;  %v4406_v35 = vmul.f32 %v12405_v53, %v12405_v53  ;;  %v4283_v13 = vmul.f32 0.015625, %v12314_v38  ;;  %v4285_v38 = vmul.f32 0.015625, %v12293_v46 }
 0x57e   :  { %v12383_v28 = vpop.xlane.xlu0 %4185  ;;  %4506 = vadd.xlane.f32.xlu1 %v4505_v12  ;;  %v14279_v12 = vld [vmem:[#allocation36_spill] sm:$0xff] }
 0x57f   :  { %v12418_v48 = vsub.f32 %v14279_v12, %v4280_v34  ;;  %v4407_v47 = vmul.f32 %v12412_v0, %v12412_v0 }
 0x580   :  { %v12393_v27 = vpop.xlane.xlu1 %4188  ;;  %4245 = vadd.xlane.f32.xlu0 %v4244_v6  ;;  %v4520_v6 = vsel %vm303_vm0, %v4404_v32, 0.0  ;;  %v4526_v32 = vsel %vm303_vm0, %v4406_v35, 0.0  ;;  %v4286_v35 = vmul.f32 0.015625, %v12354_v37  ;;  %v4288_v37 = vmul.f32 0.015625, %v12330_v39 }
 0x581   :  { %v4408_v1 = vmul.f32 %v12418_v48, %v12418_v48  ;;  %v4529_v12 = vsel %vm303_vm0, %v4407_v47, 0.0  ;;  %v4287_v47 = vmul.f32 0.015625, %v12364_v33  ;;  %v4289_v33 = vmul.f32 0.015625, %v12341_v42 }
 0x582   :  { %4248 = vadd.xlane.f32.xlu1 %v4247_v57  ;;  %v4180_v19 = vpop.xlane.xlu0 %4179  ;;  %v4523_v57 = vsel %vm303_vm0, %v4405_v2, 0.0 }
 0x583   :  { %v4532_v14 = vsel %vm303_vm0, %v4408_v1, 0.0  ;;  %v14287_v1 = vld [vmem:[#allocation7_spill] sm:$0xff] }
 0x584   :  { %4515 = vadd.xlane.f32.xlu0 %v4514_v5  ;;  %v4183_v11 = vpop.xlane.xlu1 %4182  ;;  %v12435_v5 = vsub.f32 %v14281_v43, %v4282_v24  ;;  %v14284_v24 = vld [vmem:[#allocation53_spill] sm:$0xff] }
 0x586   :  { %4518 = vadd.xlane.f32.xlu1 %v4517_v56  ;;  %v14282_v56 = vld [vmem:[#allocation25_spill] sm:$0xff] }
 0x587   :  { %v12431_v34 = vpop.xlane.xlu0 %4197  ;;  %v12444_v2 = vsub.f32 %v14282_v56, %v4283_v13  ;;  %v14286_v13 = vld [vmem:[#allocation26_spill] sm:$0xff] }
 0x588   :  { %4521 = vadd.xlane.f32.xlu0 %v4520_v6  ;;  %v12450_v6 = vsub.f32 %v14284_v24, %v4284_v62  ;;  %v12457_v43 = vsub.f32 %v14286_v13, %v4285_v38 }
 0x589   :  { %v12440_v16 = vpop.xlane.xlu1 %4200  ;;  %14283 = vst [vmem:[#allocation39_spill] sm:$0xff] %v12444_v2  ;;  %v4411_v62 = vmul.f32 %v12444_v2, %v12444_v2 }
 0x58a   :  { %4524 = vadd.xlane.f32.xlu1 %v4523_v57  ;;  %14285 = vst [vmem:[#allocation90_spill] sm:$0xff] %v12450_v6  ;;  %v4410_v57 = vmul.f32 %v12435_v5, %v12435_v5  ;;  %v4412_v38 = vmul.f32 %v12450_v6, %v12450_v6 }
 0x58b   :  { %v4192_v46 = vpop.xlane.xlu0 %4191  ;;  %v4541_v13 = vsel %vm303_vm0, %v4411_v62, 0.0  ;;  %v4291_v62 = vmul.f32 0.015625, %v4183_v11  ;;  %v4293_v11 = vmul.f32 0.015625, %v12393_v27  ;;  %v14299_v27 = vld [vmem:[#allocation11_spill] sm:$0xff] }
 0x58c   :  { %4527 = vadd.xlane.f32.xlu0 %v4526_v32  ;;  %v4535_v32 = vsel %vm303_vm0, %v4409_v25, 0.0  ;;  %v4538_v24 = vsel %vm303_vm0, %v4410_v57, 0.0  ;;  %v4290_v57 = vmul.f32 0.015625, %v4180_v19  ;;  %v4544_v2 = vsel %vm303_vm0, %v4412_v38, 0.0  ;;  %v14294_v19 = vld [vmem:[#allocation13_spill] sm:$0xff] }
 0x58d   :  { %v4195_v56 = vpop.xlane.xlu1 %4194 }
 0x58e   :  { %4530 = vadd.xlane.f32.xlu1 %v4529_v12  ;;  %v12465_v12 = vsub.f32 %v14287_v1, %v4286_v35  ;;  %v14290_v35 = vld [vmem:[#allocation60_spill] sm:$0xff] }
 0x58f   :  { %v4210_v39 = vpop.xlane.xlu0 %4209  ;;  %v12478_v1 = vsub.f32 %v14290_v35, %v4288_v37  ;;  %v4292_v37 = vmul.f32 0.015625, %v12383_v28  ;;  %v12491_v35 = vsub.f32 %v14294_v19, %v4290_v57  ;;  %v14297_v57 = vld [vmem:[#allocation76_spill] sm:$0xff] }
 0x590   :  { %4533 = vadd.xlane.f32.xlu0 %v4532_v14  ;;  %14288 = vst [vmem:[#allocation38_spill] sm:$0xff] %v12465_v12  ;;  %v14289_v14 = vld [vmem:[#allocation6_spill] sm:$0xff] }
 0x591   :  { %v12472_v25 = vsub.f32 %v14289_v14, %v4287_v47  ;;  %14291 = vst [vmem:[#allocation55_spill] sm:$0xff] %v12478_v1  ;;  %v4213_v42 = vpop.xlane.xlu1 %4212  ;;  %v14292_v47 = vld [vmem:[#allocation5_spill] sm:$0xff]  ;;  %v12504_v19 = vsub.f32 %v14297_v57, %v4292_v37  ;;  %v4296_v37 = vmul.f32 0.015625, %v12431_v34 }
 0x592   :  { %4536 = vadd.xlane.f32.xlu1 %v4535_v32  ;;  %v4413_v32 = vmul.f32 %v12457_v43, %v12457_v43  ;;  %v12484_v14 = vsub.f32 %v14292_v47, %v4289_v33  ;;  %v14295_v33 = vld [vmem:[#allocation9_spill] sm:$0xff] }
 0x593   :  { %14298 = vst [vmem:[#allocation41_spill] sm:$0xff] %v12504_v19 }
 0x594   :  { %4539 = vadd.xlane.f32.xlu0 %v4538_v24  ;;  %v4414_v24 = vmul.f32 %v12465_v12, %v12465_v12  ;;  %14293 = vst [vmem:[#allocation49_spill] sm:$0xff] %v12484_v14  ;;  %v4547_v6 = vsel %vm303_vm0, %v4413_v32, 0.0  ;;  %v4204_v12 = vpop.xlane.xlu0 %4203  ;;  %v12498_v32 = vsub.f32 %v14295_v33, %v4291_v62  ;;  %v4417_v28 = vmul.f32 %v12484_v14, %v12484_v14 }
 0x595   :  { %v12510_v62 = vsub.f32 %v14299_v27, %v4293_v11  ;;  %v4295_v33 = vmul.f32 0.015625, %v4195_v56  ;;  %v4297_v56 = vmul.f32 0.015625, %v12440_v16  ;;  %v14306_v16 = vld [vmem:[#allocation89_spill] sm:$0xff] }
 0x596   :  { %4542 = vadd.xlane.f32.xlu1 %v4541_v13  ;;  %v4415_v13 = vmul.f32 %v12472_v25, %v12472_v25  ;;  %v4550_v38 = vsel %vm303_vm0, %v4414_v24, 0.0  ;;  %14296 = vst [vmem:[#allocation36_spill] sm:$0xff] %v12498_v32  ;;  %v4294_v24 = vmul.f32 0.015625, %v4192_v46  ;;  %v4419_v14 = vmul.f32 %v12498_v32, %v12498_v32  ;;  %v14301_v46 = vld [vmem:[#allocation81_spill] sm:$0xff] }
 0x597   :  { %14300 = vst [vmem:[#allocation72_spill] sm:$0xff] %v12510_v62  ;;  %v4421_v34 = vmul.f32 %v12510_v62, %v12510_v62 }
 0x598   :  { %4545 = vadd.xlane.f32.xlu0 %v4544_v2  ;;  %v4416_v2 = vmul.f32 %v12478_v1, %v12478_v1  ;;  %v4553_v47 = vsel %vm303_vm0, %v4415_v13, 0.0  ;;  %v4559_v13 = vsel %vm303_vm0, %v4417_v28, 0.0  ;;  %v12517_v57 = vsub.f32 %v14301_v46, %v4294_v24  ;;  %v14302_v28 = vld [vmem:[#allocation91_spill] sm:$0xff]  ;;  %v14304_v24 = vld [vmem:[#allocation10_spill] sm:$0xff] }
 0x599   :  { %v12524_v27 = vsub.f32 %v14302_v28, %v4295_v33  ;;  %v4565_v32 = vsel %vm303_vm0, %v4419_v14, 0.0  ;;  %v12536_v33 = vsub.f32 %v14306_v16, %v4297_v56  ;;  %v4571_v14 = vsel %vm303_vm0, %v4421_v34, 0.0  ;;  %v14309_v16 = vld [vmem:[#allocation95_spill] sm:$0xff] }
 0x59a   :  { %4548 = vadd.xlane.f32.xlu1 %v4547_v6  ;;  %v4207_v6 = vpop.xlane.xlu1 %4206  ;;  %v4556_v1 = vsel %vm303_vm0, %v4416_v2, 0.0  ;;  %v4301_v56 = vmul.f32 0.015625, %v4213_v42 }
 0x59b   :  { %14303 = vst [vmem:[#allocation25_spill] sm:$0xff] %v12524_v27  ;;  %v4299_v28 = vmul.f32 0.015625, %v4207_v6 }
 0x59c   :  { %4551 = vadd.xlane.f32.xlu0 %v4550_v38  ;;  %v4418_v38 = vmul.f32 %v12491_v35, %v12491_v35 }
 0x59d   :  { %v12548_v6 = vsub.f32 %v14309_v16, %v4299_v28  ;;  %v14312_v28 = vld [vmem:[#allocation94_spill] sm:$0xff] }
 0x59e   :  { %4554 = vadd.xlane.f32.xlu1 %v4553_v47  ;;  %v4222_v47 = vpop.xlane.xlu0 %4221  ;;  %v4562_v2 = vsel %vm303_vm0, %v4418_v38, 0.0  ;;  %v4225_v11 = vpop.xlane.xlu1 %4224  ;;  %v4298_v38 = vmul.f32 0.015625, %v4204_v12  ;;  %v14307_v12 = vld [vmem:[#allocation93_spill] sm:$0xff]  ;;  %v12560_v16 = vsub.f32 %v14312_v28, %v4301_v56  ;;  %v14315_v28 = vld [vmem:[#allocation99_spill] sm:$0xff] }
 0x59f   :  { %14310 = vst [vmem:[#allocation7_spill] sm:$0xff] %v12548_v6  ;;  %v4305_v56 = vmul.f32 0.015625, %v4225_v11  ;;  %v14318_v11 = vld [vmem:[#allocation97_spill] sm:$0xff] }
 0x5a0   :  { %4557 = vadd.xlane.f32.xlu0 %v4556_v1  ;;  %v4420_v1 = vmul.f32 %v12504_v19, %v12504_v19  ;;  %14313 = vst [vmem:[#allocation6_spill] sm:$0xff] %v12560_v16 }
 0x5a2   :  { %4560 = vadd.xlane.f32.xlu1 %v4559_v13  ;;  %v12530_v13 = vsub.f32 %v14304_v24, %v4296_v37  ;;  %v4568_v46 = vsel %vm303_vm0, %v4420_v1, 0.0  ;;  %v4216_v19 = vpop.xlane.xlu0 %4215  ;;  %v4219_v62 = vpop.xlane.xlu1 %4218  ;;  %v4300_v37 = vmul.f32 0.015625, %v4210_v39  ;;  %v12542_v24 = vsub.f32 %v14307_v12, %v4298_v38  ;;  %v14311_v39 = vld [vmem:[#allocation92_spill] sm:$0xff] }
 0x5a3   :  { %v4302_v12 = vmul.f32 0.015625, %v4216_v19 }
 0x5a4   :  { %4563 = vadd.xlane.f32.xlu0 %v4562_v2  ;;  %14305 = vst [vmem:[#allocation53_spill] sm:$0xff] %v12530_v13  ;;  %v4422_v2 = vmul.f32 %v12517_v57, %v12517_v57  ;;  %14308 = vst [vmem:[#allocation26_spill] sm:$0xff] %v12542_v24  ;;  %v12554_v38 = vsub.f32 %v14311_v39, %v4300_v37  ;;  %v4304_v37 = vmul.f32 0.015625, %v4222_v47  ;;  %v14314_v39 = vld [vmem:[#allocation98_spill] sm:$0xff] }
 0x5a5   :  { %v12566_v19 = vsub.f32 %v14314_v39, %v4302_v12  ;;  %v14316_v12 = vld [vmem:[#allocation96_spill] sm:$0xff] }
 0x5a6   :  { %4566 = vadd.xlane.f32.xlu1 %v4565_v32  ;;  %v4423_v32 = vmul.f32 %v12524_v27, %v12524_v27  ;;  %v4574_v1 = vsel %vm303_vm0, %v4422_v2, 0.0  ;;  %v4425_v27 = vmul.f32 %v12536_v33, %v12536_v33  ;;  %v4237_v42 = vpop.xlane.xlu1 %4236  ;;  %v12578_v39 = vsub.f32 %v14316_v12, %v4304_v37  ;;  %v14320_v37 = vld [vmem:[#allocation102_spill] sm:$0xff] }
 0x5a8   :  { %4569 = vadd.xlane.f32.xlu0 %v4568_v46  ;;  %v4424_v46 = vmul.f32 %v12530_v13, %v12530_v13  ;;  %v4577_v34 = vsel %vm303_vm0, %v4423_v32, 0.0  ;;  %v4303_v32 = vmul.f32 0.015625, %v4219_v62  ;;  %v4583_v13 = vsel %vm303_vm0, %v4425_v27, 0.0  ;;  %14317 = vst [vmem:[#allocation60_spill] sm:$0xff] %v12578_v39 }
 0x5aa   :  { %4572 = vadd.xlane.f32.xlu1 %v4571_v14  ;;  %v4234_v14 = vpop.xlane.xlu0 %4233  ;;  %v4580_v2 = vsel %vm303_vm0, %v4424_v46, 0.0  ;;  %v12572_v62 = vsub.f32 %v14315_v28, %v4303_v32  ;;  %v4231_v47 = vpop.xlane.xlu1 %4230  ;;  %v12584_v32 = vsub.f32 %v14318_v11, %v4305_v56  ;;  %v14322_v56 = vld [vmem:[#allocation103_spill] sm:$0xff] }
 0x5ab   :  { %v4307_v28 = vmul.f32 0.015625, %v4231_v47 }
 0x5ac   :  { %4575 = vadd.xlane.f32.xlu0 %v4574_v1  ;;  %v4426_v1 = vmul.f32 %v12542_v24, %v12542_v24  ;;  %v4428_v24 = vmul.f32 %v12554_v38, %v12554_v38  ;;  %14319 = vst [vmem:[#allocation5_spill] sm:$0xff] %v12584_v32  ;;  %v4433_v47 = vmul.f32 %v12584_v32, %v12584_v32 }
 0x5ad   :  { %v12596_v11 = vsub.f32 %v14322_v56, %v4307_v28 }
 0x5ae   :  { %4578 = vadd.xlane.f32.xlu1 %v4577_v34  ;;  %v4427_v34 = vmul.f32 %v12548_v6, %v12548_v6  ;;  %v4586_v46 = vsel %vm303_vm0, %v4426_v1, 0.0  ;;  %v4592_v6 = vsel %vm303_vm0, %v4428_v24, 0.0  ;;  %v4607_v28 = vsel %vm303_vm0, %v4433_v47, 0.0 }
 0x5af   :  { %14323 = vst [vmem:[#allocation9_spill] sm:$0xff] %v12596_v11 }
 0x5b0   :  { %4581 = vadd.xlane.f32.xlu0 %v4580_v2  ;;  %v4228_v2 = vpop.xlane.xlu0 %4227  ;;  %v4589_v27 = vsel %vm303_vm0, %v4427_v34, 0.0 }
 0x5b1   :  { %v4306_v1 = vmul.f32 0.015625, %v4228_v2  ;;  %v4432_v2 = vmul.f32 %v12578_v39, %v12578_v39 }
 0x5b2   :  { %4584 = vadd.xlane.f32.xlu1 %v4583_v13  ;;  %v4429_v13 = vmul.f32 %v12560_v16, %v12560_v16  ;;  %v4431_v16 = vmul.f32 %v12572_v62, %v12572_v62 }
 0x5b3   :  { %v12590_v12 = vsub.f32 %v14320_v37, %v4306_v1  ;;  %v4604_v1 = vsel %vm303_vm0, %v4432_v2, 0.0  ;;  %v14326_v37 = vld [vmem:[#allocation101_spill] sm:$0xff] }
 0x5b4   :  { %4587 = vadd.xlane.f32.xlu0 %v4586_v46  ;;  %v4430_v46 = vmul.f32 %v12566_v19, %v12566_v19  ;;  %v4595_v34 = vsel %vm303_vm0, %v4429_v13, 0.0  ;;  %v4601_v13 = vsel %vm303_vm0, %v4431_v16, 0.0  ;;  %v4435_v16 = vmul.f32 %v12596_v11, %v12596_v11 }
 0x5b5   :  { %14321 = vst [vmem:[#allocation13_spill] sm:$0xff] %v12590_v12 }
 0x5b6   :  { %4590 = vadd.xlane.f32.xlu1 %v4589_v27  ;;  %v4308_v27 = vmul.f32 0.015625, %v4234_v14  ;;  %v4598_v24 = vsel %vm303_vm0, %v4430_v46, 0.0  ;;  %v14324_v14 = vld [vmem:[#allocation100_spill] sm:$0xff]  ;;  %v4434_v46 = vmul.f32 %v12590_v12, %v12590_v12  ;;  %v4613_v2 = vsel %vm303_vm0, %v4435_v16, 0.0 }
 0x5b8   :  { %4593 = vadd.xlane.f32.xlu0 %v4592_v6  ;;  %v4309_v6 = vmul.f32 0.015625, %v4237_v42 }
 0x5ba   :  { %4596 = vadd.xlane.f32.xlu1 %v4595_v34  ;;  %v12602_v34 = vsub.f32 %v14324_v14, %v4308_v27  ;;  %v12608_v42 = vsub.f32 %v14326_v37, %v4309_v6 }
 0x5bc   :  { %4599 = vadd.xlane.f32.xlu0 %v4598_v24  ;;  %14325 = vst [vmem:[#allocation76_spill] sm:$0xff] %v12602_v34  ;;  %14327 = vst [vmem:[#allocation11_spill] sm:$0xff] %v12608_v42  ;;  %v4610_v24 = vsel %vm303_vm0, %v4434_v46, 0.0  ;;  %v4436_v27 = vmul.f32 %v12602_v34, %v12602_v34  ;;  %v4437_v56 = vmul.f32 %v12608_v42, %v12608_v42 }
 0x5be   :  { %4602 = vadd.xlane.f32.xlu1 %v4601_v13  ;;  %v4616_v6 = vsel %vm303_vm0, %v4436_v27, 0.0  ;;  %v4619_v13 = vsel %vm303_vm0, %v4437_v56, 0.0 }
 0x5c0   :  { %4605 = vadd.xlane.f32.xlu0 %v4604_v1 }
 0x5c2   :  { %4608 = vadd.xlane.f32.xlu1 %v4607_v28 }
 0x5c4   :  { %4611 = vadd.xlane.f32.xlu0 %v4610_v24 }
 0x5c6   :  { %4614 = vadd.xlane.f32.xlu1 %v4613_v2 }
 0x5c8   :  { %4617 = vadd.xlane.f32.xlu0 %v4616_v6 }
 0x5ca   :  { %4620 = vadd.xlane.f32.xlu1 %v4619_v13 }
 0x5d9   :  { %v4240_v47 = vpop.xlane.xlu0 %4239 }
 0x5da   :  { %v4310_v14 = vmul.f32 0.015625, %v4240_v47 }
 0x5db   :  { %v4243_v1 = vpop.xlane.xlu1 %4242 }
 0x5dc   :  { %v12622_v46 = vsub.f32 %v12150_v61, %v4310_v14  ;;  %v4311_v37 = vmul.f32 0.015625, %v4243_v1 }
 0x5dd   :  { %v4450_v28 = vpop.xlane.xlu0 %4449 }
 0x5de   :  { %14328 = vst [vmem:[#allocation81_spill] sm:$0xff] %v12622_v46  ;;  %v12625_v16 = vsub.f32 %v12161_v7, %v4311_v37  ;;  %v4636_v24 = vmul.f32 0.015625, %v4450_v28  ;;  %v4438_v2 = vmul.f32 %v12622_v46, %v12622_v46 }
 0x5df   :  { %v4453_v27 = vpop.xlane.xlu1 %4452 }
 0x5e0   :  { %14329 = vst [vmem:[#allocation91_spill] sm:$0xff] %v12625_v16  ;;  %v4700_v6 = vadd.f32 1e-06, %v4636_v24  ;;  %v4637_v42 = vmul.f32 0.015625, %v4453_v27  ;;  %v4622_v56 = vsel %vm303_vm0, %v4438_v2, 0.0  ;;  %v4439_v13 = vmul.f32 %v12625_v16, %v12625_v16 }
 0x5e1   :  { %4623 = vadd.xlane.f32.xlu0 %v4622_v56  ;;  %v4444_v61 = vpop.xlane.xlu0 %4443 }
 0x5e2   :  { %v4701_v47 = vadd.f32 1e-06, %v4637_v42  ;;  %v4634_v14 = vmul.f32 0.015625, %v4444_v61  ;;  %v4625_v1 = vsel %vm303_vm0, %v4439_v13, 0.0  ;;  %8687 = vrsqrt.f32 %v4700_v6 }
 0x5e3   :  { %4626 = vadd.xlane.f32.xlu1 %v4625_v1  ;;  %v4447_v7 = vpop.xlane.xlu1 %4446 }
 0x5e4   :  { %8689 = vrsqrt.f32 %v4701_v47  ;;  %v4698_v37 = vadd.f32 1e-06, %v4634_v14  ;;  %v4635_v28 = vmul.f32 0.015625, %v4447_v7  ;;  %v12636_v47 = vld [vmem:[%s13755_s7 + $0x1] ss:$0 sm:$0xff] }
 0x5e5   :  { %v4462_v46 = vpop.xlane.xlu0 %4461 }
 0x5e6   :  { %8691 = vrsqrt.f32 %v4698_v37  ;;  %v4699_v24 = vadd.f32 1e-06, %v4635_v28  ;;  %v4640_v27 = vmul.f32 0.015625, %v4462_v46 }
 0x5e7   :  { %v4465_v2 = vpop.xlane.xlu1 %4464 }
 0x5e8   :  { %8693 = vrsqrt.f32 %v4699_v24  ;;  %v4704_v34 = vadd.f32 1e-06, %v4640_v27  ;;  %v4641_v16 = vmul.f32 0.015625, %v4465_v2 }
 0x5e9   :  { %v4456_v56 = vpop.xlane.xlu0 %4455 }
 0x5ea   :  { %8695 = vrsqrt.f32 %v4704_v34  ;;  %v4705_v42 = vadd.f32 1e-06, %v4641_v16  ;;  %v4638_v61 = vmul.f32 0.015625, %v4456_v56 }
 0x5eb   :  { %v4459_v11 = vpop.xlane.xlu1 %4458 }
 0x5ec   :  { %8697 = vrsqrt.f32 %v4705_v42  ;;  %v4702_v6 = vadd.f32 1e-06, %v4638_v61  ;;  %v4639_v13 = vmul.f32 0.015625, %v4459_v11  ;;  %v8688_v1 = vpop.eup %8687 }
 0x5ed   :  { %v4474_v14 = vpop.xlane.xlu0 %4473  ;;  %v4834_v24 = vmul.f32 %v8688_v1, %v12636_v47  ;;  %v12647_v1 = vld [vmem:[%s13756_s8 + $0x1] ss:$0 sm:$0xff] }
 0x5ee   :  { %v8690_v46 = vpop.eup %8689  ;;  %8699 = vrsqrt.f32 %v4702_v6  ;;  %v4703_v7 = vadd.f32 1e-06, %v4639_v13  ;;  %v4644_v37 = vmul.f32 0.015625, %v4474_v14 }
 0x5ef   :  { %v4835_v28 = vmul.f32 %v8690_v46, %v12636_v47  ;;  %v4477_v34 = vpop.xlane.xlu1 %4476 }
 0x5f0   :  { %v8692_v16 = vpop.eup %8691  ;;  %8701 = vrsqrt.f32 %v4703_v7  ;;  %v4708_v27 = vadd.f32 1e-06, %v4644_v37  ;;  %v4645_v11 = vmul.f32 0.015625, %v4477_v34 }
 0x5f1   :  { %v4899_v2 = vmul.f32 %v4835_v28, %v12148_v49  ;;  %v4468_v56 = vpop.xlane.xlu0 %4467  ;;  %v4832_v42 = vmul.f32 %v8692_v16, %v12636_v47  ;;  %v4898_v49 = vmul.f32 %v4834_v24, %v12143_v9 }
 0x5f2   :  { %v8694_v61 = vpop.eup %8693  ;;  %8703 = vrsqrt.f32 %v4708_v27  ;;  %v4709_v12 = vadd.f32 1e-06, %v4645_v11  ;;  %v4642_v6 = vmul.f32 0.015625, %v4468_v56 }
 0x5f3   :  { %v4471_v13 = vpop.xlane.xlu1 %4470  ;;  %v4833_v14 = vmul.f32 %v8694_v61, %v12636_v47  ;;  %v4896_v46 = vmul.f32 %v4832_v42, %v12155_v3  ;;  %v4969_v28 = vadd.f32 %v12647_v1, %v4899_v2  ;;  %v4968_v24 = vadd.f32 %v12647_v1, %v4898_v49 }
 0x5f4   :  { %v8696_v32 = vpop.eup %8695  ;;  %8705 = vrsqrt.f32 %v4709_v12  ;;  %v4706_v7 = vadd.f32 1e-06, %v4642_v6  ;;  %v4643_v37 = vmul.f32 0.015625, %v4471_v13 }
 0x5f5   :  { %v4486_v34 = vpop.xlane.xlu0 %4485  ;;  %v4897_v16 = vmul.f32 %v4833_v14, %v12164_v59  ;;  %v4838_v56 = vmul.f32 %v8696_v32, %v12636_v47  ;;  %v4966_v61 = vadd.f32 %v12647_v1, %v4896_v46  ;;  %v5031_v46 = vpack.c.bf16 %v4969_v28, %v4968_v24 }
 0x5f6   :  { %v8698_v27 = vpop.eup %8697  ;;  %8707 = vrsqrt.f32 %v4706_v7  ;;  %v4707_v11 = vadd.f32 1e-06, %v4643_v37  ;;  %v4648_v3 = vmul.f32 0.015625, %v4486_v34 }
 0x5f7   :  { %v4489_v42 = vpop.xlane.xlu1 %4488  ;;  %v4967_v39 = vadd.f32 %v12647_v1, %v4897_v16  ;;  %v4839_v9 = vmul.f32 %v8698_v27, %v12636_v47  ;;  %v4902_v16 = vmul.f32 %v4838_v56, %v12173_v40 }
 0x5f8   :  { %v8700_v12 = vpop.eup %8699  ;;  %8709 = vrsqrt.f32 %v4707_v11  ;;  %v4712_v2 = vadd.f32 1e-06, %v4648_v3  ;;  %v4649_v6 = vmul.f32 0.015625, %v4489_v42 }
 0x5f9   :  { %v4480_v59 = vpop.xlane.xlu0 %4479  ;;  %v5030_v13 = vpack.c.bf16 %v4967_v39, %v4966_v61  ;;  %v4836_v14 = vmul.f32 %v8700_v12, %v12636_v47  ;;  %v4903_v7 = vmul.f32 %v4839_v9, %v12181_v60  ;;  %v4972_v12 = vadd.f32 %v12647_v1, %v4902_v16 }
 0x5fa   :  { %v8702_v32 = vpop.eup %8701  ;;  %v4713_v37 = vadd.f32 1e-06, %v4649_v6  ;;  %v4646_v34 = vmul.f32 0.015625, %v4480_v59  ;;  %8711 = vrsqrt.f32 %v4712_v2 }
 0x5fb   :  { %v4483_v27 = vpop.xlane.xlu1 %4482  ;;  %7860 = vmatprep.mubr.msk.bf16.mxu0 %vm303_vm0, %v5030_v13  ;;  %v4837_v49 = vmul.f32 %v8702_v32, %v12636_v47  ;;  %v4900_v11 = vmul.f32 %v4836_v14, %v12189_v26  ;;  %v4973_v28 = vadd.f32 %v12647_v1, %v4903_v7 }
 0x5fc   :  { %v8704_v3 = vpop.eup %8703  ;;  %8713 = vrsqrt.f32 %v4713_v37  ;;  %v4710_v39 = vadd.f32 1e-06, %v4646_v34  ;;  %v4647_v42 = vmul.f32 0.015625, %v4483_v27  ;;  %7861 = vmatmul.mubr.msk.bf16.vlgmr.msra.gmra.mrb[64].mxu0 %vm303_vm0, %v5031_v46 }
 0x5fd   :  { %v4498_v60 = vpop.xlane.xlu0 %4497  ;;  %v4901_v61 = vmul.f32 %v4837_v49, %v12196_v44  ;;  %v4970_v26 = vadd.f32 %v12647_v1, %v4900_v11  ;;  %v4842_v6 = vmul.f32 %v8704_v3, %v12636_v47  ;;  %v5033_v37 = vpack.c.bf16 %v4973_v28, %v4972_v12 }
 0x5fe   :  { %v8706_v40 = vpop.eup %8705  ;;  %8715 = vrsqrt.f32 %v4710_v39  ;;  %v4711_v56 = vadd.f32 1e-06, %v4647_v42  ;;  %v4652_v9 = vmul.f32 0.015625, %v4498_v60 }
 0x5ff   :  { %v4501_v24 = vpop.xlane.xlu1 %4500  ;;  %v4971_v2 = vadd.f32 %v12647_v1, %v4901_v61  ;;  %v4843_v59 = vmul.f32 %v8706_v40, %v12636_v47  ;;  %v4906_v42 = vmul.f32 %v4842_v6, %v12205_v10 }
 0x600   :  { %v8708_v13 = vpop.eup %8707  ;;  %8717 = vrsqrt.f32 %v4711_v56  ;;  %v4716_v44 = vadd.f32 1e-06, %v4652_v9  ;;  %v4653_v14 = vmul.f32 0.015625, %v4501_v24 }
 0x601   :  { %v4492_v7 = vpop.xlane.xlu0 %4491  ;;  %v5032_v32 = vpack.c.bf16 %v4971_v2, %v4970_v26  ;;  %v4840_v34 = vmul.f32 %v8708_v13, %v12636_v47  ;;  %v4907_v49 = vmul.f32 %v4843_v59, %v12214_v18  ;;  %v4976_v2 = vadd.f32 %v12647_v1, %v4906_v42 }
 0x602   :  { %v8710_v46 = vpop.eup %8709  ;;  %8719 = vrsqrt.f32 %v4716_v44  ;;  %v4717_v16 = vadd.f32 1e-06, %v4653_v14  ;;  %v4650_v27 = vmul.f32 0.015625, %v4492_v7 }
 0x603   :  { %v4495_v11 = vpop.xlane.xlu1 %4494  ;;  %7864 = vmatprep.mubr.msk.bf16.mxu0 %vm303_vm0, %v5032_v32  ;;  %v4841_v3 = vmul.f32 %v8710_v46, %v12636_v47  ;;  %v4904_v39 = vmul.f32 %v4840_v34, %v12221_v30  ;;  %v4977_v24 = vadd.f32 %v12647_v1, %v4907_v49 }
 0x604   :  { %8721 = vrsqrt.f32 %v4717_v16  ;;  %v4714_v60 = vadd.f32 1e-06, %v4650_v27  ;;  %v4651_v61 = vmul.f32 0.015625, %v4495_v11  ;;  %7865 = vmatmul.mubr.msk.bf16.gmra.mrb[68].mxu0 %vm303_vm0, %v5033_v37  ;;  %v8712_v28 = vpop.eup %8711 }
 0x605   :  { %v4510_v40 = vpop.xlane.xlu0 %4509  ;;  %v4905_v56 = vmul.f32 %v4841_v3, %v12230_v22  ;;  %v4974_v30 = vadd.f32 %v12647_v1, %v4904_v39  ;;  %v4846_v22 = vmul.f32 %v8712_v28, %v12636_v47  ;;  %v5035_v16 = vpack.c.bf16 %v4977_v24, %v4976_v2 }
 0x606   :  { %v8714_v9 = vpop.eup %8713  ;;  %8723 = vrsqrt.f32 %v4714_v60  ;;  %v4715_v18 = vadd.f32 1e-06, %v4651_v61  ;;  %v4656_v12 = vmul.f32 0.015625, %v4510_v40 }
 0x607   :  { %v4513_v26 = vpop.xlane.xlu1 %4512  ;;  %v4975_v10 = vadd.f32 %v12647_v1, %v4905_v56  ;;  %v4847_v6 = vmul.f32 %v8714_v9, %v12636_v47  ;;  %v4910_v61 = vmul.f32 %v4846_v22, %v12239_v36 }
 0x608   :  { %v8716_v59 = vpop.eup %8715  ;;  %8725 = vrsqrt.f32 %v4715_v18  ;;  %v4720_v13 = vadd.f32 1e-06, %v4656_v12  ;;  %v4657_v44 = vmul.f32 0.015625, %v4513_v26 }
 0x609   :  { %v4504_v14 = vpop.xlane.xlu0 %4503  ;;  %v5034_v7 = vpack.c.bf16 %v4975_v10, %v4974_v30  ;;  %v4844_v32 = vmul.f32 %v8716_v59, %v12636_v47  ;;  %v4911_v27 = vmul.f32 %v4847_v6, %v12246_v41  ;;  %v4980_v2 = vadd.f32 %v12647_v1, %v4910_v61 }
 0x60a   :  { %v8718_v37 = vpop.eup %8717  ;;  %v4721_v34 = vadd.f32 1e-06, %v4657_v44  ;;  %v4654_v46 = vmul.f32 0.015625, %v4504_v14  ;;  %8727 = vrsqrt.f32 %v4720_v13 }
 0x60b   :  { %v4507_v49 = vpop.xlane.xlu1 %4506  ;;  %7868 = vmatprep.mubr.msk.bf16.mxu0 %vm303_vm0, %v5034_v7  ;;  %v4845_v11 = vmul.f32 %v8718_v37, %v12636_v47  ;;  %v4908_v3 = vmul.f32 %v4844_v32, %v12259_v21  ;;  %v4981_v18 = vadd.f32 %v12647_v1, %v4911_v27 }
 0x60c   :  { %v8720_v39 = vpop.eup %8719  ;;  %8729 = vrsqrt.f32 %v4721_v34  ;;  %v4718_v42 = vadd.f32 1e-06, %v4654_v46  ;;  %v4655_v60 = vmul.f32 0.015625, %v4507_v49  ;;  %7869 = vmatmul.mubr.msk.bf16.gmra.mrb[72].mxu0 %vm303_vm0, %v5035_v16 }
 0x60d   :  { %v4246_v28 = vpop.xlane.xlu0 %4245  ;;  %v4909_v40 = vmul.f32 %v4845_v11, %v12272_v54  ;;  %v4978_v21 = vadd.f32 %v12647_v1, %v4908_v3  ;;  %v4850_v26 = vmul.f32 %v8720_v39, %v12636_v47  ;;  %v5037_v32 = vpack.c.bf16 %v4981_v18, %v4980_v2 }
 0x60e   :  { %v8722_v41 = vpop.eup %8721  ;;  %8731 = vrsqrt.f32 %v4718_v42  ;;  %v4719_v56 = vadd.f32 1e-06, %v4655_v60  ;;  %v4312_v9 = vmul.f32 0.015625, %v4246_v28 }
 0x60f   :  { %v4249_v12 = vpop.xlane.xlu1 %4248  ;;  %v4979_v24 = vadd.f32 %v12647_v1, %v4909_v40  ;;  %v4851_v30 = vmul.f32 %v8722_v41, %v12636_v47  ;;  %v4914_v16 = vmul.f32 %v4850_v26, %v12280_v8 }
 0x610   :  { %v8724_v10 = vpop.eup %8723  ;;  %8733 = vrsqrt.f32 %v4719_v56  ;;  %v12699_v36 = vsub.f32 %v12371_v17, %v4312_v9  ;;  %v4313_v54 = vmul.f32 0.015625, %v4249_v12 }
 0x611   :  { %v4516_v6 = vpop.xlane.xlu0 %4515  ;;  %v5036_v59 = vpack.c.bf16 %v4979_v24, %v4978_v21  ;;  %v4848_v13 = vmul.f32 %v8724_v10, %v12636_v47  ;;  %v4915_v44 = vmul.f32 %v4851_v30, %v12290_v29  ;;  %v4984_v56 = vadd.f32 %v12647_v1, %v4914_v16 }
 0x612   :  { %v8726_v22 = vpop.eup %8725  ;;  %v12705_v14 = vsub.f32 %v12381_v58, %v4313_v54  ;;  %v4658_v7 = vmul.f32 0.015625, %v4516_v6  ;;  %v4440_v37 = vmul.f32 %v12699_v36, %v12699_v36 }
 0x613   :  { %v4519_v17 = vpop.xlane.xlu1 %4518  ;;  %7872 = vmatprep.mubr.msk.bf16.mxu0 %vm303_vm0, %v5036_v59  ;;  %v4849_v34 = vmul.f32 %v8726_v22, %v12636_v47  ;;  %v4912_v46 = vmul.f32 %v4848_v13, %v12299_v20  ;;  %v4985_v42 = vadd.f32 %v12647_v1, %v4915_v44 }
 0x614   :  { %v4722_v27 = vadd.f32 1e-06, %v4658_v7  ;;  %v4659_v29 = vmul.f32 0.015625, %v4519_v17  ;;  %7873 = vmatmul.mubr.msk.bf16.gmra.mrb[76].mxu0 %vm303_vm0, %v5037_v32  ;;  %v4628_v58 = vsel %vm303_vm0, %v4440_v37, 0.0  ;;  %v4441_v49 = vmul.f32 %v12705_v14, %v12705_v14  ;;  %v8728_v11 = vpop.eup %8727 }
 0x615   :  { %4629 = vadd.xlane.f32.xlu0 %v4628_v58  ;;  %v4522_v3 = vpop.xlane.xlu0 %4521  ;;  %v4913_v39 = vmul.f32 %v4849_v34, %v12308_v31  ;;  %v4982_v40 = vadd.f32 %v12647_v1, %v4912_v46  ;;  %v4854_v21 = vmul.f32 %v8728_v11, %v12636_v47  ;;  %v5039_v30 = vpack.c.bf16 %v4985_v42, %v4984_v56 }
 0x616   :  { %v8730_v60 = vpop.eup %8729  ;;  %8735 = vrsqrt.f32 %v4722_v27  ;;  %v4723_v20 = vadd.f32 1e-06, %v4659_v29  ;;  %v4660_v8 = vmul.f32 0.015625, %v4522_v3  ;;  %v4631_v61 = vsel %vm303_vm0, %v4441_v49, 0.0 }
 0x617   :  { %4632 = vadd.xlane.f32.xlu1 %v4631_v61  ;;  %v4525_v28 = vpop.xlane.xlu1 %4524  ;;  %v4983_v41 = vadd.f32 %v12647_v1, %v4913_v39  ;;  %v4855_v9 = vmul.f32 %v8730_v60, %v12636_v47  ;;  %v4918_v37 = vmul.f32 %v4854_v21, %v12317_v63 }
 0x618   :  { %v8732_v18 = vpop.eup %8731  ;;  %8737 = vrsqrt.f32 %v4723_v20  ;;  %v4724_v31 = vadd.f32 1e-06, %v4660_v8  ;;  %v4661_v12 = vmul.f32 0.015625, %v4525_v28 }
 0x619   :  { %v4528_v24 = vpop.xlane.xlu0 %4527  ;;  %v5038_v26 = vpack.c.bf16 %v4983_v41, %v4982_v40  ;;  %v4852_v10 = vmul.f32 %v8732_v18, %v12636_v47  ;;  %v4919_v59 = vmul.f32 %v4855_v9, %v12324_v50  ;;  %v4988_v3 = vadd.f32 %v12647_v1, %v4918_v37 }
 0x61a   :  { %v8734_v54 = vpop.eup %8733  ;;  %8739 = vrsqrt.f32 %v4724_v31  ;;  %v4725_v2 = vadd.f32 1e-06, %v4661_v12  ;;  %v4662_v6 = vmul.f32 0.015625, %v4528_v24 }
 0x61b   :  { %v4531_v13 = vpop.xlane.xlu1 %4530  ;;  %7876 = vmatprep.mubr.msk.bf16.mxu0 %vm303_vm0, %v5038_v26  ;;  %v4853_v44 = vmul.f32 %v8734_v54, %v12636_v47  ;;  %v4916_v22 = vmul.f32 %v4852_v10, %v12333_v23  ;;  %v4989_v16 = vadd.f32 %v12647_v1, %v4919_v59 }
 0x61c   :  { %8741 = vrsqrt.f32 %v4725_v2  ;;  %v4726_v7 = vadd.f32 1e-06, %v4662_v6  ;;  %v4663_v32 = vmul.f32 0.015625, %v4531_v13  ;;  %7877 = vmatmul.mubr.msk.bf16.gmra.mrb[80].mxu0 %vm303_vm0, %v5039_v30  ;;  %v8043_v6 = vld [vmem:[%s13757_s9] sm:$0xff]  }
 0x61d   :  { %v4534_v17 = vpop.xlane.xlu0 %4533  ;;  %v4917_v34 = vmul.f32 %v4853_v44, %v12344_v51  ;;  %v4986_v29 = vadd.f32 %v12647_v1, %v4916_v22  ;;  %v5041_v8 = vpack.c.bf16 %v4989_v16, %v4988_v3  ;;  %7924 = vmatprep.subr.bf16.mxu1 %v8043_v6 }
 0x61e   :  { %8743 = vrsqrt.f32 %v4726_v7  ;;  %v4727_v46 = vadd.f32 1e-06, %v4663_v32  ;;  %v4664_v50 = vmul.f32 0.015625, %v4534_v17  ;;  %7925 = vmatpush3.bf16.msra.mxu1 %v8043_v6  ;;  %v14330_v6 = vld [vmem:[#allocation39_spill] sm:$0xff] }
 0x61f   :  { %v4537_v27 = vpop.xlane.xlu1 %4536  ;;  %v4987_v23 = vadd.f32 %v12647_v1, %v4917_v34 }
 0x620   :  { %v8736_v58 = vpop.eup %8735  ;;  %8745 = vrsqrt.f32 %v4727_v46  ;;  %v4728_v49 = vadd.f32 1e-06, %v4664_v50  ;;  %v4665_v11 = vmul.f32 0.015625, %v4537_v27 }
 0x621   :  { %v4540_v63 = vpop.xlane.xlu0 %4539  ;;  %v5040_v39 = vpack.c.bf16 %v4987_v23, %v4986_v29  ;;  %v4856_v51 = vmul.f32 %v8736_v58, %v12636_v47 }
 0x622   :  { %v8738_v42 = vpop.eup %8737  ;;  %8747 = vrsqrt.f32 %v4728_v49  ;;  %v4729_v60 = vadd.f32 1e-06, %v4665_v11  ;;  %v4666_v20 = vmul.f32 0.015625, %v4540_v63 }
 0x623   :  { %v4543_v61 = vpop.xlane.xlu1 %4542  ;;  %7880 = vmatprep.mubr.msk.bf16.mxu0 %vm303_vm0, %v5040_v39  ;;  %v4857_v28 = vmul.f32 %v8738_v42, %v12636_v47  ;;  %v4920_v40 = vmul.f32 %v4856_v51, %v12368_v52 }
 0x624   :  { %v8740_v41 = vpop.eup %8739  ;;  %8749 = vrsqrt.f32 %v4729_v60  ;;  %v4730_v56 = vadd.f32 1e-06, %v4666_v20  ;;  %v4667_v9 = vmul.f32 0.015625, %v4543_v61  ;;  %7881 = vmatmul.mubr.msk.bf16.gmra.mrb[84].mxu0 %vm303_vm0, %v5041_v8 }
 0x625   :  { %v4546_v18 = vpop.xlane.xlu0 %4545  ;;  %v4921_v31 = vmul.f32 %v4857_v28, %v12378_v4  ;;  %v4858_v12 = vmul.f32 %v8740_v41, %v12636_v47  ;;  %v4990_v10 = vadd.f32 %v12647_v1, %v4920_v40 }
 0x626   :  { %v8742_v21 = vpop.eup %8741  ;;  %8751 = vrsqrt.f32 %v4730_v56  ;;  %v4731_v24 = vadd.f32 1e-06, %v4667_v9  ;;  %v4668_v26 = vmul.f32 0.015625, %v4546_v18 }
 0x627   :  { %v4549_v30 = vpop.xlane.xlu1 %4548  ;;  %v4991_v52 = vadd.f32 %v12647_v1, %v4921_v31  ;;  %v4859_v54 = vmul.f32 %v8742_v21, %v12636_v47  ;;  %v4922_v2 = vmul.f32 %v4858_v12, %v12386_v15 }
 0x628   :  { %v8744_v4 = vpop.eup %8743  ;;  %8753 = vrsqrt.f32 %v4731_v24  ;;  %v4732_v59 = vadd.f32 1e-06, %v4668_v26  ;;  %v4669_v13 = vmul.f32 0.015625, %v4549_v30 }
 0x629   :  { %v4552_v44 = vpop.xlane.xlu0 %4551  ;;  %v5042_v22 = vpack.c.bf16 %v4991_v52, %v4990_v10  ;;  %v4923_v7 = vmul.f32 %v4859_v54, %v12396_v55  ;;  %v4860_v32 = vmul.f32 %v8744_v4, %v12636_v47  ;;  %v4992_v46 = vadd.f32 %v12647_v1, %v4922_v2 }
 0x62a   :  { %v8746_v37 = vpop.eup %8745  ;;  %8755 = vrsqrt.f32 %v4732_v59  ;;  %v4733_v17 = vadd.f32 1e-06, %v4669_v13  ;;  %v4670_v34 = vmul.f32 0.015625, %v4552_v44 }
 0x62b   :  { %v4555_v15 = vpop.xlane.xlu1 %4554  ;;  %7884 = vmatprep.mubr.msk.bf16.mxu0 %vm303_vm0, %v5042_v22  ;;  %v4993_v50 = vadd.f32 %v12647_v1, %v4923_v7  ;;  %v4861_v16 = vmul.f32 %v8746_v37, %v12636_v47  ;;  %v4924_v27 = vmul.f32 %v4860_v32, %v12405_v53 }
 0x62c   :  { %v8748_v55 = vpop.eup %8747  ;;  %8757 = vrsqrt.f32 %v4733_v17  ;;  %v4734_v29 = vadd.f32 1e-06, %v4670_v34  ;;  %v4671_v23 = vmul.f32 0.015625, %v4555_v15  ;;  %v14331_v17 = vld [vmem:[#allocation90_spill] sm:$0xff] }
 0x62d   :  { %v4558_v58 = vpop.xlane.xlu0 %4557  ;;  %v5043_v49 = vpack.c.bf16 %v4993_v50, %v4992_v46  ;;  %v4925_v11 = vmul.f32 %v4861_v16, %v12412_v0  ;;  %v4862_v3 = vmul.f32 %v8748_v55, %v12636_v47  ;;  %v4994_v60 = vadd.f32 %v12647_v1, %v4924_v27 }
 0x62e   :  { %v8750_v63 = vpop.eup %8749  ;;  %8759 = vrsqrt.f32 %v4734_v29  ;;  %v4735_v39 = vadd.f32 1e-06, %v4671_v23  ;;  %v4672_v51 = vmul.f32 0.015625, %v4558_v58 }
 0x62f   :  { %v4561_v42 = vpop.xlane.xlu1 %4560  ;;  %7885 = vmatmul.mubr.msk.bf16.gmra.mrb[88].mxu0 %vm303_vm0, %v5043_v49  ;;  %v4995_v53 = vadd.f32 %v12647_v1, %v4925_v11  ;;  %v4863_v20 = vmul.f32 %v8750_v63, %v12636_v47  ;;  %v4926_v8 = vmul.f32 %v4862_v3, %v12418_v48 }
 0x630   :  { %v8752_v61 = vpop.eup %8751  ;;  %8761 = vrsqrt.f32 %v4735_v39  ;;  %v4736_v0 = vadd.f32 1e-06, %v4672_v51  ;;  %v4673_v28 = vmul.f32 0.015625, %v4561_v42  ;;  %v14332_v51 = vld [vmem:[#allocation38_spill] sm:$0xff] }
 0x631   :  { %v4564_v40 = vpop.xlane.xlu0 %4563  ;;  %v5044_v41 = vpack.c.bf16 %v4995_v53, %v4994_v60  ;;  %v4927_v56 = vmul.f32 %v4863_v20, %v12425_v45  ;;  %v4864_v9 = vmul.f32 %v8752_v61, %v12636_v47  ;;  %v4996_v24 = vadd.f32 %v12647_v1, %v4926_v8  ;;  %v8044_v20 = vld [vmem:[%s13757_s9 + $0x8] sm:$0xff]  }
 0x632   :  { %v8754_v18 = vpop.eup %8753  ;;  %8763 = vrsqrt.f32 %v4736_v0  ;;  %v4737_v31 = vadd.f32 1e-06, %v4673_v28  ;;  %v4674_v12 = vmul.f32 0.015625, %v4564_v40  ;;  %7926 = vmatprep.subr.bf16.mxu1 %v8044_v20 }
 0x633   :  { %v4567_v21 = vpop.xlane.xlu1 %4566  ;;  %7888 = vmatprep.mubr.msk.bf16.mxu0 %vm303_vm0, %v5044_v41  ;;  %v4997_v48 = vadd.f32 %v12647_v1, %v4927_v56  ;;  %v4865_v26 = vmul.f32 %v8754_v18, %v12636_v47  ;;  %v4928_v30 = vmul.f32 %v4864_v9, %v12435_v5  ;;  %7927 = vmatpush3.bf16.msra.mxu1 %v8044_v20 }
 0x634   :  { %v8756_v10 = vpop.eup %8755  ;;  %8765 = vrsqrt.f32 %v4737_v31  ;;  %v4738_v45 = vadd.f32 1e-06, %v4674_v12  ;;  %v4675_v52 = vmul.f32 0.015625, %v4567_v21  ;;  %v14333_v21 = vld [vmem:[#allocation55_spill] sm:$0xff] }
 0x635   :  { %v4570_v54 = vpop.xlane.xlu0 %4569  ;;  %v5045_v2 = vpack.c.bf16 %v4997_v48, %v4996_v24  ;;  %v4929_v4 = vmul.f32 %v4865_v26, %v14330_v6  ;;  %v4866_v59 = vmul.f32 %v8756_v10, %v12636_v47  ;;  %v4998_v32 = vadd.f32 %v12647_v1, %v4928_v30 }
 0x636   :  { %v8758_v13 = vpop.eup %8757  ;;  %8767 = vrsqrt.f32 %v4738_v45  ;;  %v4739_v44 = vadd.f32 1e-06, %v4675_v52  ;;  %v4676_v22 = vmul.f32 0.015625, %v4570_v54  ;;  %v14334_v45 = vld [vmem:[#allocation49_spill] sm:$0xff] }
 0x637   :  { %v4573_v7 = vpop.xlane.xlu1 %4572  ;;  %7889 = vmatmul.mubr.msk.bf16.gmra.mrb[92].mxu0 %vm303_vm0, %v5045_v2  ;;  %v4999_v5 = vadd.f32 %v12647_v1, %v4929_v4  ;;  %v4867_v37 = vmul.f32 %v8758_v13, %v12636_v47  ;;  %v4930_v34 = vmul.f32 %v4866_v59, %v14331_v17 }
 0x638   :  { %v8760_v15 = vpop.eup %8759  ;;  %8769 = vrsqrt.f32 %v4739_v44  ;;  %v4740_v46 = vadd.f32 1e-06, %v4676_v22  ;;  %v4677_v50 = vmul.f32 0.015625, %v4573_v7 }
 0x639   :  { %v4576_v16 = vpop.xlane.xlu0 %4575  ;;  %v5046_v27 = vpack.c.bf16 %v4999_v5, %v4998_v32  ;;  %v4931_v55 = vmul.f32 %v4867_v37, %v12457_v43  ;;  %v4868_v29 = vmul.f32 %v8760_v15, %v12636_v47  ;;  %v5000_v3 = vadd.f32 %v12647_v1, %v4930_v34  ;;  %v14335_v15 = vld [vmem:[#allocation36_spill] sm:$0xff] }
 0x63a   :  { %v8762_v23 = vpop.eup %8761  ;;  %8771 = vrsqrt.f32 %v4740_v46  ;;  %v4741_v58 = vadd.f32 1e-06, %v4677_v50  ;;  %v4678_v49 = vmul.f32 0.015625, %v4576_v16 }
 0x63b   :  { %v4579_v11 = vpop.xlane.xlu1 %4578  ;;  %7892 = vmatprep.mubr.msk.bf16.mxu0 %vm303_vm0, %v5046_v27  ;;  %v5001_v63 = vadd.f32 %v12647_v1, %v4931_v55  ;;  %v4869_v39 = vmul.f32 %v8762_v23, %v12636_v47  ;;  %v4932_v42 = vmul.f32 %v4868_v29, %v14332_v51 }
 0x63c   :  { %v8764_v60 = vpop.eup %8763  ;;  %8773 = vrsqrt.f32 %v4741_v58  ;;  %v4742_v43 = vadd.f32 1e-06, %v4678_v49  ;;  %v4679_v53 = vmul.f32 0.015625, %v4579_v11  ;;  %v14336_v49 = vld [vmem:[#allocation41_spill] sm:$0xff] }
 0x63d   :  { %v4582_v8 = vpop.xlane.xlu0 %4581  ;;  %v5047_v61 = vpack.c.bf16 %v5001_v63, %v5000_v3  ;;  %v4933_v0 = vmul.f32 %v4869_v39, %v12472_v25  ;;  %v4870_v28 = vmul.f32 %v8764_v60, %v12636_v47  ;;  %v5002_v9 = vadd.f32 %v12647_v1, %v4932_v42  ;;  %v14337_v60 = vld [vmem:[#allocation72_spill] sm:$0xff] }
 0x63e   :  { %v8766_v40 = vpop.eup %8765  ;;  %8775 = vrsqrt.f32 %v4742_v43  ;;  %v4743_v41 = vadd.f32 1e-06, %v4679_v53  ;;  %v4680_v56 = vmul.f32 0.015625, %v4582_v8 }
 0x63f   :  { %v4585_v18 = vpop.xlane.xlu1 %4584  ;;  %7893 = vmatmul.mubr.msk.bf16.gmra.mrb[96].mxu0 %vm303_vm0, %v5047_v61  ;;  %v5003_v31 = vadd.f32 %v12647_v1, %v4933_v0  ;;  %v4871_v12 = vmul.f32 %v8766_v40, %v12636_v47  ;;  %v4934_v24 = vmul.f32 %v4870_v28, %v14333_v21 }
 0x640   :  { %v8768_v25 = vpop.eup %8767  ;;  %8777 = vrsqrt.f32 %v4743_v41  ;;  %v4744_v48 = vadd.f32 1e-06, %v4680_v56  ;;  %v4681_v26 = vmul.f32 0.015625, %v4585_v18 }
 0x641   :  { %v4588_v30 = vpop.xlane.xlu0 %4587  ;;  %v5048_v10 = vpack.c.bf16 %v5003_v31, %v5002_v9  ;;  %v4935_v52 = vmul.f32 %v4871_v12, %v14334_v45  ;;  %v4872_v54 = vmul.f32 %v8768_v25, %v12636_v47  ;;  %v5004_v13 = vadd.f32 %v12647_v1, %v4934_v24  ;;  %v14338_v24 = vld [vmem:[#allocation25_spill] sm:$0xff] }
 0x642   :  { %v8770_v2 = vpop.eup %8769  ;;  %8779 = vrsqrt.f32 %v4744_v48  ;;  %v4745_v6 = vadd.f32 1e-06, %v4681_v26  ;;  %v4682_v4 = vmul.f32 0.015625, %v4588_v30 }
 0x643   :  { %v4591_v59 = vpop.xlane.xlu1 %4590  ;;  %7896 = vmatprep.mubr.msk.bf16.mxu0 %vm303_vm0, %v5048_v10  ;;  %v5005_v44 = vadd.f32 %v12647_v1, %v4935_v52  ;;  %v4873_v22 = vmul.f32 %v8770_v2, %v12636_v47  ;;  %v4936_v7 = vmul.f32 %v4872_v54, %v12491_v35  ;;  %v14339_v2 = vld [vmem:[#allocation53_spill] sm:$0xff] }
 0x644   :  { %v8772_v32 = vpop.eup %8771  ;;  %8781 = vrsqrt.f32 %v4745_v6  ;;  %v4746_v5 = vadd.f32 1e-06, %v4682_v4  ;;  %v4683_v37 = vmul.f32 0.015625, %v4591_v59 }
 0x645   :  { %v4594_v17 = vpop.xlane.xlu0 %4593  ;;  %v5049_v34 = vpack.c.bf16 %v5005_v44, %v5004_v13  ;;  %v4937_v46 = vmul.f32 %v4873_v22, %v14335_v15  ;;  %v4874_v50 = vmul.f32 %v8772_v32, %v12636_v47  ;;  %v5006_v23 = vadd.f32 %v12647_v1, %v4936_v7 }
 0x646   :  { %v8774_v16 = vpop.eup %8773  ;;  %8783 = vrsqrt.f32 %v4746_v5  ;;  %v4747_v27 = vadd.f32 1e-06, %v4683_v37  ;;  %v4684_v55 = vmul.f32 0.015625, %v4594_v17 }
 0x647   :  { %v4597_v29 = vpop.xlane.xlu1 %4596  ;;  %7897 = vmatmul.mubr.msk.bf16.gmra.mrb[100].mxu0 %vm303_vm0, %v5049_v34  ;;  %v5007_v35 = vadd.f32 %v12647_v1, %v4937_v46  ;;  %v4875_v58 = vmul.f32 %v8774_v16, %v12636_v47  ;;  %v4938_v11 = vmul.f32 %v4874_v50, %v14336_v49  ;;  %v14340_v16 = vld [vmem:[#allocation26_spill] sm:$0xff] }
 0x648   :  { %v8776_v3 = vpop.eup %8775  ;;  %8785 = vrsqrt.f32 %v4747_v27  ;;  %v4748_v63 = vadd.f32 1e-06, %v4684_v55  ;;  %v4685_v39 = vmul.f32 0.015625, %v4597_v29 }
 0x649   :  { %v4600_v51 = vpop.xlane.xlu0 %4599  ;;  %v5050_v42 = vpack.c.bf16 %v5007_v35, %v5006_v23  ;;  %v4939_v43 = vmul.f32 %v4875_v58, %v14337_v60  ;;  %v4876_v53 = vmul.f32 %v8776_v3, %v12636_v47  ;;  %v5008_v28 = vadd.f32 %v12647_v1, %v4938_v11  ;;  %v14341_v58 = vld [vmem:[#allocation7_spill] sm:$0xff] }
 0x64a   :  { %v8778_v20 = vpop.eup %8777  ;;  %8787 = vrsqrt.f32 %v4748_v63  ;;  %v4749_v8 = vadd.f32 1e-06, %v4685_v39  ;;  %v4686_v61 = vmul.f32 0.015625, %v4600_v51 }
 0x64b   :  { %v4603_v0 = vpop.xlane.xlu1 %4602  ;;  %7900 = vmatprep.mubr.msk.bf16.mxu0 %vm303_vm0, %v5050_v42  ;;  %v5009_v40 = vadd.f32 %v12647_v1, %v4939_v43  ;;  %v4877_v41 = vmul.f32 %v8778_v20, %v12636_v47  ;;  %v4940_v56 = vmul.f32 %v4876_v53, %v12517_v57 }
 0x64c   :  { %v8780_v9 = vpop.eup %8779  ;;  %8789 = vrsqrt.f32 %v4749_v8  ;;  %v4750_v18 = vadd.f32 1e-06, %v4686_v61  ;;  %v4687_v31 = vmul.f32 0.015625, %v4603_v0 }
 0x64d   :  { %v4606_v12 = vpop.xlane.xlu0 %4605  ;;  %v5051_v21 = vpack.c.bf16 %v5009_v40, %v5008_v28  ;;  %v4941_v25 = vmul.f32 %v4877_v41, %v14338_v24  ;;  %v4878_v48 = vmul.f32 %v8780_v9, %v12636_v47  ;;  %v5010_v52 = vadd.f32 %v12647_v1, %v4940_v56  ;;  %v14342_v28 = vld [vmem:[#allocation6_spill] sm:$0xff]  ;;  %v8045_v56 = vld [vmem:[%s13757_s9 + $0x10] sm:$0xff]  }
 0x64e   :  { %v8782_v26 = vpop.eup %8781  ;;  %8791 = vrsqrt.f32 %v4750_v18  ;;  %v4751_v30 = vadd.f32 1e-06, %v4687_v31  ;;  %v4688_v10 = vmul.f32 0.015625, %v4606_v12  ;;  %7928 = vmatprep.subr.bf16.mxu1 %v8045_v56 }
 0x64f   :  { %v4609_v45 = vpop.xlane.xlu1 %4608  ;;  %7901 = vmatmul.mubr.msk.bf16.gmra.mrb[104].mxu0 %vm303_vm0, %v5051_v21  ;;  %v5011_v57 = vadd.f32 %v12647_v1, %v4941_v25  ;;  %v4879_v54 = vmul.f32 %v8782_v26, %v12636_v47  ;;  %v4942_v6 = vmul.f32 %v4878_v48, %v14339_v2  ;;  %7929 = vmatpush3.bf16.msra.mxu1 %v8045_v56 }
 0x650   :  { %v8784_v4 = vpop.eup %8783  ;;  %8793 = vrsqrt.f32 %v4751_v30  ;;  %v4752_v59 = vadd.f32 1e-06, %v4688_v10  ;;  %v4689_v13 = vmul.f32 0.015625, %v4609_v45  ;;  %v8046_v30 = vld [vmem:[%s13757_s9 + $0x18] sm:$0xff]  }
 0x651   :  { %v4612_v44 = vpop.xlane.xlu0 %4611  ;;  %v5052_v22 = vpack.c.bf16 %v5011_v57, %v5010_v52  ;;  %v4943_v7 = vmul.f32 %v4879_v54, %v12536_v33  ;;  %v4880_v32 = vmul.f32 %v8784_v4, %v12636_v47  ;;  %v5012_v15 = vadd.f32 %v12647_v1, %v4942_v6  ;;  %v14343_v57 = vld [vmem:[#allocation60_spill] sm:$0xff]  ;;  %7930 = vmatprep.subr.bf16.mxu1 %v8046_v30  ;;  %v14344_v6 = vld [vmem:[#allocation5_spill] sm:$0xff] }
 0x652   :  { %v8786_v5 = vpop.eup %8785  ;;  %8795 = vrsqrt.f32 %v4752_v59  ;;  %v4753_v37 = vadd.f32 1e-06, %v4689_v13  ;;  %v4690_v17 = vmul.f32 0.015625, %v4612_v44  ;;  %v9079_v59 = vld [vmem:[%s13755_s7 + $0x1] ss:$0 sm:$0xff] }
 0x653   :  { %v4615_v34 = vpop.xlane.xlu1 %4614  ;;  %7904 = vmatprep.mubr.msk.bf16.mxu0 %vm303_vm0, %v5052_v22  ;;  %v5013_v46 = vadd.f32 %v12647_v1, %v4943_v7  ;;  %v4881_v50 = vmul.f32 %v8786_v5, %v12636_v47  ;;  %v4944_v27 = vmul.f32 %v4880_v32, %v14340_v16  ;;  %7931 = vmatpush3.bf16.msra.mxu1 %v8046_v30  ;;  %v14345_v32 = vld [vmem:[#allocation13_spill] sm:$0xff] }
 0x654   :  { %v8788_v55 = vpop.eup %8787  ;;  %8797 = vrsqrt.f32 %v4753_v37  ;;  %v4754_v33 = vadd.f32 1e-06, %v4690_v17  ;;  %v4691_v29 = vmul.f32 0.015625, %v4615_v34  ;;  %v14346_v34 = vld [vmem:[#allocation9_spill] sm:$0xff] }
 0x655   :  { %v4618_v23 = vpop.xlane.xlu0 %4617  ;;  %v5053_v35 = vpack.c.bf16 %v5013_v46, %v5012_v15  ;;  %v4945_v49 = vmul.f32 %v4881_v50, %v14341_v58  ;;  %v4882_v11 = vmul.f32 %v8788_v55, %v12636_v47  ;;  %v5014_v42 = vadd.f32 %v12647_v1, %v4944_v27 }
 0x656   :  { %v8790_v3 = vpop.eup %8789  ;;  %8799 = vrsqrt.f32 %v4754_v33  ;;  %v4755_v63 = vadd.f32 1e-06, %v4691_v29  ;;  %v4692_v39 = vmul.f32 0.015625, %v4618_v23  ;;  %v14347_v33 = vld [vmem:[#allocation76_spill] sm:$0xff] }
 0x657   :  { %v4621_v51 = vpop.xlane.xlu1 %4620  ;;  %7905 = vmatmul.mubr.msk.bf16.gmra.mrb[108].mxu0 %vm303_vm0, %v5053_v35  ;;  %v5015_v60 = vadd.f32 %v12647_v1, %v4945_v49  ;;  %v4883_v43 = vmul.f32 %v8790_v3, %v12636_v47  ;;  %v4946_v53 = vmul.f32 %v4882_v11, %v12554_v38  ;;  %v14348_v35 = vld [vmem:[#allocation11_spill] sm:$0xff] }
 0x658   :  { %v8792_v20 = vpop.eup %8791  ;;  %8801 = vrsqrt.f32 %v4755_v63  ;;  %v4756_v8 = vadd.f32 1e-06, %v4692_v39  ;;  %v4693_v61 = vmul.f32 0.015625, %v4621_v51 }
 0x659   :  { %v5054_v0 = vpack.c.bf16 %v5015_v60, %v5014_v42  ;;  %v4947_v40 = vmul.f32 %v4883_v43, %v14342_v28  ;;  %v4884_v41 = vmul.f32 %v8792_v20, %v12636_v47  ;;  %v5016_v31 = vadd.f32 %v12647_v1, %v4946_v53 }
 0x65a   :  { %v8794_v9 = vpop.eup %8793  ;;  %8803 = vrsqrt.f32 %v4756_v8  ;;  %v4757_v18 = vadd.f32 1e-06, %v4693_v61 }
 0x65b   :  { %7908 = vmatprep.mubr.msk.bf16.mxu0 %vm303_vm0, %v5054_v0  ;;  %v5017_v38 = vadd.f32 %v12647_v1, %v4947_v40  ;;  %v4885_v12 = vmul.f32 %v8794_v9, %v12636_v47  ;;  %v4948_v21 = vmul.f32 %v4884_v41, %v12566_v19  ;;  %v14349_v0 = vld [vmem:[#allocation81_spill] sm:$0xff]  ;;  %v14350_v40 = vld [vmem:[#allocation91_spill] sm:$0xff] }
 0x65c   :  { %v8796_v24 = vpop.eup %8795  ;;  %8805 = vrsqrt.f32 %v4757_v18 }
 0x65d   :  { %v5055_v25 = vpack.c.bf16 %v5017_v38, %v5016_v31  ;;  %v4949_v48 = vmul.f32 %v4885_v12, %v12572_v62  ;;  %v4886_v26 = vmul.f32 %v8796_v24, %v12636_v47  ;;  %v5018_v45 = vadd.f32 %v12647_v1, %v4948_v21 }
 0x65e   :  { %v8798_v10 = vpop.eup %8797 }
 0x65f   :  { %7909 = vmatmul.mubr.msk.bf16.gmra.mrb[112].mxu0 %vm303_vm0, %v5055_v25  ;;  %v5019_v19 = vadd.f32 %v12647_v1, %v4949_v48  ;;  %v4887_v52 = vmul.f32 %v8798_v10, %v12636_v47  ;;  %v4950_v54 = vmul.f32 %v4886_v26, %v14343_v57 }
 0x660   :  { %v8800_v2 = vpop.eup %8799 }
 0x661   :  { %v5056_v62 = vpack.c.bf16 %v5019_v19, %v5018_v45  ;;  %v4951_v4 = vmul.f32 %v4887_v52, %v14344_v6  ;;  %v4888_v13 = vmul.f32 %v9079_v59, %v8800_v2  ;;  %v5020_v22 = vadd.f32 %v12647_v1, %v4950_v54  ;;  %v12888_v2 = vld [vmem:[%s13754_s6 + $0x1] ss:$0 sm:$0xff] }
 0x662   :  { %v8802_v44 = vpop.eup %8801 }
 0x663   :  { %7912 = vmatprep.mubr.msk.bf16.mxu0 %vm303_vm0, %v5056_v62  ;;  %v5021_v47 = vadd.f32 %v12647_v1, %v4951_v4  ;;  %v4889_v7 = vmul.f32 %v9079_v59, %v8802_v44  ;;  %v4952_v5 = vmul.f32 %v4888_v13, %v14345_v32 }
 0x664   :  { %v8804_v37 = vpop.eup %8803 }
 0x665   :  { %v5057_v17 = vpack.c.bf16 %v5021_v47, %v5020_v22  ;;  %v4953_v15 = vmul.f32 %v4889_v7, %v14346_v34  ;;  %v4890_v46 = vmul.f32 %v9079_v59, %v8804_v37  ;;  %v5022_v16 = vadd.f32 %v12647_v1, %v4952_v5  ;;  %v14352_v7 = vld [vmem:[#allocation31_spill] sm:$0xff]  ;;  %v14353_v34 = vld [vmem:[#allocation30_spill] sm:$0xff] }
 0x666   :  { %v8806_v50 = vpop.eup %8805  ;;  %v5488_v32 = vmul.f32 0.1, %v14352_v7 }
 0x667   :  { %7913 = vmatmul.mubr.msk.bf16.gmra.mrb[116].mxu0 %vm303_vm0, %v5057_v17  ;;  %v5023_v27 = vadd.f32 %v12647_v1, %v4953_v15  ;;  %v4891_v55 = vmul.f32 %v9079_v59, %v8806_v50  ;;  %v4954_v29 = vmul.f32 %v4890_v46, %v14347_v33  ;;  %v5491_v15 = vmul.f32 0.1, %v14353_v34 }
 0x669   :  { %v5058_v23 = vpack.c.bf16 %v5023_v27, %v5022_v16  ;;  %v4955_v58 = vmul.f32 %v4891_v55, %v14348_v35  ;;  %v5024_v49 = vadd.f32 %v12647_v1, %v4954_v29  ;;  %v14354_v16 = vld [vmem:[#allocation32_spill] sm:$0xff] }
 0x66a   :  { %v5489_v27 = vmul.f32 0.1, %v14354_v16 }
 0x66b   :  { %7916 = vmatprep.mubr.msk.bf16.mxu0 %vm303_vm0, %v5058_v23  ;;  %v5025_v11 = vadd.f32 %v12647_v1, %v4955_v58  ;;  %v9080_v1 = vld [vmem:[%s13756_s8 + $0x1] ss:$0 sm:$0xff] }
 0x66d   :  { %v5059_v3 = vpack.c.bf16 %v5025_v11, %v5024_v49 }
 0x66e   :  { %v4624_v63 = vpop.xlane.xlu0 %4623 }
 0x66f   :  { %v4694_v39 = vmul.f32 0.015625, %v4624_v63  ;;  %7917 = vmatmul.mubr.msk.bf16.gmra.mrb[120].mxu0 %vm303_vm0, %v5059_v3 }
 0x670   :  { %v4627_v51 = vpop.xlane.xlu1 %4626 }
 0x671   :  { %v4758_v42 = vadd.f32 1e-06, %v4694_v39  ;;  %v4695_v60 = vmul.f32 0.015625, %v4627_v51 }
 0x673   :  { %8807 = vrsqrt.f32 %v4758_v42  ;;  %v4759_v43 = vadd.f32 1e-06, %v4695_v60 }
 0x675   :  { %8809 = vrsqrt.f32 %v4759_v43 }
 0x67d   :  { %v8808_v53 = vpop.eup %8807 }
 0x67e   :  { %v4892_v20 = vmul.f32 %v9079_v59, %v8808_v53  ;;  %v14355_v53 = vld [vmem:[#allocation33_spill] sm:$0xff] }
 0x67f   :  { %v8810_v8 = vpop.eup %8809 }
 0x680   :  { %v4893_v61 = vmul.f32 %v9079_v59, %v8810_v8  ;;  %v4956_v28 = vmul.f32 %v4892_v20, %v14349_v0  ;;  %v5494_v20 = vmul.f32 0.1, %v14355_v53  ;;  %v14356_v8 = vld [vmem:[#allocation34_spill] sm:$0xff] }
 0x682   :  { %v4957_v41 = vmul.f32 %v4893_v61, %v14350_v40  ;;  %v5026_v56 = vadd.f32 %v9080_v1, %v4956_v28  ;;  %v5495_v61 = vmul.f32 0.1, %v14356_v8  ;;  %v14357_v28 = vld [vmem:[#allocation35_spill] sm:$0xff] }
 0x683   :  { %v5492_v40 = vmul.f32 0.1, %v14357_v28 }
 0x684   :  { %v5027_v9 = vadd.f32 %v9080_v1, %v4957_v41  ;;  %v14358_v41 = vld [vmem:[#allocation37_spill] sm:$0xff] }
 0x686   :  { %v5060_v18 = vpack.c.bf16 %v5027_v9, %v5026_v56 }
 0x688   :  { %7920 = vmatprep.mubr.msk.bf16.mxu0 %vm303_vm0, %v5060_v18 }
 0x6a2   :  { %v4630_v31 = vpop.xlane.xlu0 %4629 }
 0x6a3   :  { %v4696_v38 = vmul.f32 0.015625, %v4630_v31 }
 0x6a4   :  { %v4633_v12 = vpop.xlane.xlu1 %4632 }
 0x6a5   :  { %v4760_v21 = vadd.f32 1e-06, %v4696_v38  ;;  %v4697_v24 = vmul.f32 0.015625, %v4633_v12 }
 0x6a7   :  { %8811 = vrsqrt.f32 %v4760_v21  ;;  %v4761_v25 = vadd.f32 1e-06, %v4697_v24 }
 0x6a9   :  { %8813 = vrsqrt.f32 %v4761_v25 }
 0x6b1   :  { %v8812_v48 = vpop.eup %8811 }
 0x6b2   :  { %v4894_v26 = vmul.f32 %v9079_v59, %v8812_v48 }
 0x6b3   :  { %v8814_v30 = vpop.eup %8813 }
 0x6b4   :  { %v4895_v10 = vmul.f32 %v9079_v59, %v8814_v30  ;;  %v4958_v45 = vmul.f32 %v4894_v26, %v12699_v36  ;;  %v14351_v36 = vld [vmem:[#allocation29_spill] sm:$0xff] }
 0x6b5   :  { %v5490_v44 = vmul.f32 0.1, %v14351_v36 }
 0x6b6   :  { %v4959_v19 = vmul.f32 %v4895_v10, %v12705_v14  ;;  %v5028_v52 = vadd.f32 %v9080_v1, %v4958_v45 }
 0x6b8   :  { %v5029_v57 = vadd.f32 %v9080_v1, %v4959_v19  ;;  %v5493_v1 = vmul.f32 0.1, %v14358_v41 }
 0x6ba   :  { %v5061_v54 = vpack.c.bf16 %v5029_v57, %v5028_v52 }
 0x6bc   :  { %7921 = vmatmul.mubr.msk.bf16.gmra.mrb[124].mxu0 %vm303_vm0, %v5061_v54  ;;  %v14359_v54 = vld [vmem:[#allocation40_spill] sm:$0xff] }
 0x6cf   :  { %v7862_v62 = vpop.f32.mrb[64].mxu0 }
 0x6d0   :  { %v5242_v6 = vadd.f32 %v7862_v62, %v12888_v2  ;;  %v5233_v4 = vpop.f32.mrb[65].mxu0  ;;  %v5498_v62 = vmul.f32 0.1, %v14359_v54 }
 0x6d1   :  { %v5234_v59 = vadd.f32 %v12888_v2, %v5233_v4  ;;  %v7863_v13 = vpop.f32.mrb[66].mxu0 }
 0x6d2   :  { %v5554_v14 = vmul.f32 0.9, %v5242_v6  ;;  %v5245_v22 = vadd.f32 %v7863_v13, %v12888_v2  ;;  %v5236_v47 = vpop.f32.mrb[67].mxu0  ;;  %v14360_v6 = vld [vmem:[#allocation42_spill] sm:$0xff]  ;;  %v14361_v13 = vld [vmem:[#allocation43_spill] sm:$0xff] }
 0x6d3   :  { %v5552_v5 = vmul.f32 0.9, %v5234_v59  ;;  %v5237_v37 = vadd.f32 %v12888_v2, %v5236_v47  ;;  %v5499_v4 = vmul.f32 0.1, %v14360_v6  ;;  %v5496_v36 = vmul.f32 0.1, %v14361_v13 }
 0x6d4   :  { %v5618_v17 = vadd.f32 %v5554_v14, %v5490_v44  ;;  %v5555_v46 = vmul.f32 0.9, %v5245_v22  ;;  %v14362_v44 = vld [vmem:[#allocation46_spill] sm:$0xff] }
 0x6d5   :  { %v5616_v50 = vadd.f32 %v5552_v5, %v5488_v32  ;;  %v5553_v55 = vmul.f32 0.9, %v5237_v37  ;;  %v5497_v14 = vmul.f32 0.1, %v14362_v44 }
 0x6d6   :  { %v5619_v33 = vadd.f32 %v5555_v46, %v5491_v15 }
 0x6d7   :  { %v5617_v29 = vadd.f32 %v5553_v55, %v5489_v27  ;;  %v7866_v23 = vpop.f32.mrb[68].mxu0 }
 0x6d8   :  { %v5681_v35 = vpack.c.bf16 %v5619_v33, %v5618_v17  ;;  %v5258_v58 = vadd.f32 %v7866_v23, %v12888_v2  ;;  %v5249_v49 = vpop.f32.mrb[69].mxu0 }
 0x6d9   :  { %v5680_v11 = vpack.c.bf16 %v5617_v29, %v5616_v50  ;;  %v5250_v3 = vadd.f32 %v12888_v2, %v5249_v49  ;;  %v7867_v63 = vpop.f32.mrb[70].mxu0  ;;  %v14364_v49 = vld [vmem:[#allocation48_spill] sm:$0xff] }
 0x6da   :  { %v5558_v39 = vmul.f32 0.9, %v5258_v58  ;;  %v5261_v51 = vadd.f32 %v7867_v63, %v12888_v2  ;;  %v5252_v42 = vpop.f32.mrb[71].mxu0  ;;  %v14365_v63 = vld [vmem:[#allocation50_spill] sm:$0xff] }
 0x6db   :  { %v5556_v60 = vmul.f32 0.9, %v5250_v3  ;;  %v5253_v43 = vadd.f32 %v12888_v2, %v5252_v42  ;;  %7932 = vmatprep.mubr.msk.bf16.mxu1 %vm303_vm0, %v5680_v11  ;;  %v5503_v11 = vmul.f32 0.1, %v14364_v49 }
 0x6dc   :  { %v5559_v0 = vmul.f32 0.9, %v5261_v51  ;;  %7933 = vmatmul.mubr.msk.bf16.vlgmr.msra.gmra.mrb[64].mxu1 %vm303_vm0, %v5681_v35  ;;  %v5622_v9 = vadd.f32 %v5558_v39, %v5494_v20  ;;  %v14363_v35 = vld [vmem:[#allocation47_spill] sm:$0xff]  ;;  %v5500_v39 = vmul.f32 0.1, %v14365_v63 }
 0x6dd   :  { %v5557_v56 = vmul.f32 0.9, %v5253_v43  ;;  %v5620_v31 = vadd.f32 %v5556_v60, %v5492_v40  ;;  %v5502_v58 = vmul.f32 0.1, %v14363_v35  ;;  %v14366_v51 = vld [vmem:[#allocation51_spill] sm:$0xff] }
 0x6de   :  { %v5623_v18 = vadd.f32 %v5559_v0, %v5495_v61  ;;  %v5501_v42 = vmul.f32 0.1, %v14366_v51 }
 0x6df   :  { %v5621_v38 = vadd.f32 %v5557_v56, %v5493_v1  ;;  %v7870_v12 = vpop.f32.mrb[72].mxu0 }
 0x6e0   :  { %v5683_v21 = vpack.c.bf16 %v5623_v18, %v5622_v9  ;;  %v5274_v24 = vadd.f32 %v7870_v12, %v12888_v2  ;;  %v5265_v25 = vpop.f32.mrb[73].mxu0 }
 0x6e1   :  { %v5682_v48 = vpack.c.bf16 %v5621_v38, %v5620_v31  ;;  %v5266_v26 = vadd.f32 %v12888_v2, %v5265_v25  ;;  %v7871_v30 = vpop.f32.mrb[74].mxu0  ;;  %v14368_v25 = vld [vmem:[#allocation54_spill] sm:$0xff] }
 0x6e2   :  { %v5562_v10 = vmul.f32 0.9, %v5274_v24  ;;  %v5277_v45 = vadd.f32 %v7871_v30, %v12888_v2  ;;  %v5268_v19 = vpop.f32.mrb[75].mxu0  ;;  %v14369_v30 = vld [vmem:[#allocation56_spill] sm:$0xff] }
 0x6e3   :  { %v5560_v52 = vmul.f32 0.9, %v5266_v26  ;;  %v5269_v57 = vadd.f32 %v12888_v2, %v5268_v19  ;;  %7936 = vmatprep.mubr.msk.bf16.mxu1 %vm303_vm0, %v5682_v48  ;;  %v5507_v48 = vmul.f32 0.1, %v14368_v25 }
 0x6e4   :  { %v5563_v59 = vmul.f32 0.9, %v5277_v45  ;;  %7937 = vmatmul.mubr.msk.bf16.gmra.mrb[68].mxu1 %vm303_vm0, %v5683_v21  ;;  %v5626_v47 = vadd.f32 %v5562_v10, %v5498_v62  ;;  %v14367_v21 = vld [vmem:[#allocation52_spill] sm:$0xff]  ;;  %v5504_v10 = vmul.f32 0.1, %v14369_v30  ;;  %v14370_v45 = vld [vmem:[#allocation57_spill] sm:$0xff] }
 0x6e5   :  { %v5561_v22 = vmul.f32 0.9, %v5269_v57  ;;  %v5624_v32 = vadd.f32 %v5560_v52, %v5496_v36  ;;  %v5506_v24 = vmul.f32 0.1, %v14367_v21  ;;  %v5505_v19 = vmul.f32 0.1, %v14370_v45 }
 0x6e6   :  { %v5627_v7 = vadd.f32 %v5563_v59, %v5499_v4 }
 0x6e7   :  { %v5625_v5 = vadd.f32 %v5561_v22, %v5497_v14  ;;  %v7874_v37 = vpop.f32.mrb[76].mxu0 }
 0x6e8   :  { %v5685_v17 = vpack.c.bf16 %v5627_v7, %v5626_v47  ;;  %v5290_v34 = vadd.f32 %v7874_v37, %v12888_v2  ;;  %v5281_v15 = vpop.f32.mrb[77].mxu0 }
 0x6e9   :  { %v5684_v46 = vpack.c.bf16 %v5625_v5, %v5624_v32  ;;  %v5282_v50 = vadd.f32 %v12888_v2, %v5281_v15  ;;  %v7875_v16 = vpop.f32.mrb[78].mxu0  ;;  %v14372_v15 = vld [vmem:[#allocation59_spill] sm:$0xff] }
 0x6ea   :  { %v5566_v27 = vmul.f32 0.9, %v5290_v34  ;;  %v5293_v55 = vadd.f32 %v7875_v16, %v12888_v2  ;;  %v5284_v33 = vpop.f32.mrb[79].mxu0  ;;  %v14373_v16 = vld [vmem:[#allocation61_spill] sm:$0xff] }
 0x6eb   :  { %v5564_v29 = vmul.f32 0.9, %v5282_v50  ;;  %v5285_v23 = vadd.f32 %v12888_v2, %v5284_v33  ;;  %7940 = vmatprep.mubr.msk.bf16.mxu1 %vm303_vm0, %v5684_v46  ;;  %v5511_v46 = vmul.f32 0.1, %v14372_v15 }
 0x6ec   :  { %v5567_v3 = vmul.f32 0.9, %v5293_v55  ;;  %7941 = vmatmul.mubr.msk.bf16.gmra.mrb[72].mxu1 %vm303_vm0, %v5685_v17  ;;  %v5630_v43 = vadd.f32 %v5566_v27, %v5502_v58  ;;  %v14371_v17 = vld [vmem:[#allocation58_spill] sm:$0xff]  ;;  %v5508_v27 = vmul.f32 0.1, %v14373_v16 }
 0x6ed   :  { %v5565_v60 = vmul.f32 0.9, %v5285_v23  ;;  %v5628_v20 = vadd.f32 %v5564_v29, %v5500_v39  ;;  %v5510_v34 = vmul.f32 0.1, %v14371_v17  ;;  %v14374_v55 = vld [vmem:[#allocation62_spill] sm:$0xff] }
 0x6ee   :  { %v5631_v53 = vadd.f32 %v5567_v3, %v5503_v11  ;;  %v5509_v33 = vmul.f32 0.1, %v14374_v55 }
 0x6ef   :  { %v5629_v8 = vadd.f32 %v5565_v60, %v5501_v42  ;;  %v7878_v61 = vpop.f32.mrb[80].mxu0 }
 0x6f0   :  { %v5687_v0 = vpack.c.bf16 %v5631_v53, %v5630_v43  ;;  %v5306_v28 = vadd.f32 %v7878_v61, %v12888_v2  ;;  %v5297_v40 = vpop.f32.mrb[81].mxu0 }
 0x6f1   :  { %v5686_v41 = vpack.c.bf16 %v5629_v8, %v5628_v20  ;;  %v5298_v1 = vadd.f32 %v12888_v2, %v5297_v40  ;;  %v7879_v56 = vpop.f32.mrb[82].mxu0  ;;  %v14376_v40 = vld [vmem:[#allocation64_spill] sm:$0xff] }
 0x6f2   :  { %v5570_v9 = vmul.f32 0.9, %v5306_v28  ;;  %v5309_v18 = vadd.f32 %v7879_v56, %v12888_v2  ;;  %v5300_v31 = vpop.f32.mrb[83].mxu0  ;;  %v14377_v56 = vld [vmem:[#allocation65_spill] sm:$0xff] }
 0x6f3   :  { %v5568_v38 = vmul.f32 0.9, %v5298_v1  ;;  %v5301_v12 = vadd.f32 %v12888_v2, %v5300_v31  ;;  %7944 = vmatprep.mubr.msk.bf16.mxu1 %vm303_vm0, %v5686_v41  ;;  %v5515_v41 = vmul.f32 0.1, %v14376_v40 }
 0x6f4   :  { %v5571_v26 = vmul.f32 0.9, %v5309_v18  ;;  %7945 = vmatmul.mubr.msk.bf16.gmra.mrb[76].mxu1 %vm303_vm0, %v5687_v0  ;;  %v5634_v57 = vadd.f32 %v5570_v9, %v5506_v24  ;;  %v14375_v0 = vld [vmem:[#allocation63_spill] sm:$0xff]  ;;  %v5512_v9 = vmul.f32 0.1, %v14377_v56  ;;  %v14378_v18 = vld [vmem:[#allocation66_spill] sm:$0xff] }
 0x6f5   :  { %v5569_v52 = vmul.f32 0.9, %v5301_v12  ;;  %v5632_v62 = vadd.f32 %v5568_v38, %v5504_v10  ;;  %v5514_v28 = vmul.f32 0.1, %v14375_v0  ;;  %v5513_v31 = vmul.f32 0.1, %v14378_v18 }
 0x6f6   :  { %v5635_v54 = vadd.f32 %v5571_v26, %v5507_v48 }
 0x6f7   :  { %v5633_v6 = vadd.f32 %v5569_v52, %v5505_v19  ;;  %v7882_v4 = vpop.f32.mrb[84].mxu0 }
 0x6f8   :  { %v5689_v59 = vpack.c.bf16 %v5635_v54, %v5634_v57  ;;  %v5322_v13 = vadd.f32 %v7882_v4, %v12888_v2  ;;  %v5313_v36 = vpop.f32.mrb[85].mxu0 }
 0x6f9   :  { %v5688_v44 = vpack.c.bf16 %v5633_v6, %v5632_v62  ;;  %v5314_v14 = vadd.f32 %v12888_v2, %v5313_v36  ;;  %v7883_v22 = vpop.f32.mrb[86].mxu0  ;;  %v14380_v36 = vld [vmem:[#allocation68_spill] sm:$0xff] }
 0x6fa   :  { %v5574_v47 = vmul.f32 0.9, %v5322_v13  ;;  %v5325_v7 = vadd.f32 %v7883_v22, %v12888_v2  ;;  %v5316_v32 = vpop.f32.mrb[87].mxu0  ;;  %v14381_v22 = vld [vmem:[#allocation69_spill] sm:$0xff] }
 0x6fb   :  { %v5572_v5 = vmul.f32 0.9, %v5314_v14  ;;  %v5317_v37 = vadd.f32 %v12888_v2, %v5316_v32  ;;  %7948 = vmatprep.mubr.msk.bf16.mxu1 %vm303_vm0, %v5688_v44  ;;  %v5519_v44 = vmul.f32 0.1, %v14380_v36 }
 0x6fc   :  { %v5575_v50 = vmul.f32 0.9, %v5325_v7  ;;  %7949 = vmatmul.mubr.msk.bf16.gmra.mrb[80].mxu1 %vm303_vm0, %v5689_v59  ;;  %v5638_v23 = vadd.f32 %v5574_v47, %v5510_v34  ;;  %v14379_v59 = vld [vmem:[#allocation67_spill] sm:$0xff]  ;;  %v5516_v47 = vmul.f32 0.1, %v14381_v22  ;;  %v14382_v7 = vld [vmem:[#allocation70_spill] sm:$0xff] }
 0x6fd   :  { %v5573_v29 = vmul.f32 0.9, %v5317_v37  ;;  %v5636_v58 = vadd.f32 %v5572_v5, %v5508_v27  ;;  %v5518_v13 = vmul.f32 0.1, %v14379_v59  ;;  %v5517_v32 = vmul.f32 0.1, %v14382_v7 }
 0x6fe   :  { %v5639_v35 = vadd.f32 %v5575_v50, %v5511_v46 }
 0x6ff   :  { %v5637_v49 = vadd.f32 %v5573_v29, %v5509_v33 }
 0x700   :  { %v5691_v11 = vpack.c.bf16 %v5639_v35, %v5638_v23 }
 0x701   :  { %v5690_v3 = vpack.c.bf16 %v5637_v49, %v5636_v58 }
 0x702   :  { %v7886_v63 = vpop.f32.mrb[88].mxu0 }
 0x703   :  { %v5338_v39 = vadd.f32 %v7886_v63, %v12888_v2  ;;  %v5329_v51 = vpop.f32.mrb[89].mxu0  ;;  %7952 = vmatprep.mubr.msk.bf16.mxu1 %vm303_vm0, %v5690_v3  ;;  %v14383_v3 = vld [vmem:[#allocation71_spill] sm:$0xff] }
 0x704   :  { %v5330_v42 = vadd.f32 %v12888_v2, %v5329_v51  ;;  %v7887_v60 = vpop.f32.mrb[90].mxu0  ;;  %7953 = vmatmul.mubr.msk.bf16.gmra.mrb[84].mxu1 %vm303_vm0, %v5691_v11  ;;  %v5522_v63 = vmul.f32 0.1, %v14383_v3 }
 0x705   :  { %v5578_v43 = vmul.f32 0.9, %v5338_v39  ;;  %v5341_v53 = vadd.f32 %v7887_v60, %v12888_v2  ;;  %v5332_v20 = vpop.f32.mrb[91].mxu0  ;;  %v14384_v39 = vld [vmem:[#allocation73_spill] sm:$0xff]  ;;  %v14385_v60 = vld [vmem:[#allocation74_spill] sm:$0xff] }
 0x706   :  { %v5576_v8 = vmul.f32 0.9, %v5330_v42  ;;  %v5333_v61 = vadd.f32 %v12888_v2, %v5332_v20  ;;  %v5523_v51 = vmul.f32 0.1, %v14384_v39 }
 0x707   :  { %v5579_v1 = vmul.f32 0.9, %v5341_v53  ;;  %v5642_v12 = vadd.f32 %v5578_v43, %v5514_v28  ;;  %v5520_v43 = vmul.f32 0.1, %v14385_v60  ;;  %v14386_v53 = vld [vmem:[#allocation75_spill] sm:$0xff] }
 0x708   :  { %v5577_v38 = vmul.f32 0.9, %v5333_v61  ;;  %v5640_v24 = vadd.f32 %v5576_v8, %v5512_v9  ;;  %v5521_v20 = vmul.f32 0.1, %v14386_v53 }
 0x709   :  { %v5643_v21 = vadd.f32 %v5579_v1, %v5515_v41 }
 0x70a   :  { %v5641_v25 = vadd.f32 %v5577_v38, %v5513_v31  ;;  %v7890_v48 = vpop.f32.mrb[92].mxu0 }
 0x70b   :  { %v5693_v26 = vpack.c.bf16 %v5643_v21, %v5642_v12  ;;  %v5354_v30 = vadd.f32 %v7890_v48, %v12888_v2  ;;  %v5345_v10 = vpop.f32.mrb[93].mxu0 }
 0x70c   :  { %v5692_v45 = vpack.c.bf16 %v5641_v25, %v5640_v24  ;;  %v5346_v19 = vadd.f32 %v12888_v2, %v5345_v10  ;;  %v7891_v52 = vpop.f32.mrb[94].mxu0  ;;  %v14388_v10 = vld [vmem:[#allocation77_spill] sm:$0xff] }
 0x70d   :  { %v5582_v57 = vmul.f32 0.9, %v5354_v30  ;;  %v5357_v54 = vadd.f32 %v7891_v52, %v12888_v2  ;;  %v5348_v62 = vpop.f32.mrb[95].mxu0  ;;  %v14389_v52 = vld [vmem:[#allocation78_spill] sm:$0xff] }
 0x70e   :  { %v5580_v6 = vmul.f32 0.9, %v5346_v19  ;;  %v5349_v4 = vadd.f32 %v12888_v2, %v5348_v62  ;;  %7956 = vmatprep.mubr.msk.bf16.mxu1 %vm303_vm0, %v5692_v45  ;;  %v5527_v45 = vmul.f32 0.1, %v14388_v10 }
 0x70f   :  { %v5583_v14 = vmul.f32 0.9, %v5357_v54  ;;  %7957 = vmatmul.mubr.msk.bf16.gmra.mrb[88].mxu1 %vm303_vm0, %v5693_v26  ;;  %v5646_v37 = vadd.f32 %v5582_v57, %v5518_v13  ;;  %v14387_v26 = vld [vmem:[#allocation8_spill] sm:$0xff]  ;;  %v5524_v57 = vmul.f32 0.1, %v14389_v52  ;;  %v14390_v54 = vld [vmem:[#allocation79_spill] sm:$0xff] }
 0x710   :  { %v5581_v5 = vmul.f32 0.9, %v5349_v4  ;;  %v5644_v34 = vadd.f32 %v5580_v6, %v5516_v47  ;;  %v5526_v30 = vmul.f32 0.1, %v14387_v26  ;;  %v5525_v62 = vmul.f32 0.1, %v14390_v54 }
 0x711   :  { %v5647_v17 = vadd.f32 %v5583_v14, %v5519_v44 }
 0x712   :  { %v5645_v15 = vadd.f32 %v5581_v5, %v5517_v32  ;;  %v7894_v46 = vpop.f32.mrb[96].mxu0 }
 0x713   :  { %v5695_v50 = vpack.c.bf16 %v5647_v17, %v5646_v37  ;;  %v5370_v16 = vadd.f32 %v7894_v46, %v12888_v2  ;;  %v5361_v27 = vpop.f32.mrb[97].mxu0 }
 0x714   :  { %v5694_v55 = vpack.c.bf16 %v5645_v15, %v5644_v34  ;;  %v5362_v33 = vadd.f32 %v12888_v2, %v5361_v27  ;;  %v7895_v29 = vpop.f32.mrb[98].mxu0  ;;  %v14392_v27 = vld [vmem:[#allocation12_spill] sm:$0xff] }
 0x715   :  { %v5586_v23 = vmul.f32 0.9, %v5370_v16  ;;  %v5373_v35 = vadd.f32 %v7895_v29, %v12888_v2  ;;  %v5364_v58 = vpop.f32.mrb[99].mxu0  ;;  %v14393_v29 = vld [vmem:[#allocation14_spill] sm:$0xff] }
 0x716   :  { %v5584_v49 = vmul.f32 0.9, %v5362_v33  ;;  %v5365_v11 = vadd.f32 %v12888_v2, %v5364_v58  ;;  %7960 = vmatprep.mubr.msk.bf16.mxu1 %vm303_vm0, %v5694_v55  ;;  %v5531_v55 = vmul.f32 0.1, %v14392_v27 }
 0x717   :  { %v5587_v42 = vmul.f32 0.9, %v5373_v35  ;;  %7961 = vmatmul.mubr.msk.bf16.gmra.mrb[92].mxu1 %vm303_vm0, %v5695_v50  ;;  %v5650_v61 = vadd.f32 %v5586_v23, %v5522_v63  ;;  %v14391_v50 = vld [vmem:[#allocation80_spill] sm:$0xff]  ;;  %v5528_v23 = vmul.f32 0.1, %v14393_v29  ;;  %v14394_v35 = vld [vmem:[#allocation82_spill] sm:$0xff] }
 0x718   :  { %v5585_v8 = vmul.f32 0.9, %v5365_v11  ;;  %v5648_v28 = vadd.f32 %v5584_v49, %v5520_v43  ;;  %v5530_v16 = vmul.f32 0.1, %v14391_v50  ;;  %v5529_v58 = vmul.f32 0.1, %v14394_v35 }
 0x719   :  { %v5651_v0 = vadd.f32 %v5587_v42, %v5523_v51 }
 0x71a   :  { %v5649_v40 = vadd.f32 %v5585_v8, %v5521_v20  ;;  %v7898_v41 = vpop.f32.mrb[100].mxu0 }
 0x71b   :  { %v5697_v1 = vpack.c.bf16 %v5651_v0, %v5650_v61  ;;  %v5386_v56 = vadd.f32 %v7898_v41, %v12888_v2  ;;  %v5377_v9 = vpop.f32.mrb[101].mxu0 }
 0x71c   :  { %v5696_v18 = vpack.c.bf16 %v5649_v40, %v5648_v28  ;;  %v5378_v31 = vadd.f32 %v12888_v2, %v5377_v9  ;;  %v7899_v38 = vpop.f32.mrb[102].mxu0  ;;  %v14396_v9 = vld [vmem:[#allocation16_spill] sm:$0xff] }
 0x71d   :  { %v5590_v12 = vmul.f32 0.9, %v5386_v56  ;;  %v5389_v21 = vadd.f32 %v7899_v38, %v12888_v2  ;;  %v5380_v24 = vpop.f32.mrb[103].mxu0  ;;  %v14397_v38 = vld [vmem:[#allocation17_spill] sm:$0xff] }
 0x71e   :  { %v5588_v25 = vmul.f32 0.9, %v5378_v31  ;;  %v5381_v48 = vadd.f32 %v12888_v2, %v5380_v24  ;;  %7964 = vmatprep.mubr.msk.bf16.mxu1 %vm303_vm0, %v5696_v18  ;;  %v5535_v18 = vmul.f32 0.1, %v14396_v9 }
 0x71f   :  { %v5591_v19 = vmul.f32 0.9, %v5389_v21  ;;  %7965 = vmatmul.mubr.msk.bf16.gmra.mrb[96].mxu1 %vm303_vm0, %v5697_v1  ;;  %v5654_v4 = vadd.f32 %v5590_v12, %v5526_v30  ;;  %v14395_v1 = vld [vmem:[#allocation15_spill] sm:$0xff]  ;;  %v5532_v12 = vmul.f32 0.1, %v14397_v38 }
 0x720   :  { %v5589_v6 = vmul.f32 0.9, %v5381_v48  ;;  %v5652_v13 = vadd.f32 %v5588_v25, %v5524_v57  ;;  %v5534_v56 = vmul.f32 0.1, %v14395_v1  ;;  %v14398_v21 = vld [vmem:[#allocation83_spill] sm:$0xff] }
 0x721   :  { %v5655_v59 = vadd.f32 %v5591_v19, %v5527_v45  ;;  %v5533_v24 = vmul.f32 0.1, %v14398_v21 }
 0x722   :  { %v5653_v36 = vadd.f32 %v5589_v6, %v5525_v62  ;;  %v7902_v44 = vpop.f32.mrb[104].mxu0 }
 0x723   :  { %v5699_v14 = vpack.c.bf16 %v5655_v59, %v5654_v4  ;;  %v5402_v22 = vadd.f32 %v7902_v44, %v12888_v2  ;;  %v5393_v47 = vpop.f32.mrb[105].mxu0  ;;  %v14399_v4 = vld [vmem:[#allocation84_spill] sm:$0xff] }
 0x724   :  { %v5698_v7 = vpack.c.bf16 %v5653_v36, %v5652_v13  ;;  %v5394_v32 = vadd.f32 %v12888_v2, %v5393_v47  ;;  %v7903_v5 = vpop.f32.mrb[106].mxu0  ;;  %v5538_v59 = vmul.f32 0.1, %v14399_v4 }
 0x725   :  { %v5594_v37 = vmul.f32 0.9, %v5402_v22  ;;  %v5405_v17 = vadd.f32 %v7903_v5, %v12888_v2  ;;  %v5396_v34 = vpop.f32.mrb[107].mxu0  ;;  %v14401_v5 = vld [vmem:[#allocation85_spill] sm:$0xff] }
 0x726   :  { %v5592_v15 = vmul.f32 0.9, %v5394_v32  ;;  %v5397_v46 = vadd.f32 %v12888_v2, %v5396_v34  ;;  %7968 = vmatprep.mubr.msk.bf16.mxu1 %vm303_vm0, %v5698_v7 }
 0x727   :  { %v5595_v33 = vmul.f32 0.9, %v5405_v17  ;;  %7969 = vmatmul.mubr.msk.bf16.gmra.mrb[100].mxu1 %vm303_vm0, %v5699_v14  ;;  %v5658_v11 = vadd.f32 %v5594_v37, %v5530_v16  ;;  %v14400_v14 = vld [vmem:[#allocation86_spill] sm:$0xff]  ;;  %v5539_v37 = vmul.f32 0.1, %v14401_v5 }
 0x728   :  { %v5593_v49 = vmul.f32 0.9, %v5397_v46  ;;  %v5656_v63 = vadd.f32 %v5592_v15, %v5528_v23  ;;  %v5536_v22 = vmul.f32 0.1, %v14400_v14  ;;  %v14402_v15 = vld [vmem:[#allocation87_spill] sm:$0xff] }
 0x729   :  { %v5659_v3 = vadd.f32 %v5595_v33, %v5531_v55  ;;  %v5537_v46 = vmul.f32 0.1, %v14402_v15 }
 0x72a   :  { %v5657_v39 = vadd.f32 %v5593_v49, %v5529_v58  ;;  %v7906_v51 = vpop.f32.mrb[108].mxu0 }
 0x72b   :  { %v5701_v42 = vpack.c.bf16 %v5659_v3, %v5658_v11  ;;  %v5418_v60 = vadd.f32 %v7906_v51, %v12888_v2  ;;  %v5409_v43 = vpop.f32.mrb[109].mxu0  ;;  %v14403_v11 = vld [vmem:[#allocation18_spill] sm:$0xff] }
 0x72c   :  { %v5700_v53 = vpack.c.bf16 %v5657_v39, %v5656_v63  ;;  %v5410_v20 = vadd.f32 %v12888_v2, %v5409_v43  ;;  %v7907_v8 = vpop.f32.mrb[110].mxu0  ;;  %v5542_v3 = vmul.f32 0.1, %v14403_v11 }
 0x72d   :  { %v5598_v61 = vmul.f32 0.9, %v5418_v60  ;;  %v5421_v0 = vadd.f32 %v7907_v8, %v12888_v2  ;;  %v5412_v28 = vpop.f32.mrb[111].mxu0  ;;  %v14405_v8 = vld [vmem:[#allocation19_spill] sm:$0xff] }
 0x72e   :  { %v5596_v40 = vmul.f32 0.9, %v5410_v20  ;;  %v5413_v41 = vadd.f32 %v12888_v2, %v5412_v28  ;;  %7972 = vmatprep.mubr.msk.bf16.mxu1 %vm303_vm0, %v5700_v53 }
 0x72f   :  { %v5599_v31 = vmul.f32 0.9, %v5421_v0  ;;  %7973 = vmatmul.mubr.msk.bf16.gmra.mrb[104].mxu1 %vm303_vm0, %v5701_v42  ;;  %v5662_v48 = vadd.f32 %v5598_v61, %v5534_v56  ;;  %v14404_v42 = vld [vmem:[#allocation20_spill] sm:$0xff]  ;;  %v5543_v61 = vmul.f32 0.1, %v14405_v8 }
 0x730   :  { %v5597_v25 = vmul.f32 0.9, %v5413_v41  ;;  %v5660_v30 = vadd.f32 %v5596_v40, %v5532_v12  ;;  %v5540_v60 = vmul.f32 0.1, %v14404_v42  ;;  %v14406_v40 = vld [vmem:[#allocation88_spill] sm:$0xff] }
 0x731   :  { %v5663_v26 = vadd.f32 %v5599_v31, %v5535_v18  ;;  %v5541_v41 = vmul.f32 0.1, %v14406_v40 }
 0x732   :  { %v5661_v10 = vadd.f32 %v5597_v25, %v5533_v24  ;;  %v7910_v45 = vpop.f32.mrb[112].mxu0 }
 0x733   :  { %v5703_v19 = vpack.c.bf16 %v5663_v26, %v5662_v48  ;;  %v5434_v52 = vadd.f32 %v7910_v45, %v12888_v2  ;;  %v5425_v57 = vpop.f32.mrb[113].mxu0  ;;  %v14407_v48 = vld [vmem:[#allocation21_spill] sm:$0xff] }
 0x734   :  { %v5702_v54 = vpack.c.bf16 %v5661_v10, %v5660_v30  ;;  %v5426_v62 = vadd.f32 %v12888_v2, %v5425_v57  ;;  %v7911_v6 = vpop.f32.mrb[114].mxu0  ;;  %v5546_v26 = vmul.f32 0.1, %v14407_v48 }
 0x735   :  { %v5602_v13 = vmul.f32 0.9, %v5434_v52  ;;  %v5437_v36 = vadd.f32 %v7911_v6, %v12888_v2  ;;  %v5428_v44 = vpop.f32.mrb[115].mxu0  ;;  %v14409_v6 = vld [vmem:[#allocation22_spill] sm:$0xff] }
 0x736   :  { %v5600_v47 = vmul.f32 0.9, %v5426_v62  ;;  %v5429_v7 = vadd.f32 %v12888_v2, %v5428_v44  ;;  %7976 = vmatprep.mubr.msk.bf16.mxu1 %vm303_vm0, %v5702_v54  ;;  %v5547_v4 = vmul.f32 0.1, %v14409_v6 }
 0x737   :  { %v5666_v32 = vadd.f32 %v5602_v13, %v5538_v59  ;;  %v5603_v17 = vmul.f32 0.9, %v5437_v36  ;;  %7977 = vmatmul.mubr.msk.bf16.gmra.mrb[108].mxu1 %vm303_vm0, %v5703_v19  ;;  %v14408_v19 = vld [vmem:[#allocation23_spill] sm:$0xff]  ;;  %v14410_v36 = vld [vmem:[#allocation24_spill] sm:$0xff] }
 0x738   :  { %v5664_v34 = vadd.f32 %v5600_v47, %v5536_v22  ;;  %v5601_v50 = vmul.f32 0.9, %v5429_v7  ;;  %v5544_v52 = vmul.f32 0.1, %v14408_v19  ;;  %v5545_v44 = vmul.f32 0.1, %v14410_v36 }
 0x739   :  { %v5667_v16 = vadd.f32 %v5603_v17, %v5539_v37 }
 0x73a   :  { %v5665_v27 = vadd.f32 %v5601_v50, %v5537_v46  ;;  %v7914_v55 = vpop.f32.mrb[116].mxu0  ;;  %v14411_v46 = vld [vmem:[#allocation44_spill] sm:$0xff] }
 0x73b   :  { %v5705_v33 = vpack.c.bf16 %v5667_v16, %v5666_v32  ;;  %v5450_v29 = vadd.f32 %v7914_v55, %v12888_v2  ;;  %v5441_v23 = vpop.f32.mrb[117].mxu0  ;;  %v5550_v50 = vmul.f32 0.1, %v14411_v46 }
 0x73c   :  { %v5704_v35 = vpack.c.bf16 %v5665_v27, %v5664_v34  ;;  %v5442_v58 = vadd.f32 %v12888_v2, %v5441_v23  ;;  %v7915_v49 = vpop.f32.mrb[118].mxu0 }
 0x73d   :  { %v5606_v63 = vmul.f32 0.9, %v5450_v29  ;;  %v5453_v39 = vadd.f32 %v7915_v49, %v12888_v2  ;;  %v5444_v51 = vpop.f32.mrb[119].mxu0  ;;  %v14413_v49 = vld [vmem:[#allocation45_spill] sm:$0xff] }
 0x73e   :  { %v5604_v43 = vmul.f32 0.9, %v5442_v58  ;;  %v5445_v53 = vadd.f32 %v12888_v2, %v5444_v51  ;;  %7980 = vmatprep.mubr.msk.bf16.mxu1 %vm303_vm0, %v5704_v35  ;;  %v5551_v11 = vmul.f32 0.1, %v14413_v49 }
 0x73f   :  { %v5670_v20 = vadd.f32 %v5606_v63, %v5542_v3  ;;  %v5607_v0 = vmul.f32 0.9, %v5453_v39  ;;  %7981 = vmatmul.mubr.msk.bf16.gmra.mrb[112].mxu1 %vm303_vm0, %v5705_v33  ;;  %v14412_v33 = vld [vmem:[#allocation27_spill] sm:$0xff]  ;;  %v14414_v39 = vld [vmem:[#allocation28_spill] sm:$0xff] }
 0x740   :  { %v5668_v28 = vadd.f32 %v5604_v43, %v5540_v60  ;;  %v5605_v1 = vmul.f32 0.9, %v5445_v53  ;;  %v5548_v29 = vmul.f32 0.1, %v14412_v33  ;;  %v5549_v51 = vmul.f32 0.1, %v14414_v39 }
 0x741   :  { %v5671_v56 = vadd.f32 %v5607_v0, %v5543_v61 }
 0x742   :  { %v5669_v9 = vadd.f32 %v5605_v1, %v5541_v41  ;;  %v7918_v18 = vpop.f32.mrb[120].mxu0 }
 0x743   :  { %v5707_v31 = vpack.c.bf16 %v5671_v56, %v5670_v20  ;;  %v5466_v38 = vadd.f32 %v7918_v18, %v12888_v2  ;;  %v5457_v12 = vpop.f32.mrb[121].mxu0 }
 0x744   :  { %v5706_v21 = vpack.c.bf16 %v5669_v9, %v5668_v28  ;;  %v5458_v24 = vadd.f32 %v12888_v2, %v5457_v12  ;;  %v7919_v25 = vpop.f32.mrb[122].mxu0 }
 0x745   :  { %v5610_v30 = vmul.f32 0.9, %v5466_v38  ;;  %v5469_v10 = vadd.f32 %v7919_v25, %v12888_v2  ;;  %v5460_v45 = vpop.f32.mrb[123].mxu0 }
 0x746   :  { %v5608_v57 = vmul.f32 0.9, %v5458_v24  ;;  %v5461_v54 = vadd.f32 %v12888_v2, %v5460_v45  ;;  %7984 = vmatprep.mubr.msk.bf16.mxu1 %vm303_vm0, %v5706_v21 }
 0x747   :  { %v5674_v62 = vadd.f32 %v5610_v30, %v5546_v26  ;;  %v5611_v59 = vmul.f32 0.9, %v5469_v10  ;;  %7985 = vmatmul.mubr.msk.bf16.gmra.mrb[116].mxu1 %vm303_vm0, %v5707_v31 }
 0x748   :  { %v5672_v13 = vadd.f32 %v5608_v57, %v5544_v52  ;;  %v5609_v14 = vmul.f32 0.9, %v5461_v54 }
 0x749   :  { %v5675_v22 = vadd.f32 %v5611_v59, %v5547_v4 }
 0x74a   :  { %v5673_v47 = vadd.f32 %v5609_v14, %v5545_v44 }
 0x74b   :  { %v5709_v7 = vpack.c.bf16 %v5675_v22, %v5674_v62 }
 0x74c   :  { %v5708_v32 = vpack.c.bf16 %v5673_v47, %v5672_v13 }
 0x74e   :  { %7988 = vmatprep.mubr.msk.bf16.mxu1 %vm303_vm0, %v5708_v32 }
 0x74f   :  { %7989 = vmatmul.mubr.msk.bf16.gmra.mrb[120].mxu1 %vm303_vm0, %v5709_v7 }
 0x78f   :  { %v7922_v5 = vpop.f32.mrb[124].mxu0 }
 0x790   :  { %v5482_v37 = vadd.f32 %v7922_v5, %v12888_v2  ;;  %v5473_v17 = vpop.f32.mrb[125].mxu0 }
 0x791   :  { %v5474_v34 = vadd.f32 %v12888_v2, %v5473_v17  ;;  %v7923_v15 = vpop.f32.mrb[126].mxu0 }
 0x792   :  { %v5614_v16 = vmul.f32 0.9, %v5482_v37  ;;  %v5485_v27 = vadd.f32 %v7923_v15, %v12888_v2  ;;  %v5476_v55 = vpop.f32.mrb[127].mxu0 }
 0x793   :  { %v5612_v23 = vmul.f32 0.9, %v5474_v34  ;;  %v5477_v35 = vadd.f32 %v12888_v2, %v5476_v55  ;;  %v13053_v2 = vld [vmem:[%s13758_s10] ss:$0 sm:$0xff]  ;;  %s9105_s10 = smov [#allocation2]  }
 0x794   :  { %v5678_v58 = vadd.f32 %v5614_v16, %v5550_v50  ;;  %v5615_v3 = vmul.f32 0.9, %v5485_v27  ;;  %s7037_s18 = sshll.u32 %s9105_s10, 4  ;;  %s7038_s18 = int_to_ptr.vmem [resolvable:$true] %s7037_s18 }
 0x795   :  { %v5676_v63 = vadd.f32 %v5612_v23, %v5548_v29  ;;  %v5613_v42 = vmul.f32 0.9, %v5477_v35  ;;  %s9081_s19 = scalar_lea.vmem %s7038_s18, 4096  ;;  %p9086_p1 = scmp.lt.s32.totalorder %s7038_s18, %s7038_s18 }
 0x796   :  { %v5679_v60 = vadd.f32 %v5615_v3, %v5551_v11  ;;  %p9082_p0 = scmp.ne.s32.totalorder %s7038_s18, %s9081_s19  ;;  %p9087_p2 = scmp.lt.s32.totalorder %s9081_s19, %s9081_s19 }
 0x797   :  { %v5677_v43 = vadd.f32 %v5613_v42, %v5549_v51 }
 0x798   :  { %v5711_v53 = vpack.c.bf16 %v5679_v60, %v5678_v58  ;;  %p9088_p3 = por %p9087_p2, %p9086_p1 }
 0x799   :  { %v5710_v20 = vpack.c.bf16 %v5677_v43, %v5676_v63 }
 0x79a   :  { %p9089_p4 = pnand %p9088_p3, %p9082_p0 }
 0x79b   :  { %7992 = vmatprep.mubr.msk.bf16.mxu1 %vm303_vm0, %v5710_v20 }
 0x79c   :  { %7993 = vmatmul.mubr.msk.bf16.gmra.mrb[124].mxu1 %vm303_vm0, %v5711_v53 }
 0x7af   :  { %v7934_v8 = vpop.f32.mrb[64].mxu1 }
 0x7b0   :  { %v13056_v61 = vadd.f32 %v7934_v8, %v13053_v2  ;;  %v5881_v0 = vpop.f32.mrb[65].mxu1 }
 0x7b1   :  { %v7935_v28 = vpop.f32.mrb[66].mxu1  ;;  %v13063_v1 = vadd.f32 %v13053_v2, %v5881_v0 }
 0x7b2   :  { %v13059_v40 = vadd.f32 %v7935_v28, %v13053_v2  ;;  %v5884_v41 = vpop.f32.mrb[67].mxu1  ;;  %6140 = vmax.xlane.f32.xlu0 %v13056_v61 }
 0x7b3   :  { %v13067_v56 = vadd.f32 %v13053_v2, %v5884_v41 }
 0x7b4   :  { %6142 = vmax.xlane.f32.xlu1 %v13059_v40 }
 0x7b6   :  { %6136 = vmax.xlane.f32.xlu0 %v13063_v1 }
 0x7b7   :  { %v7938_v9 = vpop.f32.mrb[68].mxu1 }
 0x7b8   :  { %v13071_v18 = vadd.f32 %v7938_v9, %v13053_v2  ;;  %6138 = vmax.xlane.f32.xlu1 %v13067_v56  ;;  %v5897_v31 = vpop.f32.mrb[69].mxu1 }
 0x7b9   :  { %v7939_v38 = vpop.f32.mrb[70].mxu1  ;;  %v13079_v24 = vadd.f32 %v13053_v2, %v5897_v31 }
 0x7ba   :  { %v13075_v12 = vadd.f32 %v7939_v38, %v13053_v2  ;;  %v5900_v21 = vpop.f32.mrb[71].mxu1  ;;  %6148 = vmax.xlane.f32.xlu0 %v13071_v18 }
 0x7bb   :  { %v13083_v25 = vadd.f32 %v13053_v2, %v5900_v21 }
 0x7bc   :  { %6150 = vmax.xlane.f32.xlu1 %v13075_v12 }
 0x7be   :  { %6144 = vmax.xlane.f32.xlu0 %v13079_v24 }
 0x7bf   :  { %v7942_v48 = vpop.f32.mrb[72].mxu1 }
 0x7c0   :  { %v13087_v26 = vadd.f32 %v7942_v48, %v13053_v2  ;;  %6146 = vmax.xlane.f32.xlu1 %v13083_v25  ;;  %v5913_v30 = vpop.f32.mrb[73].mxu1 }
 0x7c1   :  { %v7943_v10 = vpop.f32.mrb[74].mxu1  ;;  %v13095_v52 = vadd.f32 %v13053_v2, %v5913_v30 }
 0x7c2   :  { %v13091_v45 = vadd.f32 %v7943_v10, %v13053_v2  ;;  %v5916_v19 = vpop.f32.mrb[75].mxu1  ;;  %6156 = vmax.xlane.f32.xlu0 %v13087_v26 }
 0x7c3   :  { %v13099_v57 = vadd.f32 %v13053_v2, %v5916_v19 }
 0x7c4   :  { %6158 = vmax.xlane.f32.xlu1 %v13091_v45 }
 0x7c6   :  { %6152 = vmax.xlane.f32.xlu0 %v13095_v52 }
 0x7c7   :  { %v7946_v54 = vpop.f32.mrb[76].mxu1 }
 0x7c8   :  { %v13103_v62 = vadd.f32 %v7946_v54, %v13053_v2  ;;  %6154 = vmax.xlane.f32.xlu1 %v13099_v57  ;;  %v5929_v6 = vpop.f32.mrb[77].mxu1 }
 0x7c9   :  { %v7947_v4 = vpop.f32.mrb[78].mxu1  ;;  %v13111_v36 = vadd.f32 %v13053_v2, %v5929_v6 }
 0x7ca   :  { %v13107_v59 = vadd.f32 %v7947_v4, %v13053_v2  ;;  %v5932_v13 = vpop.f32.mrb[79].mxu1  ;;  %6164 = vmax.xlane.f32.xlu0 %v13103_v62 }
 0x7cb   :  { %v13115_v44 = vadd.f32 %v13053_v2, %v5932_v13 }
 0x7cc   :  { %6166 = vmax.xlane.f32.xlu1 %v13107_v59 }
 0x7ce   :  { %6160 = vmax.xlane.f32.xlu0 %v13111_v36 }
 0x7cf   :  { %v7950_v14 = vpop.f32.mrb[80].mxu1 }
 0x7d0   :  { %v13119_v22 = vadd.f32 %v7950_v14, %v13053_v2  ;;  %6162 = vmax.xlane.f32.xlu1 %v13115_v44  ;;  %v5945_v47 = vpop.f32.mrb[81].mxu1 }
 0x7d1   :  { %v7951_v7 = vpop.f32.mrb[82].mxu1  ;;  %v13127_v37 = vadd.f32 %v13053_v2, %v5945_v47 }
 0x7d2   :  { %v13123_v32 = vadd.f32 %v7951_v7, %v13053_v2  ;;  %v5948_v5 = vpop.f32.mrb[83].mxu1  ;;  %6172 = vmax.xlane.f32.xlu0 %v13119_v22 }
 0x7d3   :  { %v13131_v17 = vadd.f32 %v13053_v2, %v5948_v5 }
 0x7d4   :  { %6174 = vmax.xlane.f32.xlu1 %v13123_v32 }
 0x7d6   :  { %6168 = vmax.xlane.f32.xlu0 %v13127_v37 }
 0x7d7   :  { %v7954_v34 = vpop.f32.mrb[84].mxu1 }
 0x7d8   :  { %v13135_v15 = vadd.f32 %v7954_v34, %v13053_v2  ;;  %6170 = vmax.xlane.f32.xlu1 %v13131_v17  ;;  %v5961_v46 = vpop.f32.mrb[85].mxu1 }
 0x7d9   :  { %v7955_v50 = vpop.f32.mrb[86].mxu1  ;;  %v13143_v55 = vadd.f32 %v13053_v2, %v5961_v46 }
 0x7da   :  { %v13139_v16 = vadd.f32 %v7955_v50, %v13053_v2  ;;  %v5964_v27 = vpop.f32.mrb[87].mxu1  ;;  %6180 = vmax.xlane.f32.xlu0 %v13135_v15 }
 0x7db   :  { %v13147_v33 = vadd.f32 %v13053_v2, %v5964_v27 }
 0x7dc   :  { %6182 = vmax.xlane.f32.xlu1 %v13139_v16 }
 0x7de   :  { %6176 = vmax.xlane.f32.xlu0 %v13143_v55 }
 0x7e0   :  { %6178 = vmax.xlane.f32.xlu1 %v13147_v33 }
 0x7e2   :  { %v7958_v29 = vpop.f32.mrb[88].mxu1 }
 0x7e3   :  { %v13152_v23 = vadd.f32 %v7958_v29, %v13053_v2  ;;  %v5977_v35 = vpop.f32.mrb[89].mxu1 }
 0x7e4   :  { %v7959_v58 = vpop.f32.mrb[90].mxu1  ;;  %v13159_v3 = vadd.f32 %v13053_v2, %v5977_v35 }
 0x7e5   :  { %v13155_v49 = vadd.f32 %v7959_v58, %v13053_v2  ;;  %6188 = vmax.xlane.f32.xlu0 %v13152_v23  ;;  %v5980_v11 = vpop.f32.mrb[91].mxu1 }
 0x7e6   :  { %v13163_v63 = vadd.f32 %v13053_v2, %v5980_v11 }
 0x7e7   :  { %6190 = vmax.xlane.f32.xlu1 %v13155_v49 }
 0x7e9   :  { %6184 = vmax.xlane.f32.xlu0 %v13159_v3 }
 0x7ea   :  { %v7962_v39 = vpop.f32.mrb[92].mxu1 }
 0x7eb   :  { %v13167_v51 = vadd.f32 %v7962_v39, %v13053_v2  ;;  %6186 = vmax.xlane.f32.xlu1 %v13163_v63  ;;  %v5993_v42 = vpop.f32.mrb[93].mxu1 }
 0x7ec   :  { %v7963_v60 = vpop.f32.mrb[94].mxu1  ;;  %v13175_v20 = vadd.f32 %v13053_v2, %v5993_v42 }
 0x7ed   :  { %v13171_v43 = vadd.f32 %v7963_v60, %v13053_v2  ;;  %6196 = vmax.xlane.f32.xlu0 %v13167_v51  ;;  %v5996_v53 = vpop.f32.mrb[95].mxu1 }
 0x7ee   :  { %v13179_v8 = vadd.f32 %v13053_v2, %v5996_v53 }
 0x7ef   :  { %6198 = vmax.xlane.f32.xlu1 %v13171_v43 }
 0x7f0   :  { %14415 = vst [vmem:[#allocation10_spill] sm:$0xff] %v13179_v8 }
 0x7f1   :  { %6192 = vmax.xlane.f32.xlu0 %v13175_v20 }
 0x7f2   :  { %v7966_v0 = vpop.f32.mrb[96].mxu1 }
 0x7f3   :  { %v13183_v28 = vadd.f32 %v7966_v0, %v13053_v2  ;;  %6194 = vmax.xlane.f32.xlu1 %v13179_v8  ;;  %v6009_v41 = vpop.f32.mrb[97].mxu1 }
 0x7f4   :  { %v7967_v9 = vpop.f32.mrb[98].mxu1  ;;  %v13191_v21 = vadd.f32 %v13053_v2, %v6009_v41 }
 0x7f5   :  { %14416 = vst [vmem:[#allocation89_spill] sm:$0xff] %v13183_v28  ;;  %v13187_v31 = vadd.f32 %v7967_v9, %v13053_v2  ;;  %6204 = vmax.xlane.f32.xlu0 %v13183_v28  ;;  %v6012_v38 = vpop.f32.mrb[99].mxu1 }
 0x7f6   :  { %14418 = vst [vmem:[#allocation95_spill] sm:$0xff] %v13191_v21  ;;  %v13195_v48 = vadd.f32 %v13053_v2, %v6012_v38 }
 0x7f7   :  { %14417 = vst [vmem:[#allocation93_spill] sm:$0xff] %v13187_v31  ;;  %6206 = vmax.xlane.f32.xlu1 %v13187_v31 }
 0x7f8   :  { %14419 = vst [vmem:[#allocation92_spill] sm:$0xff] %v13195_v48 }
 0x7f9   :  { %6200 = vmax.xlane.f32.xlu0 %v13191_v21 }
 0x7fa   :  { %v7970_v30 = vpop.f32.mrb[100].mxu1 }
 0x7fb   :  { %v13199_v10 = vadd.f32 %v7970_v30, %v13053_v2  ;;  %6202 = vmax.xlane.f32.xlu1 %v13195_v48  ;;  %v6025_v19 = vpop.f32.mrb[101].mxu1 }
 0x7fc   :  { %v7971_v54 = vpop.f32.mrb[102].mxu1  ;;  %v13207_v13 = vadd.f32 %v13053_v2, %v6025_v19 }
 0x7fd   :  { %14420 = vst [vmem:[#allocation94_spill] sm:$0xff] %v13199_v10  ;;  %v13203_v6 = vadd.f32 %v7971_v54, %v13053_v2  ;;  %6212 = vmax.xlane.f32.xlu0 %v13199_v10  ;;  %v6028_v4 = vpop.f32.mrb[103].mxu1 }
 0x7fe   :  { %14422 = vst [vmem:[#allocation99_spill] sm:$0xff] %v13207_v13  ;;  %v13211_v14 = vadd.f32 %v13053_v2, %v6028_v4 }
 0x7ff   :  { %14421 = vst [vmem:[#allocation98_spill] sm:$0xff] %v13203_v6  ;;  %6214 = vmax.xlane.f32.xlu1 %v13203_v6 }
 0x800   :  { %14423 = vst [vmem:[#allocation96_spill] sm:$0xff] %v13211_v14 }
 0x801   :  { %6208 = vmax.xlane.f32.xlu0 %v13207_v13 }
 0x802   :  { %v7974_v47 = vpop.f32.mrb[104].mxu1 }
 0x803   :  { %v13215_v7 = vadd.f32 %v7974_v47, %v13053_v2  ;;  %6210 = vmax.xlane.f32.xlu1 %v13211_v14  ;;  %v6041_v5 = vpop.f32.mrb[105].mxu1 }
 0x804   :  { %v7975_v34 = vpop.f32.mrb[106].mxu1  ;;  %v13223_v27 = vadd.f32 %v13053_v2, %v6041_v5 }
 0x805   :  { %14424 = vst [vmem:[#allocation97_spill] sm:$0xff] %v13215_v7  ;;  %v13219_v46 = vadd.f32 %v7975_v34, %v13053_v2  ;;  %6220 = vmax.xlane.f32.xlu0 %v13215_v7  ;;  %v6044_v50 = vpop.f32.mrb[107].mxu1 }
 0x806   :  { %14426 = vst [vmem:[#allocation103_spill] sm:$0xff] %v13223_v27  ;;  %v13227_v29 = vadd.f32 %v13053_v2, %v6044_v50 }
 0x807   :  { %14425 = vst [vmem:[#allocation102_spill] sm:$0xff] %v13219_v46  ;;  %6222 = vmax.xlane.f32.xlu1 %v13219_v46 }
 0x808   :  { %14427 = vst [vmem:[#allocation100_spill] sm:$0xff] %v13227_v29 }
 0x809   :  { %6216 = vmax.xlane.f32.xlu0 %v13223_v27 }
 0x80a   :  { %v7978_v35 = vpop.f32.mrb[108].mxu1 }
 0x80b   :  { %v13231_v58 = vadd.f32 %v7978_v35, %v13053_v2  ;;  %6218 = vmax.xlane.f32.xlu1 %v13227_v29  ;;  %v6057_v11 = vpop.f32.mrb[109].mxu1 }
 0x80c   :  { %v7979_v39 = vpop.f32.mrb[110].mxu1  ;;  %v13239_v53 = vadd.f32 %v13053_v2, %v6057_v11 }
 0x80d   :  { %14428 = vst [vmem:[#allocation101_spill] sm:$0xff] %v13231_v58  ;;  %v13235_v42 = vadd.f32 %v7979_v39, %v13053_v2  ;;  %6228 = vmax.xlane.f32.xlu0 %v13231_v58  ;;  %v6060_v60 = vpop.f32.mrb[111].mxu1 }
 0x80e   :  { %14430 = vst [vmem:[#allocation90_spill] sm:$0xff] %v13239_v53  ;;  %v13243_v0 = vadd.f32 %v13053_v2, %v6060_v60 }
 0x80f   :  { %14429 = vst [vmem:[#allocation39_spill] sm:$0xff] %v13235_v42  ;;  %6230 = vmax.xlane.f32.xlu1 %v13235_v42 }
 0x810   :  { %14431 = vst [vmem:[#allocation38_spill] sm:$0xff] %v13243_v0 }
 0x811   :  { %6224 = vmax.xlane.f32.xlu0 %v13239_v53 }
 0x812   :  { %v7982_v41 = vpop.f32.mrb[112].mxu1 }
 0x813   :  { %v13247_v9 = vadd.f32 %v7982_v41, %v13053_v2  ;;  %6226 = vmax.xlane.f32.xlu1 %v13243_v0  ;;  %v6073_v38 = vpop.f32.mrb[113].mxu1 }
 0x814   :  { %v7983_v30 = vpop.f32.mrb[114].mxu1  ;;  %v13255_v4 = vadd.f32 %v13053_v2, %v6073_v38 }
 0x815   :  { %14432 = vst [vmem:[#allocation55_spill] sm:$0xff] %v13247_v9  ;;  %v13251_v19 = vadd.f32 %v7983_v30, %v13053_v2  ;;  %6236 = vmax.xlane.f32.xlu0 %v13247_v9  ;;  %v6076_v54 = vpop.f32.mrb[115].mxu1 }
 0x816   :  { %14434 = vst [vmem:[#allocation36_spill] sm:$0xff] %v13255_v4  ;;  %v13259_v47 = vadd.f32 %v13053_v2, %v6076_v54 }
 0x817   :  { %14433 = vst [vmem:[#allocation49_spill] sm:$0xff] %v13251_v19  ;;  %6238 = vmax.xlane.f32.xlu1 %v13251_v19 }
 0x818   :  { %14435 = vst [vmem:[#allocation41_spill] sm:$0xff] %v13259_v47 }
 0x819   :  { %6232 = vmax.xlane.f32.xlu0 %v13255_v4 }
 0x81a   :  { %v7986_v5 = vpop.f32.mrb[116].mxu1 }
 0x81b   :  { %v13263_v34 = vadd.f32 %v7986_v5, %v13053_v2  ;;  %6234 = vmax.xlane.f32.xlu1 %v13259_v47  ;;  %v6089_v50 = vpop.f32.mrb[117].mxu1 }
 0x81c   :  { %v7987_v35 = vpop.f32.mrb[118].mxu1  ;;  %v13271_v60 = vadd.f32 %v13053_v2, %v6089_v50 }
 0x81d   :  { %14436 = vst [vmem:[#allocation72_spill] sm:$0xff] %v13263_v34  ;;  %v13267_v11 = vadd.f32 %v7987_v35, %v13053_v2  ;;  %6244 = vmax.xlane.f32.xlu0 %v13263_v34  ;;  %v6092_v39 = vpop.f32.mrb[119].mxu1 }
 0x81e   :  { %14438 = vst [vmem:[#allocation53_spill] sm:$0xff] %v13271_v60  ;;  %v13275_v41 = vadd.f32 %v13053_v2, %v6092_v39 }
 0x81f   :  { %14437 = vst [vmem:[#allocation25_spill] sm:$0xff] %v13267_v11  ;;  %6246 = vmax.xlane.f32.xlu1 %v13267_v11 }
 0x820   :  { %14439 = vst [vmem:[#allocation26_spill] sm:$0xff] %v13275_v41 }
 0x821   :  { %6240 = vmax.xlane.f32.xlu0 %v13271_v60 }
 0x822   :  { %v7990_v38 = vpop.f32.mrb[120].mxu1 }
 0x823   :  { %v13279_v30 = vadd.f32 %v7990_v38, %v13053_v2  ;;  %6242 = vmax.xlane.f32.xlu1 %v13275_v41  ;;  %v6105_v54 = vpop.f32.mrb[121].mxu1 }
 0x824   :  { %v7991_v5 = vpop.f32.mrb[122].mxu1  ;;  %v13287_v11 = vadd.f32 %v13053_v2, %v6105_v54 }
 0x825   :  { %14440 = vst [vmem:[#allocation7_spill] sm:$0xff] %v13279_v30  ;;  %v13283_v35 = vadd.f32 %v7991_v5, %v13053_v2  ;;  %6252 = vmax.xlane.f32.xlu0 %v13279_v30  ;;  %v6108_v50 = vpop.f32.mrb[123].mxu1 }
 0x826   :  { %14442 = vst [vmem:[#allocation60_spill] sm:$0xff] %v13287_v11  ;;  %v13291_v39 = vadd.f32 %v13053_v2, %v6108_v50 }
 0x827   :  { %14441 = vst [vmem:[#allocation6_spill] sm:$0xff] %v13283_v35  ;;  %6254 = vmax.xlane.f32.xlu1 %v13283_v35 }
 0x828   :  { %14443 = vst [vmem:[#allocation5_spill] sm:$0xff] %v13291_v39 }
 0x829   :  { %6248 = vmax.xlane.f32.xlu0 %v13287_v11 }
 0x82b   :  { %6250 = vmax.xlane.f32.xlu1 %v13291_v39 }
 0x83f   :  { %v6141_v38 = vpop.xlane.xlu0 %6140 }
 0x840   :  { %v6266_v27 = vsub.f32 %v13056_v61, %v6141_v38 }
 0x841   :  { %v6143_v41 = vpop.xlane.xlu1 %6142 }
 0x842   :  { %v6267_v7 = vsub.f32 %v13059_v40, %v6143_v41  ;;  %v6332_v13 = vmul.f32 1.442695, %v6266_v27 }
 0x843   :  { %v6137_v60 = vpop.xlane.xlu0 %6136 }
 0x844   :  { %v6264_v6 = vsub.f32 %v13063_v1, %v6137_v60  ;;  %v6334_v10 = vmul.f32 1.442695, %v6267_v7  ;;  %8815 = vpow2.f32 %v6332_v13 }
 0x845   :  { %v6139_v5 = vpop.xlane.xlu1 %6138 }
 0x846   :  { %v6265_v48 = vsub.f32 %v13067_v56, %v6139_v5  ;;  %v6328_v31 = vmul.f32 1.442695, %v6264_v6  ;;  %8817 = vpow2.f32 %v6334_v10 }
 0x847   :  { %v6149_v34 = vpop.xlane.xlu0 %6148 }
 0x848   :  { %v6270_v28 = vsub.f32 %v13071_v18, %v6149_v34  ;;  %v6330_v27 = vmul.f32 1.442695, %v6265_v48  ;;  %8819 = vpow2.f32 %v6328_v31 }
 0x849   :  { %v6151_v47 = vpop.xlane.xlu1 %6150 }
 0x84a   :  { %v6271_v1 = vsub.f32 %v13075_v12, %v6151_v47  ;;  %v6340_v18 = vmul.f32 1.442695, %v6270_v28  ;;  %8821 = vpow2.f32 %v6330_v27 }
 0x84b   :  { %v6145_v30 = vpop.xlane.xlu0 %6144 }
 0x84c   :  { %v6268_v34 = vsub.f32 %v13079_v24, %v6145_v30  ;;  %v6342_v12 = vmul.f32 1.442695, %v6271_v1  ;;  %8823 = vpow2.f32 %v6340_v18 }
 0x84d   :  { %v6147_v4 = vpop.xlane.xlu1 %6146 }
 0x84e   :  { %v6269_v48 = vsub.f32 %v13083_v25, %v6147_v4  ;;  %v6336_v28 = vmul.f32 1.442695, %v6268_v34  ;;  %v13356_v60 = vpop.eup %8815  ;;  %8825 = vpow2.f32 %v6342_v12 }
 0x84f   :  { %v6157_v19 = vpop.xlane.xlu0 %6156 }
 0x850   :  { %v6274_v24 = vsub.f32 %v13087_v26, %v6157_v19  ;;  %v6338_v41 = vmul.f32 1.442695, %v6269_v48  ;;  %8827 = vpow2.f32 %v6336_v28 }
 0x851   :  { %v13295_v54 = vpop.xlane.xlu1 %6158 }
 0x852   :  { %v6275_v25 = vsub.f32 %v13091_v45, %v13295_v54  ;;  %v6348_v30 = vmul.f32 1.442695, %v6274_v24  ;;  %8829 = vpow2.f32 %v6338_v41 }
 0x853   :  { %v13297_v9 = vpop.xlane.xlu0 %6152 }
 0x854   :  { %v6272_v26 = vsub.f32 %v13095_v52, %v13297_v9  ;;  %v6350_v5 = vmul.f32 1.442695, %v6275_v25  ;;  %8831 = vpow2.f32 %v6348_v30 }
 0x855   :  { %v13299_v35 = vpop.xlane.xlu1 %6154 }
 0x856   :  { %v6273_v45 = vsub.f32 %v13099_v57, %v13299_v35  ;;  %v6344_v27 = vmul.f32 1.442695, %v6272_v26  ;;  %8833 = vpow2.f32 %v6350_v5 }
 0x857   :  { %v13301_v50 = vpop.xlane.xlu0 %6164 }
 0x858   :  { %v6278_v52 = vsub.f32 %v13103_v62, %v13301_v50  ;;  %8835 = vpow2.f32 %v6344_v27 }
 0x859   :  { %v13303_v11 = vpop.xlane.xlu1 %6166 }
 0x85a   :  { %v6279_v57 = vsub.f32 %v13107_v59, %v13303_v11 }
 0x85b   :  { %v13305_v39 = vpop.xlane.xlu0 %6160 }
 0x85c   :  { %v6276_v62 = vsub.f32 %v13111_v36, %v13305_v39  ;;  %v6358_v34 = vmul.f32 1.442695, %v6279_v57 }
 0x85d   :  { %v13307_v0 = vpop.xlane.xlu1 %6162 }
 0x85e   :  { %v6277_v59 = vsub.f32 %v13115_v44, %v13307_v0  ;;  %v6352_v48 = vmul.f32 1.442695, %v6276_v62 }
 0x85f   :  { %v13309_v53 = vpop.xlane.xlu0 %6172 }
 0x860   :  { %v6282_v36 = vsub.f32 %v13119_v22, %v13309_v53  ;;  %v6354_v28 = vmul.f32 1.442695, %v6277_v59 }
 0x861   :  { %v13311_v42 = vpop.xlane.xlu1 %6174 }
 0x862   :  { %v6283_v44 = vsub.f32 %v13123_v32, %v13311_v42  ;;  %v6364_v41 = vmul.f32 1.442695, %v6282_v36 }
 0x863   :  { %v13313_v58 = vpop.xlane.xlu0 %6168 }
 0x864   :  { %v6280_v22 = vsub.f32 %v13127_v37, %v13313_v58  ;;  %v6366_v30 = vmul.f32 1.442695, %v6283_v44 }
 0x865   :  { %v13315_v29 = vpop.xlane.xlu1 %6170 }
 0x866   :  { %v6281_v32 = vsub.f32 %v13131_v17, %v13315_v29  ;;  %v6360_v26 = vmul.f32 1.442695, %v6280_v22 }
 0x867   :  { %v13318_v46 = vpop.xlane.xlu0 %6180 }
 0x868   :  { %v6286_v37 = vsub.f32 %v13135_v15, %v13318_v46 }
 0x869   :  { %v13321_v14 = vpop.xlane.xlu1 %6182 }
 0x86a   :  { %v6287_v17 = vsub.f32 %v13139_v16, %v13321_v14 }
 0x86b   :  { %v13325_v21 = vpop.xlane.xlu0 %6176 }
 0x86c   :  { %v6284_v15 = vsub.f32 %v13143_v55, %v13325_v21 }
 0x86d   :  { %v13328_v61 = vpop.xlane.xlu1 %6178 }
 0x86e   :  { %v6285_v16 = vsub.f32 %v13147_v33, %v13328_v61 }
 0x86f   :  { %v7994_v8 = vpop.f32.mrb[124].mxu1 }
 0x870   :  { %v13331_v38 = vadd.f32 %v7994_v8, %v13053_v2  ;;  %v6121_v40 = vpop.f32.mrb[125].mxu1 }
 0x871   :  { %v7995_v7 = vpop.f32.mrb[126].mxu1  ;;  %v13342_v8 = vadd.f32 %v13053_v2, %v6121_v40 }
 0x872   :  { %v13335_v56 = vadd.f32 %v7995_v7, %v13053_v2  ;;  %6260 = vmax.xlane.f32.xlu0 %v13331_v38  ;;  %v6124_v6 = vpop.f32.mrb[127].mxu1  ;;  %v13338_v13 = vpop.xlane.xlu0 %6188  ;;  %v6346_v7 = vmul.f32 1.442695, %v6273_v45  ;;  %v6362_v45 = vmul.f32 1.442695, %v6281_v32 }
 0x873   :  { %v13349_v47 = vadd.f32 %v13053_v2, %v6124_v6  ;;  %v13363_v2 = vpop.eup %8817  ;;  %v6356_v6 = vmul.f32 1.442695, %v6278_v52  ;;  %v6372_v52 = vmul.f32 1.442695, %v6286_v37  ;;  %v6290_v55 = vsub.f32 %v13152_v23, %v13338_v13 }
 0x874   :  { %v13344_v10 = vpop.xlane.xlu1 %6190  ;;  %6262 = vmax.xlane.f32.xlu1 %v13335_v56  ;;  %v13368_v19 = vpop.eup %8819  ;;  %8837 = vpow2.f32 %v6346_v7  ;;  %v6374_v7 = vmul.f32 1.442695, %v6287_v17  ;;  %v14445_v17 = vld [vmem:[#allocation89_spill] sm:$0xff] }
 0x875   :  { %v13375_v40 = vpop.eup %8821  ;;  %8839 = vpow2.f32 %v6356_v6  ;;  %v6368_v6 = vmul.f32 1.442695, %v6284_v15  ;;  %v6291_v33 = vsub.f32 %v13155_v49, %v13344_v10  ;;  %v6380_v59 = vmul.f32 1.442695, %v6290_v55 }
 0x876   :  { %6256 = vmax.xlane.f32.xlu0 %v13342_v8  ;;  %v13353_v31 = vpop.xlane.xlu0 %6184  ;;  %v13382_v1 = vpop.eup %8823  ;;  %8841 = vpow2.f32 %v6358_v34  ;;  %v6370_v34 = vmul.f32 1.442695, %v6285_v16 }
 0x877   :  { %v13387_v35 = vpop.eup %8825  ;;  %8843 = vpow2.f32 %v6352_v48  ;;  %v6288_v23 = vsub.f32 %v13159_v3, %v13353_v31  ;;  %v6382_v36 = vmul.f32 1.442695, %v6291_v33 }
 0x878   :  { %6258 = vmax.xlane.f32.xlu1 %v13349_v47  ;;  %v13360_v4 = vpop.xlane.xlu1 %6186  ;;  %v13394_v18 = vpop.eup %8827  ;;  %8845 = vpow2.f32 %v6354_v28 }
 0x879   :  { %v13401_v12 = vpop.eup %8829  ;;  %8847 = vpow2.f32 %v6364_v41  ;;  %v6289_v49 = vsub.f32 %v13163_v63, %v13360_v4  ;;  %v6376_v44 = vmul.f32 1.442695, %v6288_v23  ;;  %v14448_v23 = vld [vmem:[#allocation92_spill] sm:$0xff] }
 0x87a   :  { %6460 = vadd.xlane.f32.xlu0 %v13356_v60  ;;  %v13372_v54 = vpop.xlane.xlu0 %6196  ;;  %v13406_v39 = vpop.eup %8831  ;;  %8849 = vpow2.f32 %v6366_v30 }
 0x87b   :  { %v13413_v24 = vpop.eup %8833  ;;  %8851 = vpow2.f32 %v6360_v26  ;;  %v6294_v3 = vsub.f32 %v13167_v51, %v13372_v54  ;;  %v6378_v41 = vmul.f32 1.442695, %v6289_v49 }
 0x87c   :  { %6462 = vadd.xlane.f32.xlu1 %v13363_v2  ;;  %v13379_v9 = vpop.xlane.xlu1 %6198  ;;  %v13420_v25 = vpop.eup %8835  ;;  %8853 = vpow2.f32 %v6362_v45 }
 0x87d   :  { %8855 = vpow2.f32 %v6372_v52  ;;  %v6295_v63 = vsub.f32 %v13171_v43, %v13379_v9  ;;  %v6388_v30 = vmul.f32 1.442695, %v6294_v3  ;;  %v14444_v43 = vld [vmem:[#allocation10_spill] sm:$0xff] }
 0x87e   :  { %6456 = vadd.xlane.f32.xlu0 %v13368_v19  ;;  %v13391_v50 = vpop.xlane.xlu0 %6192  ;;  %v13425_v42 = vpop.eup %8837  ;;  %8857 = vpow2.f32 %v6374_v7  ;;  %v14446_v7 = vld [vmem:[#allocation93_spill] sm:$0xff]  ;;  %v14449_v3 = vld [vmem:[#allocation94_spill] sm:$0xff] }
 0x87f   :  { %v13432_v5 = vpop.eup %8839  ;;  %8859 = vpow2.f32 %v6368_v6  ;;  %v6292_v51 = vsub.f32 %v13175_v20, %v13391_v50  ;;  %v6390_v26 = vmul.f32 1.442695, %v6295_v63 }
 0x880   :  { %6458 = vadd.xlane.f32.xlu1 %v13375_v40  ;;  %v13398_v11 = vpop.xlane.xlu1 %6194  ;;  %v13439_v27 = vpop.eup %8841  ;;  %8861 = vpow2.f32 %v6370_v34 }
 0x881   :  { %v13444_v46 = vpop.eup %8843  ;;  %8863 = vpow2.f32 %v6380_v59  ;;  %v6293_v9 = vsub.f32 %v14444_v43, %v13398_v11  ;;  %v6384_v45 = vmul.f32 1.442695, %v6292_v51  ;;  %v14450_v51 = vld [vmem:[#allocation98_spill] sm:$0xff] }
 0x882   :  { %6468 = vadd.xlane.f32.xlu0 %v13382_v1  ;;  %v13410_v0 = vpop.xlane.xlu0 %6204  ;;  %v13451_v57 = vpop.eup %8845  ;;  %8865 = vpow2.f32 %v6382_v36 }
 0x883   :  { %v13458_v62 = vpop.eup %8847  ;;  %8867 = vpow2.f32 %v6376_v44  ;;  %v6298_v20 = vsub.f32 %v14445_v17, %v13410_v0  ;;  %v6386_v15 = vmul.f32 1.442695, %v6293_v9  ;;  %v14447_v0 = vld [vmem:[#allocation95_spill] sm:$0xff] }
 0x884   :  { %6470 = vadd.xlane.f32.xlu1 %v13387_v35  ;;  %v13417_v53 = vpop.xlane.xlu1 %6206  ;;  %v13463_v61 = vpop.eup %8849  ;;  %8869 = vpow2.f32 %v6378_v41  ;;  %v14451_v9 = vld [vmem:[#allocation99_spill] sm:$0xff] }
 0x885   :  { %v13470_v48 = vpop.eup %8851  ;;  %8871 = vpow2.f32 %v6388_v30  ;;  %v6299_v11 = vsub.f32 %v14446_v7, %v13417_v53  ;;  %v6396_v55 = vmul.f32 1.442695, %v6298_v20 }
 0x886   :  { %6464 = vadd.xlane.f32.xlu0 %v13394_v18  ;;  %v13429_v58 = vpop.xlane.xlu0 %6200  ;;  %v13477_v28 = vpop.eup %8853  ;;  %8873 = vpow2.f32 %v6390_v26 }
 0x887   :  { %v13482_v31 = vpop.eup %8855  ;;  %8875 = vpow2.f32 %v6384_v45  ;;  %v6296_v34 = vsub.f32 %v14447_v0, %v13429_v58  ;;  %v6398_v59 = vmul.f32 1.442695, %v6299_v11  ;;  %v14453_v0 = vld [vmem:[#allocation97_spill] sm:$0xff] }
 0x888   :  { %6466 = vadd.xlane.f32.xlu1 %v13401_v12  ;;  %v13436_v29 = vpop.xlane.xlu1 %6202  ;;  %v13489_v22 = vpop.eup %8857  ;;  %8877 = vpow2.f32 %v6386_v15  ;;  %v14452_v15 = vld [vmem:[#allocation96_spill] sm:$0xff] }
 0x889   :  { %v13496_v32 = vpop.eup %8859  ;;  %v6297_v53 = vsub.f32 %v14448_v23, %v13436_v29  ;;  %8879 = vpow2.f32 %v6396_v55  ;;  %v6392_v44 = vmul.f32 1.442695, %v6296_v34  ;;  %v14454_v23 = vld [vmem:[#allocation102_spill] sm:$0xff] }
 0x88a   :  { %6476 = vadd.xlane.f32.xlu0 %v13406_v39  ;;  %v13448_v14 = vpop.xlane.xlu0 %6212  ;;  %v13501_v37 = vpop.eup %8861  ;;  %8881 = vpow2.f32 %v6398_v59 }
 0x88b   :  { %v13508_v52 = vpop.eup %8863  ;;  %v6302_v41 = vsub.f32 %v14449_v3, %v13448_v14  ;;  %v6394_v30 = vmul.f32 1.442695, %v6297_v53  ;;  %8883 = vpow2.f32 %v6392_v44 }
 0x88c   :  { %6478 = vadd.xlane.f32.xlu1 %v13413_v24  ;;  %v13455_v21 = vpop.xlane.xlu1 %6214  ;;  %v13515_v6 = vpop.eup %8865 }
 0x88d   :  { %v13520_v33 = vpop.eup %8867  ;;  %v6303_v29 = vsub.f32 %v14450_v51, %v13455_v21  ;;  %v6404_v43 = vmul.f32 1.442695, %v6302_v41  ;;  %8885 = vpow2.f32 %v6394_v30  ;;  %v14455_v41 = vld [vmem:[#allocation103_spill] sm:$0xff] }
 0x88e   :  { %6472 = vadd.xlane.f32.xlu0 %v13420_v25  ;;  %v13467_v13 = vpop.xlane.xlu0 %6208  ;;  %v13525_v49 = vpop.eup %8869 }
 0x88f   :  { %v13530_v63 = vpop.eup %8871  ;;  %v6300_v45 = vsub.f32 %v14451_v9, %v13467_v13  ;;  %v6406_v20 = vmul.f32 1.442695, %v6303_v29  ;;  %8887 = vpow2.f32 %v6404_v43  ;;  %v14456_v43 = vld [vmem:[#allocation100_spill] sm:$0xff] }
 0x890   :  { %6474 = vadd.xlane.f32.xlu1 %v13425_v42  ;;  %v13474_v10 = vpop.xlane.xlu1 %6210  ;;  %v13535_v26 = vpop.eup %8873 }
 0x891   :  { %v13540_v17 = vpop.eup %8875  ;;  %v6301_v7 = vsub.f32 %v14452_v15, %v13474_v10  ;;  %v6400_v55 = vmul.f32 1.442695, %v6300_v45  ;;  %8889 = vpow2.f32 %v6406_v20  ;;  %v14457_v20 = vld [vmem:[#allocation101_spill] sm:$0xff] }
 0x892   :  { %6484 = vadd.xlane.f32.xlu0 %v13432_v5  ;;  %v13486_v4 = vpop.xlane.xlu0 %6220  ;;  %v13545_v11 = vpop.eup %8877 }
 0x893   :  { %v6306_v13 = vsub.f32 %v14453_v0, %v13486_v4  ;;  %v13550_v34 = vpop.eup %8879  ;;  %v6402_v59 = vmul.f32 1.442695, %v6301_v7  ;;  %8891 = vpow2.f32 %v6400_v55  ;;  %v14458_v0 = vld [vmem:[#allocation39_spill] sm:$0xff] }
 0x894   :  { %6486 = vadd.xlane.f32.xlu1 %v13439_v27  ;;  %v13493_v54 = vpop.xlane.xlu1 %6222  ;;  %v13555_v44 = vpop.eup %8881 }
 0x895   :  { %v6307_v53 = vsub.f32 %v14454_v23, %v13493_v54  ;;  %v6412_v3 = vmul.f32 1.442695, %v6306_v13  ;;  %v13560_v51 = vpop.eup %8883  ;;  %8893 = vpow2.f32 %v6402_v59 }
 0x896   :  { %6480 = vadd.xlane.f32.xlu0 %v13444_v46  ;;  %v13505_v50 = vpop.xlane.xlu0 %6216 }
 0x897   :  { %v6304_v30 = vsub.f32 %v14455_v41, %v13505_v50  ;;  %v6414_v29 = vmul.f32 1.442695, %v6307_v53  ;;  %v13565_v9 = vpop.eup %8885  ;;  %8895 = vpow2.f32 %v6412_v3  ;;  %v14459_v53 = vld [vmem:[#allocation90_spill] sm:$0xff] }
 0x898   :  { %6482 = vadd.xlane.f32.xlu1 %v13451_v57  ;;  %v13512_v16 = vpop.xlane.xlu1 %6218 }
 0x899   :  { %v6305_v54 = vsub.f32 %v14456_v43, %v13512_v16  ;;  %v6408_v45 = vmul.f32 1.442695, %v6304_v30  ;;  %v13569_v50 = vpop.eup %8887  ;;  %8897 = vpow2.f32 %v6414_v29  ;;  %v14460_v30 = vld [vmem:[#allocation38_spill] sm:$0xff] }
 0x89a   :  { %6492 = vadd.xlane.f32.xlu0 %v13458_v62  ;;  %v6229_v36 = vpop.xlane.xlu0 %6228 }
 0x89b   :  { %v6310_v15 = vsub.f32 %v14457_v20, %v6229_v36  ;;  %v6410_v55 = vmul.f32 1.442695, %v6305_v54  ;;  %v13573_v16 = vpop.eup %8889  ;;  %8899 = vpow2.f32 %v6408_v45  ;;  %v14462_v20 = vld [vmem:[#allocation55_spill] sm:$0xff] }
 0x89c   :  { %6494 = vadd.xlane.f32.xlu1 %v13463_v61  ;;  %v6231_v58 = vpop.xlane.xlu1 %6230 }
 0x89d   :  { %v6311_v13 = vsub.f32 %v14458_v0, %v6231_v58  ;;  %v6420_v23 = vmul.f32 1.442695, %v6310_v15  ;;  %v13577_v36 = vpop.eup %8891  ;;  %8901 = vpow2.f32 %v6410_v55  ;;  %v14463_v55 = vld [vmem:[#allocation49_spill] sm:$0xff] }
 0x89e   :  { %6488 = vadd.xlane.f32.xlu0 %v13470_v48  ;;  %v6225_v14 = vpop.xlane.xlu0 %6224 }
 0x89f   :  { %v6308_v3 = vsub.f32 %v14459_v53, %v6225_v14  ;;  %v6422_v41 = vmul.f32 1.442695, %v6311_v13  ;;  %v13581_v58 = vpop.eup %8893  ;;  %8903 = vpow2.f32 %v6420_v23 }
 0x8a0   :  { %6490 = vadd.xlane.f32.xlu1 %v13477_v28  ;;  %v6227_v21 = vpop.xlane.xlu1 %6226  ;;  %14461 = vst [vmem:[#allocation13_spill] sm:$0xff] %v13581_v58 }
 0x8a1   :  { %v6309_v29 = vsub.f32 %v14460_v30, %v6227_v21  ;;  %v6416_v54 = vmul.f32 1.442695, %v6308_v3  ;;  %v13585_v14 = vpop.eup %8895  ;;  %8905 = vpow2.f32 %v6422_v41  ;;  %v14465_v30 = vld [vmem:[#allocation36_spill] sm:$0xff] }
 0x8a2   :  { %6500 = vadd.xlane.f32.xlu0 %v13482_v31  ;;  %v6237_v10 = vpop.xlane.xlu0 %6236 }
 0x8a3   :  { %v6314_v45 = vsub.f32 %v14462_v20, %v6237_v10  ;;  %v6418_v0 = vmul.f32 1.442695, %v6309_v29  ;;  %v13589_v21 = vpop.eup %8897  ;;  %8907 = vpow2.f32 %v6416_v54  ;;  %v14468_v54 = vld [vmem:[#allocation72_spill] sm:$0xff] }
 0x8a4   :  { %6502 = vadd.xlane.f32.xlu1 %v13489_v22  ;;  %v6239_v4 = vpop.xlane.xlu1 %6238  ;;  %14464 = vst [vmem:[#allocation9_spill] sm:$0xff] %v13589_v21 }
 0x8a5   :  { %v6315_v13 = vsub.f32 %v14463_v55, %v6239_v4  ;;  %v6428_v53 = vmul.f32 1.442695, %v6314_v45  ;;  %v13593_v10 = vpop.eup %8899  ;;  %8909 = vpow2.f32 %v6418_v0 }
 0x8a6   :  { %6496 = vadd.xlane.f32.xlu0 %v13496_v32  ;;  %v6233_v7 = vpop.xlane.xlu0 %6232  ;;  %14466 = vst [vmem:[#allocation76_spill] sm:$0xff] %v13593_v10 }
 0x8a7   :  { %v6312_v23 = vsub.f32 %v14465_v30, %v6233_v7  ;;  %v6430_v20 = vmul.f32 1.442695, %v6315_v13  ;;  %v13597_v4 = vpop.eup %8901  ;;  %8911 = vpow2.f32 %v6428_v53 }
 0x8a8   :  { %6498 = vadd.xlane.f32.xlu1 %v13501_v37  ;;  %v6235_v59 = vpop.xlane.xlu1 %6234 }
 0x8a9   :  { %v6424_v55 = vmul.f32 1.442695, %v6312_v23  ;;  %v13601_v7 = vpop.eup %8903  ;;  %8913 = vpow2.f32 %v6430_v20  ;;  %v14473_v20 = vld [vmem:[#allocation26_spill] sm:$0xff] }
 0x8aa   :  { %6508 = vadd.xlane.f32.xlu0 %v13508_v52  ;;  %v6245_v43 = vpop.xlane.xlu0 %6244  ;;  %14469 = vst [vmem:[#allocation11_spill] sm:$0xff] %v13601_v7 }
 0x8ab   :  { %v6318_v45 = vsub.f32 %v14468_v54, %v6245_v43  ;;  %8915 = vpow2.f32 %v6424_v55 }
 0x8ac   :  { %6510 = vadd.xlane.f32.xlu1 %v13515_v6  ;;  %v6247_v15 = vpop.xlane.xlu1 %6246 }
 0x8ae   :  { %6504 = vadd.xlane.f32.xlu0 %v13520_v33  ;;  %v6241_v3 = vpop.xlane.xlu0 %6240 }
 0x8b0   :  { %6506 = vadd.xlane.f32.xlu1 %v13525_v49  ;;  %v6243_v29 = vpop.xlane.xlu1 %6242 }
 0x8b2   :  { %6516 = vadd.xlane.f32.xlu0 %v13530_v63  ;;  %v6253_v13 = vpop.xlane.xlu0 %6252 }
 0x8b4   :  { %6518 = vadd.xlane.f32.xlu1 %v13535_v26  ;;  %v6255_v23 = vpop.xlane.xlu1 %6254 }
 0x8b6   :  { %6512 = vadd.xlane.f32.xlu0 %v13540_v17 }
 0x8b8   :  { %6514 = vadd.xlane.f32.xlu1 %v13545_v11 }
 0x8ba   :  { %6524 = vadd.xlane.f32.xlu0 %v13550_v34 }
 0x8bc   :  { %6526 = vadd.xlane.f32.xlu1 %v13555_v44 }
 0x8be   :  { %6520 = vadd.xlane.f32.xlu0 %v13560_v51 }
 0x8c0   :  { %6522 = vadd.xlane.f32.xlu1 %v13565_v9 }
 0x8c2   :  { %6532 = vadd.xlane.f32.xlu0 %v13569_v50 }
 0x8c4   :  { %6534 = vadd.xlane.f32.xlu1 %v13573_v16 }
 0x8c6   :  { %6528 = vadd.xlane.f32.xlu0 %v13577_v36 }
 0x8c8   :  { %6530 = vadd.xlane.f32.xlu1 %v13581_v58  ;;  %v14467_v58 = vld [vmem:[#allocation41_spill] sm:$0xff] }
 0x8c9   :  { %v6313_v41 = vsub.f32 %v14467_v58, %v6235_v59  ;;  %v13605_v59 = vpop.eup %8905  ;;  %v6436_v58 = vmul.f32 1.442695, %v6318_v45  ;;  %v6249_v45 = vpop.xlane.xlu0 %6248 }
 0x8ca   :  { %6540 = vadd.xlane.f32.xlu0 %v13585_v14  ;;  %14471 = vst [vmem:[#allocation81_spill] sm:$0xff] %v13605_v59  ;;  %v13609_v43 = vpop.eup %8907 }
 0x8cb   :  { %v6426_v30 = vmul.f32 1.442695, %v6313_v41  ;;  %v6317_v41 = vsub.f32 %v14473_v20, %v6243_v29 }
 0x8cc   :  { %6542 = vadd.xlane.f32.xlu1 %v13589_v21  ;;  %v14470_v21 = vld [vmem:[#allocation25_spill] sm:$0xff] }
 0x8cd   :  { %v6319_v0 = vsub.f32 %v14470_v21, %v6247_v15  ;;  %8917 = vpow2.f32 %v6426_v30  ;;  %v13613_v15 = vpop.eup %8909 }
 0x8ce   :  { %6536 = vadd.xlane.f32.xlu0 %v13593_v10  ;;  %v14472_v10 = vld [vmem:[#allocation53_spill] sm:$0xff]  ;;  %14474 = vst [vmem:[#allocation91_spill] sm:$0xff] %v13613_v15  ;;  %8919 = vpow2.f32 %v6436_v58  ;;  %v14477_v58 = vld [vmem:[#allocation60_spill] sm:$0xff] }
 0x8cf   :  { %v6316_v53 = vsub.f32 %v14472_v10, %v6241_v3  ;;  %v6438_v54 = vmul.f32 1.442695, %v6319_v0  ;;  %v13617_v3 = vpop.eup %8911  ;;  %v6434_v10 = vmul.f32 1.442695, %v6317_v41  ;;  %v6251_v0 = vpop.xlane.xlu1 %6250 }
 0x8d0   :  { %6538 = vadd.xlane.f32.xlu1 %v13597_v4  ;;  %v13621_v29 = vpop.eup %8913 }
 0x8d1   :  { %v6432_v21 = vmul.f32 1.442695, %v6316_v53  ;;  %8921 = vpow2.f32 %v6438_v54  ;;  %v6320_v53 = vsub.f32 %v14477_v58, %v6249_v45 }
 0x8d2   :  { %6548 = vadd.xlane.f32.xlu0 %v13601_v7  ;;  %v14475_v7 = vld [vmem:[#allocation7_spill] sm:$0xff] }
 0x8d3   :  { %v6322_v55 = vsub.f32 %v14475_v7, %v6253_v13  ;;  %8923 = vpow2.f32 %v6432_v21  ;;  %v13625_v7 = vpop.eup %8915 }
 0x8d4   :  { %6550 = vadd.xlane.f32.xlu1 %v13605_v59  ;;  %v14476_v59 = vld [vmem:[#allocation6_spill] sm:$0xff]  ;;  %8925 = vpow2.f32 %v6434_v10 }
 0x8d5   :  { %v6323_v30 = vsub.f32 %v14476_v59, %v6255_v23  ;;  %v6444_v20 = vmul.f32 1.442695, %v6322_v55  ;;  %v6440_v23 = vmul.f32 1.442695, %v6320_v53 }
 0x8d6   :  { %6544 = vadd.xlane.f32.xlu0 %v13609_v43 }
 0x8d7   :  { %v6446_v13 = vmul.f32 1.442695, %v6323_v30  ;;  %v13629_v59 = vpop.eup %8917  ;;  %8927 = vpow2.f32 %v6444_v20 }
 0x8d8   :  { %6546 = vadd.xlane.f32.xlu1 %v13613_v15  ;;  %v14478_v15 = vld [vmem:[#allocation5_spill] sm:$0xff]  ;;  %v13632_v41 = vpop.eup %8919 }
 0x8d9   :  { %v6321_v54 = vsub.f32 %v14478_v15, %v6251_v0  ;;  %14479 = vst [vmem:[#allocation29_spill] sm:$0xff] %v13632_v41  ;;  %8929 = vpow2.f32 %v6446_v13 }
 0x8da   :  { %6556 = vadd.xlane.f32.xlu0 %v13617_v3  ;;  %8931 = vpow2.f32 %v6440_v23 }
 0x8db   :  { %v6442_v21 = vmul.f32 1.442695, %v6321_v54  ;;  %v13635_v55 = vpop.eup %8921 }
 0x8dc   :  { %6558 = vadd.xlane.f32.xlu1 %v13621_v29  ;;  %14480 = vst [vmem:[#allocation31_spill] sm:$0xff] %v13635_v55 }
 0x8dd   :  { %v13638_v15 = vpop.eup %8923  ;;  %8933 = vpow2.f32 %v6442_v21 }
 0x8de   :  { %6552 = vadd.xlane.f32.xlu0 %v13625_v7  ;;  %14481 = vst [vmem:[#allocation30_spill] sm:$0xff] %v13638_v15  ;;  %v13641_v45 = vpop.eup %8925 }
 0x8df   :  { %14482 = vst [vmem:[#allocation32_spill] sm:$0xff] %v13641_v45 }
 0x8e0   :  { %6554 = vadd.xlane.f32.xlu1 %v13629_v59 }
 0x8e1   :  { %v13644_v10 = vpop.eup %8927 }
 0x8e2   :  { %6564 = vadd.xlane.f32.xlu0 %v13632_v41  ;;  %14483 = vst [vmem:[#allocation33_spill] sm:$0xff] %v13644_v10 }
 0x8e3   :  { %v13647_v30 = vpop.eup %8929 }
 0x8e4   :  { %6566 = vadd.xlane.f32.xlu1 %v13635_v55  ;;  %14484 = vst [vmem:[#allocation34_spill] sm:$0xff] %v13647_v30  ;;  %v13650_v0 = vpop.eup %8931 }
 0x8e5   :  { %14485 = vst [vmem:[#allocation35_spill] sm:$0xff] %v13650_v0 }
 0x8e6   :  { %6560 = vadd.xlane.f32.xlu0 %v13638_v15 }
 0x8e7   :  { %v13653_v20 = vpop.eup %8933 }
 0x8e8   :  { %6562 = vadd.xlane.f32.xlu1 %v13641_v45  ;;  %14486 = vst [vmem:[#allocation37_spill] sm:$0xff] %v13653_v20 }
 0x8ea   :  { %6572 = vadd.xlane.f32.xlu0 %v13644_v10 }
 0x8ec   :  { %6574 = vadd.xlane.f32.xlu1 %v13647_v30 }
 0x8ee   :  { %6568 = vadd.xlane.f32.xlu0 %v13650_v0 }
 0x8f0   :  { %6570 = vadd.xlane.f32.xlu1 %v13653_v20 }
 0x8ff   :  { %v6261_v58 = vpop.xlane.xlu0 %6260 }
 0x900   :  { %v6326_v53 = vsub.f32 %v13331_v38, %v6261_v58 }
 0x901   :  { %v6263_v13 = vpop.xlane.xlu1 %6262 }
 0x902   :  { %v6452_v54 = vmul.f32 1.442695, %v6326_v53  ;;  %v6327_v10 = vsub.f32 %v13335_v56, %v6263_v13 }
 0x903   :  { %v6257_v23 = vpop.xlane.xlu0 %6256 }
 0x904   :  { %v6324_v21 = vsub.f32 %v13342_v8, %v6257_v23  ;;  %8935 = vpow2.f32 %v6452_v54  ;;  %v6454_v41 = vmul.f32 1.442695, %v6327_v10 }
 0x905   :  { %v6259_v45 = vpop.xlane.xlu1 %6258 }
 0x906   :  { %v6448_v30 = vmul.f32 1.442695, %v6324_v21  ;;  %v6325_v15 = vsub.f32 %v13349_v47, %v6259_v45 }
 0x907   :  { %v6461_v0 = vpop.xlane.xlu0 %6460 }
 0x908   :  { %8937 = vpow2.f32 %v6448_v30  ;;  %v6450_v55 = vmul.f32 1.442695, %v6325_v15 }
 0x909   :  { %8939 = vrcp.f32 %v6461_v0  ;;  %v6463_v20 = vpop.xlane.xlu1 %6462 }
 0x90a   :  { %8941 = vpow2.f32 %v6450_v55 }
 0x90b   :  { %8943 = vrcp.f32 %v6463_v20  ;;  %v6457_v38 = vpop.xlane.xlu0 %6456 }
 0x90c   :  { %8945 = vrcp.f32 %v6457_v38 }
 0x90d   :  { %8947 = vpow2.f32 %v6454_v41  ;;  %v6459_v58 = vpop.xlane.xlu1 %6458 }
 0x90e   :  { %8949 = vrcp.f32 %v6459_v58  ;;  %v13660_v56 = vpop.eup %8935 }
 0x90f   :  { %v6469_v8 = vpop.xlane.xlu0 %6468 }
 0x910   :  { %8951 = vrcp.f32 %v6469_v8 }
 0x911   :  { %v6471_v53 = vpop.xlane.xlu1 %6470 }
 0x912   :  { %v13662_v47 = vpop.eup %8937  ;;  %8953 = vrcp.f32 %v6471_v53 }
 0x913   :  { %v8940_v45 = vpop.eup %8939  ;;  %6576 = vadd.xlane.f32.xlu0 %v13662_v47  ;;  %v6465_v15 = vpop.xlane.xlu0 %6464 }
 0x914   :  { %v13665_v10 = vpop.eup %8941  ;;  %8955 = vrcp.f32 %v6465_v15  ;;  %v6650_v0 = vmul.f32 %v8940_v45, %v13356_v60 }
 0x915   :  { %v8944_v55 = vpop.eup %8943  ;;  %6578 = vadd.xlane.f32.xlu1 %v13665_v10  ;;  %v6467_v41 = vpop.xlane.xlu1 %6466 }
 0x916   :  { %v8946_v30 = vpop.eup %8945  ;;  %v6651_v20 = vmul.f32 %v8944_v55, %v13363_v2  ;;  %8957 = vrcp.f32 %v6467_v41 }
 0x917   :  { %v13670_v13 = vpop.eup %8947  ;;  %6580 = vadd.xlane.f32.xlu0 %v13660_v56  ;;  %v6477_v54 = vpop.xlane.xlu0 %6476  ;;  %v6648_v38 = vmul.f32 %v8946_v30, %v13368_v19 }
 0x918   :  { %v8950_v23 = vpop.eup %8949  ;;  %v7381_v21 = vpack.c.bf16 %v6651_v20, %v6650_v0  ;;  %8959 = vrcp.f32 %v6477_v54 }
 0x919   :  { %v6649_v58 = vmul.f32 %v8950_v23, %v13375_v40  ;;  %6582 = vadd.xlane.f32.xlu1 %v13670_v13  ;;  %v6479_v8 = vpop.xlane.xlu1 %6478 }
 0x91a   :  { %v8952_v53 = vpop.eup %8951  ;;  %7533 = vst [vmem:[#allocation2 + $0x8] sm:$0xff] %v7381_v21   ;;  %8961 = vrcp.f32 %v6479_v8 }
 0x91b   :  { %v7376_v60 = vpack.c.bf16 %v6649_v58, %v6648_v38  ;;  %v6473_v2 = vpop.xlane.xlu0 %6472  ;;  %v6654_v15 = vmul.f32 %v8952_v53, %v13382_v1 }
 0x91c   :  { %v8954_v45 = vpop.eup %8953  ;;  %8963 = vrcp.f32 %v6473_v2 }
 0x91d   :  { %7377 = vst [vmem:[#allocation2] sm:$0xff] %v7376_v60   ;;  %v6655_v55 = vmul.f32 %v8954_v45, %v13387_v35  ;;  %v6475_v41 = vpop.xlane.xlu1 %6474 }
 0x91e   :  { %v8956_v0 = vpop.eup %8955  ;;  %8965 = vrcp.f32 %v6475_v41 }
 0x91f   :  { %v7391_v19 = vpack.c.bf16 %v6655_v55, %v6654_v15  ;;  %v6485_v40 = vpop.xlane.xlu0 %6484  ;;  %v6652_v20 = vmul.f32 %v8956_v0, %v13394_v18 }
 0x920   :  { %v8958_v30 = vpop.eup %8957  ;;  %8967 = vrcp.f32 %v6485_v40 }
 0x921   :  { %7535 = vst [vmem:[#allocation2 + $0x18] sm:$0xff] %v7391_v19   ;;  %v6653_v54 = vmul.f32 %v8958_v30, %v13401_v12  ;;  %v6487_v23 = vpop.xlane.xlu1 %6486 }
 0x922   :  { %v8960_v21 = vpop.eup %8959  ;;  %8969 = vrcp.f32 %v6487_v23 }
 0x923   :  { %v7386_v38 = vpack.c.bf16 %v6653_v54, %v6652_v20  ;;  %v6481_v58 = vpop.xlane.xlu0 %6480  ;;  %v6658_v35 = vmul.f32 %v8960_v21, %v13406_v39 }
 0x924   :  { %v8962_v1 = vpop.eup %8961  ;;  %8971 = vrcp.f32 %v6481_v58 }
 0x925   :  { %7534 = vst [vmem:[#allocation2 + $0x10] sm:$0xff] %v7386_v38   ;;  %v6659_v8 = vmul.f32 %v8962_v1, %v13413_v24  ;;  %v6483_v53 = vpop.xlane.xlu1 %6482 }
 0x926   :  { %v8964_v60 = vpop.eup %8963  ;;  %8973 = vrcp.f32 %v6483_v53 }
 0x927   :  { %v7401_v2 = vpack.c.bf16 %v6659_v8, %v6658_v35  ;;  %v6493_v45 = vpop.xlane.xlu0 %6492  ;;  %v6656_v12 = vmul.f32 %v8964_v60, %v13420_v25 }
 0x928   :  { %v8966_v18 = vpop.eup %8965  ;;  %8975 = vrcp.f32 %v6493_v45 }
 0x929   :  { %7537 = vst [vmem:[#allocation2 + $0x28] sm:$0xff] %v7401_v2   ;;  %v6657_v15 = vmul.f32 %v8966_v18, %v13425_v42  ;;  %v6495_v55 = vpop.xlane.xlu1 %6494 }
 0x92a   :  { %v8968_v41 = vpop.eup %8967  ;;  %8977 = vrcp.f32 %v6495_v55 }
 0x92b   :  { %v7396_v0 = vpack.c.bf16 %v6657_v15, %v6656_v12  ;;  %v6489_v19 = vpop.xlane.xlu0 %6488  ;;  %v6662_v24 = vmul.f32 %v8968_v41, %v13432_v5 }
 0x92c   :  { %v8970_v39 = vpop.eup %8969  ;;  %8979 = vrcp.f32 %v6489_v19 }
 0x92d   :  { %7536 = vst [vmem:[#allocation2 + $0x20] sm:$0xff] %v7396_v0   ;;  %v6663_v40 = vmul.f32 %v8970_v39, %v13439_v27  ;;  %v6491_v30 = vpop.xlane.xlu1 %6490 }
 0x92e   :  { %v8972_v20 = vpop.eup %8971  ;;  %8981 = vrcp.f32 %v6491_v30 }
 0x92f   :  { %v7411_v54 = vpack.c.bf16 %v6663_v40, %v6662_v24  ;;  %v6501_v23 = vpop.xlane.xlu0 %6500  ;;  %v6660_v42 = vmul.f32 %v8972_v20, %v13444_v46 }
 0x930   :  { %v8974_v25 = vpop.eup %8973  ;;  %8983 = vrcp.f32 %v6501_v23 }
 0x931   :  { %7539 = vst [vmem:[#allocation2 + $0x38] sm:$0xff] %v7411_v54   ;;  %v6661_v21 = vmul.f32 %v8974_v25, %v13451_v57  ;;  %v6503_v38 = vpop.xlane.xlu1 %6502 }
 0x932   :  { %v8976_v58 = vpop.eup %8975  ;;  %8985 = vrcp.f32 %v6503_v38 }
 0x933   :  { %v7406_v1 = vpack.c.bf16 %v6661_v21, %v6660_v42  ;;  %v6497_v35 = vpop.xlane.xlu0 %6496  ;;  %v6666_v27 = vmul.f32 %v8976_v58, %v13458_v62 }
 0x934   :  { %v8978_v5 = vpop.eup %8977  ;;  %8987 = vrcp.f32 %v6497_v35 }
 0x935   :  { %7538 = vst [vmem:[#allocation2 + $0x30] sm:$0xff] %v7406_v1   ;;  %v6667_v8 = vmul.f32 %v8978_v5, %v13463_v61  ;;  %v6499_v53 = vpop.xlane.xlu1 %6498 }
 0x936   :  { %v8980_v60 = vpop.eup %8979  ;;  %8989 = vrcp.f32 %v6499_v53 }
 0x937   :  { %v7421_v2 = vpack.c.bf16 %v6667_v8, %v6666_v27  ;;  %v6509_v45 = vpop.xlane.xlu0 %6508  ;;  %v6664_v57 = vmul.f32 %v8980_v60, %v13470_v48 }
 0x938   :  { %v8982_v46 = vpop.eup %8981  ;;  %8991 = vrcp.f32 %v6509_v45 }
 0x939   :  { %7541 = vst [vmem:[#allocation2 + $0x48] sm:$0xff] %v7421_v2   ;;  %v6665_v18 = vmul.f32 %v8982_v46, %v13477_v28  ;;  %v6511_v12 = vpop.xlane.xlu1 %6510 }
 0x93a   :  { %v8984_v15 = vpop.eup %8983  ;;  %8993 = vrcp.f32 %v6511_v12 }
 0x93b   :  { %v7416_v55 = vpack.c.bf16 %v6665_v18, %v6664_v57  ;;  %v6505_v41 = vpop.xlane.xlu0 %6504  ;;  %v6670_v61 = vmul.f32 %v8984_v15, %v13482_v31 }
 0x93c   :  { %v8986_v62 = vpop.eup %8985  ;;  %8995 = vrcp.f32 %v6505_v41 }
 0x93d   :  { %7540 = vst [vmem:[#allocation2 + $0x40] sm:$0xff] %v7416_v55   ;;  %v6671_v0 = vmul.f32 %v8986_v62, %v13489_v22  ;;  %v6507_v19 = vpop.xlane.xlu1 %6506 }
 0x93e   :  { %v8988_v39 = vpop.eup %8987  ;;  %8997 = vrcp.f32 %v6507_v19 }
 0x93f   :  { %v7431_v24 = vpack.c.bf16 %v6671_v0, %v6670_v61  ;;  %v6517_v40 = vpop.xlane.xlu0 %6516  ;;  %v6668_v28 = vmul.f32 %v8988_v39, %v13496_v32 }
 0x940   :  { %v8990_v48 = vpop.eup %8989  ;;  %8999 = vrcp.f32 %v6517_v40 }
 0x941   :  { %7543 = vst [vmem:[#allocation2 + $0x58] sm:$0xff] %v7431_v24   ;;  %v6669_v30 = vmul.f32 %v8990_v48, %v13501_v37  ;;  %v6519_v20 = vpop.xlane.xlu1 %6518 }
 0x942   :  { %v8992_v54 = vpop.eup %8991  ;;  %9001 = vrcp.f32 %v6519_v20 }
 0x943   :  { %v7426_v23 = vpack.c.bf16 %v6669_v30, %v6668_v28  ;;  %v6513_v25 = vpop.xlane.xlu0 %6512  ;;  %v6674_v22 = vmul.f32 %v8992_v54, %v13508_v52 }
 0x944   :  { %v8994_v31 = vpop.eup %8993  ;;  %9003 = vrcp.f32 %v6513_v25 }
 0x945   :  { %7542 = vst [vmem:[#allocation2 + $0x50] sm:$0xff] %v7426_v23   ;;  %v6675_v42 = vmul.f32 %v8994_v31, %v13515_v6  ;;  %v6515_v21 = vpop.xlane.xlu1 %6514 }
 0x946   :  { %v8996_v38 = vpop.eup %8995  ;;  %9005 = vrcp.f32 %v6515_v21 }
 0x947   :  { %v7441_v58 = vpack.c.bf16 %v6675_v42, %v6674_v22  ;;  %v6525_v1 = vpop.xlane.xlu0 %6524  ;;  %v6672_v37 = vmul.f32 %v8996_v38, %v13520_v33  ;;  %v14487_v22 = vld [vmem:[#allocation13_spill] sm:$0xff] }
 0x948   :  { %v8998_v32 = vpop.eup %8997  ;;  %9007 = vrcp.f32 %v6525_v1 }
 0x949   :  { %7545 = vst [vmem:[#allocation2 + $0x68] sm:$0xff] %v7441_v58   ;;  %v6673_v35 = vmul.f32 %v8998_v32, %v13525_v49  ;;  %v6527_v5 = vpop.xlane.xlu1 %6526  ;;  %v14488_v32 = vld [vmem:[#allocation9_spill] sm:$0xff] }
 0x94a   :  { %v9000_v27 = vpop.eup %8999  ;;  %9009 = vrcp.f32 %v6527_v5 }
 0x94b   :  { %v7436_v8 = vpack.c.bf16 %v6673_v35, %v6672_v37  ;;  %v6521_v53 = vpop.xlane.xlu0 %6520  ;;  %v6678_v6 = vmul.f32 %v9000_v27, %v13530_v63 }
 0x94c   :  { %v9002_v52 = vpop.eup %9001  ;;  %9011 = vrcp.f32 %v6521_v53  ;;  %v14489_v53 = vld [vmem:[#allocation76_spill] sm:$0xff] }
 0x94d   :  { %7544 = vst [vmem:[#allocation2 + $0x60] sm:$0xff] %v7436_v8   ;;  %v6679_v60 = vmul.f32 %v9002_v52, %v13535_v26  ;;  %v6523_v2 = vpop.xlane.xlu1 %6522 }
 0x94e   :  { %v9004_v45 = vpop.eup %9003  ;;  %9013 = vrcp.f32 %v6523_v2 }
 0x94f   :  { %v7451_v46 = vpack.c.bf16 %v6679_v60, %v6678_v6  ;;  %v6533_v57 = vpop.xlane.xlu0 %6532  ;;  %v6676_v49 = vmul.f32 %v9004_v45, %v13540_v17 }
 0x950   :  { %v9006_v33 = vpop.eup %9005  ;;  %9015 = vrcp.f32 %v6533_v57  ;;  %v14490_v57 = vld [vmem:[#allocation11_spill] sm:$0xff] }
 0x951   :  { %7547 = vst [vmem:[#allocation2 + $0x78] sm:$0xff] %v7451_v46   ;;  %v6677_v18 = vmul.f32 %v9006_v33, %v13545_v11  ;;  %v6535_v12 = vpop.xlane.xlu1 %6534 }
 0x952   :  { %v9008_v15 = vpop.eup %9007  ;;  %9017 = vrcp.f32 %v6535_v12 }
 0x953   :  { %v7446_v55 = vpack.c.bf16 %v6677_v18, %v6676_v49  ;;  %v6529_v41 = vpop.xlane.xlu0 %6528  ;;  %v6682_v26 = vmul.f32 %v9008_v15, %v13550_v34  ;;  %v14491_v49 = vld [vmem:[#allocation81_spill] sm:$0xff] }
 0x954   :  { %v9010_v63 = vpop.eup %9009  ;;  %9019 = vrcp.f32 %v6529_v41 }
 0x955   :  { %7546 = vst [vmem:[#allocation2 + $0x70] sm:$0xff] %v7446_v55   ;;  %v6683_v62 = vmul.f32 %v9010_v63, %v13555_v44  ;;  %v6531_v61 = vpop.xlane.xlu1 %6530 }
 0x956   :  { %v9012_v0 = vpop.eup %9011  ;;  %9021 = vrcp.f32 %v6531_v61 }
 0x957   :  { %v7461_v19 = vpack.c.bf16 %v6683_v62, %v6682_v26  ;;  %v6541_v39 = vpop.xlane.xlu0 %6540  ;;  %v6680_v11 = vmul.f32 %v9012_v0, %v13560_v51  ;;  %v14492_v26 = vld [vmem:[#allocation91_spill] sm:$0xff] }
 0x958   :  { %v9014_v17 = vpop.eup %9013  ;;  %9023 = vrcp.f32 %v6541_v39 }
 0x959   :  { %7549 = vst [vmem:[#allocation2 + $0x88] sm:$0xff] %v7461_v19   ;;  %v6681_v24 = vmul.f32 %v9014_v17, %v13565_v9  ;;  %v6543_v40 = vpop.xlane.xlu1 %6542 }
 0x95a   :  { %v9016_v48 = vpop.eup %9015  ;;  %9025 = vrcp.f32 %v6543_v40 }
 0x95b   :  { %v7456_v28 = vpack.c.bf16 %v6681_v24, %v6680_v11  ;;  %v6537_v30 = vpop.xlane.xlu0 %6536  ;;  %v6686_v44 = vmul.f32 %v9016_v48, %v13569_v50 }
 0x95c   :  { %v9018_v34 = vpop.eup %9017  ;;  %9027 = vrcp.f32 %v6537_v30 }
 0x95d   :  { %7548 = vst [vmem:[#allocation2 + $0x80] sm:$0xff] %v7456_v28   ;;  %v6687_v20 = vmul.f32 %v9018_v34, %v13573_v16  ;;  %v6539_v54 = vpop.xlane.xlu1 %6538 }
 0x95e   :  { %v9020_v23 = vpop.eup %9019  ;;  %9029 = vrcp.f32 %v6539_v54 }
 0x95f   :  { %v7471_v25 = vpack.c.bf16 %v6687_v20, %v6686_v44  ;;  %v6549_v31 = vpop.xlane.xlu0 %6548  ;;  %v6684_v9 = vmul.f32 %v9020_v23, %v13577_v36 }
 0x960   :  { %v9022_v51 = vpop.eup %9021  ;;  %9031 = vrcp.f32 %v6549_v31 }
 0x961   :  { %7551 = vst [vmem:[#allocation2 + $0x98] sm:$0xff] %v7471_v25   ;;  %v6685_v42 = vmul.f32 %v9022_v51, %v14487_v22  ;;  %v6551_v21 = vpop.xlane.xlu1 %6550  ;;  %v14494_v51 = vld [vmem:[#allocation31_spill] sm:$0xff] }
 0x962   :  { %v9024_v38 = vpop.eup %9023  ;;  %9033 = vrcp.f32 %v6551_v21 }
 0x963   :  { %v7466_v58 = vpack.c.bf16 %v6685_v42, %v6684_v9  ;;  %v6545_v1 = vpop.xlane.xlu0 %6544  ;;  %v6690_v16 = vmul.f32 %v9024_v38, %v13585_v14 }
 0x964   :  { %v9026_v50 = vpop.eup %9025  ;;  %9035 = vrcp.f32 %v6545_v1 }
 0x965   :  { %7550 = vst [vmem:[#allocation2 + $0x90] sm:$0xff] %v7466_v58   ;;  %v6691_v37 = vmul.f32 %v9026_v50, %v14488_v32  ;;  %v6547_v35 = vpop.xlane.xlu1 %6546  ;;  %v14496_v58 = vld [vmem:[#allocation32_spill] sm:$0xff] }
 0x966   :  { %v9028_v5 = vpop.eup %9027  ;;  %9037 = vrcp.f32 %v6547_v35 }
 0x967   :  { %v7481_v27 = vpack.c.bf16 %v6691_v37, %v6690_v16  ;;  %v6557_v8 = vpop.xlane.xlu0 %6556  ;;  %v6688_v52 = vmul.f32 %v9028_v5, %v14489_v53  ;;  %v14497_v37 = vld [vmem:[#allocation33_spill] sm:$0xff]  ;;  %v14498_v5 = vld [vmem:[#allocation34_spill] sm:$0xff] }
 0x968   :  { %v9030_v36 = vpop.eup %9029  ;;  %9039 = vrcp.f32 %v6557_v8 }
 0x969   :  { %7553 = vst [vmem:[#allocation2 + $0xa8] sm:$0xff] %v7481_v27   ;;  %v6689_v6 = vmul.f32 %v9030_v36, %v13597_v4  ;;  %v6559_v60 = vpop.xlane.xlu1 %6558 }
 0x96a   :  { %v9032_v2 = vpop.eup %9031  ;;  %9041 = vrcp.f32 %v6559_v60  ;;  %v14500_v60 = vld [vmem:[#allocation37_spill] sm:$0xff] }
 0x96b   :  { %v7476_v45 = vpack.c.bf16 %v6689_v6, %v6688_v52  ;;  %v6553_v46 = vpop.xlane.xlu0 %6552  ;;  %v6694_v33 = vmul.f32 %v9032_v2, %v14490_v57  ;;  %v14499_v52 = vld [vmem:[#allocation35_spill] sm:$0xff] }
 0x96c   :  { %v9034_v14 = vpop.eup %9033  ;;  %9043 = vrcp.f32 %v6553_v46 }
 0x96d   :  { %7552 = vst [vmem:[#allocation2 + $0xa0] sm:$0xff] %v7476_v45   ;;  %v6695_v18 = vmul.f32 %v9034_v14, %v14491_v49  ;;  %v6555_v12 = vpop.xlane.xlu1 %6554 }
 0x96e   :  { %v9036_v15 = vpop.eup %9035  ;;  %9045 = vrcp.f32 %v6555_v12 }
 0x96f   :  { %v7491_v55 = vpack.c.bf16 %v6695_v18, %v6694_v33  ;;  %v6565_v41 = vpop.xlane.xlu0 %6564  ;;  %v6692_v4 = vmul.f32 %v9036_v15, %v13609_v43 }
 0x970   :  { %v9038_v63 = vpop.eup %9037  ;;  %9047 = vrcp.f32 %v6565_v41 }
 0x971   :  { %7555 = vst [vmem:[#allocation2 + $0xb8] sm:$0xff] %v7491_v55   ;;  %v6693_v62 = vmul.f32 %v9038_v63, %v14492_v26  ;;  %v6567_v61 = vpop.xlane.xlu1 %6566 }
 0x972   :  { %v9040_v0 = vpop.eup %9039  ;;  %9049 = vrcp.f32 %v6567_v61 }
 0x973   :  { %v7486_v19 = vpack.c.bf16 %v6693_v62, %v6692_v4  ;;  %v6561_v39 = vpop.xlane.xlu0 %6560  ;;  %v6698_v11 = vmul.f32 %v9040_v0, %v13617_v3 }
 0x974   :  { %v9042_v17 = vpop.eup %9041  ;;  %9051 = vrcp.f32 %v6561_v39 }
 0x975   :  { %7554 = vst [vmem:[#allocation2 + $0xb0] sm:$0xff] %v7486_v19   ;;  %v6699_v24 = vmul.f32 %v9042_v17, %v13621_v29  ;;  %v6563_v40 = vpop.xlane.xlu1 %6562  ;;  %v14493_v29 = vld [vmem:[#allocation29_spill] sm:$0xff] }
 0x976   :  { %v9044_v48 = vpop.eup %9043  ;;  %9053 = vrcp.f32 %v6563_v40 }
 0x977   :  { %v7501_v28 = vpack.c.bf16 %v6699_v24, %v6698_v11  ;;  %v6573_v30 = vpop.xlane.xlu0 %6572  ;;  %v6696_v34 = vmul.f32 %v9044_v48, %v13625_v7  ;;  %v14495_v7 = vld [vmem:[#allocation30_spill] sm:$0xff] }
 0x978   :  { %v9046_v43 = vpop.eup %9045  ;;  %9055 = vrcp.f32 %v6573_v30 }
 0x979   :  { %7557 = vst [vmem:[#allocation2 + $0xc8] sm:$0xff] %v7501_v28   ;;  %v6697_v44 = vmul.f32 %v9046_v43, %v13629_v59  ;;  %v6575_v20 = vpop.xlane.xlu1 %6574 }
 0x97a   :  { %v9048_v54 = vpop.eup %9047  ;;  %9057 = vrcp.f32 %v6575_v20 }
 0x97b   :  { %v7496_v23 = vpack.c.bf16 %v6697_v44, %v6696_v34  ;;  %v6569_v25 = vpop.xlane.xlu0 %6568  ;;  %v6702_v31 = vmul.f32 %v9048_v54, %v14493_v29 }
 0x97c   :  { %v9050_v3 = vpop.eup %9049  ;;  %9059 = vrcp.f32 %v6569_v25 }
 0x97d   :  { %7556 = vst [vmem:[#allocation2 + $0xc0] sm:$0xff] %v7496_v23   ;;  %v6703_v9 = vmul.f32 %v9050_v3, %v14494_v51  ;;  %v6571_v22 = vpop.xlane.xlu1 %6570 }
 0x97e   :  { %v9052_v42 = vpop.eup %9051  ;;  %9061 = vrcp.f32 %v6571_v22 }
 0x97f   :  { %v7511_v21 = vpack.c.bf16 %v6703_v9, %v6702_v31  ;;  %v6700_v59 = vmul.f32 %v9052_v42, %v14495_v7 }
 0x980   :  { %v9054_v38 = vpop.eup %9053 }
 0x981   :  { %7559 = vst [vmem:[#allocation2 + $0xd8] sm:$0xff] %v7511_v21   ;;  %v6701_v1 = vmul.f32 %v9054_v38, %v14496_v58 }
 0x982   :  { %v9056_v50 = vpop.eup %9055 }
 0x983   :  { %v7506_v16 = vpack.c.bf16 %v6701_v1, %v6700_v59  ;;  %v6706_v35 = vmul.f32 %v9056_v50, %v14497_v37 }
 0x984   :  { %v9058_v32 = vpop.eup %9057 }
 0x985   :  { %7558 = vst [vmem:[#allocation2 + $0xd0] sm:$0xff] %v7506_v16   ;;  %v6707_v27 = vmul.f32 %v9058_v32, %v14498_v5 }
 0x986   :  { %v9060_v8 = vpop.eup %9059 }
 0x987   :  { %v7521_v36 = vpack.c.bf16 %v6707_v27, %v6706_v35  ;;  %v6704_v6 = vmul.f32 %v9060_v8, %v14499_v52 }
 0x988   :  { %v9062_v53 = vpop.eup %9061 }
 0x989   :  { %7561 = vst [vmem:[#allocation2 + $0xe8] sm:$0xff] %v7521_v36   ;;  %v6705_v2 = vmul.f32 %v9062_v53, %v14500_v60 }
 0x98b   :  { %v7516_v45 = vpack.c.bf16 %v6705_v2, %v6704_v6 }
 0x98d   :  { %7560 = vst [vmem:[#allocation2 + $0xe0] sm:$0xff] %v7516_v45  }
 0x9a0   :  { %v6577_v46 = vpop.xlane.xlu0 %6576 }
 0x9a1   :  { %9063 = vrcp.f32 %v6577_v46 }
 0x9a2   :  { %v6579_v14 = vpop.xlane.xlu1 %6578 }
 0x9a3   :  { %9065 = vrcp.f32 %v6579_v14 }
 0x9a4   :  { %v6581_v57 = vpop.xlane.xlu0 %6580 }
 0x9a5   :  { %9067 = vrcp.f32 %v6581_v57 }
 0x9a6   :  { %v6583_v33 = vpop.xlane.xlu1 %6582 }
 0x9a7   :  { %9069 = vrcp.f32 %v6583_v33 }
 0x9ab   :  { %v9064_v49 = vpop.eup %9063 }
 0x9ac   :  { %v6708_v12 = vmul.f32 %v9064_v49, %v13662_v47 }
 0x9ad   :  { %v9066_v18 = vpop.eup %9065 }
 0x9ae   :  { %v6709_v15 = vmul.f32 %v9066_v18, %v13665_v10 }
 0x9af   :  { %v9068_v55 = vpop.eup %9067 }
 0x9b0   :  { %v7526_v41 = vpack.c.bf16 %v6709_v15, %v6708_v12  ;;  %v6710_v4 = vmul.f32 %v9068_v55, %v13660_v56 }
 0x9b1   :  { %v9070_v63 = vpop.eup %9069 }
 0x9b2   :  { %7562 = vst [vmem:[#allocation2 + $0xf0] sm:$0xff] %v7526_v41   ;;  %v6711_v26 = vmul.f32 %v9070_v63, %v13670_v13 }
 0x9b4   :  { %v7531_v62 = vpack.c.bf16 %v6711_v26, %v6710_v4 }
 0x9b6   :  { %7563 = vst [vmem:[#allocation2 + $0xf8] sm:$0xff] %v7531_v62  }
 0x9b7   :  { %9092 = shalt.err (!%p9089_p4)
}
 0x9b8   :  { %s9093_s21 = scalar_lea.hbm %s13759_s11, 4096 }
 0x9b9   :  { %p9094_p5 = scmp.ne.s32.totalorder %s13759_s11, %s9093_s21  ;;  %p9097_p6 = scmp.lt.u32.totalorder %s9093_s21, %s13759_s11 }
 0x9bb   :  { %p9099_p7 = pnand %p9097_p6, %p9094_p5 }
 0x9bd   :  { %9102 = shalt.err (!%p9099_p7)
}
 0x9be   :  { %s9106_s5 = smov 64   ;;  %s9107_s25 = smov 4  }
 0x9bf   :  { %7043 = dma.vmem_to_hbm [thread:$0]  %s7038_s18, 4096, %s13759_s11, [#allocation3], %s9106_s5, %s9106_s5, %s9107_s25  }
 0x9c0   :  { %9103 = dma.done.wait [#allocation3], 4096  }
 0x9c1   :  { %9104 = vsyncadd [#allocation3], 4294963200 }
 0x9c2   :  { %7047 = vsyncpa [#allocation3], 1 }

</bundles_post_ra>
